<compile_context>
chip_gen: v7x
topology: tpu7x:2x2x1
jax: 0.10.0
libtpu: 0.0.40
codegen_flags: <defaults>
</compile_context>

<pallas_src>
import jax
import jax.numpy as jnp
import numpy as np
from jax.experimental import pallas as pl
from jax.experimental.pallas import tpu as pltpu


# ----------------------------------------------------------------------------
# Helpers
# ----------------------------------------------------------------------------
def _conv_out(size, ksize, stride, pad):
    return (size + 2 * pad - ksize) // stride + 1


def _build_tap_selectors(hin, win, hout, wout, stride):
    """Per-tap 0/1 selectors g[t, s_out, s_in] for a 3x3 window, padding=1.

    Out-of-range taps leave the row all-zero (== zero padding for the convs,
    and equivalent to -inf padding for the maxpool since feat is post-ReLU).
    """
    g = np.zeros((9, hout * wout, hin * win), np.float32)
    for ki in range(3):
        for kj in range(3):
            t = ki * 3 + kj
            for oh in range(hout):
                ih = stride * oh + ki - 1
                if ih < 0 or ih >= hin:
                    continue
                for ow in range(wout):
                    iw = stride * ow + kj - 1
                    if iw < 0 or iw >= win:
                        continue
                    g[t, oh * wout + ow, ih * win + iw] = 1.0
    return g


def _selector_cat(g):
    """vstack_t(G_t^T): (9*S_in, S_out), bf16 (0/1 exact)."""
    n_t, s_out, s_in = g.shape
    return jnp.asarray(g.transpose(0, 2, 1).reshape(n_t * s_in, s_out),
                       jnp.bfloat16)


def _selector_pool(g):
    """hstack_t(G_t^T): (S_in, 9*S_out), bf16 (0/1 exact)."""
    n_t, s_out, s_in = g.shape
    return jnp.asarray(g.transpose(2, 0, 1).reshape(s_in, n_t * s_out),
                       jnp.bfloat16)


# ----------------------------------------------------------------------------
# Fused Pallas kernel: nb images per grid step, all activations stay in VMEM.
# Activation layout everywhere: (channels, spatial)  == NCHW-native.
# ----------------------------------------------------------------------------
def _stem_fused_kernel(x_ref, g1_ref, g2c_ref, g2p_ref, g3_ref,
                       w1_ref, b1_ref, wl0_ref, bl0_ref,
                       wl1_ref, bl1_ref, wf_ref, bf_ref, o_ref):
    f32, bf16 = jnp.float32, jnp.bfloat16
    nb = x_ref.shape[0]
    s2 = o_ref.shape[2]

    def conv3x3(act, w_stk_ref, g_cat_ref, b_ref):
        """3x3 conv (+folded BN bias + ReLU): act (Cin, S_in) -> (OC, S_out).

        Two MXU calls: small weight-mix matmul, then one deep (K = 9*S_in)
        gather matmul -- the per-tap structure is fully fused.
        """
        oc = b_ref.shape[0]
        a = jnp.dot(w_stk_ref[...], act.astype(bf16),
                    preferred_element_type=f32).astype(bf16)      # (9*OC, S_in)
        a_cat = jnp.concatenate(
            [a[t * oc:(t + 1) * oc, :] for t in range(9)], axis=1)  # (OC, 9*S_in)
        y = jnp.dot(a_cat, g_cat_ref[...], preferred_element_type=f32)
        return jnp.maximum(y + b_ref[...], 0.0)                    # (OC, S_out)

    for i in range(nb):                                            # static unroll
        xt = x_ref[i]                                              # (Cin, H*W) bf16

        # conv: 3x3 s2, Cin -> 16 (BN folded, ReLU)
        feat = conv3x3(xt, w1_ref, g1_ref, b1_ref)                 # (16, S1)
        featb = feat.astype(bf16)

        # left[0]: 1x1 conv 16 -> 8
        left = jnp.maximum(
            jnp.dot(wl0_ref[...], featb, preferred_element_type=f32)
            + bl0_ref[...], 0.0)                                   # (8, S1)

        # left[1]: 3x3 s2 conv 8 -> 16
        left = conv3x3(left, wl1_ref, g2c_ref, bl1_ref)            # (16, S2)

        # right: MaxPool2d(3, stride=2, pad=1): one gather matmul, max on VPU.
        # Zero selector columns emulate the padding; valid because feat >= 0.
        pool = jnp.dot(featb, g2p_ref[...],
                       preferred_element_type=f32)                 # (16, 9*S2)
        right = pool[:, 0:s2]
        for t in range(1, 9):
            right = jnp.maximum(right, pool[:, t * s2:(t + 1) * s2])  # (16, S2)

        # fuse: 3x3 s1 conv on cat([left, right], channels) -> 16
        fused = jnp.concatenate([left, right], axis=0)             # (32, S2)
        out = conv3x3(fused, wf_ref, g3_ref, bf_ref)               # (16, S2)

        o_ref[i] = out.astype(o_ref.dtype)


# ----------------------------------------------------------------------------
# Parameters (deterministic synthetic init; BN folded into conv, eval mode)
# ----------------------------------------------------------------------------
def make_conv_bn_params(key, in_c, out_c, ksize, eps=1e-5):
    k1, k2, k3, k4, k5 = jax.random.split(key, 5)
    w = 0.1 * jax.random.normal(k1, (out_c, in_c, ksize, ksize), jnp.float32)
    gamma = 1.0 + 0.1 * jax.random.normal(k2, (out_c,), jnp.float32)
    beta = 0.1 * jax.random.normal(k3, (out_c,), jnp.float32)
    mean = 0.1 * jax.random.normal(k4, (out_c,), jnp.float32)
    var = 1.0 + 0.1 * jax.random.uniform(k5, (out_c,), jnp.float32)
    scale = gamma / jnp.sqrt(var + eps)
    w_folded = w * scale[:, None, None, None]                 # (OC, IC, KH, KW)
    b_folded = beta - mean * scale                            # (OC,)
    # Stacked per-tap matrices: rows t*OC + oc with t = ki*3 + kj (matches the
    # selector tap order); bf16 MXU operands.
    w_stk = jnp.transpose(w_folded, (2, 3, 0, 1)).reshape(
        ksize * ksize * out_c, in_c)
    return {"w_stk": w_stk.astype(jnp.bfloat16),
            "b": b_folded.reshape(out_c, 1),                  # (OC, 1) f32
            "w_nchw": w_folded, "b_flat": b_folded}


# ----------------------------------------------------------------------------
# StemBlock_pc forward (single fused Pallas call; NCHW in, NCHW out)
# ----------------------------------------------------------------------------
def stem_block_pc_forward(x_nchw, params, *, batch_block=4):
    N, C, H, W = x_nchw.shape
    H2, W2 = _conv_out(H, 3, 2, 1), _conv_out(W, 3, 2, 1)
    H4, W4 = _conv_out(H2, 3, 2, 1), _conv_out(W2, 3, 2, 1)
    S0, S1, S2 = H * W, H2 * W2, H4 * W4
    OC = params["fuse"]["b"].shape[0]

    # NCHW is already channels-on-sublanes / spatial-on-lanes: reshape only.
    x = x_nchw.reshape(N, C, S0).astype(jnp.bfloat16)

    # Images per grid step (amortize per-step pipeline overhead).
    nb = min(batch_block, N)
    while N % nb:
        nb -= 1

    g1_np = _build_tap_selectors(H, W, H2, W2, 2)     # conv           (s=2)
    g2_np = _build_tap_selectors(H2, W2, H4, W4, 2)   # left[1] / pool (s=2)
    g3_np = _build_tap_selectors(H4, W4, H4, W4, 1)   # fuse           (s=1)
    g1c, g2c = _selector_cat(g1_np), _selector_cat(g2_np)
    g2p, g3c = _selector_pool(g2_np), _selector_cat(g3_np)

    consts = (g1c, g2c, g2p, g3c,
              params["conv"]["w_stk"], params["conv"]["b"],
              params["left0"]["w_stk"], params["left0"]["b"],
              params["left1"]["w_stk"], params["left1"]["b"],
              params["fuse"]["w_stk"], params["fuse"]["b"])

    def _const_spec(a):
        return pl.BlockSpec(a.shape, lambda n: (0, 0))

    # Advisory cost estimate (per image: 2 MXU calls per conv stage + pool gather).
    flops_img = 2 * (9 * 16 * C * S0 + 16 * 9 * S0 * S1        # conv
                     + 8 * 16 * S1                             # left[0]
                     + 9 * 16 * 8 * S1 + 16 * 9 * S1 * S2      # left[1]
                     + 16 * S1 * 9 * S2                        # maxpool gather
                     + 9 * 16 * 32 * S2 + 16 * 9 * S2 * S2)    # fuse
    bytes_accessed = (x.size * x.dtype.itemsize
                      + N * OC * S2 * 4
                      + sum(a.size * a.dtype.itemsize for a in consts))

    out = pl.pallas_call(
        _stem_fused_kernel,
        out_shape=jax.ShapeDtypeStruct((N, OC, S2), jnp.float32),
        grid=(N // nb,),
        in_specs=[pl.BlockSpec((nb, C, S0), lambda n: (n, 0, 0))]
                 + [_const_spec(a) for a in consts],
        out_specs=pl.BlockSpec((nb, OC, S2), lambda n: (n, 0, 0)),
        compiler_params=pltpu.CompilerParams(
            dimension_semantics=("parallel",)),
        cost_estimate=pl.CostEstimate(flops=int(N * flops_img),
                                      transcendentals=0,
                                      bytes_accessed=int(bytes_accessed)),
    )(x, *consts)

    return out.reshape(N, OC, H4, W4)                 # already NCHW layout


# ----------------------------------------------------------------------------
# Pure-JAX f32 reference (correctness check only)
# ----------------------------------------------------------------------------
def _ref_conv_bn_relu(x, w_nchw, b, stride, pad):
    w_hwio = jnp.transpose(w_nchw, (2, 3, 1, 0))
    y = jax.lax.conv_general_dilated(
        x, w_hwio, (stride, stride), [(pad, pad), (pad, pad)],
        dimension_numbers=("NHWC", "HWIO", "NHWC"))
    return jnp.maximum(y + b, 0.0)


def stem_block_pc_ref(x_nchw, params):
    x = jnp.transpose(x_nchw, (0, 2, 3, 1))
    feat = _ref_conv_bn_relu(x, params["conv"]["w_nchw"],
                             params["conv"]["b_flat"], 2, 1)
    left = _ref_conv_bn_relu(feat, params["left0"]["w_nchw"],
                             params["left0"]["b_flat"], 1, 0)
    left = _ref_conv_bn_relu(left, params["left1"]["w_nchw"],
                             params["left1"]["b_flat"], 2, 1)
    right = jax.lax.reduce_window(
        feat, -jnp.inf, jax.lax.max, (1, 3, 3, 1), (1, 2, 2, 1),
        [(0, 0), (1, 1), (1, 1), (0, 0)])
    fused = jnp.concatenate([left, right], axis=-1)
    out = _ref_conv_bn_relu(fused, params["fuse"]["w_nchw"],
                            params["fuse"]["b_flat"], 1, 1)
    return jnp.transpose(out, (0, 3, 1, 2))


# ----------------------------------------------------------------------------
if __name__ == "__main__":
    key = jax.random.PRNGKey(0)
    kx, kp = jax.random.split(key)
    N, C, H, W = 4, 5, 16, 16                 # in_c=5 per StemBlock_pc.__init__
    x = jax.random.normal(kx, (N, C, H, W), jnp.float32)

    kc, kl0, kl1, kf = jax.random.split(kp, 4)
    params = {
        "conv":  make_conv_bn_params(kc,  5, 16, 3),
        "left0": make_conv_bn_params(kl0, 16, 8, 1),
        "left1": make_conv_bn_params(kl1, 8, 16, 3),
        "fuse":  make_conv_bn_params(kf,  32, 16, 3),
    }

    fwd = jax.jit(stem_block_pc_forward)
    out = jax.block_until_ready(fwd(x, params))
    assert out.shape == (N, 16, H // 4, W // 4)

    ref = jax.block_until_ready(stem_block_pc_ref(x, params))
    # bf16 MXU operands / f32 accumulation vs an f32 reference -> loosened tol.
    np.testing.assert_allclose(np.asarray(out), np.asarray(ref),
                               rtol=5e-2, atol=5e-2)

    print("KERNEL_OK")
</pallas_src>

<mosaic_0001>
module attributes {stable_mosaic.version = 11 : i64} {
  func.func @_stem_fused_kernel(%arg0: i32, %arg1: memref<4x5x256xbf16, #tpu.memory_space<vmem>>, %arg2: memref<2304x64xbf16, #tpu.memory_space<vmem>>, %arg3: memref<576x16xbf16, #tpu.memory_space<vmem>>, %arg4: memref<64x144xbf16, #tpu.memory_space<vmem>>, %arg5: memref<144x16xbf16, #tpu.memory_space<vmem>>, %arg6: memref<144x5xbf16, #tpu.memory_space<vmem>>, %arg7: memref<16x1xf32, #tpu.memory_space<vmem>>, %arg8: memref<8x16xbf16, #tpu.memory_space<vmem>>, %arg9: memref<8x1xf32, #tpu.memory_space<vmem>>, %arg10: memref<144x8xbf16, #tpu.memory_space<vmem>>, %arg11: memref<16x1xf32, #tpu.memory_space<vmem>>, %arg12: memref<144x32xbf16, #tpu.memory_space<vmem>>, %arg13: memref<16x1xf32, #tpu.memory_space<vmem>>, %arg14: memref<4x16x16xf32, #tpu.memory_space<vmem>>) attributes {dimension_semantics = [#tpu.dimension_semantics<parallel>], iteration_bounds = array<i64: 1>, scalar_prefetch = 0 : i64, scratch_operands = 0 : i64, tpu.core_type = #tpu.core_type<tc>, window_params = [{transform_indices = @transform_0, window_bounds = array<i64: 4, 5, 256>}, {pipeline_mode = #tpu.pipeline_mode<synchronous>, transform_indices = @transform_1, window_bounds = array<i64: 2304, 64>}, {pipeline_mode = #tpu.pipeline_mode<synchronous>, transform_indices = @transform_2, window_bounds = array<i64: 576, 16>}, {pipeline_mode = #tpu.pipeline_mode<synchronous>, transform_indices = @transform_3, window_bounds = array<i64: 64, 144>}, {pipeline_mode = #tpu.pipeline_mode<synchronous>, transform_indices = @transform_4, window_bounds = array<i64: 144, 16>}, {pipeline_mode = #tpu.pipeline_mode<synchronous>, transform_indices = @transform_5, window_bounds = array<i64: 144, 5>}, {pipeline_mode = #tpu.pipeline_mode<synchronous>, transform_indices = @transform_6, window_bounds = array<i64: 16, 1>}, {pipeline_mode = #tpu.pipeline_mode<synchronous>, transform_indices = @transform_7, window_bounds = array<i64: 8, 16>}, {pipeline_mode = #tpu.pipeline_mode<synchronous>, transform_indices = @transform_8, window_bounds = array<i64: 8, 1>}, {pipeline_mode = #tpu.pipeline_mode<synchronous>, transform_indices = @transform_9, window_bounds = array<i64: 144, 8>}, {pipeline_mode = #tpu.pipeline_mode<synchronous>, transform_indices = @transform_10, window_bounds = array<i64: 16, 1>}, {pipeline_mode = #tpu.pipeline_mode<synchronous>, transform_indices = @transform_11, window_bounds = array<i64: 144, 32>}, {pipeline_mode = #tpu.pipeline_mode<synchronous>, transform_indices = @transform_12, window_bounds = array<i64: 16, 1>}, {transform_indices = @transform_13, window_bounds = array<i64: 4, 16, 16>}]} {
    %c0 = arith.constant 0 : index
    %c0_0 = arith.constant 0 : index
    %c0_1 = arith.constant 0 : index
    %0 = vector.load %arg1[%c0, %c0_0, %c0_1] : memref<4x5x256xbf16, #tpu.memory_space<vmem>>, vector<1x5x256xbf16>
    %1 = vector.shape_cast %0 : vector<1x5x256xbf16> to vector<5x256xbf16>
    %c0_2 = arith.constant 0 : index
    %c0_3 = arith.constant 0 : index
    %2 = vector.load %arg6[%c0_2, %c0_3] : memref<144x5xbf16, #tpu.memory_space<vmem>>, vector<144x5xbf16>
    %cst = arith.constant dense<0.000000e+00> : vector<144x256xf32>
    %3 = tpu.matmul %2, %1, %cst {dimension_numbers = #tpu.dot_dimension_numbers<[1], [0], [0], [1], [0, 0, 1, 1], [], []>} : vector<144x5xbf16>, vector<5x256xbf16>, vector<144x256xf32> -> vector<144x256xf32>
    %4 = arith.truncf %3 : vector<144x256xf32> to vector<144x256xbf16>
    %5 = vector.extract_strided_slice %4 {offsets = [0, 0], sizes = [16, 256], strides = [1, 1]} : vector<144x256xbf16> to vector<16x256xbf16>
    %6 = vector.extract_strided_slice %4 {offsets = [16, 0], sizes = [16, 256], strides = [1, 1]} : vector<144x256xbf16> to vector<16x256xbf16>
    %7 = vector.extract_strided_slice %4 {offsets = [32, 0], sizes = [16, 256], strides = [1, 1]} : vector<144x256xbf16> to vector<16x256xbf16>
    %8 = vector.extract_strided_slice %4 {offsets = [48, 0], sizes = [16, 256], strides = [1, 1]} : vector<144x256xbf16> to vector<16x256xbf16>
    %9 = vector.extract_strided_slice %4 {offsets = [64, 0], sizes = [16, 256], strides = [1, 1]} : vector<144x256xbf16> to vector<16x256xbf16>
    %10 = vector.extract_strided_slice %4 {offsets = [80, 0], sizes = [16, 256], strides = [1, 1]} : vector<144x256xbf16> to vector<16x256xbf16>
    %11 = vector.extract_strided_slice %4 {offsets = [96, 0], sizes = [16, 256], strides = [1, 1]} : vector<144x256xbf16> to vector<16x256xbf16>
    %12 = vector.extract_strided_slice %4 {offsets = [112, 0], sizes = [16, 256], strides = [1, 1]} : vector<144x256xbf16> to vector<16x256xbf16>
    %13 = vector.extract_strided_slice %4 {offsets = [128, 0], sizes = [16, 256], strides = [1, 1]} : vector<144x256xbf16> to vector<16x256xbf16>
    %14 = tpu.concatenate %5, %6, %7, %8, %9, %10, %11, %12, %13 in 1 : vector<16x256xbf16>, vector<16x256xbf16>, vector<16x256xbf16>, vector<16x256xbf16>, vector<16x256xbf16>, vector<16x256xbf16>, vector<16x256xbf16>, vector<16x256xbf16>, vector<16x256xbf16> -> vector<16x2304xbf16>
    %c0_4 = arith.constant 0 : index
    %c0_5 = arith.constant 0 : index
    %15 = vector.load %arg2[%c0_4, %c0_5] : memref<2304x64xbf16, #tpu.memory_space<vmem>>, vector<2304x64xbf16>
    %cst_6 = arith.constant dense<0.000000e+00> : vector<16x64xf32>
    %16 = tpu.matmul %14, %15, %cst_6 {dimension_numbers = #tpu.dot_dimension_numbers<[1], [0], [0], [1], [0, 0, 1, 1], [], []>} : vector<16x2304xbf16>, vector<2304x64xbf16>, vector<16x64xf32> -> vector<16x64xf32>
    %c0_7 = arith.constant 0 : index
    %c0_8 = arith.constant 0 : index
    %17 = vector.load %arg7[%c0_7, %c0_8] : memref<16x1xf32, #tpu.memory_space<vmem>>, vector<16x1xf32>
    %18 = vector.broadcast %17 : vector<16x1xf32> to vector<16x64xf32>
    %19 = arith.addf %16, %18 : vector<16x64xf32>
    %cst_9 = arith.constant 0.000000e+00 : f32
    %20 = vector.broadcast %cst_9 : f32 to vector<16x64xf32>
    %21 = arith.maximumf %19, %20 : vector<16x64xf32>
    %22 = arith.truncf %21 : vector<16x64xf32> to vector<16x64xbf16>
    %c0_10 = arith.constant 0 : index
    %c0_11 = arith.constant 0 : index
    %23 = vector.load %arg8[%c0_10, %c0_11] : memref<8x16xbf16, #tpu.memory_space<vmem>>, vector<8x16xbf16>
    %cst_12 = arith.constant dense<0.000000e+00> : vector<8x64xf32>
    %24 = tpu.matmul %23, %22, %cst_12 {dimension_numbers = #tpu.dot_dimension_numbers<[1], [0], [0], [1], [0, 0, 1, 1], [], []>} : vector<8x16xbf16>, vector<16x64xbf16>, vector<8x64xf32> -> vector<8x64xf32>
    %c0_13 = arith.constant 0 : index
    %c0_14 = arith.constant 0 : index
    %25 = vector.load %arg9[%c0_13, %c0_14] : memref<8x1xf32, #tpu.memory_space<vmem>>, vector<8x1xf32>
    %26 = vector.broadcast %25 : vector<8x1xf32> to vector<8x64xf32>
    %27 = arith.addf %24, %26 : vector<8x64xf32>
    %cst_15 = arith.constant 0.000000e+00 : f32
    %28 = vector.broadcast %cst_15 : f32 to vector<8x64xf32>
    %29 = arith.maximumf %27, %28 : vector<8x64xf32>
    %c0_16 = arith.constant 0 : index
    %c0_17 = arith.constant 0 : index
    %30 = vector.load %arg10[%c0_16, %c0_17] : memref<144x8xbf16, #tpu.memory_space<vmem>>, vector<144x8xbf16>
    %31 = arith.truncf %29 : vector<8x64xf32> to vector<8x64xbf16>
    %cst_18 = arith.constant dense<0.000000e+00> : vector<144x64xf32>
    %32 = tpu.matmul %30, %31, %cst_18 {dimension_numbers = #tpu.dot_dimension_numbers<[1], [0], [0], [1], [0, 0, 1, 1], [], []>} : vector<144x8xbf16>, vector<8x64xbf16>, vector<144x64xf32> -> vector<144x64xf32>
    %33 = arith.truncf %32 : vector<144x64xf32> to vector<144x64xbf16>
    %34 = vector.extract_strided_slice %33 {offsets = [0, 0], sizes = [16, 64], strides = [1, 1]} : vector<144x64xbf16> to vector<16x64xbf16>
    %35 = vector.extract_strided_slice %33 {offsets = [16, 0], sizes = [16, 64], strides = [1, 1]} : vector<144x64xbf16> to vector<16x64xbf16>
    %36 = vector.extract_strided_slice %33 {offsets = [32, 0], sizes = [16, 64], strides = [1, 1]} : vector<144x64xbf16> to vector<16x64xbf16>
    %37 = vector.extract_strided_slice %33 {offsets = [48, 0], sizes = [16, 64], strides = [1, 1]} : vector<144x64xbf16> to vector<16x64xbf16>
    %38 = vector.extract_strided_slice %33 {offsets = [64, 0], sizes = [16, 64], strides = [1, 1]} : vector<144x64xbf16> to vector<16x64xbf16>
    %39 = vector.extract_strided_slice %33 {offsets = [80, 0], sizes = [16, 64], strides = [1, 1]} : vector<144x64xbf16> to vector<16x64xbf16>
    %40 = vector.extract_strided_slice %33 {offsets = [96, 0], sizes = [16, 64], strides = [1, 1]} : vector<144x64xbf16> to vector<16x64xbf16>
    %41 = vector.extract_strided_slice %33 {offsets = [112, 0], sizes = [16, 64], strides = [1, 1]} : vector<144x64xbf16> to vector<16x64xbf16>
    %42 = vector.extract_strided_slice %33 {offsets = [128, 0], sizes = [16, 64], strides = [1, 1]} : vector<144x64xbf16> to vector<16x64xbf16>
    %43 = tpu.concatenate %34, %35, %36, %37, %38, %39, %40, %41, %42 in 1 : vector<16x64xbf16>, vector<16x64xbf16>, vector<16x64xbf16>, vector<16x64xbf16>, vector<16x64xbf16>, vector<16x64xbf16>, vector<16x64xbf16>, vector<16x64xbf16>, vector<16x64xbf16> -> vector<16x576xbf16>
    %c0_19 = arith.constant 0 : index
    %c0_20 = arith.constant 0 : index
    %44 = vector.load %arg3[%c0_19, %c0_20] : memref<576x16xbf16, #tpu.memory_space<vmem>>, vector<576x16xbf16>
    %cst_21 = arith.constant dense<0.000000e+00> : vector<16x16xf32>
    %45 = tpu.matmul %43, %44, %cst_21 {dimension_numbers = #tpu.dot_dimension_numbers<[1], [0], [0], [1], [0, 0, 1, 1], [], []>} : vector<16x576xbf16>, vector<576x16xbf16>, vector<16x16xf32> -> vector<16x16xf32>
    %c0_22 = arith.constant 0 : index
    %c0_23 = arith.constant 0 : index
    %46 = vector.load %arg11[%c0_22, %c0_23] : memref<16x1xf32, #tpu.memory_space<vmem>>, vector<16x1xf32>
    %47 = vector.broadcast %46 : vector<16x1xf32> to vector<16x16xf32>
    %48 = arith.addf %45, %47 : vector<16x16xf32>
    %cst_24 = arith.constant 0.000000e+00 : f32
    %49 = vector.broadcast %cst_24 : f32 to vector<16x16xf32>
    %50 = arith.maximumf %48, %49 : vector<16x16xf32>
    %c0_25 = arith.constant 0 : index
    %c0_26 = arith.constant 0 : index
    %51 = vector.load %arg4[%c0_25, %c0_26] : memref<64x144xbf16, #tpu.memory_space<vmem>>, vector<64x144xbf16>
    %cst_27 = arith.constant dense<0.000000e+00> : vector<16x144xf32>
    %52 = tpu.matmul %22, %51, %cst_27 {dimension_numbers = #tpu.dot_dimension_numbers<[1], [0], [0], [1], [0, 0, 1, 1], [], []>} : vector<16x64xbf16>, vector<64x144xbf16>, vector<16x144xf32> -> vector<16x144xf32>
    %53 = vector.extract_strided_slice %52 {offsets = [0, 0], sizes = [16, 16], strides = [1, 1]} : vector<16x144xf32> to vector<16x16xf32>
    %54 = vector.extract_strided_slice %52 {offsets = [0, 16], sizes = [16, 16], strides = [1, 1]} : vector<16x144xf32> to vector<16x16xf32>
    %55 = arith.maximumf %53, %54 : vector<16x16xf32>
    %56 = vector.extract_strided_slice %52 {offsets = [0, 32], sizes = [16, 16], strides = [1, 1]} : vector<16x144xf32> to vector<16x16xf32>
    %57 = arith.maximumf %55, %56 : vector<16x16xf32>
    %58 = vector.extract_strided_slice %52 {offsets = [0, 48], sizes = [16, 16], strides = [1, 1]} : vector<16x144xf32> to vector<16x16xf32>
    %59 = arith.maximumf %57, %58 : vector<16x16xf32>
    %60 = vector.extract_strided_slice %52 {offsets = [0, 64], sizes = [16, 16], strides = [1, 1]} : vector<16x144xf32> to vector<16x16xf32>
    %61 = arith.maximumf %59, %60 : vector<16x16xf32>
    %62 = vector.extract_strided_slice %52 {offsets = [0, 80], sizes = [16, 16], strides = [1, 1]} : vector<16x144xf32> to vector<16x16xf32>
    %63 = arith.maximumf %61, %62 : vector<16x16xf32>
    %64 = vector.extract_strided_slice %52 {offsets = [0, 96], sizes = [16, 16], strides = [1, 1]} : vector<16x144xf32> to vector<16x16xf32>
    %65 = arith.maximumf %63, %64 : vector<16x16xf32>
    %66 = vector.extract_strided_slice %52 {offsets = [0, 112], sizes = [16, 16], strides = [1, 1]} : vector<16x144xf32> to vector<16x16xf32>
    %67 = arith.maximumf %65, %66 : vector<16x16xf32>
    %68 = vector.extract_strided_slice %52 {offsets = [0, 128], sizes = [16, 16], strides = [1, 1]} : vector<16x144xf32> to vector<16x16xf32>
    %69 = arith.maximumf %67, %68 : vector<16x16xf32>
    %70 = tpu.concatenate %50, %69 in 0 : vector<16x16xf32>, vector<16x16xf32> -> vector<32x16xf32>
    %c0_28 = arith.constant 0 : index
    %c0_29 = arith.constant 0 : index
    %71 = vector.load %arg12[%c0_28, %c0_29] : memref<144x32xbf16, #tpu.memory_space<vmem>>, vector<144x32xbf16>
    %72 = arith.truncf %70 : vector<32x16xf32> to vector<32x16xbf16>
    %cst_30 = arith.constant dense<0.000000e+00> : vector<144x16xf32>
    %73 = tpu.matmul %71, %72, %cst_30 {dimension_numbers = #tpu.dot_dimension_numbers<[1], [0], [0], [1], [0, 0, 1, 1], [], []>} : vector<144x32xbf16>, vector<32x16xbf16>, vector<144x16xf32> -> vector<144x16xf32>
    %74 = arith.truncf %73 : vector<144x16xf32> to vector<144x16xbf16>
    %75 = vector.extract_strided_slice %74 {offsets = [0, 0], sizes = [16, 16], strides = [1, 1]} : vector<144x16xbf16> to vector<16x16xbf16>
    %76 = vector.extract_strided_slice %74 {offsets = [16, 0], sizes = [16, 16], strides = [1, 1]} : vector<144x16xbf16> to vector<16x16xbf16>
    %77 = vector.extract_strided_slice %74 {offsets = [32, 0], sizes = [16, 16], strides = [1, 1]} : vector<144x16xbf16> to vector<16x16xbf16>
    %78 = vector.extract_strided_slice %74 {offsets = [48, 0], sizes = [16, 16], strides = [1, 1]} : vector<144x16xbf16> to vector<16x16xbf16>
    %79 = vector.extract_strided_slice %74 {offsets = [64, 0], sizes = [16, 16], strides = [1, 1]} : vector<144x16xbf16> to vector<16x16xbf16>
    %80 = vector.extract_strided_slice %74 {offsets = [80, 0], sizes = [16, 16], strides = [1, 1]} : vector<144x16xbf16> to vector<16x16xbf16>
    %81 = vector.extract_strided_slice %74 {offsets = [96, 0], sizes = [16, 16], strides = [1, 1]} : vector<144x16xbf16> to vector<16x16xbf16>
    %82 = vector.extract_strided_slice %74 {offsets = [112, 0], sizes = [16, 16], strides = [1, 1]} : vector<144x16xbf16> to vector<16x16xbf16>
    %83 = vector.extract_strided_slice %74 {offsets = [128, 0], sizes = [16, 16], strides = [1, 1]} : vector<144x16xbf16> to vector<16x16xbf16>
    %84 = tpu.concatenate %75, %76, %77, %78, %79, %80, %81, %82, %83 in 1 : vector<16x16xbf16>, vector<16x16xbf16>, vector<16x16xbf16>, vector<16x16xbf16>, vector<16x16xbf16>, vector<16x16xbf16>, vector<16x16xbf16>, vector<16x16xbf16>, vector<16x16xbf16> -> vector<16x144xbf16>
    %c0_31 = arith.constant 0 : index
    %c0_32 = arith.constant 0 : index
    %85 = vector.load %arg5[%c0_31, %c0_32] : memref<144x16xbf16, #tpu.memory_space<vmem>>, vector<144x16xbf16>
    %cst_33 = arith.constant dense<0.000000e+00> : vector<16x16xf32>
    %86 = tpu.matmul %84, %85, %cst_33 {dimension_numbers = #tpu.dot_dimension_numbers<[1], [0], [0], [1], [0, 0, 1, 1], [], []>} : vector<16x144xbf16>, vector<144x16xbf16>, vector<16x16xf32> -> vector<16x16xf32>
    %c0_34 = arith.constant 0 : index
    %c0_35 = arith.constant 0 : index
    %87 = vector.load %arg13[%c0_34, %c0_35] : memref<16x1xf32, #tpu.memory_space<vmem>>, vector<16x1xf32>
    %88 = vector.broadcast %87 : vector<16x1xf32> to vector<16x16xf32>
    %89 = arith.addf %86, %88 : vector<16x16xf32>
    %cst_36 = arith.constant 0.000000e+00 : f32
    %90 = vector.broadcast %cst_36 : f32 to vector<16x16xf32>
    %91 = arith.maximumf %89, %90 : vector<16x16xf32>
    %c0_37 = arith.constant 0 : index
    %c0_38 = arith.constant 0 : index
    %c0_39 = arith.constant 0 : index
    %92 = vector.load %arg14[%c0_37, %c0_38, %c0_39] : memref<4x16x16xf32, #tpu.memory_space<vmem>>, vector<1x16x16xf32>
    %93 = vector.shape_cast %92 : vector<1x16x16xf32> to vector<16x16xf32>
    %94 = vector.shape_cast %91 : vector<16x16xf32> to vector<1x16x16xf32>
    tpu.vector_store %arg14[%c0_37, %c0_38, %c0_39], %94 {strides = array<i32>} : memref<4x16x16xf32, #tpu.memory_space<vmem>>, vector<1x16x16xf32>,
    %c1 = arith.constant 1 : index
    %c0_40 = arith.constant 0 : index
    %c0_41 = arith.constant 0 : index
    %95 = vector.load %arg1[%c1, %c0_40, %c0_41] : memref<4x5x256xbf16, #tpu.memory_space<vmem>>, vector<1x5x256xbf16>
    %96 = vector.shape_cast %95 : vector<1x5x256xbf16> to vector<5x256xbf16>
    %c0_42 = arith.constant 0 : index
    %c0_43 = arith.constant 0 : index
    %97 = vector.load %arg6[%c0_42, %c0_43] : memref<144x5xbf16, #tpu.memory_space<vmem>>, vector<144x5xbf16>
    %cst_44 = arith.constant dense<0.000000e+00> : vector<144x256xf32>
    %98 = tpu.matmul %97, %96, %cst_44 {dimension_numbers = #tpu.dot_dimension_numbers<[1], [0], [0], [1], [0, 0, 1, 1], [], []>} : vector<144x5xbf16>, vector<5x256xbf16>, vector<144x256xf32> -> vector<144x256xf32>
    %99 = arith.truncf %98 : vector<144x256xf32> to vector<144x256xbf16>
    %100 = vector.extract_strided_slice %99 {offsets = [0, 0], sizes = [16, 256], strides = [1, 1]} : vector<144x256xbf16> to vector<16x256xbf16>
    %101 = vector.extract_strided_slice %99 {offsets = [16, 0], sizes = [16, 256], strides = [1, 1]} : vector<144x256xbf16> to vector<16x256xbf16>
    %102 = vector.extract_strided_slice %99 {offsets = [32, 0], sizes = [16, 256], strides = [1, 1]} : vector<144x256xbf16> to vector<16x256xbf16>
    %103 = vector.extract_strided_slice %99 {offsets = [48, 0], sizes = [16, 256], strides = [1, 1]} : vector<144x256xbf16> to vector<16x256xbf16>
    %104 = vector.extract_strided_slice %99 {offsets = [64, 0], sizes = [16, 256], strides = [1, 1]} : vector<144x256xbf16> to vector<16x256xbf16>
    %105 = vector.extract_strided_slice %99 {offsets = [80, 0], sizes = [16, 256], strides = [1, 1]} : vector<144x256xbf16> to vector<16x256xbf16>
    %106 = vector.extract_strided_slice %99 {offsets = [96, 0], sizes = [16, 256], strides = [1, 1]} : vector<144x256xbf16> to vector<16x256xbf16>
    %107 = vector.extract_strided_slice %99 {offsets = [112, 0], sizes = [16, 256], strides = [1, 1]} : vector<144x256xbf16> to vector<16x256xbf16>
    %108 = vector.extract_strided_slice %99 {offsets = [128, 0], sizes = [16, 256], strides = [1, 1]} : vector<144x256xbf16> to vector<16x256xbf16>
    %109 = tpu.concatenate %100, %101, %102, %103, %104, %105, %106, %107, %108 in 1 : vector<16x256xbf16>, vector<16x256xbf16>, vector<16x256xbf16>, vector<16x256xbf16>, vector<16x256xbf16>, vector<16x256xbf16>, vector<16x256xbf16>, vector<16x256xbf16>, vector<16x256xbf16> -> vector<16x2304xbf16>
    %c0_45 = arith.constant 0 : index
    %c0_46 = arith.constant 0 : index
    %110 = vector.load %arg2[%c0_45, %c0_46] : memref<2304x64xbf16, #tpu.memory_space<vmem>>, vector<2304x64xbf16>
    %cst_47 = arith.constant dense<0.000000e+00> : vector<16x64xf32>
    %111 = tpu.matmul %109, %110, %cst_47 {dimension_numbers = #tpu.dot_dimension_numbers<[1], [0], [0], [1], [0, 0, 1, 1], [], []>} : vector<16x2304xbf16>, vector<2304x64xbf16>, vector<16x64xf32> -> vector<16x64xf32>
    %c0_48 = arith.constant 0 : index
    %c0_49 = arith.constant 0 : index
    %112 = vector.load %arg7[%c0_48, %c0_49] : memref<16x1xf32, #tpu.memory_space<vmem>>, vector<16x1xf32>
    %113 = vector.broadcast %112 : vector<16x1xf32> to vector<16x64xf32>
    %114 = arith.addf %111, %113 : vector<16x64xf32>
    %cst_50 = arith.constant 0.000000e+00 : f32
    %115 = vector.broadcast %cst_50 : f32 to vector<16x64xf32>
    %116 = arith.maximumf %114, %115 : vector<16x64xf32>
    %117 = arith.truncf %116 : vector<16x64xf32> to vector<16x64xbf16>
    %c0_51 = arith.constant 0 : index
    %c0_52 = arith.constant 0 : index
    %118 = vector.load %arg8[%c0_51, %c0_52] : memref<8x16xbf16, #tpu.memory_space<vmem>>, vector<8x16xbf16>
    %cst_53 = arith.constant dense<0.000000e+00> : vector<8x64xf32>
    %119 = tpu.matmul %118, %117, %cst_53 {dimension_numbers = #tpu.dot_dimension_numbers<[1], [0], [0], [1], [0, 0, 1, 1], [], []>} : vector<8x16xbf16>, vector<16x64xbf16>, vector<8x64xf32> -> vector<8x64xf32>
    %c0_54 = arith.constant 0 : index
    %c0_55 = arith.constant 0 : index
    %120 = vector.load %arg9[%c0_54, %c0_55] : memref<8x1xf32, #tpu.memory_space<vmem>>, vector<8x1xf32>
    %121 = vector.broadcast %120 : vector<8x1xf32> to vector<8x64xf32>
    %122 = arith.addf %119, %121 : vector<8x64xf32>
    %cst_56 = arith.constant 0.000000e+00 : f32
    %123 = vector.broadcast %cst_56 : f32 to vector<8x64xf32>
    %124 = arith.maximumf %122, %123 : vector<8x64xf32>
    %c0_57 = arith.constant 0 : index
    %c0_58 = arith.constant 0 : index
    %125 = vector.load %arg10[%c0_57, %c0_58] : memref<144x8xbf16, #tpu.memory_space<vmem>>, vector<144x8xbf16>
    %126 = arith.truncf %124 : vector<8x64xf32> to vector<8x64xbf16>
    %cst_59 = arith.constant dense<0.000000e+00> : vector<144x64xf32>
    %127 = tpu.matmul %125, %126, %cst_59 {dimension_numbers = #tpu.dot_dimension_numbers<[1], [0], [0], [1], [0, 0, 1, 1], [], []>} : vector<144x8xbf16>, vector<8x64xbf16>, vector<144x64xf32> -> vector<144x64xf32>
    %128 = arith.truncf %127 : vector<144x64xf32> to vector<144x64xbf16>
    %129 = vector.extract_strided_slice %128 {offsets = [0, 0], sizes = [16, 64], strides = [1, 1]} : vector<144x64xbf16> to vector<16x64xbf16>
    %130 = vector.extract_strided_slice %128 {offsets = [16, 0], sizes = [16, 64], strides = [1, 1]} : vector<144x64xbf16> to vector<16x64xbf16>
    %131 = vector.extract_strided_slice %128 {offsets = [32, 0], sizes = [16, 64], strides = [1, 1]} : vector<144x64xbf16> to vector<16x64xbf16>
    %132 = vector.extract_strided_slice %128 {offsets = [48, 0], sizes = [16, 64], strides = [1, 1]} : vector<144x64xbf16> to vector<16x64xbf16>
    %133 = vector.extract_strided_slice %128 {offsets = [64, 0], sizes = [16, 64], strides = [1, 1]} : vector<144x64xbf16> to vector<16x64xbf16>
    %134 = vector.extract_strided_slice %128 {offsets = [80, 0], sizes = [16, 64], strides = [1, 1]} : vector<144x64xbf16> to vector<16x64xbf16>
    %135 = vector.extract_strided_slice %128 {offsets = [96, 0], sizes = [16, 64], strides = [1, 1]} : vector<144x64xbf16> to vector<16x64xbf16>
    %136 = vector.extract_strided_slice %128 {offsets = [112, 0], sizes = [16, 64], strides = [1, 1]} : vector<144x64xbf16> to vector<16x64xbf16>
    %137 = vector.extract_strided_slice %128 {offsets = [128, 0], sizes = [16, 64], strides = [1, 1]} : vector<144x64xbf16> to vector<16x64xbf16>
    %138 = tpu.concatenate %129, %130, %131, %132, %133, %134, %135, %136, %137 in 1 : vector<16x64xbf16>, vector<16x64xbf16>, vector<16x64xbf16>, vector<16x64xbf16>, vector<16x64xbf16>, vector<16x64xbf16>, vector<16x64xbf16>, vector<16x64xbf16>, vector<16x64xbf16> -> vector<16x576xbf16>
    %c0_60 = arith.constant 0 : index
    %c0_61 = arith.constant 0 : index
    %139 = vector.load %arg3[%c0_60, %c0_61] : memref<576x16xbf16, #tpu.memory_space<vmem>>, vector<576x16xbf16>
    %cst_62 = arith.constant dense<0.000000e+00> : vector<16x16xf32>
    %140 = tpu.matmul %138, %139, %cst_62 {dimension_numbers = #tpu.dot_dimension_numbers<[1], [0], [0], [1], [0, 0, 1, 1], [], []>} : vector<16x576xbf16>, vector<576x16xbf16>, vector<16x16xf32> -> vector<16x16xf32>
    %c0_63 = arith.constant 0 : index
    %c0_64 = arith.constant 0 : index
    %141 = vector.load %arg11[%c0_63, %c0_64] : memref<16x1xf32, #tpu.memory_space<vmem>>, vector<16x1xf32>
    %142 = vector.broadcast %141 : vector<16x1xf32> to vector<16x16xf32>
    %143 = arith.addf %140, %142 : vector<16x16xf32>
    %cst_65 = arith.constant 0.000000e+00 : f32
    %144 = vector.broadcast %cst_65 : f32 to vector<16x16xf32>
    %145 = arith.maximumf %143, %144 : vector<16x16xf32>
    %c0_66 = arith.constant 0 : index
    %c0_67 = arith.constant 0 : index
    %146 = vector.load %arg4[%c0_66, %c0_67] : memref<64x144xbf16, #tpu.memory_space<vmem>>, vector<64x144xbf16>
    %cst_68 = arith.constant dense<0.000000e+00> : vector<16x144xf32>
    %147 = tpu.matmul %117, %146, %cst_68 {dimension_numbers = #tpu.dot_dimension_numbers<[1], [0], [0], [1], [0, 0, 1, 1], [], []>} : vector<16x64xbf16>, vector<64x144xbf16>, vector<16x144xf32> -> vector<16x144xf32>
    %148 = vector.extract_strided_slice %147 {offsets = [0, 0], sizes = [16, 16], strides = [1, 1]} : vector<16x144xf32> to vector<16x16xf32>
    %149 = vector.extract_strided_slice %147 {offsets = [0, 16], sizes = [16, 16], strides = [1, 1]} : vector<16x144xf32> to vector<16x16xf32>
    %150 = arith.maximumf %148, %149 : vector<16x16xf32>
    %151 = vector.extract_strided_slice %147 {offsets = [0, 32], sizes = [16, 16], strides = [1, 1]} : vector<16x144xf32> to vector<16x16xf32>
    %152 = arith.maximumf %150, %151 : vector<16x16xf32>
    %153 = vector.extract_strided_slice %147 {offsets = [0, 48], sizes = [16, 16], strides = [1, 1]} : vector<16x144xf32> to vector<16x16xf32>
    %154 = arith.maximumf %152, %153 : vector<16x16xf32>
    %155 = vector.extract_strided_slice %147 {offsets = [0, 64], sizes = [16, 16], strides = [1, 1]} : vector<16x144xf32> to vector<16x16xf32>
    %156 = arith.maximumf %154, %155 : vector<16x16xf32>
    %157 = vector.extract_strided_slice %147 {offsets = [0, 80], sizes = [16, 16], strides = [1, 1]} : vector<16x144xf32> to vector<16x16xf32>
    %158 = arith.maximumf %156, %157 : vector<16x16xf32>
    %159 = vector.extract_strided_slice %147 {offsets = [0, 96], sizes = [16, 16], strides = [1, 1]} : vector<16x144xf32> to vector<16x16xf32>
    %160 = arith.maximumf %158, %159 : vector<16x16xf32>
    %161 = vector.extract_strided_slice %147 {offsets = [0, 112], sizes = [16, 16], strides = [1, 1]} : vector<16x144xf32> to vector<16x16xf32>
    %162 = arith.maximumf %160, %161 : vector<16x16xf32>
    %163 = vector.extract_strided_slice %147 {offsets = [0, 128], sizes = [16, 16], strides = [1, 1]} : vector<16x144xf32> to vector<16x16xf32>
    %164 = arith.maximumf %162, %163 : vector<16x16xf32>
    %165 = tpu.concatenate %145, %164 in 0 : vector<16x16xf32>, vector<16x16xf32> -> vector<32x16xf32>
    %c0_69 = arith.constant 0 : index
    %c0_70 = arith.constant 0 : index
    %166 = vector.load %arg12[%c0_69, %c0_70] : memref<144x32xbf16, #tpu.memory_space<vmem>>, vector<144x32xbf16>
    %167 = arith.truncf %165 : vector<32x16xf32> to vector<32x16xbf16>
    %cst_71 = arith.constant dense<0.000000e+00> : vector<144x16xf32>
    %168 = tpu.matmul %166, %167, %cst_71 {dimension_numbers = #tpu.dot_dimension_numbers<[1], [0], [0], [1], [0, 0, 1, 1], [], []>} : vector<144x32xbf16>, vector<32x16xbf16>, vector<144x16xf32> -> vector<144x16xf32>
    %169 = arith.truncf %168 : vector<144x16xf32> to vector<144x16xbf16>
    %170 = vector.extract_strided_slice %169 {offsets = [0, 0], sizes = [16, 16], strides = [1, 1]} : vector<144x16xbf16> to vector<16x16xbf16>
    %171 = vector.extract_strided_slice %169 {offsets = [16, 0], sizes = [16, 16], strides = [1, 1]} : vector<144x16xbf16> to vector<16x16xbf16>
    %172 = vector.extract_strided_slice %169 {offsets = [32, 0], sizes = [16, 16], strides = [1, 1]} : vector<144x16xbf16> to vector<16x16xbf16>
    %173 = vector.extract_strided_slice %169 {offsets = [48, 0], sizes = [16, 16], strides = [1, 1]} : vector<144x16xbf16> to vector<16x16xbf16>
    %174 = vector.extract_strided_slice %169 {offsets = [64, 0], sizes = [16, 16], strides = [1, 1]} : vector<144x16xbf16> to vector<16x16xbf16>
    %175 = vector.extract_strided_slice %169 {offsets = [80, 0], sizes = [16, 16], strides = [1, 1]} : vector<144x16xbf16> to vector<16x16xbf16>
    %176 = vector.extract_strided_slice %169 {offsets = [96, 0], sizes = [16, 16], strides = [1, 1]} : vector<144x16xbf16> to vector<16x16xbf16>
    %177 = vector.extract_strided_slice %169 {offsets = [112, 0], sizes = [16, 16], strides = [1, 1]} : vector<144x16xbf16> to vector<16x16xbf16>
    %178 = vector.extract_strided_slice %169 {offsets = [128, 0], sizes = [16, 16], strides = [1, 1]} : vector<144x16xbf16> to vector<16x16xbf16>
    %179 = tpu.concatenate %170, %171, %172, %173, %174, %175, %176, %177, %178 in 1 : vector<16x16xbf16>, vector<16x16xbf16>, vector<16x16xbf16>, vector<16x16xbf16>, vector<16x16xbf16>, vector<16x16xbf16>, vector<16x16xbf16>, vector<16x16xbf16>, vector<16x16xbf16> -> vector<16x144xbf16>
    %c0_72 = arith.constant 0 : index
    %c0_73 = arith.constant 0 : index
    %180 = vector.load %arg5[%c0_72, %c0_73] : memref<144x16xbf16, #tpu.memory_space<vmem>>, vector<144x16xbf16>
    %cst_74 = arith.constant dense<0.000000e+00> : vector<16x16xf32>
    %181 = tpu.matmul %179, %180, %cst_74 {dimension_numbers = #tpu.dot_dimension_numbers<[1], [0], [0], [1], [0, 0, 1, 1], [], []>} : vector<16x144xbf16>, vector<144x16xbf16>, vector<16x16xf32> -> vector<16x16xf32>
    %c0_75 = arith.constant 0 : index
    %c0_76 = arith.constant 0 : index
    %182 = vector.load %arg13[%c0_75, %c0_76] : memref<16x1xf32, #tpu.memory_space<vmem>>, vector<16x1xf32>
    %183 = vector.broadcast %182 : vector<16x1xf32> to vector<16x16xf32>
    %184 = arith.addf %181, %183 : vector<16x16xf32>
    %cst_77 = arith.constant 0.000000e+00 : f32
    %185 = vector.broadcast %cst_77 : f32 to vector<16x16xf32>
    %186 = arith.maximumf %184, %185 : vector<16x16xf32>
    %c1_78 = arith.constant 1 : index
    %c0_79 = arith.constant 0 : index
    %c0_80 = arith.constant 0 : index
    %187 = vector.load %arg14[%c1_78, %c0_79, %c0_80] : memref<4x16x16xf32, #tpu.memory_space<vmem>>, vector<1x16x16xf32>
    %188 = vector.shape_cast %187 : vector<1x16x16xf32> to vector<16x16xf32>
    %189 = vector.shape_cast %186 : vector<16x16xf32> to vector<1x16x16xf32>
    tpu.vector_store %arg14[%c1_78, %c0_79, %c0_80], %189 {strides = array<i32>} : memref<4x16x16xf32, #tpu.memory_space<vmem>>, vector<1x16x16xf32>,
    %c2 = arith.constant 2 : index
    %c0_81 = arith.constant 0 : index
    %c0_82 = arith.constant 0 : index
    %190 = vector.load %arg1[%c2, %c0_81, %c0_82] : memref<4x5x256xbf16, #tpu.memory_space<vmem>>, vector<1x5x256xbf16>
    %191 = vector.shape_cast %190 : vector<1x5x256xbf16> to vector<5x256xbf16>
    %c0_83 = arith.constant 0 : index
    %c0_84 = arith.constant 0 : index
    %192 = vector.load %arg6[%c0_83, %c0_84] : memref<144x5xbf16, #tpu.memory_space<vmem>>, vector<144x5xbf16>
    %cst_85 = arith.constant dense<0.000000e+00> : vector<144x256xf32>
    %193 = tpu.matmul %192, %191, %cst_85 {dimension_numbers = #tpu.dot_dimension_numbers<[1], [0], [0], [1], [0, 0, 1, 1], [], []>} : vector<144x5xbf16>, vector<5x256xbf16>, vector<144x256xf32> -> vector<144x256xf32>
    %194 = arith.truncf %193 : vector<144x256xf32> to vector<144x256xbf16>
    %195 = vector.extract_strided_slice %194 {offsets = [0, 0], sizes = [16, 256], strides = [1, 1]} : vector<144x256xbf16> to vector<16x256xbf16>
    %196 = vector.extract_strided_slice %194 {offsets = [16, 0], sizes = [16, 256], strides = [1, 1]} : vector<144x256xbf16> to vector<16x256xbf16>
    %197 = vector.extract_strided_slice %194 {offsets = [32, 0], sizes = [16, 256], strides = [1, 1]} : vector<144x256xbf16> to vector<16x256xbf16>
    %198 = vector.extract_strided_slice %194 {offsets = [48, 0], sizes = [16, 256], strides = [1, 1]} : vector<144x256xbf16> to vector<16x256xbf16>
    %199 = vector.extract_strided_slice %194 {offsets = [64, 0], sizes = [16, 256], strides = [1, 1]} : vector<144x256xbf16> to vector<16x256xbf16>
    %200 = vector.extract_strided_slice %194 {offsets = [80, 0], sizes = [16, 256], strides = [1, 1]} : vector<144x256xbf16> to vector<16x256xbf16>
    %201 = vector.extract_strided_slice %194 {offsets = [96, 0], sizes = [16, 256], strides = [1, 1]} : vector<144x256xbf16> to vector<16x256xbf16>
    %202 = vector.extract_strided_slice %194 {offsets = [112, 0], sizes = [16, 256], strides = [1, 1]} : vector<144x256xbf16> to vector<16x256xbf16>
    %203 = vector.extract_strided_slice %194 {offsets = [128, 0], sizes = [16, 256], strides = [1, 1]} : vector<144x256xbf16> to vector<16x256xbf16>
    %204 = tpu.concatenate %195, %196, %197, %198, %199, %200, %201, %202, %203 in 1 : vector<16x256xbf16>, vector<16x256xbf16>, vector<16x256xbf16>, vector<16x256xbf16>, vector<16x256xbf16>, vector<16x256xbf16>, vector<16x256xbf16>, vector<16x256xbf16>, vector<16x256xbf16> -> vector<16x2304xbf16>
    %c0_86 = arith.constant 0 : index
    %c0_87 = arith.constant 0 : index
    %205 = vector.load %arg2[%c0_86, %c0_87] : memref<2304x64xbf16, #tpu.memory_space<vmem>>, vector<2304x64xbf16>
    %cst_88 = arith.constant dense<0.000000e+00> : vector<16x64xf32>
    %206 = tpu.matmul %204, %205, %cst_88 {dimension_numbers = #tpu.dot_dimension_numbers<[1], [0], [0], [1], [0, 0, 1, 1], [], []>} : vector<16x2304xbf16>, vector<2304x64xbf16>, vector<16x64xf32> -> vector<16x64xf32>
    %c0_89 = arith.constant 0 : index
    %c0_90 = arith.constant 0 : index
    %207 = vector.load %arg7[%c0_89, %c0_90] : memref<16x1xf32, #tpu.memory_space<vmem>>, vector<16x1xf32>
    %208 = vector.broadcast %207 : vector<16x1xf32> to vector<16x64xf32>
    %209 = arith.addf %206, %208 : vector<16x64xf32>
    %cst_91 = arith.constant 0.000000e+00 : f32
    %210 = vector.broadcast %cst_91 : f32 to vector<16x64xf32>
    %211 = arith.maximumf %209, %210 : vector<16x64xf32>
    %212 = arith.truncf %211 : vector<16x64xf32> to vector<16x64xbf16>
    %c0_92 = arith.constant 0 : index
    %c0_93 = arith.constant 0 : index
    %213 = vector.load %arg8[%c0_92, %c0_93] : memref<8x16xbf16, #tpu.memory_space<vmem>>, vector<8x16xbf16>
    %cst_94 = arith.constant dense<0.000000e+00> : vector<8x64xf32>
    %214 = tpu.matmul %213, %212, %cst_94 {dimension_numbers = #tpu.dot_dimension_numbers<[1], [0], [0], [1], [0, 0, 1, 1], [], []>} : vector<8x16xbf16>, vector<16x64xbf16>, vector<8x64xf32> -> vector<8x64xf32>
    %c0_95 = arith.constant 0 : index
    %c0_96 = arith.constant 0 : index
    %215 = vector.load %arg9[%c0_95, %c0_96] : memref<8x1xf32, #tpu.memory_space<vmem>>, vector<8x1xf32>
    %216 = vector.broadcast %215 : vector<8x1xf32> to vector<8x64xf32>
    %217 = arith.addf %214, %216 : vector<8x64xf32>
    %cst_97 = arith.constant 0.000000e+00 : f32
    %218 = vector.broadcast %cst_97 : f32 to vector<8x64xf32>
    %219 = arith.maximumf %217, %218 : vector<8x64xf32>
    %c0_98 = arith.constant 0 : index
    %c0_99 = arith.constant 0 : index
    %220 = vector.load %arg10[%c0_98, %c0_99] : memref<144x8xbf16, #tpu.memory_space<vmem>>, vector<144x8xbf16>
    %221 = arith.truncf %219 : vector<8x64xf32> to vector<8x64xbf16>
    %cst_100 = arith.constant dense<0.000000e+00> : vector<144x64xf32>
    %222 = tpu.matmul %220, %221, %cst_100 {dimension_numbers = #tpu.dot_dimension_numbers<[1], [0], [0], [1], [0, 0, 1, 1], [], []>} : vector<144x8xbf16>, vector<8x64xbf16>, vector<144x64xf32> -> vector<144x64xf32>
    %223 = arith.truncf %222 : vector<144x64xf32> to vector<144x64xbf16>
    %224 = vector.extract_strided_slice %223 {offsets = [0, 0], sizes = [16, 64], strides = [1, 1]} : vector<144x64xbf16> to vector<16x64xbf16>
    %225 = vector.extract_strided_slice %223 {offsets = [16, 0], sizes = [16, 64], strides = [1, 1]} : vector<144x64xbf16> to vector<16x64xbf16>
    %226 = vector.extract_strided_slice %223 {offsets = [32, 0], sizes = [16, 64], strides = [1, 1]} : vector<144x64xbf16> to vector<16x64xbf16>
    %227 = vector.extract_strided_slice %223 {offsets = [48, 0], sizes = [16, 64], strides = [1, 1]} : vector<144x64xbf16> to vector<16x64xbf16>
    %228 = vector.extract_strided_slice %223 {offsets = [64, 0], sizes = [16, 64], strides = [1, 1]} : vector<144x64xbf16> to vector<16x64xbf16>
    %229 = vector.extract_strided_slice %223 {offsets = [80, 0], sizes = [16, 64], strides = [1, 1]} : vector<144x64xbf16> to vector<16x64xbf16>
    %230 = vector.extract_strided_slice %223 {offsets = [96, 0], sizes = [16, 64], strides = [1, 1]} : vector<144x64xbf16> to vector<16x64xbf16>
    %231 = vector.extract_strided_slice %223 {offsets = [112, 0], sizes = [16, 64], strides = [1, 1]} : vector<144x64xbf16> to vector<16x64xbf16>
    %232 = vector.extract_strided_slice %223 {offsets = [128, 0], sizes = [16, 64], strides = [1, 1]} : vector<144x64xbf16> to vector<16x64xbf16>
    %233 = tpu.concatenate %224, %225, %226, %227, %228, %229, %230, %231, %232 in 1 : vector<16x64xbf16>, vector<16x64xbf16>, vector<16x64xbf16>, vector<16x64xbf16>, vector<16x64xbf16>, vector<16x64xbf16>, vector<16x64xbf16>, vector<16x64xbf16>, vector<16x64xbf16> -> vector<16x576xbf16>
    %c0_101 = arith.constant 0 : index
    %c0_102 = arith.constant 0 : index
    %234 = vector.load %arg3[%c0_101, %c0_102] : memref<576x16xbf16, #tpu.memory_space<vmem>>, vector<576x16xbf16>
    %cst_103 = arith.constant dense<0.000000e+00> : vector<16x16xf32>
    %235 = tpu.matmul %233, %234, %cst_103 {dimension_numbers = #tpu.dot_dimension_numbers<[1], [0], [0], [1], [0, 0, 1, 1], [], []>} : vector<16x576xbf16>, vector<576x16xbf16>, vector<16x16xf32> -> vector<16x16xf32>
    %c0_104 = arith.constant 0 : index
    %c0_105 = arith.constant 0 : index
    %236 = vector.load %arg11[%c0_104, %c0_105] : memref<16x1xf32, #tpu.memory_space<vmem>>, vector<16x1xf32>
    %237 = vector.broadcast %236 : vector<16x1xf32> to vector<16x16xf32>
    %238 = arith.addf %235, %237 : vector<16x16xf32>
    %cst_106 = arith.constant 0.000000e+00 : f32
    %239 = vector.broadcast %cst_106 : f32 to vector<16x16xf32>
    %240 = arith.maximumf %238, %239 : vector<16x16xf32>
    %c0_107 = arith.constant 0 : index
    %c0_108 = arith.constant 0 : index
    %241 = vector.load %arg4[%c0_107, %c0_108] : memref<64x144xbf16, #tpu.memory_space<vmem>>, vector<64x144xbf16>
    %cst_109 = arith.constant dense<0.000000e+00> : vector<16x144xf32>
    %242 = tpu.matmul %212, %241, %cst_109 {dimension_numbers = #tpu.dot_dimension_numbers<[1], [0], [0], [1], [0, 0, 1, 1], [], []>} : vector<16x64xbf16>, vector<64x144xbf16>, vector<16x144xf32> -> vector<16x144xf32>
    %243 = vector.extract_strided_slice %242 {offsets = [0, 0], sizes = [16, 16], strides = [1, 1]} : vector<16x144xf32> to vector<16x16xf32>
    %244 = vector.extract_strided_slice %242 {offsets = [0, 16], sizes = [16, 16], strides = [1, 1]} : vector<16x144xf32> to vector<16x16xf32>
    %245 = arith.maximumf %243, %244 : vector<16x16xf32>
    %246 = vector.extract_strided_slice %242 {offsets = [0, 32], sizes = [16, 16], strides = [1, 1]} : vector<16x144xf32> to vector<16x16xf32>
    %247 = arith.maximumf %245, %246 : vector<16x16xf32>
    %248 = vector.extract_strided_slice %242 {offsets = [0, 48], sizes = [16, 16], strides = [1, 1]} : vector<16x144xf32> to vector<16x16xf32>
    %249 = arith.maximumf %247, %248 : vector<16x16xf32>
    %250 = vector.extract_strided_slice %242 {offsets = [0, 64], sizes = [16, 16], strides = [1, 1]} : vector<16x144xf32> to vector<16x16xf32>
    %251 = arith.maximumf %249, %250 : vector<16x16xf32>
    %252 = vector.extract_strided_slice %242 {offsets = [0, 80], sizes = [16, 16], strides = [1, 1]} : vector<16x144xf32> to vector<16x16xf32>
    %253 = arith.maximumf %251, %252 : vector<16x16xf32>
    %254 = vector.extract_strided_slice %242 {offsets = [0, 96], sizes = [16, 16], strides = [1, 1]} : vector<16x144xf32> to vector<16x16xf32>
    %255 = arith.maximumf %253, %254 : vector<16x16xf32>
    %256 = vector.extract_strided_slice %242 {offsets = [0, 112], sizes = [16, 16], strides = [1, 1]} : vector<16x144xf32> to vector<16x16xf32>
    %257 = arith.maximumf %255, %256 : vector<16x16xf32>
    %258 = vector.extract_strided_slice %242 {offsets = [0, 128], sizes = [16, 16], strides = [1, 1]} : vector<16x144xf32> to vector<16x16xf32>
    %259 = arith.maximumf %257, %258 : vector<16x16xf32>
    %260 = tpu.concatenate %240, %259 in 0 : vector<16x16xf32>, vector<16x16xf32> -> vector<32x16xf32>
    %c0_110 = arith.constant 0 : index
    %c0_111 = arith.constant 0 : index
    %261 = vector.load %arg12[%c0_110, %c0_111] : memref<144x32xbf16, #tpu.memory_space<vmem>>, vector<144x32xbf16>
    %262 = arith.truncf %260 : vector<32x16xf32> to vector<32x16xbf16>
    %cst_112 = arith.constant dense<0.000000e+00> : vector<144x16xf32>
    %263 = tpu.matmul %261, %262, %cst_112 {dimension_numbers = #tpu.dot_dimension_numbers<[1], [0], [0], [1], [0, 0, 1, 1], [], []>} : vector<144x32xbf16>, vector<32x16xbf16>, vector<144x16xf32> -> vector<144x16xf32>
    %264 = arith.truncf %263 : vector<144x16xf32> to vector<144x16xbf16>
    %265 = vector.extract_strided_slice %264 {offsets = [0, 0], sizes = [16, 16], strides = [1, 1]} : vector<144x16xbf16> to vector<16x16xbf16>
    %266 = vector.extract_strided_slice %264 {offsets = [16, 0], sizes = [16, 16], strides = [1, 1]} : vector<144x16xbf16> to vector<16x16xbf16>
    %267 = vector.extract_strided_slice %264 {offsets = [32, 0], sizes = [16, 16], strides = [1, 1]} : vector<144x16xbf16> to vector<16x16xbf16>
    %268 = vector.extract_strided_slice %264 {offsets = [48, 0], sizes = [16, 16], strides = [1, 1]} : vector<144x16xbf16> to vector<16x16xbf16>
    %269 = vector.extract_strided_slice %264 {offsets = [64, 0], sizes = [16, 16], strides = [1, 1]} : vector<144x16xbf16> to vector<16x16xbf16>
    %270 = vector.extract_strided_slice %264 {offsets = [80, 0], sizes = [16, 16], strides = [1, 1]} : vector<144x16xbf16> to vector<16x16xbf16>
    %271 = vector.extract_strided_slice %264 {offsets = [96, 0], sizes = [16, 16], strides = [1, 1]} : vector<144x16xbf16> to vector<16x16xbf16>
    %272 = vector.extract_strided_slice %264 {offsets = [112, 0], sizes = [16, 16], strides = [1, 1]} : vector<144x16xbf16> to vector<16x16xbf16>
    %273 = vector.extract_strided_slice %264 {offsets = [128, 0], sizes = [16, 16], strides = [1, 1]} : vector<144x16xbf16> to vector<16x16xbf16>
    %274 = tpu.concatenate %265, %266, %267, %268, %269, %270, %271, %272, %273 in 1 : vector<16x16xbf16>, vector<16x16xbf16>, vector<16x16xbf16>, vector<16x16xbf16>, vector<16x16xbf16>, vector<16x16xbf16>, vector<16x16xbf16>, vector<16x16xbf16>, vector<16x16xbf16> -> vector<16x144xbf16>
    %c0_113 = arith.constant 0 : index
    %c0_114 = arith.constant 0 : index
    %275 = vector.load %arg5[%c0_113, %c0_114] : memref<144x16xbf16, #tpu.memory_space<vmem>>, vector<144x16xbf16>
    %cst_115 = arith.constant dense<0.000000e+00> : vector<16x16xf32>
    %276 = tpu.matmul %274, %275, %cst_115 {dimension_numbers = #tpu.dot_dimension_numbers<[1], [0], [0], [1], [0, 0, 1, 1], [], []>} : vector<16x144xbf16>, vector<144x16xbf16>, vector<16x16xf32> -> vector<16x16xf32>
    %c0_116 = arith.constant 0 : index
    %c0_117 = arith.constant 0 : index
    %277 = vector.load %arg13[%c0_116, %c0_117] : memref<16x1xf32, #tpu.memory_space<vmem>>, vector<16x1xf32>
    %278 = vector.broadcast %277 : vector<16x1xf32> to vector<16x16xf32>
    %279 = arith.addf %276, %278 : vector<16x16xf32>
    %cst_118 = arith.constant 0.000000e+00 : f32
    %280 = vector.broadcast %cst_118 : f32 to vector<16x16xf32>
    %281 = arith.maximumf %279, %280 : vector<16x16xf32>
    %c2_119 = arith.constant 2 : index
    %c0_120 = arith.constant 0 : index
    %c0_121 = arith.constant 0 : index
    %282 = vector.load %arg14[%c2_119, %c0_120, %c0_121] : memref<4x16x16xf32, #tpu.memory_space<vmem>>, vector<1x16x16xf32>
    %283 = vector.shape_cast %282 : vector<1x16x16xf32> to vector<16x16xf32>
    %284 = vector.shape_cast %281 : vector<16x16xf32> to vector<1x16x16xf32>
    tpu.vector_store %arg14[%c2_119, %c0_120, %c0_121], %284 {strides = array<i32>} : memref<4x16x16xf32, #tpu.memory_space<vmem>>, vector<1x16x16xf32>,
    %c3 = arith.constant 3 : index
    %c0_122 = arith.constant 0 : index
    %c0_123 = arith.constant 0 : index
    %285 = vector.load %arg1[%c3, %c0_122, %c0_123] : memref<4x5x256xbf16, #tpu.memory_space<vmem>>, vector<1x5x256xbf16>
    %286 = vector.shape_cast %285 : vector<1x5x256xbf16> to vector<5x256xbf16>
    %c0_124 = arith.constant 0 : index
    %c0_125 = arith.constant 0 : index
    %287 = vector.load %arg6[%c0_124, %c0_125] : memref<144x5xbf16, #tpu.memory_space<vmem>>, vector<144x5xbf16>
    %cst_126 = arith.constant dense<0.000000e+00> : vector<144x256xf32>
    %288 = tpu.matmul %287, %286, %cst_126 {dimension_numbers = #tpu.dot_dimension_numbers<[1], [0], [0], [1], [0, 0, 1, 1], [], []>} : vector<144x5xbf16>, vector<5x256xbf16>, vector<144x256xf32> -> vector<144x256xf32>
    %289 = arith.truncf %288 : vector<144x256xf32> to vector<144x256xbf16>
    %290 = vector.extract_strided_slice %289 {offsets = [0, 0], sizes = [16, 256], strides = [1, 1]} : vector<144x256xbf16> to vector<16x256xbf16>
    %291 = vector.extract_strided_slice %289 {offsets = [16, 0], sizes = [16, 256], strides = [1, 1]} : vector<144x256xbf16> to vector<16x256xbf16>
    %292 = vector.extract_strided_slice %289 {offsets = [32, 0], sizes = [16, 256], strides = [1, 1]} : vector<144x256xbf16> to vector<16x256xbf16>
    %293 = vector.extract_strided_slice %289 {offsets = [48, 0], sizes = [16, 256], strides = [1, 1]} : vector<144x256xbf16> to vector<16x256xbf16>
    %294 = vector.extract_strided_slice %289 {offsets = [64, 0], sizes = [16, 256], strides = [1, 1]} : vector<144x256xbf16> to vector<16x256xbf16>
    %295 = vector.extract_strided_slice %289 {offsets = [80, 0], sizes = [16, 256], strides = [1, 1]} : vector<144x256xbf16> to vector<16x256xbf16>
    %296 = vector.extract_strided_slice %289 {offsets = [96, 0], sizes = [16, 256], strides = [1, 1]} : vector<144x256xbf16> to vector<16x256xbf16>
    %297 = vector.extract_strided_slice %289 {offsets = [112, 0], sizes = [16, 256], strides = [1, 1]} : vector<144x256xbf16> to vector<16x256xbf16>
    %298 = vector.extract_strided_slice %289 {offsets = [128, 0], sizes = [16, 256], strides = [1, 1]} : vector<144x256xbf16> to vector<16x256xbf16>
    %299 = tpu.concatenate %290, %291, %292, %293, %294, %295, %296, %297, %298 in 1 : vector<16x256xbf16>, vector<16x256xbf16>, vector<16x256xbf16>, vector<16x256xbf16>, vector<16x256xbf16>, vector<16x256xbf16>, vector<16x256xbf16>, vector<16x256xbf16>, vector<16x256xbf16> -> vector<16x2304xbf16>
    %c0_127 = arith.constant 0 : index
    %c0_128 = arith.constant 0 : index
    %300 = vector.load %arg2[%c0_127, %c0_128] : memref<2304x64xbf16, #tpu.memory_space<vmem>>, vector<2304x64xbf16>
    %cst_129 = arith.constant dense<0.000000e+00> : vector<16x64xf32>
    %301 = tpu.matmul %299, %300, %cst_129 {dimension_numbers = #tpu.dot_dimension_numbers<[1], [0], [0], [1], [0, 0, 1, 1], [], []>} : vector<16x2304xbf16>, vector<2304x64xbf16>, vector<16x64xf32> -> vector<16x64xf32>
    %c0_130 = arith.constant 0 : index
    %c0_131 = arith.constant 0 : index
    %302 = vector.load %arg7[%c0_130, %c0_131] : memref<16x1xf32, #tpu.memory_space<vmem>>, vector<16x1xf32>
    %303 = vector.broadcast %302 : vector<16x1xf32> to vector<16x64xf32>
    %304 = arith.addf %301, %303 : vector<16x64xf32>
    %cst_132 = arith.constant 0.000000e+00 : f32
    %305 = vector.broadcast %cst_132 : f32 to vector<16x64xf32>
    %306 = arith.maximumf %304, %305 : vector<16x64xf32>
    %307 = arith.truncf %306 : vector<16x64xf32> to vector<16x64xbf16>
    %c0_133 = arith.constant 0 : index
    %c0_134 = arith.constant 0 : index
    %308 = vector.load %arg8[%c0_133, %c0_134] : memref<8x16xbf16, #tpu.memory_space<vmem>>, vector<8x16xbf16>
    %cst_135 = arith.constant dense<0.000000e+00> : vector<8x64xf32>
    %309 = tpu.matmul %308, %307, %cst_135 {dimension_numbers = #tpu.dot_dimension_numbers<[1], [0], [0], [1], [0, 0, 1, 1], [], []>} : vector<8x16xbf16>, vector<16x64xbf16>, vector<8x64xf32> -> vector<8x64xf32>
    %c0_136 = arith.constant 0 : index
    %c0_137 = arith.constant 0 : index
    %310 = vector.load %arg9[%c0_136, %c0_137] : memref<8x1xf32, #tpu.memory_space<vmem>>, vector<8x1xf32>
    %311 = vector.broadcast %310 : vector<8x1xf32> to vector<8x64xf32>
    %312 = arith.addf %309, %311 : vector<8x64xf32>
    %cst_138 = arith.constant 0.000000e+00 : f32
    %313 = vector.broadcast %cst_138 : f32 to vector<8x64xf32>
    %314 = arith.maximumf %312, %313 : vector<8x64xf32>
    %c0_139 = arith.constant 0 : index
    %c0_140 = arith.constant 0 : index
    %315 = vector.load %arg10[%c0_139, %c0_140] : memref<144x8xbf16, #tpu.memory_space<vmem>>, vector<144x8xbf16>
    %316 = arith.truncf %314 : vector<8x64xf32> to vector<8x64xbf16>
    %cst_141 = arith.constant dense<0.000000e+00> : vector<144x64xf32>
    %317 = tpu.matmul %315, %316, %cst_141 {dimension_numbers = #tpu.dot_dimension_numbers<[1], [0], [0], [1], [0, 0, 1, 1], [], []>} : vector<144x8xbf16>, vector<8x64xbf16>, vector<144x64xf32> -> vector<144x64xf32>
    %318 = arith.truncf %317 : vector<144x64xf32> to vector<144x64xbf16>
    %319 = vector.extract_strided_slice %318 {offsets = [0, 0], sizes = [16, 64], strides = [1, 1]} : vector<144x64xbf16> to vector<16x64xbf16>
    %320 = vector.extract_strided_slice %318 {offsets = [16, 0], sizes = [16, 64], strides = [1, 1]} : vector<144x64xbf16> to vector<16x64xbf16>
    %321 = vector.extract_strided_slice %318 {offsets = [32, 0], sizes = [16, 64], strides = [1, 1]} : vector<144x64xbf16> to vector<16x64xbf16>
    %322 = vector.extract_strided_slice %318 {offsets = [48, 0], sizes = [16, 64], strides = [1, 1]} : vector<144x64xbf16> to vector<16x64xbf16>
    %323 = vector.extract_strided_slice %318 {offsets = [64, 0], sizes = [16, 64], strides = [1, 1]} : vector<144x64xbf16> to vector<16x64xbf16>
    %324 = vector.extract_strided_slice %318 {offsets = [80, 0], sizes = [16, 64], strides = [1, 1]} : vector<144x64xbf16> to vector<16x64xbf16>
    %325 = vector.extract_strided_slice %318 {offsets = [96, 0], sizes = [16, 64], strides = [1, 1]} : vector<144x64xbf16> to vector<16x64xbf16>
    %326 = vector.extract_strided_slice %318 {offsets = [112, 0], sizes = [16, 64], strides = [1, 1]} : vector<144x64xbf16> to vector<16x64xbf16>
    %327 = vector.extract_strided_slice %318 {offsets = [128, 0], sizes = [16, 64], strides = [1, 1]} : vector<144x64xbf16> to vector<16x64xbf16>
    %328 = tpu.concatenate %319, %320, %321, %322, %323, %324, %325, %326, %327 in 1 : vector<16x64xbf16>, vector<16x64xbf16>, vector<16x64xbf16>, vector<16x64xbf16>, vector<16x64xbf16>, vector<16x64xbf16>, vector<16x64xbf16>, vector<16x64xbf16>, vector<16x64xbf16> -> vector<16x576xbf16>
    %c0_142 = arith.constant 0 : index
    %c0_143 = arith.constant 0 : index
    %329 = vector.load %arg3[%c0_142, %c0_143] : memref<576x16xbf16, #tpu.memory_space<vmem>>, vector<576x16xbf16>
    %cst_144 = arith.constant dense<0.000000e+00> : vector<16x16xf32>
    %330 = tpu.matmul %328, %329, %cst_144 {dimension_numbers = #tpu.dot_dimension_numbers<[1], [0], [0], [1], [0, 0, 1, 1], [], []>} : vector<16x576xbf16>, vector<576x16xbf16>, vector<16x16xf32> -> vector<16x16xf32>
    %c0_145 = arith.constant 0 : index
    %c0_146 = arith.constant 0 : index
    %331 = vector.load %arg11[%c0_145, %c0_146] : memref<16x1xf32, #tpu.memory_space<vmem>>, vector<16x1xf32>
    %332 = vector.broadcast %331 : vector<16x1xf32> to vector<16x16xf32>
    %333 = arith.addf %330, %332 : vector<16x16xf32>
    %cst_147 = arith.constant 0.000000e+00 : f32
    %334 = vector.broadcast %cst_147 : f32 to vector<16x16xf32>
    %335 = arith.maximumf %333, %334 : vector<16x16xf32>
    %c0_148 = arith.constant 0 : index
    %c0_149 = arith.constant 0 : index
    %336 = vector.load %arg4[%c0_148, %c0_149] : memref<64x144xbf16, #tpu.memory_space<vmem>>, vector<64x144xbf16>
    %cst_150 = arith.constant dense<0.000000e+00> : vector<16x144xf32>
    %337 = tpu.matmul %307, %336, %cst_150 {dimension_numbers = #tpu.dot_dimension_numbers<[1], [0], [0], [1], [0, 0, 1, 1], [], []>} : vector<16x64xbf16>, vector<64x144xbf16>, vector<16x144xf32> -> vector<16x144xf32>
    %338 = vector.extract_strided_slice %337 {offsets = [0, 0], sizes = [16, 16], strides = [1, 1]} : vector<16x144xf32> to vector<16x16xf32>
    %339 = vector.extract_strided_slice %337 {offsets = [0, 16], sizes = [16, 16], strides = [1, 1]} : vector<16x144xf32> to vector<16x16xf32>
    %340 = arith.maximumf %338, %339 : vector<16x16xf32>
    %341 = vector.extract_strided_slice %337 {offsets = [0, 32], sizes = [16, 16], strides = [1, 1]} : vector<16x144xf32> to vector<16x16xf32>
    %342 = arith.maximumf %340, %341 : vector<16x16xf32>
    %343 = vector.extract_strided_slice %337 {offsets = [0, 48], sizes = [16, 16], strides = [1, 1]} : vector<16x144xf32> to vector<16x16xf32>
    %344 = arith.maximumf %342, %343 : vector<16x16xf32>
    %345 = vector.extract_strided_slice %337 {offsets = [0, 64], sizes = [16, 16], strides = [1, 1]} : vector<16x144xf32> to vector<16x16xf32>
    %346 = arith.maximumf %344, %345 : vector<16x16xf32>
    %347 = vector.extract_strided_slice %337 {offsets = [0, 80], sizes = [16, 16], strides = [1, 1]} : vector<16x144xf32> to vector<16x16xf32>
    %348 = arith.maximumf %346, %347 : vector<16x16xf32>
    %349 = vector.extract_strided_slice %337 {offsets = [0, 96], sizes = [16, 16], strides = [1, 1]} : vector<16x144xf32> to vector<16x16xf32>
    %350 = arith.maximumf %348, %349 : vector<16x16xf32>
    %351 = vector.extract_strided_slice %337 {offsets = [0, 112], sizes = [16, 16], strides = [1, 1]} : vector<16x144xf32> to vector<16x16xf32>
    %352 = arith.maximumf %350, %351 : vector<16x16xf32>
    %353 = vector.extract_strided_slice %337 {offsets = [0, 128], sizes = [16, 16], strides = [1, 1]} : vector<16x144xf32> to vector<16x16xf32>
    %354 = arith.maximumf %352, %353 : vector<16x16xf32>
    %355 = tpu.concatenate %335, %354 in 0 : vector<16x16xf32>, vector<16x16xf32> -> vector<32x16xf32>
    %c0_151 = arith.constant 0 : index
    %c0_152 = arith.constant 0 : index
    %356 = vector.load %arg12[%c0_151, %c0_152] : memref<144x32xbf16, #tpu.memory_space<vmem>>, vector<144x32xbf16>
    %357 = arith.truncf %355 : vector<32x16xf32> to vector<32x16xbf16>
    %cst_153 = arith.constant dense<0.000000e+00> : vector<144x16xf32>
    %358 = tpu.matmul %356, %357, %cst_153 {dimension_numbers = #tpu.dot_dimension_numbers<[1], [0], [0], [1], [0, 0, 1, 1], [], []>} : vector<144x32xbf16>, vector<32x16xbf16>, vector<144x16xf32> -> vector<144x16xf32>
    %359 = arith.truncf %358 : vector<144x16xf32> to vector<144x16xbf16>
    %360 = vector.extract_strided_slice %359 {offsets = [0, 0], sizes = [16, 16], strides = [1, 1]} : vector<144x16xbf16> to vector<16x16xbf16>
    %361 = vector.extract_strided_slice %359 {offsets = [16, 0], sizes = [16, 16], strides = [1, 1]} : vector<144x16xbf16> to vector<16x16xbf16>
    %362 = vector.extract_strided_slice %359 {offsets = [32, 0], sizes = [16, 16], strides = [1, 1]} : vector<144x16xbf16> to vector<16x16xbf16>
    %363 = vector.extract_strided_slice %359 {offsets = [48, 0], sizes = [16, 16], strides = [1, 1]} : vector<144x16xbf16> to vector<16x16xbf16>
    %364 = vector.extract_strided_slice %359 {offsets = [64, 0], sizes = [16, 16], strides = [1, 1]} : vector<144x16xbf16> to vector<16x16xbf16>
    %365 = vector.extract_strided_slice %359 {offsets = [80, 0], sizes = [16, 16], strides = [1, 1]} : vector<144x16xbf16> to vector<16x16xbf16>
    %366 = vector.extract_strided_slice %359 {offsets = [96, 0], sizes = [16, 16], strides = [1, 1]} : vector<144x16xbf16> to vector<16x16xbf16>
    %367 = vector.extract_strided_slice %359 {offsets = [112, 0], sizes = [16, 16], strides = [1, 1]} : vector<144x16xbf16> to vector<16x16xbf16>
    %368 = vector.extract_strided_slice %359 {offsets = [128, 0], sizes = [16, 16], strides = [1, 1]} : vector<144x16xbf16> to vector<16x16xbf16>
    %369 = tpu.concatenate %360, %361, %362, %363, %364, %365, %366, %367, %368 in 1 : vector<16x16xbf16>, vector<16x16xbf16>, vector<16x16xbf16>, vector<16x16xbf16>, vector<16x16xbf16>, vector<16x16xbf16>, vector<16x16xbf16>, vector<16x16xbf16>, vector<16x16xbf16> -> vector<16x144xbf16>
    %c0_154 = arith.constant 0 : index
    %c0_155 = arith.constant 0 : index
    %370 = vector.load %arg5[%c0_154, %c0_155] : memref<144x16xbf16, #tpu.memory_space<vmem>>, vector<144x16xbf16>
    %cst_156 = arith.constant dense<0.000000e+00> : vector<16x16xf32>
    %371 = tpu.matmul %369, %370, %cst_156 {dimension_numbers = #tpu.dot_dimension_numbers<[1], [0], [0], [1], [0, 0, 1, 1], [], []>} : vector<16x144xbf16>, vector<144x16xbf16>, vector<16x16xf32> -> vector<16x16xf32>
    %c0_157 = arith.constant 0 : index
    %c0_158 = arith.constant 0 : index
    %372 = vector.load %arg13[%c0_157, %c0_158] : memref<16x1xf32, #tpu.memory_space<vmem>>, vector<16x1xf32>
    %373 = vector.broadcast %372 : vector<16x1xf32> to vector<16x16xf32>
    %374 = arith.addf %371, %373 : vector<16x16xf32>
    %cst_159 = arith.constant 0.000000e+00 : f32
    %375 = vector.broadcast %cst_159 : f32 to vector<16x16xf32>
    %376 = arith.maximumf %374, %375 : vector<16x16xf32>
    %c3_160 = arith.constant 3 : index
    %c0_161 = arith.constant 0 : index
    %c0_162 = arith.constant 0 : index
    %377 = vector.load %arg14[%c3_160, %c0_161, %c0_162] : memref<4x16x16xf32, #tpu.memory_space<vmem>>, vector<1x16x16xf32>
    %378 = vector.shape_cast %377 : vector<1x16x16xf32> to vector<16x16xf32>
    %379 = vector.shape_cast %376 : vector<16x16xf32> to vector<1x16x16xf32>
    tpu.vector_store %arg14[%c3_160, %c0_161, %c0_162], %379 {strides = array<i32>} : memref<4x16x16xf32, #tpu.memory_space<vmem>>, vector<1x16x16xf32>,
    return
  }
  func.func @transform_0(%arg0: i32) -> (i32, i32, i32) {
    %c0_i32 = arith.constant 0 : i32
    %c0_i32_0 = arith.constant 0 : i32
    %c0_i32_1 = arith.constant 0 : i32
    return %arg0, %c0_i32, %c0_i32_0 : i32, i32, i32
  }
  func.func @transform_1(%arg0: i32) -> (i32, i32) {
    %c0_i32 = arith.constant 0 : i32
    %c0_i32_0 = arith.constant 0 : i32
    %c0_i32_1 = arith.constant 0 : i32
    return %c0_i32, %c0_i32_0 : i32, i32
  }
  func.func @transform_2(%arg0: i32) -> (i32, i32) {
    %c0_i32 = arith.constant 0 : i32
    %c0_i32_0 = arith.constant 0 : i32
    %c0_i32_1 = arith.constant 0 : i32
    return %c0_i32, %c0_i32_0 : i32, i32
  }
  func.func @transform_3(%arg0: i32) -> (i32, i32) {
    %c0_i32 = arith.constant 0 : i32
    %c0_i32_0 = arith.constant 0 : i32
    %c0_i32_1 = arith.constant 0 : i32
    return %c0_i32, %c0_i32_0 : i32, i32
  }
  func.func @transform_4(%arg0: i32) -> (i32, i32) {
    %c0_i32 = arith.constant 0 : i32
    %c0_i32_0 = arith.constant 0 : i32
    %c0_i32_1 = arith.constant 0 : i32
    return %c0_i32, %c0_i32_0 : i32, i32
  }
  func.func @transform_5(%arg0: i32) -> (i32, i32) {
    %c0_i32 = arith.constant 0 : i32
    %c0_i32_0 = arith.constant 0 : i32
    %c0_i32_1 = arith.constant 0 : i32
    return %c0_i32, %c0_i32_0 : i32, i32
  }
  func.func @transform_6(%arg0: i32) -> (i32, i32) {
    %c0_i32 = arith.constant 0 : i32
    %c0_i32_0 = arith.constant 0 : i32
    %c0_i32_1 = arith.constant 0 : i32
    return %c0_i32, %c0_i32_0 : i32, i32
  }
  func.func @transform_7(%arg0: i32) -> (i32, i32) {
    %c0_i32 = arith.constant 0 : i32
    %c0_i32_0 = arith.constant 0 : i32
    %c0_i32_1 = arith.constant 0 : i32
    return %c0_i32, %c0_i32_0 : i32, i32
  }
  func.func @transform_8(%arg0: i32) -> (i32, i32) {
    %c0_i32 = arith.constant 0 : i32
    %c0_i32_0 = arith.constant 0 : i32
    %c0_i32_1 = arith.constant 0 : i32
    return %c0_i32, %c0_i32_0 : i32, i32
  }
  func.func @transform_9(%arg0: i32) -> (i32, i32) {
    %c0_i32 = arith.constant 0 : i32
    %c0_i32_0 = arith.constant 0 : i32
    %c0_i32_1 = arith.constant 0 : i32
    return %c0_i32, %c0_i32_0 : i32, i32
  }
  func.func @transform_10(%arg0: i32) -> (i32, i32) {
    %c0_i32 = arith.constant 0 : i32
    %c0_i32_0 = arith.constant 0 : i32
    %c0_i32_1 = arith.constant 0 : i32
    return %c0_i32, %c0_i32_0 : i32, i32
  }
  func.func @transform_11(%arg0: i32) -> (i32, i32) {
    %c0_i32 = arith.constant 0 : i32
    %c0_i32_0 = arith.constant 0 : i32
    %c0_i32_1 = arith.constant 0 : i32
    return %c0_i32, %c0_i32_0 : i32, i32
  }
  func.func @transform_12(%arg0: i32) -> (i32, i32) {
    %c0_i32 = arith.constant 0 : i32
    %c0_i32_0 = arith.constant 0 : i32
    %c0_i32_1 = arith.constant 0 : i32
    return %c0_i32, %c0_i32_0 : i32, i32
  }
  func.func @transform_13(%arg0: i32) -> (i32, i32, i32) {
    %c0_i32 = arith.constant 0 : i32
    %c0_i32_0 = arith.constant 0 : i32
    %c0_i32_1 = arith.constant 0 : i32
    return %arg0, %c0_i32, %c0_i32_0 : i32, i32, i32
  }
}

</mosaic_0001>

<bundles_post_ra>
// kernel: stem_block_pc_forward.1
= control target key start
LH: loop header
LB: loop body
LE: loop exit
PB: predicated region body
PF: predicated region fallthrough
CT: control target
= control target key end

     0   :  { %18 = vsyncpa [#allocation3], 0  ;;  %s19227_s0 = inlined_call_operand.vmem [shape: bf16[4,5,256], index: 0, kind: input, shape index: {}]   ;;  %s19228_s1 = inlined_call_operand.vmem [shape: bf16[2304,64], index: 1, kind: input, shape index: {}]   ;;  %s19229_s2 = inlined_call_operand.hbm [shape: bf16[576,16], index: 2, kind: input, shape index: {}]   ;;  %s19230_s3 = inlined_call_operand.vmem [shape: bf16[64,144], index: 3, kind: input, shape index: {}]   ;;  %s19231_s4 = inlined_call_operand.hbm [shape: bf16[144,16], index: 4, kind: input, shape index: {}]   ;;  %s19232_s5 = inlined_call_operand.vmem [shape: bf16[144,5], index: 5, kind: input, shape index: {}]   ;;  %s19233_s6 = inlined_call_operand.vmem [shape: f32[16,1], index: 6, kind: input, shape index: {}]   ;;  %s19234_s7 = inlined_call_operand.vmem [shape: bf16[8,16], index: 7, kind: input, shape index: {}]   ;;  %s19235_s8 = inlined_call_operand.vmem [shape: f32[8,1], index: 8, kind: input, shape index: {}]   ;;  %s19236_s9 = inlined_call_operand.vmem [shape: bf16[144,8], index: 9, kind: input, shape index: {}]   ;;  %s19237_s10 = inlined_call_operand.vmem [shape: f32[16,1], index: 10, kind: input, shape index: {}]   ;;  %s19238_s11 = inlined_call_operand.vmem [shape: bf16[144,32], index: 11, kind: input, shape index: {}]   ;;  %s19239_s12 = inlined_call_operand.vmem [shape: f32[16,1], index: 12, kind: input, shape index: {}]   ;;  %s19240_s13 = inlined_call_operand.vmem [shape: f32[4,16,16], index: 13, kind: output, shape index: {}]  }
   0x1   :  { %19 = vsyncpa [#allocation5], 0  ;;  %s15819_s25 = smov [#allocation2]   ;;  %s15771_s29 = scalar_lea.hbm %s19229_s2, 4608 }
   0x2   :  { %s29_s26 = sshll.u32 %s15819_s25, 4  ;;  %p15772_p0 = scmp.ne.s32.totalorder %s19229_s2, %s15771_s29  ;;  %s30_s26 = int_to_ptr.vmem [resolvable:$true] %s29_s26 }
   0x3   :  { %p15775_p1 = scmp.lt.u32.totalorder %s15771_s29, %s19229_s2 }
   0x5   :  { %p15777_p2 = pnand %p15775_p1, %p15772_p0 }
   0x7   :  { %15780 = shalt.err (!%p15777_p2)
}
   0x8   :  { %s15781_s17 = scalar_lea.vmem %s30_s26, 4608  ;;  %p15786_p4 = scmp.lt.s32.totalorder %s30_s26, %s30_s26 }
   0x9   :  { %p15782_p3 = scmp.ne.s32.totalorder %s30_s26, %s15781_s17  ;;  %p15787_p5 = scmp.lt.s32.totalorder %s15781_s17, %s15781_s17 }
   0xb   :  { %p15788_p6 = por %p15787_p5, %p15786_p4 }
   0xd   :  { %p15789_p7 = pnand %p15788_p6, %p15782_p3 }
   0xf   :  { %15792 = shalt.err (!%p15789_p7)
}
  0x10   :  { %s15820_s18 = smov 64   ;;  %s15821_s19 = smov 4  }
  0x11   :  { %35 = dma.hbm_to_vmem [thread:$0]  %s19229_s2, 4608, %s30_s26, [#allocation3], %s15820_s18, %s15820_s18, %s15821_s19  }
  0x12   :  { %s15822_s22 = smov [#allocation4]   ;;  %s15793_s27 = scalar_lea.hbm %s19231_s4, 1152 }
  0x13   :  { %s43_s23 = sshll.u32 %s15822_s22, 4  ;;  %p15794_p8 = scmp.ne.s32.totalorder %s19231_s4, %s15793_s27  ;;  %s44_s23 = int_to_ptr.vmem [resolvable:$true] %s43_s23 }
  0x14   :  { %p15797_p9 = scmp.lt.u32.totalorder %s15793_s27, %s19231_s4 }
  0x16   :  { %p15799_p10 = pnand %p15797_p9, %p15794_p8 }
  0x18   :  { %15802 = shalt.err (!%p15799_p10)
}
  0x19   :  { %s15803_s15 = scalar_lea.vmem %s44_s23, 1152  ;;  %p15808_p12 = scmp.lt.s32.totalorder %s44_s23, %s44_s23 }
  0x1a   :  { %p15804_p11 = scmp.ne.s32.totalorder %s44_s23, %s15803_s15  ;;  %p15809_p13 = scmp.lt.s32.totalorder %s15803_s15, %s15803_s15 }
  0x1c   :  { %p15810_p0 = por %p15809_p13, %p15808_p12 }
  0x1e   :  { %p15811_p1 = pnand %p15810_p0, %p15804_p11 }
  0x20   :  { %15814 = shalt.err (!%p15811_p1)
}
  0x21   :  { %49 = dma.hbm_to_vmem [thread:$0]  %s19231_s4, 1152, %s44_s23, [#allocation5], %s15820_s18, %s15820_s18, %s15821_s19  }
  0x22   :  { %15815 = dma.done.wait [#allocation3], 4608  }
  0x23   :  { %15816 = vsyncadd [#allocation3], 4294962688 }
  0x24   :  { %15817 = dma.done.wait [#allocation5], 1152  }
  0x25   :  { %15818 = vsyncadd [#allocation5], 4294966144  ;;  %vm170_vm0 = vcmask 1041408   ;;  %v15823_v0 = vmov 0   ;;  %vm171_vm1 = vcmask 1042432   ;;  %v15824_v1 = vmov 65535  }
  0x26   :  { %212 = vmatprep.mubr.bf16.mxu0 %v15823_v0  ;;  %262 = vmatprep.mubr.bf16.mxu1 %v15823_v0  ;;  %v172_v2 = vsel %vm170_vm0, 4294967295, %v15824_v1  ;;  %v73_v4 = vld [vmem:[%s19227_s0] sm:$0x77]  ;;  %vm142_vm2 = vcmask 39936   ;;  %v14857_v10 = vld [vmem:[%s19232_s5 + $0x28] sm:$0xff]   ;;  %v14858_v15 = vld [vmem:[%s19232_s5 + $0x30] sm:$0xff]  }
  0x27   :  { %14708 = vset.pattern.permute.xlu0 %v15823_v0  ;;  %14709 = vset.pattern.permute.xlu1 %v15823_v0  ;;  %v15935_v3 = vsel %vm171_vm1, %v172_v2, 0  ;;  %v12201_v5 = vcombine.high %v73_v4, %v73_v4  ;;  %v12200_v6 = vcombine.low %v73_v4, %v73_v4  ;;  %v14852_v9 = vld [vmem:[%s19232_s5] sm:$0xff]   ;;  %v14853_v12 = vld [vmem:[%s19232_s5 + $0x8] sm:$0xff]   ;;  %v14865_v17 = vld [vmem:[%s19228_s1 + $0x50] sm:$0xff]   ;;  %vm15826_vm3 = vmmov 0   ;;  %s15827_s29 = smov 96  }
  0x28   :  { %v14861_v11 = vld [vmem:[%s19228_s1 + $0x40] sm:$0xff]   ;;  %v14863_v14 = vld [vmem:[%s19228_s1 + $0x48] sm:$0xff]   ;;  %v14854_v18 = vld [vmem:[%s19232_s5 + $0x10] sm:$0xff]   ;;  %vm1864_vm4 = vcmask 130048   ;;  %vm2001_vm5 = vcmask 1043456   ;;  %vm1973_vm6 = vcmask 64512  }
  0x29   :  { %v178_v7 = vand.u32 %v12201_v5, %v15935_v3  ;;  %v175_v8 = vand.u32 %v12200_v6, %v15935_v3  ;;  %v14862_v13 = vld [vmem:[%s19228_s1] sm:$0xff]   ;;  %v14864_v16 = vld [vmem:[%s19228_s1 + $0x8] sm:$0xff]   ;;  %v14866_v19 = vld [vmem:[%s19228_s1 + $0x10] sm:$0xff]   ;;  %vm2131_vm7 = vcmask 523264   ;;  %s15828_s30 = smov 112   ;;  %s15829_s14 = smov 80  }
  0x2a   :  { %v14867_v20 = vld [vmem:[%s19228_s1 + $0x58] sm:$0xff]   ;;  %v14869_v23 = vld [vmem:[%s19228_s1 + $0x60] sm:$0xff]   ;;  %v14871_v25 = vld [vmem:[%s19228_s1 + $0x68] sm:$0xff]   ;;  %s15830_s15 = smov 32   ;;  %s15831_s2 = smov 48   ;;  %vm2795_vm8 = vcmask 261120  }
  0x2b   :  { %180 = vmatprep.subr.bf16.mxu0 %v178_v7  ;;  %14692 = vmatprep.subr.bf16.mxu1 %v178_v7  ;;  %v14859_v21 = vld [vmem:[%s19232_s5 + $0x38] sm:$0xff]   ;;  %v14870_v24 = vld [vmem:[%s19228_s1 + $0x20] sm:$0xff]   ;;  %v14872_v28 = vld [vmem:[%s19228_s1 + $0x28] sm:$0xff]   ;;  %s15832_s26 = smov 16   ;;  %vm2963_vm9 = vcmask 392192   ;;  %vm2968_vm10 = vcmask 654336  }
  0x2c   :  { %181 = vmatpush1.bf16.msra.mxu0 %v175_v8  ;;  %14693 = vmatpush1.bf16.msra.mxu1 %v175_v8  ;;  %v14868_v22 = vld [vmem:[%s19228_s1 + $0x18] sm:$0xff]   ;;  %v14860_v27 = vld [vmem:[%s19232_s5 + $0x40] sm:$0xff]   ;;  %v14873_v29 = vld [vmem:[%s19228_s1 + $0x70] sm:$0xff]   ;;  %vm2971_vm11 = vcmask 785408   ;;  %vm2974_vm12 = vcmask 916480  }
  0x2d   :  { %13228 = vmatprep.subr.bf16.mxu1 %v14861_v11  ;;  %v14855_v26 = vld [vmem:[%s19232_s5 + $0x18] sm:$0xff]   ;;  %v14874_v30 = vld [vmem:[%s19228_s1 + $0x30] sm:$0xff]   ;;  %v14856_v31 = vld [vmem:[%s19232_s5 + $0x20] sm:$0xff]  }
  0x2e   :  { %v14875_v32 = vld [vmem:[%s19228_s1 + $0x140] sm:$0xff]   ;;  %v14876_v33 = vld [vmem:[%s19228_s1 + $0x78] sm:$0xff]   ;;  %v14879_v36 = vld [vmem:[%s19228_s1 + $0x148] sm:$0xff]  }
  0x2f   :  { %12202 = vmatmul.mubr.msk.bf16.vlgmr.msra.gmra.mrb[0].mxu0 %vm142_vm2, %v14852_v9  ;;  %12207 = vmatmul.mubr.msk.bf16.vlgmr.msra.gmra.mrb[0].mxu1 %vm142_vm2, %v14857_v10  ;;  %v14877_v34 = vld [vmem:[%s19228_s1 + $0x100] sm:$0xff]   ;;  %v14878_v35 = vld [vmem:[%s19228_s1 + $0x38] sm:$0xff]   ;;  %v14881_v38 = vld [vmem:[%s19228_s1 + $0x108] sm:$0xff]  }
  0x30   :  { %222 = vmatprep.mubr.bf16.mxu0 %v15823_v0  ;;  %272 = vmatprep.mubr.bf16.mxu1 %v15823_v0  ;;  %v14880_v37 = vld [vmem:[%s19228_s1 + $0xc0] sm:$0xff]   ;;  %v14883_v39 = vld [vmem:[%s19228_s1 + $0x150] sm:$0xff]   ;;  %v14887_v41 = vld [vmem:[%s19228_s1 + $0x158] sm:$0xff]  }
  0x31   :  { %13229 = vmatpush3.bf16.msra.mxu1 %v14862_v13  ;;  %13272 = vmatprep.subr.bf16.mxu0 %v14875_v32  ;;  %v14885_v40 = vld [vmem:[%s19228_s1 + $0x110] sm:$0xff]   ;;  %v14889_v42 = vld [vmem:[%s19228_s1 + $0x118] sm:$0xff]   ;;  %v14891_v43 = vld [vmem:[%s19228_s1 + $0x160] sm:$0xff]  }
  0x32   :  { %13230 = vmatprep.subr.bf16.mxu1 %v14863_v14  ;;  %13273 = vmatpush3.bf16.msra.mxu0 %v14877_v34  ;;  %v14893_v44 = vld [vmem:[%s19228_s1 + $0x120] sm:$0xff]   ;;  %v14895_v45 = vld [vmem:[%s19228_s1 + $0x168] sm:$0xff]   ;;  %v14899_v47 = vld [vmem:[%s19228_s1 + $0x170] sm:$0xff]  }
  0x33   :  { %13274 = vmatprep.subr.bf16.mxu0 %v14879_v36  ;;  %v14897_v46 = vld [vmem:[%s19228_s1 + $0x128] sm:$0xff]   ;;  %v14901_v48 = vld [vmem:[%s19228_s1 + $0x130] sm:$0xff]   ;;  %v14903_v49 = vld [vmem:[%s19228_s1 + $0x178] sm:$0xff]  }
  0x34   :  { %v14905_v50 = vld [vmem:[%s19228_s1 + $0x138] sm:$0xff]   ;;  %v14907_v51 = vld [vmem:[%s19228_s1 + $0x240] sm:$0xff]   ;;  %v610_v53 = vld [vmem:[%s19233_s6 + $0x8] sm:$0xff] }
  0x35   :  { %13231 = vmatpush3.bf16.msra.mxu1 %v14864_v16  ;;  %v609_v52 = vld [vmem:[%s19233_s6] sm:$0xff]  ;;  %v14884_v63 = vld [vmem:[%s19228_s1 + $0xc8] sm:$0xff]   ;;  %v14888_v7 = vld [vmem:[%s19228_s1 + $0xd0] sm:$0xff]  }
  0x36   :  { %13232 = vmatprep.subr.bf16.mxu1 %v14865_v17  ;;  %13275 = vmatpush3.bf16.msra.mxu0 %v14881_v38  ;;  %v14882_v59 = vld [vmem:[%s19228_s1 + $0x80] sm:$0xff]   ;;  %v14886_v6 = vld [vmem:[%s19228_s1 + $0x88] sm:$0xff]  }
  0x37   :  { %12203 = vmatmul.mubr.msk.bf16.gmra.mrb[4].mxu0 %vm142_vm2, %v14853_v12  ;;  %12208 = vmatmul.mubr.msk.bf16.gmra.mrb[4].mxu1 %vm142_vm2, %v14858_v15  ;;  %v14890_v12 = vld [vmem:[%s19228_s1 + $0x90] sm:$0xff]   ;;  %v14892_v15 = vld [vmem:[%s19228_s1 + $0xd8] sm:$0xff]   ;;  %v14900_v32 = vld [vmem:[%s19228_s1 + $0xe8] sm:$0xff]  }
  0x38   :  { %232 = vmatprep.mubr.bf16.mxu0 %v15823_v0  ;;  %282 = vmatprep.mubr.bf16.mxu1 %v15823_v0 }
  0x39   :  { %13233 = vmatpush3.bf16.msra.mxu1 %v14866_v19  ;;  %13276 = vmatprep.subr.bf16.mxu0 %v14883_v39 }
  0x3a   :  { %13234 = vmatprep.subr.bf16.mxu1 %v14867_v20  ;;  %13277 = vmatpush3.bf16.msra.mxu0 %v14885_v40  ;;  %v14902_v40 = vld [vmem:[%s19228_s1 + $0xa8] sm:$0xff]  }
  0x3b   :  { %13278 = vmatprep.subr.bf16.mxu0 %v14887_v41  ;;  %613 = vperm.xlu0 %14708, %v609_v52   ;;  %v14913_v41 = vld [vmem:[%s19228_s1 + $0x208] sm:$0xff]   ;;  %v14908_v52 = vld [vmem:[%s19228_s1 + $0xf8] sm:$0xff]  }
  0x3d   :  { %13235 = vmatpush3.bf16.msra.mxu1 %v14868_v22  ;;  %v14894_v22 = vld [vmem:[%s19228_s1 + $0x98] sm:$0xff]  }
  0x3e   :  { %13236 = vmatprep.subr.bf16.mxu1 %v14869_v23  ;;  %13279 = vmatpush3.bf16.msra.mxu0 %v14889_v42  ;;  %v14896_v23 = vld [vmem:[%s19228_s1 + $0xe0] sm:$0xff]   ;;  %v14904_v42 = vld [vmem:[%s19228_s1 + $0xf0] sm:$0xff]  }
  0x3f   :  { %12204 = vmatmul.mubr.msk.bf16.gmra.mrb[8].mxu0 %vm142_vm2, %v14854_v18  ;;  %12209 = vmatmul.mubr.msk.bf16.gmra.mrb[8].mxu1 %vm142_vm2, %v14859_v21 }
  0x40   :  { %242 = vmatprep.mubr.bf16.mxu0 %v15823_v0  ;;  %292 = vmatprep.mubr.bf16.mxu1 %v15823_v0 }
  0x41   :  { %13237 = vmatpush3.bf16.msra.mxu1 %v14870_v24  ;;  %13280 = vmatprep.subr.bf16.mxu0 %v14891_v43  ;;  %v14915_v43 = vld [vmem:[%s19228_s1 + $0x250] sm:$0xff]  }
  0x42   :  { %13238 = vmatprep.subr.bf16.mxu1 %v14871_v25  ;;  %13281 = vmatpush3.bf16.msra.mxu0 %v14893_v44 }
  0x43   :  { %13282 = vmatprep.subr.bf16.mxu0 %v14895_v45  ;;  %618 = vperm.xlu0 %14708, %v610_v53   ;;  %v14919_v53 = vld [vmem:[%s19228_s1 + $0x258] sm:$0xff]  }
  0x45   :  { %13239 = vmatpush3.bf16.msra.mxu1 %v14872_v28  ;;  %v14898_v28 = vld [vmem:[%s19228_s1 + $0xa0] sm:$0xff]  }
  0x46   :  { %13240 = vmatprep.subr.bf16.mxu1 %v14873_v29  ;;  %13283 = vmatpush3.bf16.msra.mxu0 %v14897_v46 }
  0x47   :  { %12205 = vmatmul.mubr.msk.bf16.gmra.mrb[12].mxu0 %vm142_vm2, %v14855_v26  ;;  %12210 = vmatmul.mubr.msk.bf16.gmra.mrb[12].mxu1 %vm142_vm2, %v14860_v27 }
  0x48   :  { %252 = vmatprep.mubr.bf16.mxu0 %v15823_v0  ;;  %13284 = vmatprep.subr.bf16.mxu0 %v14899_v47 }
  0x49   :  { %13241 = vmatpush3.bf16.msra.mxu1 %v14874_v30  ;;  %v14909_v30 = vld [vmem:[%s19228_s1 + $0x200] sm:$0xff]  }
  0x4a   :  { %13242 = vmatprep.subr.bf16.mxu1 %v14876_v33  ;;  %13285 = vmatpush3.bf16.msra.mxu0 %v14901_v48  ;;  %v14906_v48 = vld [vmem:[%s19228_s1 + $0xb0] sm:$0xff]  }
  0x4b   :  { %13286 = vmatprep.subr.bf16.mxu0 %v14903_v49  ;;  %v14917_v49 = vld [vmem:[%s19228_s1 + $0x210] sm:$0xff]  }
  0x4d   :  { %13243 = vmatpush3.bf16.msra.mxu1 %v14878_v35  ;;  %v14911_v35 = vld [vmem:[%s19228_s1 + $0x248] sm:$0xff]  }
  0x4e   :  { %13250 = vmatprep.subr.bf16.mxu1 %v14880_v37  ;;  %13287 = vmatpush3.bf16.msra.mxu0 %v14905_v50 }
  0x4f   :  { %12206 = vmatmul.mubr.msk.bf16.gmra.mrb[16].mxu0 %vm142_vm2, %v14856_v31  ;;  %13316 = vmatprep.subr.bf16.mxu0 %v14907_v51 }
 0x102   :  { %v214_v54 = vpop.f32.mrb[0].mxu0  ;;  %v16093_v55 = vpop.f32.mrb[0].mxu1 }
 0x103   :  { %v216_v56 = vpop.f32.mrb[1].mxu0  ;;  %v16095_v57 = vpop.f32.mrb[1].mxu1 }
 0x104   :  { %v218_v58 = vpop.f32.mrb[2].mxu0  ;;  %v16100_v60 = vpop.f32.mrb[2].mxu1 }
 0x105   :  { %v303_v61 = vpack.c.bf16 %v218_v58, %v214_v54  ;;  %v220_v62 = vpop.f32.mrb[3].mxu0  ;;  %v313_v1 = vpack.c.bf16 %v16100_v60, %v16093_v55  ;;  %v16107_v2 = vpop.f32.mrb[3].mxu1  ;;  %v14997_v55 = vld [vmem:[%s19228_s1 + $0x430] sm:$0xff]   ;;  %v14988_v60 = vld [vmem:[%s19228_s1 + $0x3d8] sm:$0xff]  }
 0x106   :  { %v304_v4 = vpack.c.bf16 %v220_v62, %v216_v56  ;;  %v314_v5 = vpack.c.bf16 %v16107_v2, %v16095_v57  ;;  %v14969_v57 = vld [vmem:[%s19228_s1 + $0x338] sm:$0xff]   ;;  %v14960_v2 = vld [vmem:[%s19228_s1 + $0x2e0] sm:$0xff]  }
 0x108   :  { %1517 = vmatprep.mubr.bf16.mxu1 %v304_v4  ;;  %v14921_v4 = vld [vmem:[%s19228_s1 + $0x218] sm:$0xff]  }
 0x109   :  { %1518 = vmatmul.mubr.bf16.vlgmr.msra.gmra.mrb[16].mxu1 %v303_v61 }
 0x10a   :  { %13251 = vmatpush3.bf16.msra.mxu1 %v14882_v59  ;;  %v16117_v8 = vpop.f32.mrb[4].mxu0  ;;  %v16119_v9 = vpop.f32.mrb[4].mxu1 }
 0x10b   :  { %13252 = vmatprep.subr.bf16.mxu1 %v14884_v63  ;;  %v226_v10 = vpop.f32.mrb[5].mxu0  ;;  %v16121_v11 = vpop.f32.mrb[5].mxu1  ;;  %v14910_v63 = vld [vmem:[%s19228_s1 + $0xb8] sm:$0xff]  }
 0x10c   :  { %v16126_v13 = vpop.f32.mrb[6].mxu0  ;;  %v16128_v14 = vpop.f32.mrb[6].mxu1 }
 0x10d   :  { %v305_v16 = vpack.c.bf16 %v16126_v13, %v16117_v8  ;;  %v230_v17 = vpop.f32.mrb[7].mxu0  ;;  %v315_v18 = vpack.c.bf16 %v16128_v14, %v16119_v9  ;;  %v16137_v19 = vpop.f32.mrb[7].mxu1  ;;  %v14933_v8 = vld [vmem:[%s19228_s1 + $0x230] sm:$0xff]   ;;  %v14924_v13 = vld [vmem:[%s19228_s1 + $0x1d8] sm:$0xff]  }
 0x10e   :  { %13253 = vmatpush3.bf16.msra.mxu1 %v14886_v6  ;;  %v306_v20 = vpack.c.bf16 %v230_v17, %v226_v10  ;;  %v316_v21 = vpack.c.bf16 %v16137_v19, %v16121_v11  ;;  %v14912_v6 = vld [vmem:[%s19228_s1 + $0x1c0] sm:$0xff]   ;;  %v14953_v11 = vld [vmem:[%s19228_s1 + $0x318] sm:$0xff]  }
 0x10f   :  { %13254 = vmatprep.subr.bf16.mxu1 %v14888_v7  ;;  %v14923_v7 = vld [vmem:[%s19228_s1 + $0x260] sm:$0xff]   ;;  %v14972_v9 = vld [vmem:[%s19228_s1 + $0x2f8] sm:$0xff]  }
 0x110   :  { %1558 = vmatprep.mubr.bf16.mxu1 %v306_v20  ;;  %v14925_v17 = vld [vmem:[%s19228_s1 + $0x220] sm:$0xff]   ;;  %v14983_v14 = vld [vmem:[%s19228_s1 + $0x458] sm:$0xff]  }
 0x111   :  { %v14944_v19 = vld [vmem:[%s19228_s1 + $0x2c0] sm:$0xff]  }
 0x112   :  { %13255 = vmatpush3.bf16.msra.mxu1 %v14890_v12  ;;  %v234_v24 = vpop.f32.mrb[8].mxu0  ;;  %v16147_v25 = vpop.f32.mrb[8].mxu1 }
 0x113   :  { %13256 = vmatprep.subr.bf16.mxu1 %v14892_v15  ;;  %v236_v26 = vpop.f32.mrb[9].mxu0  ;;  %v16149_v27 = vpop.f32.mrb[9].mxu1  ;;  %v14914_v15 = vld [vmem:[%s19228_s1 + $0x180] sm:$0xff]  }
 0x114   :  { %v238_v29 = vpop.f32.mrb[10].mxu0  ;;  %v16157_v31 = vpop.f32.mrb[10].mxu1 }
 0x115   :  { %v307_v33 = vpack.c.bf16 %v238_v29, %v234_v24  ;;  %v240_v34 = vpop.f32.mrb[11].mxu0  ;;  %v317_v36 = vpack.c.bf16 %v16157_v31, %v16147_v25  ;;  %v16167_v37 = vpop.f32.mrb[11].mxu1  ;;  %v14918_v29 = vld [vmem:[%s19228_s1 + $0x188] sm:$0xff]   ;;  %v1858_v25 = vld [vmem:[%s19235_s8] sm:$0xff] }
 0x116   :  { %13257 = vmatpush3.bf16.msra.mxu1 %v14894_v22  ;;  %v308_v38 = vpack.c.bf16 %v240_v34, %v236_v26  ;;  %v318_v39 = vpack.c.bf16 %v16167_v37, %v16149_v27  ;;  %v14916_v22 = vld [vmem:[%s19228_s1 + $0x1c8] sm:$0xff]   ;;  %v14922_v34 = vld [vmem:[%s19228_s1 + $0x190] sm:$0xff]   ;;  %v15001_v27 = vld [vmem:[%s19228_s1 + $0x438] sm:$0xff]   ;;  %1861 = vperm.xlu1 %14709, %v1858_v25  }
 0x117   :  { %13258 = vmatprep.subr.bf16.mxu1 %v14896_v23  ;;  %v14927_v23 = vld [vmem:[%s19228_s1 + $0x268] sm:$0xff]   ;;  %v14992_v37 = vld [vmem:[%s19228_s1 + $0x3e0] sm:$0xff]  }
 0x118   :  { %1599 = vmatprep.mubr.bf16.mxu0 %v308_v38  ;;  %v14937_v38 = vld [vmem:[%s19228_s1 + $0x238] sm:$0xff]  }
 0x119   :  { %1600 = vmatmul.mubr.bf16.vlgmr.msra.gmra.mrb[20].mxu0 %v307_v33  ;;  %v14931_v33 = vld [vmem:[%s19228_s1 + $0x270] sm:$0xff]  }
 0x11a   :  { %13259 = vmatpush3.bf16.msra.mxu1 %v14898_v28  ;;  %13317 = vmatpush3.bf16.msra.mxu0 %v14909_v30  ;;  %v16183_v44 = vpop.f32.mrb[12].mxu0  ;;  %v16185_v45 = vpop.f32.mrb[12].mxu1  ;;  %v14929_v30 = vld [vmem:[%s19228_s1 + $0x228] sm:$0xff]  }
 0x11b   :  { %13260 = vmatprep.subr.bf16.mxu1 %v14900_v32  ;;  %13318 = vmatprep.subr.bf16.mxu0 %v14911_v35  ;;  %v246_v46 = vpop.f32.mrb[13].mxu0  ;;  %v16187_v47 = vpop.f32.mrb[13].mxu1  ;;  %v14920_v32 = vld [vmem:[%s19228_s1 + $0x1d0] sm:$0xff]   ;;  %v14926_v35 = vld [vmem:[%s19228_s1 + $0x198] sm:$0xff]  }
 0x11c   :  { %v16195_v50 = vpop.f32.mrb[14].mxu0  ;;  %v16197_v51 = vpop.f32.mrb[14].mxu1 }
 0x11d   :  { %v309_v54 = vpack.c.bf16 %v16195_v50, %v16183_v44  ;;  %v250_v56 = vpop.f32.mrb[15].mxu0  ;;  %v319_v58 = vpack.c.bf16 %v16197_v51, %v16185_v45  ;;  %v16209_v59 = vpop.f32.mrb[15].mxu1  ;;  %v14965_v44 = vld [vmem:[%s19228_s1 + $0x330] sm:$0xff]   ;;  %v14956_v50 = vld [vmem:[%s19228_s1 + $0x2d8] sm:$0xff]  }
 0x11e   :  { %13261 = vmatpush3.bf16.msra.mxu1 %v14902_v40  ;;  %13319 = vmatpush3.bf16.msra.mxu0 %v14913_v41  ;;  %v310_v61 = vpack.c.bf16 %v250_v56, %v246_v46  ;;  %v320_v62 = vpack.c.bf16 %v16209_v59, %v16187_v47  ;;  %v14928_v40 = vld [vmem:[%s19228_s1 + $0x1e0] sm:$0xff]   ;;  %v14932_v46 = vld [vmem:[%s19228_s1 + $0x1e8] sm:$0xff]   ;;  %v14947_v56 = vld [vmem:[%s19228_s1 + $0x350] sm:$0xff]  }
 0x11f   :  { %13262 = vmatprep.subr.bf16.mxu1 %v14904_v42  ;;  %13320 = vmatprep.subr.bf16.mxu0 %v14915_v43  ;;  %v14939_v41 = vld [vmem:[%s19228_s1 + $0x340] sm:$0xff]   ;;  %v14985_v47 = vld [vmem:[%s19228_s1 + $0x418] sm:$0xff]  }
 0x120   :  { %v14930_v42 = vld [vmem:[%s19228_s1 + $0x1a0] sm:$0xff]  }
 0x121   :  { %v14941_v43 = vld [vmem:[%s19228_s1 + $0x300] sm:$0xff]  }
 0x122   :  { %13263 = vmatpush3.bf16.msra.mxu1 %v14906_v48  ;;  %13321 = vmatpush3.bf16.msra.mxu0 %v14917_v49  ;;  %v254_v10 = vpop.f32.mrb[16].mxu0  ;;  %v14943_v48 = vld [vmem:[%s19228_s1 + $0x348] sm:$0xff]   ;;  %v14976_v59 = vld [vmem:[%s19228_s1 + $0x3c0] sm:$0xff]  }
 0x123   :  { %13264 = vmatprep.subr.bf16.mxu1 %v14908_v52  ;;  %13322 = vmatprep.subr.bf16.mxu0 %v14919_v53  ;;  %v256_v12 = vpop.f32.mrb[17].mxu0  ;;  %v14934_v49 = vld [vmem:[%s19228_s1 + $0x1a8] sm:$0xff]   ;;  %v14936_v53 = vld [vmem:[%s19228_s1 + $0x1f0] sm:$0xff]  }
 0x124   :  { %v258_v20 = vpop.f32.mrb[18].mxu0  ;;  %v14945_v52 = vld [vmem:[%s19228_s1 + $0x308] sm:$0xff]  }
 0x125   :  { %v311_v24 = vpack.c.bf16 %v258_v20, %v254_v10  ;;  %v260_v26 = vpop.f32.mrb[19].mxu0  ;;  %v14946_v10 = vld [vmem:[%s19228_s1 + $0x280] sm:$0xff]   ;;  %v14950_v20 = vld [vmem:[%s19228_s1 + $0x288] sm:$0xff]  }
 0x126   :  { %13265 = vmatpush3.bf16.msra.mxu1 %v14910_v63  ;;  %13323 = vmatpush3.bf16.msra.mxu0 %v14921_v4  ;;  %v312_v28 = vpack.c.bf16 %v260_v26, %v256_v12  ;;  %v14949_v63 = vld [vmem:[%s19228_s1 + $0x310] sm:$0xff]   ;;  %v14940_v4 = vld [vmem:[%s19228_s1 + $0x1f8] sm:$0xff]   ;;  %v14957_v12 = vld [vmem:[%s19228_s1 + $0x320] sm:$0xff]  }
 0x127   :  { %13294 = vmatprep.subr.bf16.mxu1 %v14912_v6  ;;  %13324 = vmatprep.subr.bf16.mxu0 %v14923_v7  ;;  %v14951_v6 = vld [vmem:[%s19228_s1 + $0x358] sm:$0xff]   ;;  %v14954_v26 = vld [vmem:[%s19228_s1 + $0x290] sm:$0xff]  }
 0x128   :  { %1681 = vmatprep.mubr.bf16.mxu0 %v312_v28  ;;  %v14942_v7 = vld [vmem:[%s19228_s1 + $0x1b8] sm:$0xff]  }
 0x129   :  { %1559 = vmatmul.mubr.bf16.vlgmr.msra.gmra.mrb[20].mxu1 %v305_v16  ;;  %v14935_v16 = vld [vmem:[%s19228_s1 + $0x278] sm:$0xff]  }
 0x12a   :  { %13295 = vmatpush3.bf16.msra.mxu1 %v14914_v15  ;;  %13325 = vmatpush3.bf16.msra.mxu0 %v14925_v17  ;;  %v14948_v15 = vld [vmem:[%s19228_s1 + $0x2c8] sm:$0xff]   ;;  %v14958_v28 = vld [vmem:[%s19228_s1 + $0x298] sm:$0xff]  }
 0x12b   :  { %13296 = vmatprep.subr.bf16.mxu1 %v14916_v22  ;;  %13326 = vmatprep.subr.bf16.mxu0 %v14927_v23  ;;  %v14959_v17 = vld [vmem:[%s19228_s1 + $0x368] sm:$0xff]   ;;  %v14952_v23 = vld [vmem:[%s19228_s1 + $0x2d0] sm:$0xff]  }
 0x12c   :  { %1640 = vmatprep.mubr.bf16.mxu1 %v310_v61  ;;  %v14938_v61 = vld [vmem:[%s19228_s1 + $0x1b0] sm:$0xff]   ;;  %v14961_v22 = vld [vmem:[%s19228_s1 + $0x328] sm:$0xff]  }
 0x12e   :  { %13297 = vmatpush3.bf16.msra.mxu1 %v14918_v29  ;;  %13327 = vmatpush3.bf16.msra.mxu0 %v14929_v30  ;;  %v14962_v29 = vld [vmem:[%s19228_s1 + $0x2a0] sm:$0xff]  }
 0x12f   :  { %13298 = vmatprep.subr.bf16.mxu1 %v14920_v32  ;;  %13328 = vmatprep.subr.bf16.mxu0 %v14931_v33  ;;  %v14973_v30 = vld [vmem:[%s19228_s1 + $0x400] sm:$0xff]   ;;  %v14964_v32 = vld [vmem:[%s19228_s1 + $0x2e8] sm:$0xff]  }
 0x130   :  { %v14975_v33 = vld [vmem:[%s19228_s1 + $0x448] sm:$0xff]  }
 0x132   :  { %13299 = vmatpush3.bf16.msra.mxu1 %v14922_v34  ;;  %13329 = vmatpush3.bf16.msra.mxu0 %v14933_v8  ;;  %v14966_v34 = vld [vmem:[%s19228_s1 + $0x2a8] sm:$0xff]  }
 0x133   :  { %13300 = vmatprep.subr.bf16.mxu1 %v14924_v13  ;;  %13330 = vmatprep.subr.bf16.mxu0 %v14935_v16  ;;  %v14977_v8 = vld [vmem:[%s19228_s1 + $0x408] sm:$0xff]   ;;  %v14968_v13 = vld [vmem:[%s19228_s1 + $0x2f0] sm:$0xff]  }
 0x134   :  { %v14979_v16 = vld [vmem:[%s19228_s1 + $0x450] sm:$0xff]  }
 0x136   :  { %13301 = vmatpush3.bf16.msra.mxu1 %v14926_v35  ;;  %13331 = vmatpush3.bf16.msra.mxu0 %v14937_v38  ;;  %v14970_v35 = vld [vmem:[%s19228_s1 + $0x2b0] sm:$0xff]  }
 0x137   :  { %13302 = vmatprep.subr.bf16.mxu1 %v14928_v40  ;;  %13360 = vmatprep.subr.bf16.mxu0 %v14939_v41  ;;  %v14981_v38 = vld [vmem:[%s19228_s1 + $0x410] sm:$0xff]   ;;  %v14978_v40 = vld [vmem:[%s19228_s1 + $0x380] sm:$0xff]  }
 0x138   :  { %v14989_v41 = vld [vmem:[%s19228_s1 + $0x420] sm:$0xff]  }
 0x139   :  { %1682 = vmatmul.mubr.bf16.vlgmr.msra.gmra.mrb[24].mxu0 %v311_v24  ;;  %v14963_v24 = vld [vmem:[%s19228_s1 + $0x370] sm:$0xff]  }
 0x13a   :  { %13303 = vmatpush3.bf16.msra.mxu1 %v14930_v42  ;;  %13361 = vmatpush3.bf16.msra.mxu0 %v14941_v43  ;;  %v14980_v42 = vld [vmem:[%s19228_s1 + $0x3c8] sm:$0xff]  }
 0x13b   :  { %13304 = vmatprep.subr.bf16.mxu1 %v14932_v46  ;;  %13362 = vmatprep.subr.bf16.mxu0 %v14943_v48  ;;  %v14991_v43 = vld [vmem:[%s19228_s1 + $0x468] sm:$0xff]  }
 0x13c   :  { %1763 = vmatprep.mubr.bf16.mxu0 %v316_v21  ;;  %v14955_v21 = vld [vmem:[%s19228_s1 + $0x360] sm:$0xff]   ;;  %v14982_v46 = vld [vmem:[%s19228_s1 + $0x388] sm:$0xff]  }
 0x13d   :  { %v14993_v48 = vld [vmem:[%s19228_s1 + $0x428] sm:$0xff]  }
 0x13e   :  { %13305 = vmatpush3.bf16.msra.mxu1 %v14934_v49  ;;  %13363 = vmatpush3.bf16.msra.mxu0 %v14945_v52  ;;  %v14984_v49 = vld [vmem:[%s19228_s1 + $0x3d0] sm:$0xff]  }
 0x13f   :  { %13306 = vmatprep.subr.bf16.mxu1 %v14936_v53  ;;  %13364 = vmatprep.subr.bf16.mxu0 %v14947_v56  ;;  %v14995_v52 = vld [vmem:[%s19228_s1 + $0x470] sm:$0xff]   ;;  %v14990_v56 = vld [vmem:[%s19228_s1 + $0x398] sm:$0xff]  }
 0x140   :  { %v14986_v53 = vld [vmem:[%s19228_s1 + $0x390] sm:$0xff]  }
 0x142   :  { %13307 = vmatpush3.bf16.msra.mxu1 %v14938_v61  ;;  %13365 = vmatpush3.bf16.msra.mxu0 %v14949_v63  ;;  %v14996_v61 = vld [vmem:[%s19228_s1 + $0x3e8] sm:$0xff]  }
 0x143   :  { %13308 = vmatprep.subr.bf16.mxu1 %v14940_v4  ;;  %13366 = vmatprep.subr.bf16.mxu0 %v14951_v6  ;;  %v14998_v63 = vld [vmem:[%s19228_s1 + $0x3a8] sm:$0xff]   ;;  %v15000_v4 = vld [vmem:[%s19228_s1 + $0x3f0] sm:$0xff]  }
 0x144   :  { %v15002_v6 = vld [vmem:[%s19228_s1 + $0x3b0] sm:$0xff]  }
 0x146   :  { %13309 = vmatpush3.bf16.msra.mxu1 %v14942_v7  ;;  %13367 = vmatpush3.bf16.msra.mxu0 %v14953_v11  ;;  %v15003_v7 = vld [vmem:[%s19228_s1 + $0x3f8] sm:$0xff]  }
 0x147   :  { %13338 = vmatprep.subr.bf16.mxu1 %v14944_v19  ;;  %13368 = vmatprep.subr.bf16.mxu0 %v14955_v21  ;;  %v15004_v11 = vld [vmem:[%s19228_s1 + $0x3b8] sm:$0xff]  }
 0x149   :  { %1641 = vmatmul.mubr.bf16.vlgmr.msra.gmra.mrb[24].mxu1 %v309_v54  ;;  %v14967_v54 = vld [vmem:[%s19228_s1 + $0x378] sm:$0xff]  }
 0x14a   :  { %13339 = vmatpush3.bf16.msra.mxu1 %v14946_v10  ;;  %13369 = vmatpush3.bf16.msra.mxu0 %v14957_v12  ;;  %v15825_v12 = vmov 0.0  }
 0x14b   :  { %13340 = vmatprep.subr.bf16.mxu1 %v14948_v15  ;;  %13370 = vmatprep.subr.bf16.mxu0 %v14959_v17 }
 0x14c   :  { %1722 = vmatprep.mubr.bf16.mxu1 %v314_v5  ;;  %v14971_v5 = vld [vmem:[%s19228_s1 + $0x440] sm:$0xff]  }
 0x14e   :  { %13341 = vmatpush3.bf16.msra.mxu1 %v14950_v20  ;;  %13371 = vmatpush3.bf16.msra.mxu0 %v14961_v22 }
 0x14f   :  { %13342 = vmatprep.subr.bf16.mxu1 %v14952_v23  ;;  %13372 = vmatprep.subr.bf16.mxu0 %v14963_v24  ;;  %v614_v23 = vpop.permute.xlu0 %613 }
 0x152   :  { %13343 = vmatpush3.bf16.msra.mxu1 %v14954_v26  ;;  %13373 = vmatpush3.bf16.msra.mxu0 %v14965_v44 }
 0x153   :  { %13344 = vmatprep.subr.bf16.mxu1 %v14956_v50  ;;  %13374 = vmatprep.subr.bf16.mxu0 %v14967_v54  ;;  %v619_v26 = vpop.permute.xlu0 %618 }
 0x156   :  { %13345 = vmatpush3.bf16.msra.mxu1 %v14958_v28  ;;  %13375 = vmatpush3.bf16.msra.mxu0 %v14969_v57 }
 0x157   :  { %13346 = vmatprep.subr.bf16.mxu1 %v14960_v2  ;;  %13404 = vmatprep.subr.bf16.mxu0 %v14971_v5 }
 0x159   :  { %1764 = vmatmul.mubr.bf16.vlgmr.msra.gmra.mrb[28].mxu0 %v315_v18  ;;  %v14974_v18 = vld [vmem:[%s19228_s1 + $0x2b8] sm:$0xff]  }
 0x15a   :  { %13347 = vmatpush3.bf16.msra.mxu1 %v14962_v29  ;;  %13405 = vmatpush3.bf16.msra.mxu0 %v14973_v30 }
 0x15b   :  { %13348 = vmatprep.subr.bf16.mxu1 %v14964_v32  ;;  %13406 = vmatprep.subr.bf16.mxu0 %v14975_v33 }
 0x15c   :  { %1845 = vmatprep.mubr.bf16.mxu0 %v320_v62  ;;  %v14987_v62 = vld [vmem:[%s19228_s1 + $0x460] sm:$0xff]  }
 0x15e   :  { %13349 = vmatpush3.bf16.msra.mxu1 %v14966_v34  ;;  %13407 = vmatpush3.bf16.msra.mxu0 %v14977_v8 }
 0x15f   :  { %13350 = vmatprep.subr.bf16.mxu1 %v14968_v13  ;;  %13408 = vmatprep.subr.bf16.mxu0 %v14979_v16 }
 0x162   :  { %13351 = vmatpush3.bf16.msra.mxu1 %v14970_v35  ;;  %13409 = vmatpush3.bf16.msra.mxu0 %v14981_v38 }
 0x163   :  { %13352 = vmatprep.subr.bf16.mxu1 %v14972_v9  ;;  %13410 = vmatprep.subr.bf16.mxu0 %v14983_v14 }
 0x166   :  { %13353 = vmatpush3.bf16.msra.mxu1 %v14974_v18  ;;  %13411 = vmatpush3.bf16.msra.mxu0 %v14985_v47 }
 0x167   :  { %13382 = vmatprep.subr.bf16.mxu1 %v14976_v59  ;;  %13412 = vmatprep.subr.bf16.mxu0 %v14987_v62 }
 0x169   :  { %1723 = vmatmul.mubr.bf16.vlgmr.msra.gmra.mrb[28].mxu1 %v313_v1  ;;  %v14999_v1 = vld [vmem:[%s19228_s1 + $0x478] sm:$0xff]  }
 0x16a   :  { %13383 = vmatpush3.bf16.msra.mxu1 %v14978_v40  ;;  %13413 = vmatpush3.bf16.msra.mxu0 %v14989_v41 }
 0x16b   :  { %13384 = vmatprep.subr.bf16.mxu1 %v14980_v42  ;;  %13414 = vmatprep.subr.bf16.mxu0 %v14991_v43 }
 0x16c   :  { %1804 = vmatprep.mubr.bf16.mxu1 %v318_v39  ;;  %v14994_v39 = vld [vmem:[%s19228_s1 + $0x3a0] sm:$0xff]  }
 0x16e   :  { %13385 = vmatpush3.bf16.msra.mxu1 %v14982_v46  ;;  %13415 = vmatpush3.bf16.msra.mxu0 %v14993_v48 }
 0x16f   :  { %13386 = vmatprep.subr.bf16.mxu1 %v14984_v49  ;;  %13416 = vmatprep.subr.bf16.mxu0 %v14995_v52 }
 0x172   :  { %13387 = vmatpush3.bf16.msra.mxu1 %v14986_v53  ;;  %13417 = vmatpush3.bf16.msra.mxu0 %v14997_v55 }
 0x173   :  { %13388 = vmatprep.subr.bf16.mxu1 %v14988_v60  ;;  %13418 = vmatprep.subr.bf16.mxu0 %v14999_v1 }
 0x176   :  { %13389 = vmatpush3.bf16.msra.mxu1 %v14990_v56  ;;  %13419 = vmatpush3.bf16.msra.mxu0 %v15001_v27 }
 0x177   :  { %13390 = vmatprep.subr.bf16.mxu1 %v14992_v37 }
 0x179   :  { %1846 = vmatmul.mubr.bf16.vlgmr.msra.gmra.mrb[32].mxu0 %v319_v58 }
 0x17a   :  { %13391 = vmatpush3.bf16.msra.mxu1 %v14994_v39 }
 0x17b   :  { %13392 = vmatprep.subr.bf16.mxu1 %v14996_v61 }
 0x17e   :  { %13393 = vmatpush3.bf16.msra.mxu1 %v14998_v63 }
 0x17f   :  { %13394 = vmatprep.subr.bf16.mxu1 %v15000_v4 }
 0x182   :  { %13395 = vmatpush3.bf16.msra.mxu1 %v15002_v6 }
 0x183   :  { %13396 = vmatprep.subr.bf16.mxu1 %v15003_v7 }
 0x186   :  { %13397 = vmatpush3.bf16.msra.mxu1 %v15004_v11 }
 0x187   :  { %14308 = vmatprep.subr.bf16.mxu1 %v15825_v12 }
 0x189   :  { %1805 = vmatmul.mubr.bf16.vlgmr.msra.gmra.mrb[32].mxu1 %v317_v36 }
 0x18a   :  { %14310 = vmatprep.mubr.msk.bf16.mxu1 %vm15826_vm3, %v15825_v12 }
 0x1dc   :  { %v13244_v45 = vpop.f32.mrb[16].mxu1 }
 0x1dd   :  { %v13245_v51 = vpop.f32.mrb[17].mxu1 }
 0x1de   :  { %v13246_v58 = vadd.f32 %v13245_v51, %v13244_v45  ;;  %v13247_v19 = vpop.f32.mrb[18].mxu1 }
 0x1df   :  { %v13248_v21 = vpop.f32.mrb[19].mxu1 }
 0x1e0   :  { %v13249_v10 = vadd.f32 %v13248_v21, %v13247_v19  ;;  %v1520_v50 = vadd.f32 %v13246_v58, %v614_v23 }
 0x1e2   :  { %v1523_v2 = vadd.f32 %v13249_v10, %v619_v26 }
 0x1ec   :  { %v13288_v15 = vpop.f32.mrb[20].mxu0 }
 0x1ed   :  { %v13289_v17 = vpop.f32.mrb[21].mxu0 }
 0x1ee   :  { %v13290_v31 = vadd.f32 %v13289_v17, %v13288_v15  ;;  %v13291_v36 = vpop.f32.mrb[22].mxu0 }
 0x1ef   :  { %v13292_v20 = vpop.f32.mrb[23].mxu0 }
 0x1f0   :  { %v13293_v22 = vadd.f32 %v13292_v20, %v13291_v36 }
 0x1fc   :  { %v13266_v24 = vpop.f32.mrb[20].mxu1 }
 0x1fd   :  { %v13267_v44 = vpop.f32.mrb[21].mxu1 }
 0x1fe   :  { %v13268_v54 = vadd.f32 %v13267_v44, %v13266_v24  ;;  %v13269_v28 = vpop.f32.mrb[22].mxu1 }
 0x1ff   :  { %v13270_v57 = vpop.f32.mrb[23].mxu1 }
 0x200   :  { %v1561_v5 = vadd.f32 %v13268_v54, %v1520_v50  ;;  %v13271_v29 = vadd.f32 %v13270_v57, %v13269_v28  ;;  %v1857_v50 = vld [vmem:[%s19234_s7] sm:$0xf]  ;;  %v1862_v54 = vpop.permute.xlu1 %1861 }
 0x202   :  { %v1564_v30 = vadd.f32 %v13271_v29, %v1523_v2  ;;  %v1602_v32 = vadd.f32 %v13290_v31, %v1561_v5 }
 0x204   :  { %v1605_v33 = vadd.f32 %v13293_v22, %v1564_v30 }
 0x20c   :  { %v13332_v34 = vpop.f32.mrb[24].mxu0 }
 0x20d   :  { %v13333_v8 = vpop.f32.mrb[25].mxu0 }
 0x20e   :  { %v13334_v13 = vadd.f32 %v13333_v8, %v13332_v34  ;;  %v13335_v16 = vpop.f32.mrb[26].mxu0  ;;  %v15005_v34 = vld [vmem:[%s19236_s9] sm:$0xff]   ;;  %v15006_v8 = vld [vmem:[%s19236_s9 + $0x8] sm:$0xff]  }
 0x20f   :  { %v13336_v35 = vpop.f32.mrb[27].mxu0 }
 0x210   :  { %v13337_v38 = vadd.f32 %v13336_v35, %v13335_v16  ;;  %v15008_v16 = vld [vmem:[%s19236_s9 + $0x18] sm:$0xff]   ;;  %v15009_v35 = vld [vmem:[%s19236_s9 + $0x20] sm:$0xff]  }
 0x21c   :  { %v13310_v9 = vpop.f32.mrb[24].mxu1 }
 0x21d   :  { %v13311_v14 = vpop.f32.mrb[25].mxu1 }
 0x21e   :  { %v13312_v18 = vadd.f32 %v13311_v14, %v13310_v9  ;;  %v13313_v47 = vpop.f32.mrb[26].mxu1  ;;  %v15011_v9 = vld [vmem:[%s19236_s9 + $0x30] sm:$0xff]   ;;  %v15012_v14 = vld [vmem:[%s19236_s9 + $0x38] sm:$0xff]  }
 0x21f   :  { %v13314_v59 = vpop.f32.mrb[27].mxu1 }
 0x220   :  { %v1643_v62 = vadd.f32 %v13312_v18, %v1602_v32  ;;  %v13315_v40 = vadd.f32 %v13314_v59, %v13313_v47  ;;  %v15013_v18 = vld [vmem:[%s19236_s9 + $0x40] sm:$0xff]  }
 0x221   :  { %v15014_v47 = vld [vmem:[#allocation2 + $0x40] sm:$0xff]  }
 0x222   :  { %v1646_v41 = vadd.f32 %v13315_v40, %v1605_v33  ;;  %v1684_v42 = vadd.f32 %v13334_v13, %v1643_v62  ;;  %v15007_v13 = vld [vmem:[%s19236_s9 + $0x10] sm:$0xff]   ;;  %v15015_v59 = vld [vmem:[#allocation2] sm:$0xff]   ;;  %v15016_v62 = vld [vmem:[#allocation2 + $0x48] sm:$0xff]   ;;  %13438 = vmatprep.subr.bf16.mxu0 %v15014_v47 }
 0x223   :  { %13439 = vmatpush3.bf16.msra.mxu0 %v15015_v59  ;;  %v15017_v40 = vld [vmem:[#allocation2 + $0x8] sm:$0xff]  }
 0x224   :  { %v1687_v43 = vadd.f32 %v13337_v38, %v1646_v41  ;;  %v15010_v38 = vld [vmem:[%s19236_s9 + $0x28] sm:$0xff]   ;;  %13440 = vmatprep.subr.bf16.mxu0 %v15016_v62  ;;  %v15018_v41 = vld [vmem:[#allocation2 + $0x50] sm:$0xff]   ;;  %v2220_v62 = vld [vmem:[%s19237_s10] sm:$0xff] }
 0x227   :  { %13441 = vmatpush3.bf16.msra.mxu0 %v15017_v40 }
 0x228   :  { %13442 = vmatprep.subr.bf16.mxu0 %v15018_v41 }
 0x22c   :  { %v13376_v46 = vpop.f32.mrb[28].mxu0 }
 0x22d   :  { %v13377_v48 = vpop.f32.mrb[29].mxu0 }
 0x22e   :  { %v13378_v49 = vadd.f32 %v13377_v48, %v13376_v46  ;;  %v13379_v52 = vpop.f32.mrb[30].mxu0  ;;  %v15021_v46 = vld [vmem:[#allocation2 + $0x18] sm:$0xff]   ;;  %v15022_v48 = vld [vmem:[#allocation2 + $0x60] sm:$0xff]  }
 0x22f   :  { %v13380_v53 = vpop.f32.mrb[31].mxu0 }
 0x230   :  { %v13381_v55 = vadd.f32 %v13380_v53, %v13379_v52  ;;  %v15023_v52 = vld [vmem:[#allocation2 + $0x20] sm:$0xff]   ;;  %v15024_v53 = vld [vmem:[#allocation2 + $0x68] sm:$0xff]  }
 0x23c   :  { %v13354_v60 = vpop.f32.mrb[28].mxu1 }
 0x23d   :  { %v13355_v1 = vpop.f32.mrb[29].mxu1 }
 0x23e   :  { %v13356_v56 = vadd.f32 %v13355_v1, %v13354_v60  ;;  %v13357_v27 = vpop.f32.mrb[30].mxu1  ;;  %v15025_v1 = vld [vmem:[#allocation2 + $0x28] sm:$0xff]  }
 0x23f   :  { %v13358_v37 = vpop.f32.mrb[31].mxu1 }
 0x240   :  { %v1725_v39 = vadd.f32 %v13356_v56, %v1684_v42  ;;  %v13359_v61 = vadd.f32 %v13358_v37, %v13357_v27  ;;  %v15019_v42 = vld [vmem:[#allocation2 + $0x10] sm:$0xff]  }
 0x241   :  { %13443 = vmatpush3.bf16.msra.mxu0 %v15019_v42  ;;  %v15026_v37 = vld [vmem:[#allocation2 + $0x70] sm:$0xff]  }
 0x242   :  { %v1728_v63 = vadd.f32 %v13359_v61, %v1687_v43  ;;  %v1766_v4 = vadd.f32 %v13378_v49, %v1725_v39  ;;  %v15020_v43 = vld [vmem:[#allocation2 + $0x58] sm:$0xff]   ;;  %v15027_v39 = vld [vmem:[#allocation2 + $0x30] sm:$0xff]  }
 0x243   :  { %13444 = vmatprep.subr.bf16.mxu0 %v15020_v43  ;;  %v15028_v61 = vld [vmem:[#allocation2 + $0x78] sm:$0xff]  }
 0x244   :  { %v1769_v6 = vadd.f32 %v13381_v55, %v1728_v63 }
 0x245   :  { %13445 = vmatpush3.bf16.msra.mxu0 %v15021_v46 }
 0x246   :  { %13446 = vmatprep.subr.bf16.mxu0 %v15022_v48 }
 0x249   :  { %13447 = vmatpush3.bf16.msra.mxu0 %v15023_v52 }
 0x24a   :  { %13448 = vmatprep.subr.bf16.mxu0 %v15024_v53  ;;  %v15031_v53 = vld [vmem:[#allocation2 + $0x80] sm:$0xff]  }
 0x24c   :  { %v13420_v7 = vpop.f32.mrb[32].mxu0 }
 0x24d   :  { %v13421_v11 = vpop.f32.mrb[33].mxu0  ;;  %13449 = vmatpush3.bf16.msra.mxu0 %v15025_v1  ;;  %v15032_v1 = vld [vmem:[#allocation2 + $0xc8] sm:$0xff]  }
 0x24e   :  { %v13422_v45 = vadd.f32 %v13421_v11, %v13420_v7  ;;  %v13423_v51 = vpop.f32.mrb[34].mxu0  ;;  %13450 = vmatprep.subr.bf16.mxu0 %v15026_v37  ;;  %v15029_v7 = vld [vmem:[#allocation2 + $0x38] sm:$0xff]   ;;  %v15033_v37 = vld [vmem:[#allocation2 + $0x88] sm:$0xff]  }
 0x24f   :  { %v13424_v58 = vpop.f32.mrb[35].mxu0 }
 0x250   :  { %v13425_v19 = vadd.f32 %v13424_v58, %v13423_v51  ;;  %v15030_v51 = vld [vmem:[#allocation2 + $0xc0] sm:$0xff]  }
 0x251   :  { %13451 = vmatpush3.bf16.msra.mxu0 %v15027_v39  ;;  %v15034_v39 = vld [vmem:[#allocation2 + $0xd0] sm:$0xff]  }
 0x252   :  { %13452 = vmatprep.subr.bf16.mxu0 %v15028_v61  ;;  %v15035_v61 = vld [vmem:[#allocation2 + $0x90] sm:$0xff]  }
 0x255   :  { %13453 = vmatpush3.bf16.msra.mxu0 %v15029_v7  ;;  %v15039_v7 = vld [vmem:[#allocation2 + $0xa0] sm:$0xff]  }
 0x256   :  { %13460 = vmatprep.subr.bf16.mxu0 %v15030_v51  ;;  %v15047_v51 = vld [vmem:[#allocation2 + $0xb8] sm:$0xff]  }
 0x25c   :  { %v13398_v21 = vpop.f32.mrb[32].mxu1 }
 0x25d   :  { %v13399_v10 = vpop.f32.mrb[33].mxu1 }
 0x25e   :  { %v13400_v15 = vadd.f32 %v13399_v10, %v13398_v21  ;;  %v13401_v17 = vpop.f32.mrb[34].mxu1 }
 0x25f   :  { %v13402_v25 = vpop.f32.mrb[35].mxu1 }
 0x260   :  { %v1807_v31 = vadd.f32 %v13400_v15, %v1766_v4  ;;  %v13403_v36 = vadd.f32 %v13402_v25, %v13401_v17 }
 0x262   :  { %v1848_v20 = vadd.f32 %v13422_v45, %v1807_v31  ;;  %v1810_v22 = vadd.f32 %v13403_v36, %v1769_v6 }
 0x264   :  { %v1851_v23 = vadd.f32 %v13425_v19, %v1810_v22  ;;  %v1854_v24 = vmax.f32 %v1848_v20, 0.0 }
 0x266   :  { %v1855_v26 = vmax.f32 %v1851_v23, 0.0 }
 0x268   :  { %v16519_v44 = vpack.c.bf16 %v1855_v26, %v1854_v24 }
 0x26a   :  { %14309 = vmatpush3.bf16.msra.mxu1 %v16519_v44 }
 0x26b   :  { %14314 = vmatprep.subr.bf16.mxu1 %v15825_v12 }
 0x26d   :  { %14311 = vmatmul.mubr.msk.bf16.vlgmr.msra.gmra.mrb[36].mxu1 %vm1864_vm4, %v1857_v50 }
 0x26e   :  { %14316 = vmatprep.mubr.msk.bf16.mxu1 %vm15826_vm3, %v15825_v12 }
 0x340   :  { %v1902_v28 = vpop.f32.mrb[36].mxu1 }
 0x341   :  { %v1903_v57 = vadd.f32 %v1902_v28, %v1862_v54  ;;  %v14312_v2 = vpop.f32.mrb[37].mxu1  ;;  %v15042_v54 = vld [vmem:[#allocation2 + $0x100] sm:$0xff]  }
 0x342   :  { %v1905_v5 = vpop.f32.mrb[38].mxu1 }
 0x343   :  { %v1908_v29 = vmax.f32 %v1903_v57, 0.0  ;;  %v14313_v30 = vpop.f32.mrb[39].mxu1 }
 0x344   :  { %v15045_v30 = vld [vmem:[#allocation2 + $0x108] sm:$0xff]  }
 0x345   :  { %v1927_v32 = vpack.c.bf16 %v1908_v29, %v1908_v29 }
 0x347   :  { %v2003_v33 = vsel %vm2001_vm5, %v1927_v32, 0  ;;  %v2221_v32 = vld [vmem:[%s19237_s10 + $0x8] sm:$0xff] }
 0x348   :  { %14315 = vmatpush3.bf16.msra.mxu1 %v2003_v33  ;;  %v15048_v33 = vld [vmem:[#allocation2 + $0x110] sm:$0xff]  }
 0x349   :  { %14352 = vmatprep.subr.bf16.mxu1 %v15825_v12 }
 0x34b   :  { %14317 = vmatmul.mubr.msk.bf16.vlgmr.msra.gmra.mrb[40].mxu1 %vm1973_vm6, %v15005_v34 }
 0x34c   :  { %14320 = vmatprep.mubr.msk.bf16.mxu1 %vm15826_vm3, %v15825_v12  ;;  %14353 = vmatpush3.bf16.msra.mxu1 %v15042_v54 }
 0x34d   :  { %14354 = vmatprep.subr.bf16.mxu1 %v15825_v12 }
 0x350   :  { %14355 = vmatpush3.bf16.msra.mxu1 %v15045_v30 }
 0x351   :  { %14356 = vmatprep.subr.bf16.mxu1 %v15825_v12 }
 0x353   :  { %14321 = vmatmul.mubr.msk.bf16.gmra.mrb[44].mxu1 %vm1973_vm6, %v15006_v8 }
 0x354   :  { %14324 = vmatprep.mubr.msk.bf16.mxu1 %vm15826_vm3, %v15825_v12  ;;  %14357 = vmatpush3.bf16.msra.mxu1 %v15048_v33 }
 0x355   :  { %14358 = vmatprep.subr.bf16.mxu1 %v15825_v12 }
 0x35b   :  { %14325 = vmatmul.mubr.msk.bf16.gmra.mrb[48].mxu1 %vm1973_vm6, %v15007_v13 }
 0x35c   :  { %14328 = vmatprep.mubr.msk.bf16.mxu1 %vm15826_vm3, %v15825_v12 }
 0x363   :  { %14329 = vmatmul.mubr.msk.bf16.gmra.mrb[52].mxu1 %vm1973_vm6, %v15008_v16 }
 0x364   :  { %14332 = vmatprep.mubr.msk.bf16.mxu1 %vm15826_vm3, %v15825_v12 }
 0x36b   :  { %14333 = vmatmul.mubr.msk.bf16.gmra.mrb[56].mxu1 %vm1973_vm6, %v15009_v35 }
 0x36c   :  { %14336 = vmatprep.mubr.msk.bf16.mxu1 %vm15826_vm3, %v15825_v12 }
 0x373   :  { %14337 = vmatmul.mubr.msk.bf16.gmra.mrb[60].mxu1 %vm1973_vm6, %v15010_v38  ;;  %v15052_v38 = vld [vmem:[#allocation2 + $0x118] sm:$0xff]  }
 0x374   :  { %14340 = vmatprep.mubr.msk.bf16.mxu1 %vm15826_vm3, %v15825_v12  ;;  %14359 = vmatpush3.bf16.msra.mxu1 %v15052_v38 }
 0x375   :  { %14364 = vmatprep.subr.bf16.mxu1 %v15825_v12 }
 0x37b   :  { %14341 = vmatmul.mubr.msk.bf16.gmra.mrb[64].mxu1 %vm1973_vm6, %v15011_v9 }
 0x37c   :  { %14344 = vmatprep.mubr.msk.bf16.mxu1 %vm15826_vm3, %v15825_v12 }
 0x383   :  { %14345 = vmatmul.mubr.msk.bf16.gmra.mrb[68].mxu1 %vm1973_vm6, %v15012_v14 }
 0x384   :  { %14348 = vmatprep.mubr.msk.bf16.mxu1 %vm15826_vm3, %v15825_v12 }
 0x38b   :  { %14349 = vmatmul.mubr.msk.bf16.gmra.mrb[72].mxu1 %vm1973_vm6, %v15013_v18 }
 0x38c   :  { %14360 = vmatprep.mubr.msk.bf16.mxu1 %vm15826_vm3, %v15825_v12 }
 0x41e   :  { %v16585_v49 = vpop.f32.mrb[40].mxu1 }
 0x41f   :  { %v14318_v55 = vpop.f32.mrb[41].mxu1 }
 0x420   :  { %v16587_v60 = vpop.f32.mrb[42].mxu1 }
 0x421   :  { %v2110_v56 = vpack.c.bf16 %v16587_v60, %v16585_v49  ;;  %v14319_v27 = vpop.f32.mrb[43].mxu1  ;;  %v15040_v49 = vld [vmem:[#allocation2 + $0xe8] sm:$0xff]  }
 0x422   :  { %v15041_v60 = vld [vmem:[#allocation2 + $0xa8] sm:$0xff]  }
 0x426   :  { %v2047_v63 = vpop.f32.mrb[44].mxu1 }
 0x427   :  { %v14322_v4 = vpop.f32.mrb[45].mxu1 }
 0x428   :  { %v2050_v6 = vpop.f32.mrb[46].mxu1  ;;  %v15037_v4 = vld [vmem:[#allocation2 + $0x98] sm:$0xff]  }
 0x429   :  { %v14323_v11 = vpop.f32.mrb[47].mxu1  ;;  %v2111_v45 = vpack.c.bf16 %v2050_v6, %v2047_v63  ;;  %v15036_v63 = vld [vmem:[#allocation2 + $0xd8] sm:$0xff]   ;;  %v15038_v6 = vld [vmem:[#allocation2 + $0xe0] sm:$0xff]  }
 0x42a   :  { %v15044_v11 = vld [vmem:[#allocation2 + $0xb0] sm:$0xff]  }
 0x42b   :  { %2120 = vrot.lane.b32.xlu0 %v2111_v45, %s15820_s18  ;;  %v15046_v45 = vld [vmem:[#allocation2 + $0xf8] sm:$0xff]  }
 0x42e   :  { %v16592_v58 = vpop.f32.mrb[48].mxu1 }
 0x42f   :  { %v14326_v19 = vpop.f32.mrb[49].mxu1 }
 0x430   :  { %v2058_v21 = vpop.f32.mrb[50].mxu1 }
 0x431   :  { %v2112_v10 = vpack.c.bf16 %v2058_v21, %v16592_v58  ;;  %v14327_v15 = vpop.f32.mrb[51].mxu1  ;;  %v15051_v58 = vld [vmem:[%s19230_s3 + $0x4] ss:$8 sps:$4 sm:$0xff]  }
 0x436   :  { %v2063_v17 = vpop.f32.mrb[52].mxu1 }
 0x437   :  { %v14330_v25 = vpop.f32.mrb[53].mxu1 }
 0x438   :  { %v2066_v31 = vpop.f32.mrb[54].mxu1 }
 0x439   :  { %v14331_v36 = vpop.f32.mrb[55].mxu1  ;;  %v2113_v20 = vpack.c.bf16 %v2066_v31, %v2063_v17  ;;  %v15055_v17 = vld [vmem:[%s19230_s3 + $0x14] ss:$8 sps:$4 sm:$0xff]   ;;  %v15053_v31 = vld [vmem:[%s19230_s3 + $0x10] ss:$8 sps:$4 sm:$0xff]  }
 0x43a   :  { %v15058_v36 = vld [vmem:[%s19230_s3 + $0x24] ss:$8 sps:$4 sm:$0xff]  }
 0x43b   :  { %2123 = vrot.lane.b32.xlu1 %v2113_v20, %s15820_s18  ;;  %v15056_v20 = vld [vmem:[%s19230_s3 + $0x20] ss:$8 sps:$4 sm:$0xff]  }
 0x43e   :  { %v16596_v22 = vpop.f32.mrb[56].mxu1 }
 0x43f   :  { %v14334_v23 = vpop.f32.mrb[57].mxu1 }
 0x440   :  { %v16598_v24 = vpop.f32.mrb[58].mxu1  ;;  %v15059_v23 = vld [vmem:[%s19230_s3 + $0x30] ss:$8 sps:$4 sm:$0xff]  }
 0x441   :  { %v2114_v26 = vpack.c.bf16 %v16598_v24, %v16596_v22  ;;  %v14335_v50 = vpop.f32.mrb[59].mxu1  ;;  %v15061_v22 = vld [vmem:[%s19230_s3 + $0x34] ss:$8 sps:$4 sm:$0xff]  }
 0x446   :  { %v2079_v28 = vpop.f32.mrb[60].mxu1 }
 0x447   :  { %v14338_v57 = vpop.f32.mrb[61].mxu1 }
 0x448   :  { %v2082_v2 = vpop.f32.mrb[62].mxu1 }
 0x449   :  { %v14339_v5 = vpop.f32.mrb[63].mxu1  ;;  %v2115_v29 = vpack.c.bf16 %v2082_v2, %v2079_v28 }
 0x44b   :  { %2126 = vrot.lane.b32.xlu0 %v2115_v29, %s15820_s18 }
 0x44e   :  { %v16608_v34 = vpop.f32.mrb[64].mxu1 }
 0x44f   :  { %2229 = vperm.xlu0 %14708, %v2221_v32   ;;  %v14342_v8 = vpop.f32.mrb[65].mxu1 }
 0x450   :  { %v16610_v13 = vpop.f32.mrb[66].mxu1 }
 0x451   :  { %v2116_v16 = vpack.c.bf16 %v16610_v13, %v16608_v34  ;;  %v14343_v35 = vpop.f32.mrb[67].mxu1 }
 0x456   :  { %v2095_v9 = vpop.f32.mrb[68].mxu1 }
 0x457   :  { %v14346_v14 = vpop.f32.mrb[69].mxu1 }
 0x458   :  { %v2098_v18 = vpop.f32.mrb[70].mxu1 }
 0x459   :  { %v2117_v47 = vpack.c.bf16 %v2098_v18, %v2095_v9  ;;  %v14347_v59 = vpop.f32.mrb[71].mxu1 }
 0x45b   :  { %2129 = vrot.lane.b32.xlu1 %v2117_v47, %s15820_s18 }
 0x45e   :  { %v2103_v40 = vpop.f32.mrb[72].mxu1 }
 0x45f   :  { %2224 = vperm.xlu1 %14709, %v2220_v62   ;;  %v14350_v41 = vpop.f32.mrb[73].mxu1 }
 0x460   :  { %v2106_v42 = vpop.f32.mrb[74].mxu1 }
 0x461   :  { %v2118_v43 = vpack.c.bf16 %v2106_v42, %v2103_v40  ;;  %v14351_v46 = vpop.f32.mrb[75].mxu1 }
 0x463   :  { %14361 = vmatmul.mubr.msk.bf16.vlgmr.msra.gmra.mrb[76].mxu1 %vm2131_vm7, %v2118_v43 }
 0x464   :  { %14368 = vmatprep.mubr.msk.bf16.mxu1 %vm15826_vm3, %v15825_v12 }
 0x49d   :  { %v2121_v48 = vpop.permute.xlu0 %2120 }
 0x49e   :  { %v2134_v27 = vsel %vm2131_vm7, %v2110_v56, %v2121_v48  ;;  %v15043_v56 = vld [vmem:[#allocation2 + $0xf0] sm:$0xff]  }
 0x4ad   :  { %v2124_v52 = vpop.permute.xlu1 %2123 }
 0x4ae   :  { %v2138_v55 = vsel %vm2131_vm7, %v2112_v10, %v2124_v52  ;;  %v15049_v10 = vld [vmem:[%s19230_s3] ss:$8 sps:$4 sm:$0xff]  }
 0x4af   :  { %2483 = vmatprep.mubr.bf16.mxu0 %v2138_v55 }
 0x4b0   :  { %2484 = vmatmul.mubr.bf16.vlgmr.msra.gmra.mrb[36].mxu0 %v2134_v27 }
 0x4b1   :  { %13461 = vmatpush3.bf16.msra.mxu0 %v15031_v53 }
 0x4b2   :  { %13462 = vmatprep.subr.bf16.mxu0 %v15032_v1 }
 0x4b5   :  { %13463 = vmatpush3.bf16.msra.mxu0 %v15033_v37 }
 0x4b6   :  { %13464 = vmatprep.subr.bf16.mxu0 %v15034_v39 }
 0x4b9   :  { %13465 = vmatpush3.bf16.msra.mxu0 %v15035_v61 }
 0x4ba   :  { %13466 = vmatprep.subr.bf16.mxu0 %v15036_v63 }
 0x4bd   :  { %13467 = vmatpush3.bf16.msra.mxu0 %v15037_v4  ;;  %v2127_v19 = vpop.permute.xlu0 %2126 }
 0x4be   :  { %13468 = vmatprep.subr.bf16.mxu0 %v15038_v6  ;;  %v2142_v25 = vsel %vm2131_vm7, %v2114_v26, %v2127_v19 }
 0x4c1   :  { %13469 = vmatpush3.bf16.msra.mxu0 %v15039_v7 }
 0x4c2   :  { %13470 = vmatprep.subr.bf16.mxu0 %v15040_v49 }
 0x4c5   :  { %13471 = vmatpush3.bf16.msra.mxu0 %v15041_v60 }
 0x4c6   :  { %13472 = vmatprep.subr.bf16.mxu0 %v15043_v56 }
 0x4c9   :  { %13473 = vmatpush3.bf16.msra.mxu0 %v15044_v11 }
 0x4ca   :  { %13474 = vmatprep.subr.bf16.mxu0 %v15046_v45 }
 0x4cd   :  { %13475 = vmatpush3.bf16.msra.mxu0 %v15047_v51  ;;  %v2130_v21 = vpop.permute.xlu1 %2129 }
 0x4ce   :  { %v2146_v15 = vsel %vm2131_vm7, %v2116_v16, %v2130_v21  ;;  %2627 = vmatprep.subr.bf16.mxu0 %v15051_v58  ;;  %v2230_v35 = vpop.permute.xlu0 %2229 }
 0x4cf   :  { %2524 = vmatprep.mubr.bf16.mxu0 %v2146_v15 }
 0x4d0   :  { %2525 = vmatmul.mubr.bf16.vlgmr.msra.gmra.mrb[40].mxu0 %v2142_v25 }
 0x4d1   :  { %2628 = vmatpush1.bf16.msra.mxu0 %v15049_v10  ;;  %2659 = vmatprep.mubr.bf16.mxu0 %v15823_v0 }
 0x4d2   :  { %2629 = vmatprep.subr.bf16.mxu0 %v15055_v17 }
 0x4d5   :  { %2630 = vmatpush1.bf16.msra.mxu0 %v15053_v31 }
 0x4d6   :  { %2631 = vmatprep.subr.bf16.mxu0 %v15058_v36 }
 0x4d9   :  { %2632 = vmatpush1.bf16.msra.mxu0 %v15056_v20 }
 0x4da   :  { %2633 = vmatprep.subr.bf16.mxu0 %v15061_v22 }
 0x4dd   :  { %2634 = vmatpush1.bf16.msra.mxu0 %v15059_v23 }
 0x4de   :  { %3065 = vmatprep.subr.bf16.mxu0 %v15823_v0  ;;  %v2225_v33 = vpop.permute.xlu1 %2224 }
 0x4e0   :  { %12419 = vmatmul.mubr.msk.bf16.vlgmr.msra.gmra.mrb[44].mxu0 %vm2131_vm7, %v16519_v44 }
 0x536   :  { %v2567_v24 = vpop.f32.mrb[76].mxu1 }
 0x537   :  { %v14362_v26 = vpop.f32.mrb[77].mxu1 }
 0x538   :  { %v2570_v50 = vpop.f32.mrb[78].mxu1 }
 0x539   :  { %v14363_v54 = vpop.f32.mrb[79].mxu1 }
 0x583   :  { %v13454_v28 = vpop.f32.mrb[36].mxu0 }
 0x584   :  { %v13455_v57 = vpop.f32.mrb[37].mxu0 }
 0x585   :  { %v13456_v2 = vadd.f32 %v13455_v57, %v13454_v28  ;;  %v13457_v5 = vpop.f32.mrb[38].mxu0 }
 0x586   :  { %v13458_v29 = vpop.f32.mrb[39].mxu0 }
 0x587   :  { %v13459_v30 = vadd.f32 %v13458_v29, %v13457_v5  ;;  %v2486_v16 = vadd.f32 %v13456_v2, %v2225_v33  ;;  %v15064_v33 = vld [vmem:[%s19238_s11 + $0x10] sm:$0xff]  }
 0x589   :  { %v2489_v14 = vadd.f32 %v13459_v30, %v2230_v35  ;;  %v15062_v30 = vld [vmem:[%s19238_s11] sm:$0xff]   ;;  %v15069_v35 = vld [vmem:[%s19238_s11 + $0x38] sm:$0xff]  }
 0x5a3   :  { %v13476_v32 = vpop.f32.mrb[40].mxu0 }
 0x5a4   :  { %v13477_v34 = vpop.f32.mrb[41].mxu0 }
 0x5a5   :  { %v13478_v8 = vadd.f32 %v13477_v34, %v13476_v32  ;;  %v13479_v13 = vpop.f32.mrb[42].mxu0  ;;  %v15063_v32 = vld [vmem:[%s19238_s11 + $0x8] sm:$0xff]   ;;  %v15065_v34 = vld [vmem:[%s19238_s11 + $0x18] sm:$0xff]  }
 0x5a6   :  { %v13480_v38 = vpop.f32.mrb[43].mxu0 }
 0x5a7   :  { %v13481_v9 = vadd.f32 %v13480_v38, %v13479_v13  ;;  %v2527_v44 = vadd.f32 %v13478_v8, %v2486_v16  ;;  %v15066_v8 = vld [vmem:[%s19238_s11 + $0x20] sm:$0xff]   ;;  %v15067_v13 = vld [vmem:[%s19238_s11 + $0x28] sm:$0xff]   ;;  %v15068_v16 = vld [vmem:[%s19238_s11 + $0x30] sm:$0xff]  }
 0x5a8   :  { %v15070_v38 = vld [vmem:[%s19238_s11 + $0x40] sm:$0xff]  }
 0x5a9   :  { %v2568_v18 = vadd.f32 %v2567_v24, %v2527_v44  ;;  %v2530_v47 = vadd.f32 %v13481_v9, %v2489_v14 }
 0x5ab   :  { %v2571_v59 = vadd.f32 %v2570_v50, %v2530_v47  ;;  %v2574_v62 = vmax.f32 %v2568_v18, 0.0 }
 0x5ad   :  { %v2575_v40 = vmax.f32 %v2571_v59, 0.0 }
 0x5af   :  { %v2748_v41 = vpack.c.bf16 %v2575_v40, %v2574_v62  ;;  %v15071_v62 = vld [vmem:[#allocation4] sm:$0xff]  }
 0x5b0   :  { %3066 = vmatpush1.bf16.msra.mxu0 %v15071_v62  ;;  %v15095_v62 = vld [vmem:[%s19228_s1 + $0x50] sm:$0xff]  }
 0x5b1   :  { %14365 = vmatpush3.bf16.msra.mxu1 %v2748_v41  ;;  %3067 = vmatprep.subr.bf16.mxu0 %v15823_v0 }
 0x5b2   :  { %14366 = vmatprep.subr.bf16.mxu1 %v15825_v12 }
 0x5b3   :  { %v2661_v42 = vpop.f32.mrb[44].mxu0 }
 0x5b4   :  { %v2663_v43 = vpop.f32.mrb[45].mxu0 }
 0x5b5   :  { %v2665_v46 = vpop.f32.mrb[46].mxu0 }
 0x5b6   :  { %v2667_v48 = vpop.f32.mrb[47].mxu0  ;;  %v14715_v52 = vpack.i.bf16 %v2665_v46, %v2661_v42 }
 0x5b8   :  { %14716 = vrot.lane.b32.xlu0 %v14715_v52, %s15827_s29  ;;  %14711 = vrot.lane.b32.xlu1 %v14715_v52, %s15828_s30 }
 0x5bc   :  { %14726 = vrot.lane.b32.xlu0 %v14715_v52, %s15820_s18  ;;  %14721 = vrot.lane.b32.xlu1 %v14715_v52, %s15829_s14 }
 0x5c0   :  { %14736 = vrot.lane.b32.xlu0 %v14715_v52, %s15830_s15  ;;  %14731 = vrot.lane.b32.xlu1 %v14715_v52, %s15831_s2 }
 0x5c4   :  { %14741 = vrot.lane.b32.xlu1 %v14715_v52, %s15832_s26 }
 0x62a   :  { %v14717_v53 = vpop.permute.xlu0 %14716  ;;  %v14712_v55 = vpop.permute.xlu1 %14711 }
 0x62b   :  { %v14714_v1 = vunpack.i.h.bf16 %v14712_v55  ;;  %v14713_v27 = vunpack.i.l.bf16 %v14712_v55  ;;  %v14719_v61 = vunpack.i.h.bf16 %v14717_v53  ;;  %v14718_v63 = vunpack.i.l.bf16 %v14717_v53  ;;  %v15073_v55 = vld [vmem:[#allocation4 + $0x10] sm:$0xff]  }
 0x62d   :  { %v2679_v37 = vmax.f32 %v2665_v46, %v14714_v1  ;;  %v2678_v39 = vmax.f32 %v2661_v42, %v14713_v27 }
 0x62e   :  { %v14727_v4 = vpop.permute.xlu0 %14726  ;;  %v14722_v6 = vpop.permute.xlu1 %14721 }
 0x62f   :  { %v14724_v7 = vunpack.i.h.bf16 %v14722_v6  ;;  %v14723_v49 = vunpack.i.l.bf16 %v14722_v6  ;;  %v2686_v60 = vmax.f32 %v2678_v39, %v14718_v63  ;;  %v2687_v56 = vmax.f32 %v2679_v37, %v14719_v61  ;;  %v15074_v39 = vld [vmem:[#allocation4 + $0x18] sm:$0xff]  }
 0x630   :  { %v14729_v11 = vunpack.i.h.bf16 %v14727_v4  ;;  %v14728_v45 = vunpack.i.l.bf16 %v14727_v4  ;;  %v15075_v4 = vld [vmem:[#allocation4 + $0x20] sm:$0xff]  }
 0x631   :  { %v2694_v51 = vmax.f32 %v2686_v60, %v14723_v49  ;;  %v2695_v58 = vmax.f32 %v2687_v56, %v14724_v7  ;;  %v15076_v60 = vld [vmem:[#allocation4 + $0x28] sm:$0xff]  }
 0x632   :  { %v14732_v19 = vpop.permute.xlu1 %14731  ;;  %v14737_v21 = vpop.permute.xlu0 %14736 }
 0x633   :  { %v14734_v10 = vunpack.i.h.bf16 %v14732_v19  ;;  %v14733_v15 = vunpack.i.l.bf16 %v14732_v19  ;;  %v2702_v17 = vmax.f32 %v2694_v51, %v14728_v45  ;;  %v2703_v25 = vmax.f32 %v2695_v58, %v14729_v11  ;;  %v15077_v45 = vld [vmem:[#allocation4 + $0x30] sm:$0xff]  }
 0x634   :  { %v14739_v31 = vunpack.i.h.bf16 %v14737_v21  ;;  %v14738_v36 = vunpack.i.l.bf16 %v14737_v21  ;;  %v15078_v21 = vld [vmem:[#allocation4 + $0x38] sm:$0xff]  }
 0x635   :  { %v2710_v20 = vmax.f32 %v2702_v17, %v14733_v15  ;;  %v2711_v22 = vmax.f32 %v2703_v25, %v14734_v10  ;;  %v15079_v17 = vld [vmem:[#allocation4 + $0x40] sm:$0xff]  }
 0x636   :  { %v14742_v23 = vpop.permute.xlu1 %14741 }
 0x637   :  { %v14744_v24 = vunpack.i.h.bf16 %v14742_v23  ;;  %v14743_v26 = vunpack.i.l.bf16 %v14742_v23  ;;  %v2718_v50 = vmax.f32 %v2710_v20, %v14738_v36  ;;  %v2719_v54 = vmax.f32 %v2711_v22, %v14739_v31  ;;  %v16743_v20 = vld [vmem:[%s19227_s0 + $0x8] sm:$0x77] }
 0x638   :  { %v12459_v23 = vcombine.high %v16743_v20, %v16743_v20 }
 0x639   :  { %v2726_v28 = vmax.f32 %v2718_v50, %v14743_v26  ;;  %v2727_v57 = vmax.f32 %v2719_v54, %v14744_v24 }
 0x63a   :  { %v3211_v54 = vand.u32 %v12459_v23, %v15935_v3  ;;  %v15109_v23 = vld [vmem:[%s19228_s1 + $0x70] sm:$0xff]  }
 0x63b   :  { %v2728_v2 = vmax.f32 %v2726_v28, %v2663_v43  ;;  %v2729_v5 = vmax.f32 %v2727_v57, %v2667_v48  ;;  %v15072_v48 = vld [vmem:[#allocation4 + $0x8] sm:$0xff]   ;;  %v3642_v28 = vld [vmem:[%s19233_s6] sm:$0xff] }
 0x63c   :  { %3068 = vmatpush1.bf16.msra.mxu0 %v15072_v48  ;;  %v15105_v48 = vld [vmem:[%s19228_s1 + $0x68] sm:$0xff]  }
 0x63d   :  { %v2749_v29 = vpack.c.bf16 %v2729_v5, %v2728_v2  ;;  %3069 = vmatprep.subr.bf16.mxu0 %v15823_v0 }
 0x63f   :  { %14367 = vmatpush3.bf16.msra.mxu1 %v2749_v29 }
 0x640   :  { %3070 = vmatpush1.bf16.msra.mxu0 %v15073_v55 }
 0x641   :  { %3071 = vmatprep.subr.bf16.mxu0 %v15823_v0 }
 0x642   :  { %14369 = vmatmul.mubr.msk.bf16.vlgmr.msra.gmra.mrb[80].mxu1 %vm2795_vm8, %v15062_v30 }
 0x643   :  { %14372 = vmatprep.mubr.msk.bf16.mxu1 %vm15826_vm3, %v15825_v12 }
 0x644   :  { %3072 = vmatpush1.bf16.msra.mxu0 %v15074_v39  ;;  %v12458_v39 = vcombine.low %v16743_v20, %v16743_v20  ;;  %v15090_v20 = vld [vmem:[%s19232_s5 + $0x40] sm:$0xff]  }
 0x645   :  { %3073 = vmatprep.subr.bf16.mxu0 %v15823_v0 }
 0x648   :  { %3074 = vmatpush1.bf16.msra.mxu0 %v15075_v4 }
 0x649   :  { %3075 = vmatprep.subr.bf16.mxu0 %v15823_v0 }
 0x64a   :  { %14373 = vmatmul.mubr.msk.bf16.gmra.mrb[84].mxu1 %vm2795_vm8, %v15063_v32  ;;  %v15770_v32 = vld [vmem:[%s19235_s8] sm:$0xff] }
 0x64b   :  { %14376 = vmatprep.mubr.msk.bf16.mxu1 %vm15826_vm3, %v15825_v12 }
 0x64c   :  { %3076 = vmatpush1.bf16.msra.mxu0 %v15076_v60  ;;  %v15099_v60 = vld [vmem:[%s19228_s1 + $0x140] sm:$0xff]  }
 0x64d   :  { %3077 = vmatprep.subr.bf16.mxu0 %v15823_v0 }
 0x650   :  { %3078 = vmatpush1.bf16.msra.mxu0 %v15077_v45  ;;  %v15100_v45 = vld [vmem:[%s19228_s1 + $0x100] sm:$0xff]  }
 0x651   :  { %3079 = vmatprep.subr.bf16.mxu0 %v15823_v0 }
 0x652   :  { %14377 = vmatmul.mubr.msk.bf16.gmra.mrb[88].mxu1 %vm2795_vm8, %v15064_v33  ;;  %v3643_v33 = vld [vmem:[%s19233_s6 + $0x8] sm:$0xff] }
 0x653   :  { %14380 = vmatprep.mubr.msk.bf16.mxu1 %vm15826_vm3, %v15825_v12 }
 0x654   :  { %3080 = vmatpush1.bf16.msra.mxu0 %v15078_v21  ;;  %v15083_v21 = vld [vmem:[%s19232_s5 + $0x8] sm:$0xff]  }
 0x655   :  { %3081 = vmatprep.subr.bf16.mxu0 %v15823_v0 }
 0x658   :  { %3082 = vmatpush1.bf16.msra.mxu0 %v15079_v17  ;;  %v15086_v17 = vld [vmem:[%s19232_s5 + $0x20] sm:$0xff]  }
 0x659   :  { %3213 = vmatprep.subr.bf16.mxu0 %v3211_v54  ;;  %v15112_v54 = vld [vmem:[%s19228_s1 + $0x118] sm:$0xff]  }
 0x65a   :  { %14381 = vmatmul.mubr.msk.bf16.gmra.mrb[92].mxu1 %vm2795_vm8, %v15065_v34 }
 0x65b   :  { %14384 = vmatprep.mubr.msk.bf16.mxu1 %vm15826_vm3, %v15825_v12 }
 0x662   :  { %14385 = vmatmul.mubr.msk.bf16.gmra.mrb[96].mxu1 %vm2795_vm8, %v15066_v8 }
 0x663   :  { %14388 = vmatprep.mubr.msk.bf16.mxu1 %vm15826_vm3, %v15825_v12 }
 0x66a   :  { %14389 = vmatmul.mubr.msk.bf16.gmra.mrb[100].mxu1 %vm2795_vm8, %v15067_v13 }
 0x66b   :  { %14392 = vmatprep.mubr.msk.bf16.mxu1 %vm15826_vm3, %v15825_v12 }
 0x672   :  { %14393 = vmatmul.mubr.msk.bf16.gmra.mrb[104].mxu1 %vm2795_vm8, %v15068_v16 }
 0x673   :  { %14396 = vmatprep.mubr.msk.bf16.mxu1 %vm15826_vm3, %v15825_v12 }
 0x67a   :  { %14397 = vmatmul.mubr.msk.bf16.gmra.mrb[108].mxu1 %vm2795_vm8, %v15069_v35 }
 0x67b   :  { %14400 = vmatprep.mubr.msk.bf16.mxu1 %vm15826_vm3, %v15825_v12 }
 0x682   :  { %14401 = vmatmul.mubr.msk.bf16.gmra.mrb[112].mxu1 %vm2795_vm8, %v15070_v38  ;;  %v15091_v38 = vld [vmem:[%s19228_s1 + $0x40] sm:$0xff]  }
 0x683   :  { %13498 = vmatprep.subr.bf16.mxu1 %v15091_v38 }
 0x715   :  { %v16721_v9 = vpop.f32.mrb[80].mxu1 }
 0x716   :  { %v14370_v44 = vpop.f32.mrb[81].mxu1 }
 0x717   :  { %v16723_v14 = vpop.f32.mrb[82].mxu1  ;;  %v15092_v44 = vld [vmem:[%s19228_s1] sm:$0xff]  }
 0x718   :  { %v2928_v18 = vpack.c.bf16 %v16723_v14, %v16721_v9  ;;  %v14371_v47 = vpop.f32.mrb[83].mxu1  ;;  %13499 = vmatpush3.bf16.msra.mxu1 %v15092_v44  ;;  %v3208_v9 = vand.u32 %v12458_v39, %v15935_v3  ;;  %v15122_v39 = vld [vmem:[%s19228_s1 + $0x90] sm:$0xff]  }
 0x719   :  { %v15093_v47 = vld [vmem:[%s19228_s1 + $0x48] sm:$0xff]  }
 0x71a   :  { %13500 = vmatprep.subr.bf16.mxu1 %v15093_v47 }
 0x71d   :  { %v2865_v59 = vpop.f32.mrb[84].mxu1 }
 0x71e   :  { %v14374_v40 = vpop.f32.mrb[85].mxu1 }
 0x71f   :  { %v2868_v41 = vpop.f32.mrb[86].mxu1  ;;  %v15096_v40 = vld [vmem:[%s19228_s1 + $0x10] sm:$0xff]  }
 0x720   :  { %v2929_v42 = vpack.c.bf16 %v2868_v41, %v2865_v59  ;;  %v14375_v43 = vpop.f32.mrb[87].mxu1  ;;  %v15094_v59 = vld [vmem:[%s19228_s1 + $0x8] sm:$0xff]   ;;  %v15097_v41 = vld [vmem:[%s19228_s1 + $0x58] sm:$0xff]  }
 0x721   :  { %13501 = vmatpush3.bf16.msra.mxu1 %v15094_v59  ;;  %v15101_v43 = vld [vmem:[%s19228_s1 + $0x60] sm:$0xff]  }
 0x722   :  { %2938 = vrot.lane.b32.xlu0 %v2929_v42, %s15832_s26  ;;  %13502 = vmatprep.subr.bf16.mxu1 %v15095_v62  ;;  %v15098_v42 = vld [vmem:[%s19228_s1 + $0x18] sm:$0xff]  }
 0x725   :  { %v2873_v46 = vpop.f32.mrb[88].mxu1  ;;  %13503 = vmatpush3.bf16.msra.mxu1 %v15096_v40 }
 0x726   :  { %v14378_v52 = vpop.f32.mrb[89].mxu1  ;;  %13504 = vmatprep.subr.bf16.mxu1 %v15097_v41 }
 0x727   :  { %v2876_v53 = vpop.f32.mrb[90].mxu1  ;;  %v15106_v52 = vld [vmem:[%s19228_s1 + $0x28] sm:$0xff]  }
 0x728   :  { %v2930_v1 = vpack.c.bf16 %v2876_v53, %v2873_v46  ;;  %v14379_v27 = vpop.f32.mrb[91].mxu1  ;;  %v15102_v46 = vld [vmem:[%s19228_s1 + $0x20] sm:$0xff]  }
 0x729   :  { %13505 = vmatpush3.bf16.msra.mxu1 %v15098_v42 }
 0x72a   :  { %2941 = vrot.lane.b32.xlu1 %v2930_v1, %s15830_s15  ;;  %13506 = vmatprep.subr.bf16.mxu1 %v15101_v43  ;;  %v15116_v43 = vld [vmem:[%s19228_s1 + $0x80] sm:$0xff]  }
 0x72d   :  { %v2881_v37 = vpop.f32.mrb[92].mxu1  ;;  %13507 = vmatpush3.bf16.msra.mxu1 %v15102_v46  ;;  %v15118_v46 = vld [vmem:[%s19228_s1 + $0xc8] sm:$0xff]  }
 0x72e   :  { %v14382_v61 = vpop.f32.mrb[93].mxu1  ;;  %13508 = vmatprep.subr.bf16.mxu1 %v15105_v48  ;;  %v15120_v48 = vld [vmem:[%s19228_s1 + $0x88] sm:$0xff]  }
 0x72f   :  { %v2884_v63 = vpop.f32.mrb[94].mxu1 }
 0x730   :  { %v2931_v6 = vpack.c.bf16 %v2884_v63, %v2881_v37  ;;  %v14383_v7 = vpop.f32.mrb[95].mxu1 }
 0x731   :  { %13509 = vmatpush3.bf16.msra.mxu1 %v15106_v52 }
 0x732   :  { %2944 = vrot.lane.b32.xlu0 %v2931_v6, %s15831_s2  ;;  %13510 = vmatprep.subr.bf16.mxu1 %v15109_v23 }
 0x735   :  { %v2889_v49 = vpop.f32.mrb[96].mxu1 }
 0x736   :  { %v14386_v56 = vpop.f32.mrb[97].mxu1 }
 0x737   :  { %v2892_v11 = vpop.f32.mrb[98].mxu1 }
 0x738   :  { %v2932_v51 = vpack.c.bf16 %v2892_v11, %v2889_v49  ;;  %v14387_v58 = vpop.f32.mrb[99].mxu1  ;;  %v15082_v11 = vld [vmem:[%s19232_s5] sm:$0xff]  }
 0x739   :  { %v15104_v58 = vld [vmem:[%s19228_s1 + $0x108] sm:$0xff]  }
 0x73a   :  { %2947 = vrot.lane.b32.xlu1 %v2932_v51, %s15820_s18  ;;  %v15103_v51 = vld [vmem:[%s19228_s1 + $0x148] sm:$0xff]  }
 0x73d   :  { %v2897_v19 = vpop.f32.mrb[100].mxu1 }
 0x73e   :  { %v14390_v10 = vpop.f32.mrb[101].mxu1 }
 0x73f   :  { %v2900_v15 = vpop.f32.mrb[102].mxu1  ;;  %v15084_v10 = vld [vmem:[%s19232_s5 + $0x10] sm:$0xff]  }
 0x740   :  { %v2933_v25 = vpack.c.bf16 %v2900_v15, %v2897_v19  ;;  %v14391_v31 = vpop.f32.mrb[103].mxu1  ;;  %v15107_v19 = vld [vmem:[%s19228_s1 + $0x150] sm:$0xff]   ;;  %v15085_v15 = vld [vmem:[%s19232_s5 + $0x18] sm:$0xff]  }
 0x741   :  { %v15088_v31 = vld [vmem:[%s19232_s5 + $0x30] sm:$0xff]  }
 0x742   :  { %2950 = vrot.lane.b32.xlu0 %v2933_v25, %s15829_s14  ;;  %v15087_v25 = vld [vmem:[%s19232_s5 + $0x28] sm:$0xff]  }
 0x745   :  { %v2905_v36 = vpop.f32.mrb[104].mxu1 }
 0x746   :  { %v14394_v22 = vpop.f32.mrb[105].mxu1 }
 0x747   :  { %v2908_v24 = vpop.f32.mrb[106].mxu1  ;;  %v15108_v22 = vld [vmem:[%s19228_s1 + $0x110] sm:$0xff]  }
 0x748   :  { %v2934_v26 = vpack.c.bf16 %v2908_v24, %v2905_v36  ;;  %v14395_v50 = vpop.f32.mrb[107].mxu1  ;;  %v15089_v36 = vld [vmem:[%s19232_s5 + $0x38] sm:$0xff]   ;;  %v15110_v24 = vld [vmem:[%s19228_s1 + $0x30] sm:$0xff]  }
 0x749   :  { %13511 = vmatpush3.bf16.msra.mxu1 %v15110_v24  ;;  %v15113_v50 = vld [vmem:[%s19228_s1 + $0x78] sm:$0xff]  }
 0x74a   :  { %2953 = vrot.lane.b32.xlu1 %v2934_v26, %s15827_s29  ;;  %v15111_v26 = vld [vmem:[%s19228_s1 + $0x158] sm:$0xff]   ;;  %13512 = vmatprep.subr.bf16.mxu1 %v15113_v50 }
 0x74b   :  { %v15138_v24 = vld [vmem:[%s19228_s1 + $0xf8] sm:$0xff]  }
 0x74c   :  { %v15140_v50 = vld [vmem:[%s19228_s1 + $0xb8] sm:$0xff]  }
 0x74d   :  { %v2913_v57 = vpop.f32.mrb[108].mxu1 }
 0x74e   :  { %3646 = vperm.xlu1 %14709, %v3642_v28   ;;  %v14398_v2 = vpop.f32.mrb[109].mxu1  ;;  %v15114_v28 = vld [vmem:[%s19228_s1 + $0x38] sm:$0xff]  }
 0x74f   :  { %v2916_v5 = vpop.f32.mrb[110].mxu1  ;;  %13513 = vmatpush3.bf16.msra.mxu1 %v15114_v28  ;;  %v15117_v2 = vld [vmem:[%s19228_s1 + $0x160] sm:$0xff]  }
 0x750   :  { %v2935_v29 = vpack.c.bf16 %v2916_v5, %v2913_v57  ;;  %v14399_v30 = vpop.f32.mrb[111].mxu1  ;;  %v15115_v57 = vld [vmem:[%s19228_s1 + $0xc0] sm:$0xff]  }
 0x751   :  { %13520 = vmatprep.subr.bf16.mxu1 %v15115_v57  ;;  %v15119_v5 = vld [vmem:[%s19228_s1 + $0x120] sm:$0xff]   ;;  %v15126_v30 = vld [vmem:[%s19228_s1 + $0x128] sm:$0xff]  }
 0x752   :  { %4894 = vperm.xlu1 %14709, %v15770_v32   ;;  %2956 = vrot.lane.b32.xlu0 %v2935_v29, %s15828_s30  ;;  %v15124_v29 = vld [vmem:[%s19228_s1 + $0x168] sm:$0xff]   ;;  %v15129_v32 = vld [vmem:[%s19228_s1 + $0x170] sm:$0xff]   ;;  %v15142_v57 = vld [vmem:[%s19228_s1 + $0x1c0] sm:$0xff]  }
 0x755   :  { %v2921_v34 = vpop.f32.mrb[112].mxu1 }
 0x756   :  { %3651 = vperm.xlu0 %14708, %v3643_v33   ;;  %v14402_v8 = vpop.f32.mrb[113].mxu1  ;;  %v15131_v33 = vld [vmem:[%s19228_s1 + $0x130] sm:$0xff]  }
 0x757   :  { %v2924_v13 = vpop.f32.mrb[114].mxu1  ;;  %v15135_v8 = vld [vmem:[%s19228_s1 + $0x138] sm:$0xff]  }
 0x758   :  { %v2936_v16 = vpack.c.bf16 %v2924_v13, %v2921_v34  ;;  %v14403_v35 = vpop.f32.mrb[115].mxu1  ;;  %v15133_v34 = vld [vmem:[%s19228_s1 + $0x178] sm:$0xff]   ;;  %v15137_v13 = vld [vmem:[%s19228_s1 + $0x240] sm:$0xff]  }
 0x75a   :  { %12447 = vmatprep.mubr.msk.bf16.mxu0 %vm1864_vm4, %v2936_v16 }
 0x794   :  { %v2939_v53 = vpop.permute.xlu0 %2938 }
 0x795   :  { %v2960_v37 = vsel %vm1864_vm4, %v2928_v18, %v2939_v53  ;;  %v15121_v53 = vld [vmem:[%s19228_s1 + $0xd0] sm:$0xff]  }
 0x79c   :  { %v2942_v55 = vpop.permute.xlu1 %2941 }
 0x79d   :  { %v2962_v61 = vsel %vm2795_vm8, %v2960_v37, %v2942_v55 }
 0x7a4   :  { %v2945_v1 = vpop.permute.xlu0 %2944 }
 0x7a5   :  { %v2965_v4 = vsel %vm2963_vm9, %v2962_v61, %v2945_v1 }
 0x7ac   :  { %v2948_v27 = vpop.permute.xlu1 %2947 }
 0x7ad   :  { %v2967_v7 = vsel %vm2131_vm7, %v2965_v4, %v2948_v27  ;;  %v15125_v4 = vld [vmem:[%s19228_s1 + $0x98] sm:$0xff]  }
 0x7b4   :  { %v2951_v63 = vpop.permute.xlu0 %2950 }
 0x7b5   :  { %v2970_v49 = vsel %vm2968_vm10, %v2967_v7, %v2951_v63  ;;  %v15123_v63 = vld [vmem:[%s19228_s1 + $0xd8] sm:$0xff]   ;;  %v15127_v7 = vld [vmem:[%s19228_s1 + $0xe0] sm:$0xff]  }
 0x7bc   :  { %v2954_v6 = vpop.permute.xlu1 %2953 }
 0x7bd   :  { %v2973_v14 = vsel %vm2971_vm11, %v2970_v49, %v2954_v6 }
 0x7c4   :  { %v2957_v18 = vpop.permute.xlu0 %2956 }
 0x7c5   :  { %v2976_v56 = vsel %vm2974_vm12, %v2973_v14, %v2957_v18 }
 0x7c6   :  { %3098 = vmatmul.mubr.bf16.vlgmr.msra.gmra.mrb[48].mxu0 %v2976_v56 }
 0x7c7   :  { %3214 = vmatpush1.bf16.msra.mxu0 %v3208_v9  ;;  %3245 = vmatprep.mubr.bf16.mxu0 %v15823_v0 }
 0x7c8   :  { %13542 = vmatprep.subr.bf16.mxu0 %v15099_v60  ;;  %v15128_v60 = vld [vmem:[%s19228_s1 + $0xa0] sm:$0xff]  }
 0x7ce   :  { %12460 = vmatmul.mubr.msk.bf16.vlgmr.msra.gmra.mrb[52].mxu0 %vm142_vm2, %v15082_v11  ;;  %v15139_v11 = vld [vmem:[%s19228_s1 + $0x200] sm:$0xff]  }
 0x7cf   :  { %3255 = vmatprep.mubr.bf16.mxu0 %v15823_v0  ;;  %13543 = vmatpush3.bf16.msra.mxu0 %v15100_v45  ;;  %v15130_v45 = vld [vmem:[%s19228_s1 + $0xe8] sm:$0xff]  }
 0x7d0   :  { %13544 = vmatprep.subr.bf16.mxu0 %v15103_v51  ;;  %v15141_v51 = vld [vmem:[%s19228_s1 + $0x248] sm:$0xff]  }
 0x7d3   :  { %13545 = vmatpush3.bf16.msra.mxu0 %v15104_v58  ;;  %v15132_v58 = vld [vmem:[%s19228_s1 + $0xa8] sm:$0xff]  }
 0x7d4   :  { %13546 = vmatprep.subr.bf16.mxu0 %v15107_v19  ;;  %v15143_v19 = vld [vmem:[%s19228_s1 + $0x208] sm:$0xff]  }
 0x7d6   :  { %12461 = vmatmul.mubr.msk.bf16.gmra.mrb[56].mxu0 %vm142_vm2, %v15083_v21 }
 0x7d7   :  { %3265 = vmatprep.mubr.bf16.mxu0 %v15823_v0  ;;  %13547 = vmatpush3.bf16.msra.mxu0 %v15108_v22  ;;  %v15147_v22 = vld [vmem:[%s19228_s1 + $0x210] sm:$0xff]  }
 0x7d8   :  { %13548 = vmatprep.subr.bf16.mxu0 %v15111_v26  ;;  %v15149_v26 = vld [vmem:[%s19228_s1 + $0x258] sm:$0xff]  }
 0x7db   :  { %13549 = vmatpush3.bf16.msra.mxu0 %v15112_v54  ;;  %v15151_v54 = vld [vmem:[%s19228_s1 + $0x218] sm:$0xff]  }
 0x7dc   :  { %13550 = vmatprep.subr.bf16.mxu0 %v15117_v2  ;;  %v15153_v2 = vld [vmem:[%s19228_s1 + $0x260] sm:$0xff]  }
 0x7de   :  { %12462 = vmatmul.mubr.msk.bf16.gmra.mrb[60].mxu0 %vm142_vm2, %v15084_v10  ;;  %v15134_v10 = vld [vmem:[%s19228_s1 + $0xf0] sm:$0xff]  }
 0x7df   :  { %3275 = vmatprep.mubr.bf16.mxu0 %v15823_v0  ;;  %13551 = vmatpush3.bf16.msra.mxu0 %v15119_v5 }
 0x7e0   :  { %13552 = vmatprep.subr.bf16.mxu0 %v15124_v29 }
 0x7e3   :  { %13553 = vmatpush3.bf16.msra.mxu0 %v15126_v30 }
 0x7e4   :  { %13554 = vmatprep.subr.bf16.mxu0 %v15129_v32 }
 0x7e6   :  { %12463 = vmatmul.mubr.msk.bf16.gmra.mrb[64].mxu0 %vm142_vm2, %v15085_v15  ;;  %v15145_v15 = vld [vmem:[%s19228_s1 + $0x250] sm:$0xff]  }
 0x7e7   :  { %3285 = vmatprep.mubr.bf16.mxu0 %v15823_v0  ;;  %13555 = vmatpush3.bf16.msra.mxu0 %v15131_v33  ;;  %v15144_v33 = vld [vmem:[%s19228_s1 + $0x180] sm:$0xff]  }
 0x7e8   :  { %13556 = vmatprep.subr.bf16.mxu0 %v15133_v34  ;;  %v15155_v34 = vld [vmem:[%s19228_s1 + $0x220] sm:$0xff]  }
 0x7eb   :  { %13557 = vmatpush3.bf16.msra.mxu0 %v15135_v8 }
 0x7ec   :  { %13586 = vmatprep.subr.bf16.mxu0 %v15137_v13  ;;  %v15146_v13 = vld [vmem:[%s19228_s1 + $0x1c8] sm:$0xff]  }
 0x7ee   :  { %12464 = vmatmul.mubr.msk.bf16.gmra.mrb[68].mxu0 %vm142_vm2, %v15086_v17 }
 0x7ef   :  { %3295 = vmatprep.mubr.bf16.mxu0 %v15823_v0 }
 0x7f6   :  { %12465 = vmatmul.mubr.msk.bf16.gmra.mrb[72].mxu0 %vm142_vm2, %v15087_v25 }
 0x7f7   :  { %3305 = vmatprep.mubr.bf16.mxu0 %v15823_v0 }
 0x7fe   :  { %12466 = vmatmul.mubr.msk.bf16.gmra.mrb[76].mxu0 %vm142_vm2, %v15088_v31 }
 0x7ff   :  { %3315 = vmatprep.mubr.bf16.mxu0 %v15823_v0 }
 0x806   :  { %12467 = vmatmul.mubr.msk.bf16.gmra.mrb[80].mxu0 %vm142_vm2, %v15089_v36 }
 0x807   :  { %3325 = vmatprep.mubr.bf16.mxu0 %v15823_v0 }
 0x80e   :  { %12468 = vmatmul.mubr.msk.bf16.gmra.mrb[84].mxu0 %vm142_vm2, %v15090_v20  ;;  %v15136_v20 = vld [vmem:[%s19228_s1 + $0xb0] sm:$0xff]  }
 0x899   :  { %v16920_v16 = vpop.f32.mrb[48].mxu0 }
 0x89a   :  { %v3101_v35 = vpop.f32.mrb[49].mxu0 }
 0x89b   :  { %v16922_v38 = vpop.f32.mrb[50].mxu0  ;;  %v15157_v35 = vld [vmem:[%s19228_s1 + $0x268] sm:$0xff]  }
 0x89c   :  { %v3104_v44 = vpop.f32.mrb[51].mxu0 }
 0x89d   :  { %v15148_v44 = vld [vmem:[%s19228_s1 + $0x188] sm:$0xff]  }
 0x8a1   :  { %v3247_v47 = vpop.f32.mrb[52].mxu0 }
 0x8a2   :  { %v3249_v59 = vpop.f32.mrb[53].mxu0 }
 0x8a3   :  { %v3251_v62 = vpop.f32.mrb[54].mxu0 }
 0x8a4   :  { %v3336_v40 = vpack.c.bf16 %v3251_v62, %v3247_v47  ;;  %v3253_v41 = vpop.f32.mrb[55].mxu0  ;;  %v15159_v47 = vld [vmem:[%s19228_s1 + $0x228] sm:$0xff]   ;;  %v15150_v62 = vld [vmem:[%s19228_s1 + $0x1d0] sm:$0xff]  }
 0x8a5   :  { %v3337_v42 = vpack.c.bf16 %v3253_v41, %v3249_v59 }
 0x8a7   :  { %4550 = vmatprep.mubr.bf16.mxu1 %v3337_v42 }
 0x8a8   :  { %4551 = vmatmul.mubr.bf16.vlgmr.msra.gmra.mrb[116].mxu1 %v3336_v40  ;;  %v15161_v40 = vld [vmem:[%s19228_s1 + $0x270] sm:$0xff]  }
 0x8a9   :  { %13521 = vmatpush3.bf16.msra.mxu1 %v15116_v43  ;;  %v16933_v52 = vpop.f32.mrb[56].mxu0 }
 0x8aa   :  { %13522 = vmatprep.subr.bf16.mxu1 %v15118_v46  ;;  %v3259_v55 = vpop.f32.mrb[57].mxu0 }
 0x8ab   :  { %v16938_v1 = vpop.f32.mrb[58].mxu0 }
 0x8ac   :  { %v3338_v27 = vpack.c.bf16 %v16938_v1, %v16933_v52  ;;  %v3263_v37 = vpop.f32.mrb[59].mxu0  ;;  %v15163_v52 = vld [vmem:[%s19228_s1 + $0x230] sm:$0xff]   ;;  %v15165_v1 = vld [vmem:[%s19228_s1 + $0x278] sm:$0xff]  }
 0x8ad   :  { %13523 = vmatpush3.bf16.msra.mxu1 %v15120_v48  ;;  %v3339_v61 = vpack.c.bf16 %v3263_v37, %v3259_v55  ;;  %v15152_v48 = vld [vmem:[%s19228_s1 + $0x190] sm:$0xff]   ;;  %v15154_v55 = vld [vmem:[%s19228_s1 + $0x1d8] sm:$0xff]  }
 0x8ae   :  { %13524 = vmatprep.subr.bf16.mxu1 %v15121_v53  ;;  %v15167_v37 = vld [vmem:[%s19228_s1 + $0x238] sm:$0xff]  }
 0x8af   :  { %4591 = vmatprep.mubr.bf16.mxu1 %v3339_v61  ;;  %v15158_v61 = vld [vmem:[%s19228_s1 + $0x1e0] sm:$0xff]  }
 0x8b1   :  { %13525 = vmatpush3.bf16.msra.mxu1 %v15122_v39  ;;  %v3267_v6 = vpop.f32.mrb[60].mxu0 }
 0x8b2   :  { %13526 = vmatprep.subr.bf16.mxu1 %v15123_v63  ;;  %v3269_v49 = vpop.f32.mrb[61].mxu0  ;;  %v15169_v63 = vld [vmem:[%s19228_s1 + $0x340] sm:$0xff]  }
 0x8b3   :  { %v3271_v9 = vpop.f32.mrb[62].mxu0 }
 0x8b4   :  { %v3340_v14 = vpack.c.bf16 %v3271_v9, %v3267_v6  ;;  %v3273_v18 = vpop.f32.mrb[63].mxu0  ;;  %v15160_v9 = vld [vmem:[%s19228_s1 + $0x1a0] sm:$0xff]  }
 0x8b5   :  { %13527 = vmatpush3.bf16.msra.mxu1 %v15125_v4  ;;  %v3341_v56 = vpack.c.bf16 %v3273_v18, %v3269_v49 }
 0x8b6   :  { %13528 = vmatprep.subr.bf16.mxu1 %v15127_v7 }
 0x8b7   :  { %4632 = vmatprep.mubr.bf16.mxu0 %v3341_v56  ;;  %v15173_v56 = vld [vmem:[%s19228_s1 + $0x348] sm:$0xff]  }
 0x8b8   :  { %4633 = vmatmul.mubr.bf16.vlgmr.msra.gmra.mrb[88].mxu0 %v3340_v14  ;;  %v15171_v14 = vld [vmem:[%s19228_s1 + $0x300] sm:$0xff]  }
 0x8b9   :  { %13529 = vmatpush3.bf16.msra.mxu1 %v15128_v60  ;;  %13587 = vmatpush3.bf16.msra.mxu0 %v15139_v11  ;;  %v16972_v21 = vpop.f32.mrb[64].mxu0  ;;  %v15162_v60 = vld [vmem:[%s19228_s1 + $0x1e8] sm:$0xff]  }
 0x8ba   :  { %13530 = vmatprep.subr.bf16.mxu1 %v15130_v45  ;;  %13588 = vmatprep.subr.bf16.mxu0 %v15141_v51  ;;  %v3279_v17 = vpop.f32.mrb[65].mxu0  ;;  %v15164_v11 = vld [vmem:[%s19228_s1 + $0x1a8] sm:$0xff]  }
 0x8bb   :  { %v16980_v25 = vpop.f32.mrb[66].mxu0  ;;  %v15175_v45 = vld [vmem:[%s19228_s1 + $0x308] sm:$0xff]  }
 0x8bc   :  { %v3342_v31 = vpack.c.bf16 %v16980_v25, %v16972_v21  ;;  %v3283_v36 = vpop.f32.mrb[67].mxu0  ;;  %v15193_v21 = vld [vmem:[%s19228_s1 + $0x370] sm:$0xff]  }
 0x8bd   :  { %13531 = vmatpush3.bf16.msra.mxu1 %v15132_v58  ;;  %13589 = vmatpush3.bf16.msra.mxu0 %v15143_v19  ;;  %v3343_v23 = vpack.c.bf16 %v3283_v36, %v3279_v17  ;;  %v15166_v58 = vld [vmem:[%s19228_s1 + $0x1f0] sm:$0xff]  }
 0x8be   :  { %13532 = vmatprep.subr.bf16.mxu1 %v15134_v10  ;;  %13590 = vmatprep.subr.bf16.mxu0 %v15145_v15  ;;  %v15177_v19 = vld [vmem:[%s19228_s1 + $0x350] sm:$0xff]  }
 0x8bf   :  { %v15184_v25 = vld [vmem:[%s19228_s1 + $0x290] sm:$0xff]  }
 0x8c1   :  { %13533 = vmatpush3.bf16.msra.mxu1 %v15136_v20  ;;  %13591 = vmatpush3.bf16.msra.mxu0 %v15147_v22  ;;  %v17002_v28 = vpop.f32.mrb[68].mxu0  ;;  %v15168_v20 = vld [vmem:[%s19228_s1 + $0x1b0] sm:$0xff]  }
 0x8c2   :  { %13534 = vmatprep.subr.bf16.mxu1 %v15138_v24  ;;  %13592 = vmatprep.subr.bf16.mxu0 %v15149_v26  ;;  %v3289_v5 = vpop.f32.mrb[69].mxu0  ;;  %v15179_v22 = vld [vmem:[%s19228_s1 + $0x310] sm:$0xff]   ;;  %v15170_v24 = vld [vmem:[%s19228_s1 + $0x1f8] sm:$0xff]  }
 0x8c3   :  { %v3291_v29 = vpop.f32.mrb[70].mxu0  ;;  %v15181_v26 = vld [vmem:[%s19228_s1 + $0x358] sm:$0xff]  }
 0x8c4   :  { %v3344_v30 = vpack.c.bf16 %v3291_v29, %v17002_v28  ;;  %v3293_v32 = vpop.f32.mrb[71].mxu0 }
 0x8c5   :  { %13535 = vmatpush3.bf16.msra.mxu1 %v15140_v50  ;;  %13593 = vmatpush3.bf16.msra.mxu0 %v15151_v54  ;;  %v3345_v8 = vpack.c.bf16 %v3293_v32, %v3289_v5  ;;  %v15172_v50 = vld [vmem:[%s19228_s1 + $0x1b8] sm:$0xff]  }
 0x8c6   :  { %13564 = vmatprep.subr.bf16.mxu1 %v15142_v57  ;;  %13594 = vmatprep.subr.bf16.mxu0 %v15153_v2  ;;  %v15183_v54 = vld [vmem:[%s19228_s1 + $0x318] sm:$0xff]   ;;  %v15174_v57 = vld [vmem:[%s19228_s1 + $0x2c0] sm:$0xff]  }
 0x8c7   :  { %4714 = vmatprep.mubr.bf16.mxu0 %v3345_v8  ;;  %v15185_v2 = vld [vmem:[%s19228_s1 + $0x360] sm:$0xff]  }
 0x8c8   :  { %4592 = vmatmul.mubr.bf16.vlgmr.msra.gmra.mrb[120].mxu1 %v3338_v27  ;;  %v15156_v27 = vld [vmem:[%s19228_s1 + $0x198] sm:$0xff]  }
 0x8c9   :  { %13565 = vmatpush3.bf16.msra.mxu1 %v15144_v33  ;;  %13595 = vmatpush3.bf16.msra.mxu0 %v15155_v34  ;;  %v17032_v59 = vpop.f32.mrb[72].mxu0  ;;  %v15176_v33 = vld [vmem:[%s19228_s1 + $0x280] sm:$0xff]  }
 0x8ca   :  { %13566 = vmatprep.subr.bf16.mxu1 %v15146_v13  ;;  %13596 = vmatprep.subr.bf16.mxu0 %v15157_v35  ;;  %v17040_v41 = vpop.f32.mrb[73].mxu0  ;;  %v15187_v34 = vld [vmem:[%s19228_s1 + $0x320] sm:$0xff]   ;;  %v15178_v13 = vld [vmem:[%s19228_s1 + $0x2c8] sm:$0xff]  }
 0x8cb   :  { %4673 = vmatprep.mubr.bf16.mxu1 %v3343_v23  ;;  %v17042_v42 = vpop.f32.mrb[74].mxu0  ;;  %v15189_v35 = vld [vmem:[%s19228_s1 + $0x368] sm:$0xff]  }
 0x8cc   :  { %v3346_v43 = vpack.c.bf16 %v17042_v42, %v17032_v59  ;;  %v17046_v46 = vpop.f32.mrb[75].mxu0  ;;  %v15225_v59 = vld [vmem:[%s19228_s1 + $0x470] sm:$0xff]  }
 0x8cd   :  { %13567 = vmatpush3.bf16.msra.mxu1 %v15148_v44  ;;  %13597 = vmatpush3.bf16.msra.mxu0 %v15159_v47  ;;  %v3347_v53 = vpack.c.bf16 %v17046_v46, %v17040_v41  ;;  %v15180_v44 = vld [vmem:[%s19228_s1 + $0x288] sm:$0xff]   ;;  %v15197_v41 = vld [vmem:[%s19228_s1 + $0x378] sm:$0xff]   ;;  %v15216_v42 = vld [vmem:[%s19228_s1 + $0x390] sm:$0xff]  }
 0x8ce   :  { %13568 = vmatprep.subr.bf16.mxu1 %v15150_v62  ;;  %13598 = vmatprep.subr.bf16.mxu0 %v15161_v40  ;;  %v15191_v47 = vld [vmem:[%s19228_s1 + $0x328] sm:$0xff]   ;;  %v15182_v62 = vld [vmem:[%s19228_s1 + $0x2d0] sm:$0xff]   ;;  %v15186_v40 = vld [vmem:[%s19228_s1 + $0x2d8] sm:$0xff]  }
 0x8cf   :  { %v15188_v46 = vld [vmem:[%s19228_s1 + $0x298] sm:$0xff]  }
 0x8d1   :  { %13569 = vmatpush3.bf16.msra.mxu1 %v15152_v48  ;;  %13599 = vmatpush3.bf16.msra.mxu0 %v15163_v52  ;;  %v17068_v39 = vpop.f32.mrb[76].mxu0  ;;  %v15199_v48 = vld [vmem:[%s19228_s1 + $0x338] sm:$0xff]   ;;  %v15190_v52 = vld [vmem:[%s19228_s1 + $0x2e0] sm:$0xff]  }
 0x8d2   :  { %13570 = vmatprep.subr.bf16.mxu1 %v15154_v55  ;;  %13600 = vmatprep.subr.bf16.mxu0 %v15165_v1  ;;  %v3309_v4 = vpop.f32.mrb[77].mxu0  ;;  %v15192_v55 = vld [vmem:[%s19228_s1 + $0x2a0] sm:$0xff]  }
 0x8d3   :  { %v17076_v6 = vpop.f32.mrb[78].mxu0  ;;  %v15203_v1 = vld [vmem:[%s19228_s1 + $0x400] sm:$0xff]  }
 0x8d4   :  { %v3348_v7 = vpack.c.bf16 %v17076_v6, %v17068_v39  ;;  %v3313_v49 = vpop.f32.mrb[79].mxu0  ;;  %v15209_v39 = vld [vmem:[%s19228_s1 + $0x450] sm:$0xff]  }
 0x8d5   :  { %13571 = vmatpush3.bf16.msra.mxu1 %v15156_v27  ;;  %13601 = vmatpush3.bf16.msra.mxu0 %v15167_v37  ;;  %v3349_v18 = vpack.c.bf16 %v3313_v49, %v3309_v4  ;;  %v15194_v27 = vld [vmem:[%s19228_s1 + $0x2e8] sm:$0xff]   ;;  %v15198_v4 = vld [vmem:[%s19228_s1 + $0x2f0] sm:$0xff]   ;;  %v15202_v49 = vld [vmem:[%s19228_s1 + $0x2f8] sm:$0xff]  }
 0x8d6   :  { %13572 = vmatprep.subr.bf16.mxu1 %v15158_v61  ;;  %13630 = vmatprep.subr.bf16.mxu0 %v15169_v63  ;;  %v15205_v37 = vld [vmem:[%s19228_s1 + $0x448] sm:$0xff]   ;;  %v15200_v6 = vld [vmem:[%s19228_s1 + $0x2b0] sm:$0xff]  }
 0x8d7   :  { %v15196_v61 = vld [vmem:[%s19228_s1 + $0x2a8] sm:$0xff]  }
 0x8d8   :  { %4715 = vmatmul.mubr.bf16.vlgmr.msra.gmra.mrb[92].mxu0 %v3344_v30  ;;  %v15207_v63 = vld [vmem:[%s19228_s1 + $0x408] sm:$0xff]  }
 0x8d9   :  { %13573 = vmatpush3.bf16.msra.mxu1 %v15160_v9  ;;  %13631 = vmatpush3.bf16.msra.mxu0 %v15171_v14  ;;  %v17098_v51 = vpop.f32.mrb[80].mxu0  ;;  %v15213_v9 = vld [vmem:[%s19228_s1 + $0x458] sm:$0xff]  }
 0x8da   :  { %13574 = vmatprep.subr.bf16.mxu1 %v15162_v60  ;;  %13632 = vmatprep.subr.bf16.mxu0 %v15173_v56  ;;  %v17106_v10 = vpop.f32.mrb[81].mxu0  ;;  %v15204_v14 = vld [vmem:[%s19228_s1 + $0x2b8] sm:$0xff]   ;;  %v15206_v60 = vld [vmem:[%s19228_s1 + $0x3c0] sm:$0xff]  }
 0x8db   :  { %4796 = vmatprep.mubr.bf16.mxu0 %v3349_v18  ;;  %v17108_v15 = vpop.f32.mrb[82].mxu0  ;;  %v15215_v18 = vld [vmem:[%s19228_s1 + $0x418] sm:$0xff]   ;;  %v15217_v56 = vld [vmem:[%s19228_s1 + $0x460] sm:$0xff]  }
 0x8dc   :  { %v3350_v17 = vpack.c.bf16 %v17108_v15, %v17098_v51  ;;  %v17112_v36 = vpop.f32.mrb[83].mxu0 }
 0x8dd   :  { %13575 = vmatpush3.bf16.msra.mxu1 %v15164_v11  ;;  %13633 = vmatpush3.bf16.msra.mxu0 %v15175_v45  ;;  %v3351_v23 = vpack.c.bf16 %v17112_v36, %v17106_v10  ;;  %v15208_v11 = vld [vmem:[%s19228_s1 + $0x380] sm:$0xff]   ;;  %v15229_v10 = vld [vmem:[%s19228_s1 + $0x478] sm:$0xff]  }
 0x8de   :  { %13576 = vmatprep.subr.bf16.mxu1 %v15166_v58  ;;  %13634 = vmatprep.subr.bf16.mxu0 %v15177_v19  ;;  %v15219_v45 = vld [vmem:[%s19228_s1 + $0x420] sm:$0xff]   ;;  %v15210_v58 = vld [vmem:[%s19228_s1 + $0x3c8] sm:$0xff]   ;;  %v15220_v36 = vld [vmem:[%s19228_s1 + $0x398] sm:$0xff]  }
 0x8df   :  { %v15221_v19 = vld [vmem:[%s19228_s1 + $0x468] sm:$0xff]  }
 0x8e1   :  { %13577 = vmatpush3.bf16.msra.mxu1 %v15168_v20  ;;  %13635 = vmatpush3.bf16.msra.mxu0 %v15179_v22  ;;  %v17134_v28 = vpop.f32.mrb[84].mxu0  ;;  %v15212_v20 = vld [vmem:[%s19228_s1 + $0x388] sm:$0xff]  }
 0x8e2   :  { %13578 = vmatprep.subr.bf16.mxu1 %v15170_v24  ;;  %13636 = vmatprep.subr.bf16.mxu0 %v15181_v26  ;;  %v3329_v5 = vpop.f32.mrb[85].mxu0  ;;  %v15223_v22 = vld [vmem:[%s19228_s1 + $0x428] sm:$0xff]   ;;  %v15214_v24 = vld [vmem:[%s19228_s1 + $0x3d0] sm:$0xff]   ;;  %v15218_v26 = vld [vmem:[%s19228_s1 + $0x3d8] sm:$0xff]  }
 0x8e3   :  { %v17142_v29 = vpop.f32.mrb[86].mxu0 }
 0x8e4   :  { %v3352_v30 = vpack.c.bf16 %v17142_v29, %v17134_v28  ;;  %v3333_v32 = vpop.f32.mrb[87].mxu0  ;;  %v15233_v28 = vld [vmem:[%s19228_s1 + $0x3f8] sm:$0xff]  }
 0x8e5   :  { %13579 = vmatpush3.bf16.msra.mxu1 %v15172_v50  ;;  %13637 = vmatpush3.bf16.msra.mxu0 %v15183_v54  ;;  %v3353_v8 = vpack.c.bf16 %v3333_v32, %v3329_v5  ;;  %v15222_v50 = vld [vmem:[%s19228_s1 + $0x3e0] sm:$0xff]   ;;  %v15230_v5 = vld [vmem:[%s19228_s1 + $0x3f0] sm:$0xff]   ;;  %v15234_v29 = vld [vmem:[%s19228_s1 + $0x3b8] sm:$0xff]  }
 0x8e6   :  { %13608 = vmatprep.subr.bf16.mxu1 %v15174_v57  ;;  %13638 = vmatprep.subr.bf16.mxu0 %v15185_v2  ;;  %v15224_v54 = vld [vmem:[%s19228_s1 + $0x3a0] sm:$0xff]   ;;  %v15226_v57 = vld [vmem:[%s19228_s1 + $0x3e8] sm:$0xff]   ;;  %v15232_v32 = vld [vmem:[%s19228_s1 + $0x3b0] sm:$0xff]  }
 0x8e7   :  { %v15228_v2 = vld [vmem:[%s19228_s1 + $0x3a8] sm:$0xff]  }
 0x8e8   :  { %4674 = vmatmul.mubr.bf16.vlgmr.msra.gmra.mrb[124].mxu1 %v3342_v31  ;;  %v15195_v31 = vld [vmem:[%s19228_s1 + $0x330] sm:$0xff]  }
 0x8e9   :  { %13609 = vmatpush3.bf16.msra.mxu1 %v15176_v33  ;;  %13639 = vmatpush3.bf16.msra.mxu0 %v15187_v34 }
 0x8ea   :  { %13610 = vmatprep.subr.bf16.mxu1 %v15178_v13  ;;  %13640 = vmatprep.subr.bf16.mxu0 %v15189_v35 }
 0x8eb   :  { %4755 = vmatprep.mubr.bf16.mxu1 %v3347_v53  ;;  %v15201_v53 = vld [vmem:[%s19228_s1 + $0x440] sm:$0xff]  }
 0x8ed   :  { %13611 = vmatpush3.bf16.msra.mxu1 %v15180_v44  ;;  %13641 = vmatpush3.bf16.msra.mxu0 %v15191_v47 }
 0x8ee   :  { %13612 = vmatprep.subr.bf16.mxu1 %v15182_v62  ;;  %13642 = vmatprep.subr.bf16.mxu0 %v15193_v21 }
 0x8f1   :  { %13613 = vmatpush3.bf16.msra.mxu1 %v15184_v25  ;;  %13643 = vmatpush3.bf16.msra.mxu0 %v15195_v31 }
 0x8f2   :  { %13614 = vmatprep.subr.bf16.mxu1 %v15186_v40  ;;  %13644 = vmatprep.subr.bf16.mxu0 %v15197_v41  ;;  %v3647_v41 = vpop.permute.xlu1 %3646 }
 0x8f5   :  { %13615 = vmatpush3.bf16.msra.mxu1 %v15188_v46  ;;  %13645 = vmatpush3.bf16.msra.mxu0 %v15199_v48  ;;  %v3652_v48 = vpop.permute.xlu0 %3651 }
 0x8f6   :  { %13616 = vmatprep.subr.bf16.mxu1 %v15190_v52  ;;  %13674 = vmatprep.subr.bf16.mxu0 %v15201_v53 }
 0x8f8   :  { %4797 = vmatmul.mubr.bf16.vlgmr.msra.gmra.mrb[96].mxu0 %v3348_v7  ;;  %v15211_v7 = vld [vmem:[%s19228_s1 + $0x410] sm:$0xff]  }
 0x8f9   :  { %13617 = vmatpush3.bf16.msra.mxu1 %v15192_v55  ;;  %13675 = vmatpush3.bf16.msra.mxu0 %v15203_v1 }
 0x8fa   :  { %13618 = vmatprep.subr.bf16.mxu1 %v15194_v27  ;;  %13676 = vmatprep.subr.bf16.mxu0 %v15205_v37 }
 0x8fb   :  { %4878 = vmatprep.mubr.bf16.mxu0 %v3353_v8 }
 0x8fd   :  { %13619 = vmatpush3.bf16.msra.mxu1 %v15196_v61  ;;  %13677 = vmatpush3.bf16.msra.mxu0 %v15207_v63 }
 0x8fe   :  { %13620 = vmatprep.subr.bf16.mxu1 %v15198_v4  ;;  %13678 = vmatprep.subr.bf16.mxu0 %v15209_v39 }
 0x901   :  { %13621 = vmatpush3.bf16.msra.mxu1 %v15200_v6  ;;  %13679 = vmatpush3.bf16.msra.mxu0 %v15211_v7 }
 0x902   :  { %13622 = vmatprep.subr.bf16.mxu1 %v15202_v49  ;;  %13680 = vmatprep.subr.bf16.mxu0 %v15213_v9 }
 0x905   :  { %13623 = vmatpush3.bf16.msra.mxu1 %v15204_v14  ;;  %13681 = vmatpush3.bf16.msra.mxu0 %v15215_v18 }
 0x906   :  { %13652 = vmatprep.subr.bf16.mxu1 %v15206_v60  ;;  %13682 = vmatprep.subr.bf16.mxu0 %v15217_v56 }
 0x908   :  { %4756 = vmatmul.mubr.bf16.vlgmr.msra.gmra.mrb[128].mxu1 %v3346_v43  ;;  %v15227_v43 = vld [vmem:[%s19228_s1 + $0x430] sm:$0xff]  }
 0x909   :  { %13653 = vmatpush3.bf16.msra.mxu1 %v15208_v11  ;;  %13683 = vmatpush3.bf16.msra.mxu0 %v15219_v45 }
 0x90a   :  { %13654 = vmatprep.subr.bf16.mxu1 %v15210_v58  ;;  %13684 = vmatprep.subr.bf16.mxu0 %v15221_v19 }
 0x90b   :  { %4837 = vmatprep.mubr.bf16.mxu1 %v3351_v23  ;;  %v15231_v23 = vld [vmem:[%s19228_s1 + $0x438] sm:$0xff]  }
 0x90d   :  { %13655 = vmatpush3.bf16.msra.mxu1 %v15212_v20  ;;  %13685 = vmatpush3.bf16.msra.mxu0 %v15223_v22 }
 0x90e   :  { %13656 = vmatprep.subr.bf16.mxu1 %v15214_v24  ;;  %13686 = vmatprep.subr.bf16.mxu0 %v15225_v59 }
 0x911   :  { %13657 = vmatpush3.bf16.msra.mxu1 %v15216_v42  ;;  %13687 = vmatpush3.bf16.msra.mxu0 %v15227_v43 }
 0x912   :  { %13658 = vmatprep.subr.bf16.mxu1 %v15218_v26  ;;  %13688 = vmatprep.subr.bf16.mxu0 %v15229_v10 }
 0x915   :  { %13659 = vmatpush3.bf16.msra.mxu1 %v15220_v36  ;;  %13689 = vmatpush3.bf16.msra.mxu0 %v15231_v23 }
 0x916   :  { %13660 = vmatprep.subr.bf16.mxu1 %v15222_v50  ;;  %14410 = vmatprep.subr.bf16.mxu0 %v15825_v12 }
 0x918   :  { %4879 = vmatmul.mubr.bf16.vlgmr.msra.gmra.mrb[100].mxu0 %v3352_v30 }
 0x919   :  { %13661 = vmatpush3.bf16.msra.mxu1 %v15224_v54  ;;  %14412 = vmatprep.mubr.msk.bf16.mxu0 %vm15826_vm3, %v15825_v12 }
 0x91a   :  { %13662 = vmatprep.subr.bf16.mxu1 %v15226_v57 }
 0x91d   :  { %13663 = vmatpush3.bf16.msra.mxu1 %v15228_v2 }
 0x91e   :  { %13664 = vmatprep.subr.bf16.mxu1 %v15230_v5 }
 0x921   :  { %13665 = vmatpush3.bf16.msra.mxu1 %v15232_v32 }
 0x922   :  { %13666 = vmatprep.subr.bf16.mxu1 %v15233_v28 }
 0x925   :  { %13667 = vmatpush3.bf16.msra.mxu1 %v15234_v29 }
 0x926   :  { %14404 = vmatprep.subr.bf16.mxu1 %v15825_v12 }
 0x928   :  { %4838 = vmatmul.mubr.bf16.vlgmr.msra.gmra.mrb[132].mxu1 %v3350_v17 }
 0x929   :  { %14406 = vmatprep.mubr.msk.bf16.mxu1 %vm15826_vm3, %v15825_v12 }
 0x97b   :  { %v13514_v30 = vpop.f32.mrb[116].mxu1 }
 0x97c   :  { %v13515_v33 = vpop.f32.mrb[117].mxu1 }
 0x97d   :  { %v13516_v34 = vadd.f32 %v13515_v33, %v13514_v30  ;;  %v13517_v8 = vpop.f32.mrb[118].mxu1 }
 0x97e   :  { %v13518_v13 = vpop.f32.mrb[119].mxu1 }
 0x97f   :  { %v13519_v35 = vadd.f32 %v13518_v13, %v13517_v8  ;;  %v4553_v51 = vadd.f32 %v13516_v34, %v3647_v41 }
 0x981   :  { %v4556_v53 = vadd.f32 %v13519_v35, %v3652_v48  ;;  %v4890_v48 = vld [vmem:[%s19234_s7] sm:$0xf] }
 0x98b   :  { %v13558_v44 = vpop.f32.mrb[88].mxu0 }
 0x98c   :  { %v13559_v47 = vpop.f32.mrb[89].mxu0 }
 0x98d   :  { %v13560_v62 = vadd.f32 %v13559_v47, %v13558_v44  ;;  %v13561_v21 = vpop.f32.mrb[90].mxu0 }
 0x98e   :  { %v13562_v25 = vpop.f32.mrb[91].mxu0 }
 0x98f   :  { %v13563_v31 = vadd.f32 %v13562_v25, %v13561_v21 }
 0x99b   :  { %v13536_v40 = vpop.f32.mrb[120].mxu1 }
 0x99c   :  { %v13537_v46 = vpop.f32.mrb[121].mxu1 }
 0x99d   :  { %v13538_v15 = vadd.f32 %v13537_v46, %v13536_v40  ;;  %v13539_v17 = vpop.f32.mrb[122].mxu1 }
 0x99e   :  { %v13540_v52 = vpop.f32.mrb[123].mxu1 }
 0x99f   :  { %v4594_v55 = vadd.f32 %v13538_v15, %v4553_v51  ;;  %v13541_v1 = vadd.f32 %v13540_v52, %v13539_v17  ;;  %v4895_v52 = vpop.permute.xlu1 %4894 }
 0x9a1   :  { %v4597_v27 = vadd.f32 %v13541_v1, %v4556_v53  ;;  %v4635_v37 = vadd.f32 %v13560_v62, %v4594_v55 }
 0x9a3   :  { %v4638_v61 = vadd.f32 %v13563_v31, %v4597_v27 }
 0x9ab   :  { %v13602_v63 = vpop.f32.mrb[92].mxu0 }
 0x9ac   :  { %v13603_v4 = vpop.f32.mrb[93].mxu0 }
 0x9ad   :  { %v13604_v39 = vadd.f32 %v13603_v4, %v13602_v63  ;;  %v13605_v6 = vpop.f32.mrb[94].mxu0 }
 0x9ae   :  { %v13606_v7 = vpop.f32.mrb[95].mxu0 }
 0x9af   :  { %v13607_v49 = vadd.f32 %v13606_v7, %v13605_v6  ;;  %v15236_v6 = vld [vmem:[%s19236_s9 + $0x8] sm:$0xff]   ;;  %v15237_v7 = vld [vmem:[%s19236_s9 + $0x10] sm:$0xff]  }
 0x9bb   :  { %v13580_v9 = vpop.f32.mrb[124].mxu1 }
 0x9bc   :  { %v13581_v14 = vpop.f32.mrb[125].mxu1 }
 0x9bd   :  { %v13582_v18 = vadd.f32 %v13581_v14, %v13580_v9  ;;  %v13583_v60 = vpop.f32.mrb[126].mxu1  ;;  %v15239_v9 = vld [vmem:[%s19236_s9 + $0x20] sm:$0xff]   ;;  %v15240_v14 = vld [vmem:[%s19236_s9 + $0x28] sm:$0xff]  }
 0x9be   :  { %v13584_v56 = vpop.f32.mrb[127].mxu1 }
 0x9bf   :  { %v4676_v11 = vadd.f32 %v13582_v18, %v4635_v37  ;;  %v13585_v45 = vadd.f32 %v13584_v56, %v13583_v60  ;;  %v15241_v18 = vld [vmem:[%s19236_s9 + $0x30] sm:$0xff]   ;;  %v15242_v60 = vld [vmem:[%s19236_s9 + $0x38] sm:$0xff]   ;;  %v15243_v56 = vld [vmem:[%s19236_s9 + $0x40] sm:$0xff]  }
 0x9c1   :  { %v4679_v58 = vadd.f32 %v13585_v45, %v4638_v61  ;;  %v4717_v19 = vadd.f32 %v13604_v39, %v4676_v11  ;;  %v15235_v39 = vld [vmem:[%s19236_s9] sm:$0xff]  }
 0x9c2   :  { %v15244_v11 = vld [vmem:[#allocation2 + $0x40] sm:$0xff]  }
 0x9c3   :  { %v4720_v20 = vadd.f32 %v13607_v49, %v4679_v58  ;;  %v15238_v49 = vld [vmem:[%s19236_s9 + $0x18] sm:$0xff]   ;;  %v15245_v45 = vld [vmem:[#allocation2] sm:$0xff]   ;;  %v15246_v58 = vld [vmem:[#allocation2 + $0x48] sm:$0xff]  }
 0x9cb   :  { %v13646_v22 = vpop.f32.mrb[96].mxu0 }
 0x9cc   :  { %v13647_v24 = vpop.f32.mrb[97].mxu0 }
 0x9cd   :  { %v13648_v59 = vadd.f32 %v13647_v24, %v13646_v22  ;;  %v13649_v42 = vpop.f32.mrb[98].mxu0  ;;  %v15249_v22 = vld [vmem:[#allocation2 + $0x10] sm:$0xff]   ;;  %v15250_v24 = vld [vmem:[#allocation2 + $0x58] sm:$0xff]  }
 0x9ce   :  { %v13650_v43 = vpop.f32.mrb[99].mxu0 }
 0x9cf   :  { %v13651_v26 = vadd.f32 %v13650_v43, %v13649_v42  ;;  %v15252_v42 = vld [vmem:[#allocation2 + $0x60] sm:$0xff]  }
 0x9db   :  { %v13624_v10 = vpop.f32.mrb[128].mxu1 }
 0x9dc   :  { %v13625_v36 = vpop.f32.mrb[129].mxu1 }
 0x9dd   :  { %v13626_v23 = vadd.f32 %v13625_v36, %v13624_v10  ;;  %v13627_v50 = vpop.f32.mrb[130].mxu1  ;;  %v15254_v10 = vld [vmem:[#allocation2 + $0x68] sm:$0xff]  }
 0x9de   :  { %v13628_v54 = vpop.f32.mrb[131].mxu1 }
 0x9df   :  { %v4758_v57 = vadd.f32 %v13626_v23, %v4717_v19  ;;  %v13629_v2 = vadd.f32 %v13628_v54, %v13627_v50  ;;  %v15247_v19 = vld [vmem:[#allocation2 + $0x8] sm:$0xff]  }
 0x9e0   :  { %v15255_v50 = vld [vmem:[#allocation2 + $0x28] sm:$0xff]  }
 0x9e1   :  { %v4761_v5 = vadd.f32 %v13629_v2, %v4720_v20  ;;  %v4799_v32 = vadd.f32 %v13648_v59, %v4758_v57  ;;  %v15248_v20 = vld [vmem:[#allocation2 + $0x50] sm:$0xff]   ;;  %v15251_v59 = vld [vmem:[#allocation2 + $0x18] sm:$0xff]  }
 0x9e2   :  { %v15256_v2 = vld [vmem:[#allocation2 + $0x70] sm:$0xff]  }
 0x9e3   :  { %v4802_v28 = vadd.f32 %v13651_v26, %v4761_v5  ;;  %v15253_v26 = vld [vmem:[#allocation2 + $0x20] sm:$0xff]   ;;  %v15257_v5 = vld [vmem:[#allocation2 + $0x30] sm:$0xff]  }
 0x9eb   :  { %v13690_v29 = vpop.f32.mrb[100].mxu0 }
 0x9ec   :  { %v13691_v30 = vpop.f32.mrb[101].mxu0 }
 0x9ed   :  { %v13692_v33 = vadd.f32 %v13691_v30, %v13690_v29  ;;  %v13693_v34 = vpop.f32.mrb[102].mxu0 }
 0x9ee   :  { %v13694_v8 = vpop.f32.mrb[103].mxu0 }
 0x9ef   :  { %v13695_v13 = vadd.f32 %v13694_v8, %v13693_v34 }
 0x9fb   :  { %v13668_v35 = vpop.f32.mrb[132].mxu1 }
 0x9fc   :  { %v13669_v44 = vpop.f32.mrb[133].mxu1 }
 0x9fd   :  { %v13670_v47 = vadd.f32 %v13669_v44, %v13668_v35  ;;  %v13671_v62 = vpop.f32.mrb[134].mxu1 }
 0x9fe   :  { %v13672_v21 = vpop.f32.mrb[135].mxu1 }
 0x9ff   :  { %v4840_v25 = vadd.f32 %v13670_v47, %v4799_v32  ;;  %v13673_v31 = vadd.f32 %v13672_v21, %v13671_v62  ;;  %v15258_v32 = vld [vmem:[#allocation2 + $0x78] sm:$0xff]  }
 0xa01   :  { %v4881_v40 = vadd.f32 %v13692_v33, %v4840_v25  ;;  %v4843_v41 = vadd.f32 %v13673_v31, %v4802_v28  ;;  %v15259_v33 = vld [vmem:[#allocation2 + $0x38] sm:$0xff]  }
 0xa03   :  { %v4884_v46 = vadd.f32 %v13695_v13, %v4843_v41  ;;  %v4887_v51 = vmax.f32 %v4881_v40, 0.0  ;;  %v15260_v13 = vld [vmem:[#allocation2 + $0xc0] sm:$0xff]  }
 0xa05   :  { %v4888_v15 = vmax.f32 %v4884_v46, 0.0 }
 0xa07   :  { %v17335_v17 = vpack.c.bf16 %v4888_v15, %v4887_v51 }
 0xa09   :  { %14405 = vmatpush3.bf16.msra.mxu1 %v17335_v17 }
 0xa0a   :  { %13708 = vmatprep.subr.bf16.mxu1 %v15244_v11 }
 0xa0c   :  { %14407 = vmatmul.mubr.msk.bf16.vlgmr.msra.gmra.mrb[136].mxu1 %vm1864_vm4, %v4890_v48 }
 0xa0d   :  { %13709 = vmatpush3.bf16.msra.mxu1 %v15245_v45 }
 0xa0e   :  { %13710 = vmatprep.subr.bf16.mxu1 %v15246_v58 }
 0xa11   :  { %13711 = vmatpush3.bf16.msra.mxu1 %v15247_v19 }
 0xa12   :  { %13712 = vmatprep.subr.bf16.mxu1 %v15248_v20  ;;  %v5249_v20 = vld [vmem:[%s19237_s10] sm:$0xff] }
 0xa15   :  { %13713 = vmatpush3.bf16.msra.mxu1 %v15249_v22 }
 0xa16   :  { %13714 = vmatprep.subr.bf16.mxu1 %v15250_v24 }
 0xa19   :  { %13715 = vmatpush3.bf16.msra.mxu1 %v15251_v59 }
 0xa1a   :  { %13716 = vmatprep.subr.bf16.mxu1 %v15252_v42 }
 0xa1d   :  { %13717 = vmatpush3.bf16.msra.mxu1 %v15253_v26 }
 0xa1e   :  { %13718 = vmatprep.subr.bf16.mxu1 %v15254_v10 }
 0xa21   :  { %13719 = vmatpush3.bf16.msra.mxu1 %v15255_v50  ;;  %v15261_v50 = vld [vmem:[#allocation2 + $0x80] sm:$0xff]  }
 0xa22   :  { %13720 = vmatprep.subr.bf16.mxu1 %v15256_v2  ;;  %v15262_v2 = vld [vmem:[#allocation2 + $0xc8] sm:$0xff]  }
 0xa25   :  { %13721 = vmatpush3.bf16.msra.mxu1 %v15257_v5 }
 0xa26   :  { %13722 = vmatprep.subr.bf16.mxu1 %v15258_v32  ;;  %v15263_v32 = vld [vmem:[#allocation2 + $0x88] sm:$0xff]  }
 0xa29   :  { %13723 = vmatpush3.bf16.msra.mxu1 %v15259_v33  ;;  %v15267_v33 = vld [vmem:[#allocation2 + $0x98] sm:$0xff]  }
 0xa2a   :  { %13730 = vmatprep.subr.bf16.mxu1 %v15260_v13  ;;  %v15274_v13 = vld [vmem:[#allocation2 + $0xb0] sm:$0xff]  }
 0xadf   :  { %v4934_v53 = vpop.f32.mrb[136].mxu1 }
 0xae0   :  { %v4935_v55 = vadd.f32 %v4934_v53, %v4895_v52  ;;  %v14408_v1 = vpop.f32.mrb[137].mxu1 }
 0xae1   :  { %v4937_v27 = vpop.f32.mrb[138].mxu1 }
 0xae2   :  { %v4940_v37 = vmax.f32 %v4935_v55, 0.0  ;;  %v14409_v61 = vpop.f32.mrb[139].mxu1  ;;  %v15272_v55 = vld [vmem:[#allocation2 + $0x100] sm:$0xff]  }
 0xae4   :  { %v4959_v63 = vpack.c.bf16 %v4940_v37, %v4940_v37 }
 0xae6   :  { %v5033_v4 = vsel %vm2001_vm5, %v4959_v63, 0 }
 0xae7   :  { %14411 = vmatpush3.bf16.msra.mxu0 %v5033_v4  ;;  %v15275_v4 = vld [vmem:[#allocation2 + $0x108] sm:$0xff]  }
 0xae8   :  { %14448 = vmatprep.subr.bf16.mxu0 %v15825_v12 }
 0xaea   :  { %14413 = vmatmul.mubr.msk.bf16.vlgmr.msra.gmra.mrb[104].mxu0 %vm1973_vm6, %v15235_v39  ;;  %v5250_v39 = vld [vmem:[%s19237_s10 + $0x8] sm:$0xff] }
 0xaeb   :  { %14416 = vmatprep.mubr.msk.bf16.mxu0 %vm15826_vm3, %v15825_v12  ;;  %14449 = vmatpush3.bf16.msra.mxu0 %v15272_v55 }
 0xaec   :  { %14450 = vmatprep.subr.bf16.mxu0 %v15825_v12 }
 0xaef   :  { %14451 = vmatpush3.bf16.msra.mxu0 %v15275_v4 }
 0xaf0   :  { %14452 = vmatprep.subr.bf16.mxu0 %v15825_v12 }
 0xaf2   :  { %14417 = vmatmul.mubr.msk.bf16.gmra.mrb[108].mxu0 %vm1973_vm6, %v15236_v6  ;;  %v15278_v6 = vld [vmem:[#allocation2 + $0x110] sm:$0xff]  }
 0xaf3   :  { %14420 = vmatprep.mubr.msk.bf16.mxu0 %vm15826_vm3, %v15825_v12  ;;  %14453 = vmatpush3.bf16.msra.mxu0 %v15278_v6 }
 0xaf4   :  { %14454 = vmatprep.subr.bf16.mxu0 %v15825_v12 }
 0xafa   :  { %14421 = vmatmul.mubr.msk.bf16.gmra.mrb[112].mxu0 %vm1973_vm6, %v15237_v7 }
 0xafb   :  { %14424 = vmatprep.mubr.msk.bf16.mxu0 %vm15826_vm3, %v15825_v12 }
 0xb02   :  { %14425 = vmatmul.mubr.msk.bf16.gmra.mrb[116].mxu0 %vm1973_vm6, %v15238_v49 }
 0xb03   :  { %14428 = vmatprep.mubr.msk.bf16.mxu0 %vm15826_vm3, %v15825_v12 }
 0xb0a   :  { %14429 = vmatmul.mubr.msk.bf16.gmra.mrb[120].mxu0 %vm1973_vm6, %v15239_v9 }
 0xb0b   :  { %14432 = vmatprep.mubr.msk.bf16.mxu0 %vm15826_vm3, %v15825_v12 }
 0xb12   :  { %14433 = vmatmul.mubr.msk.bf16.gmra.mrb[124].mxu0 %vm1973_vm6, %v15240_v14 }
 0xb13   :  { %14436 = vmatprep.mubr.msk.bf16.mxu0 %vm15826_vm3, %v15825_v12 }
 0xb1a   :  { %14437 = vmatmul.mubr.msk.bf16.gmra.mrb[128].mxu0 %vm1973_vm6, %v15241_v18 }
 0xb1b   :  { %14440 = vmatprep.mubr.msk.bf16.mxu0 %vm15826_vm3, %v15825_v12 }
 0xb22   :  { %14441 = vmatmul.mubr.msk.bf16.gmra.mrb[132].mxu0 %vm1973_vm6, %v15242_v60  ;;  %v15282_v60 = vld [vmem:[#allocation2 + $0x118] sm:$0xff]  }
 0xb23   :  { %14444 = vmatprep.mubr.msk.bf16.mxu0 %vm15826_vm3, %v15825_v12  ;;  %14455 = vmatpush3.bf16.msra.mxu0 %v15282_v60 }
 0xb24   :  { %14460 = vmatprep.subr.bf16.mxu0 %v15825_v12 }
 0xb2a   :  { %14445 = vmatmul.mubr.msk.bf16.gmra.mrb[136].mxu0 %vm1973_vm6, %v15243_v56 }
 0xb2b   :  { %14456 = vmatprep.mubr.msk.bf16.mxu0 %vm15826_vm3, %v15825_v12 }
 0xbbd   :  { %v17398_v43 = vpop.f32.mrb[104].mxu0 }
 0xbbe   :  { %v14414_v36 = vpop.f32.mrb[105].mxu0 }
 0xbbf   :  { %v17400_v23 = vpop.f32.mrb[106].mxu0 }
 0xbc0   :  { %v5140_v54 = vpack.c.bf16 %v17400_v23, %v17398_v43  ;;  %v14415_v57 = vpop.f32.mrb[107].mxu0  ;;  %v15270_v43 = vld [vmem:[#allocation2 + $0xe8] sm:$0xff]  }
 0xbc1   :  { %v15271_v23 = vld [vmem:[#allocation2 + $0xa8] sm:$0xff]  }
 0xbc5   :  { %v5077_v28 = vpop.f32.mrb[108].mxu0 }
 0xbc6   :  { %v14418_v29 = vpop.f32.mrb[109].mxu0 }
 0xbc7   :  { %v5080_v30 = vpop.f32.mrb[110].mxu0  ;;  %v15265_v29 = vld [vmem:[#allocation2 + $0x90] sm:$0xff]  }
 0xbc8   :  { %v5141_v34 = vpack.c.bf16 %v5080_v30, %v5077_v28  ;;  %v14419_v8 = vpop.f32.mrb[111].mxu0  ;;  %v15264_v28 = vld [vmem:[#allocation2 + $0xd0] sm:$0xff]   ;;  %v15266_v30 = vld [vmem:[#allocation2 + $0xd8] sm:$0xff]  }
 0xbc9   :  { %v15269_v8 = vld [vmem:[#allocation2 + $0xa0] sm:$0xff]  }
 0xbca   :  { %5150 = vrot.lane.b32.xlu1 %v5141_v34, %s15820_s18  ;;  %v15268_v34 = vld [vmem:[#allocation2 + $0xe0] sm:$0xff]  }
 0xbcd   :  { %v5085_v35 = vpop.f32.mrb[112].mxu0 }
 0xbce   :  { %v14422_v44 = vpop.f32.mrb[113].mxu0 }
 0xbcf   :  { %v5088_v47 = vpop.f32.mrb[114].mxu0  ;;  %v15277_v44 = vld [vmem:[#allocation2 + $0xb8] sm:$0xff]  }
 0xbd0   :  { %v5142_v62 = vpack.c.bf16 %v5088_v47, %v5085_v35  ;;  %v14423_v21 = vpop.f32.mrb[115].mxu0  ;;  %v15276_v35 = vld [vmem:[#allocation2 + $0xf8] sm:$0xff]   ;;  %v15281_v47 = vld [vmem:[%s19230_s3 + $0x4] ss:$8 sps:$4 sm:$0xff]  }
 0xbd5   :  { %v5093_v25 = vpop.f32.mrb[116].mxu0 }
 0xbd6   :  { %v14426_v31 = vpop.f32.mrb[117].mxu0 }
 0xbd7   :  { %v5096_v40 = vpop.f32.mrb[118].mxu0 }
 0xbd8   :  { %v5143_v41 = vpack.c.bf16 %v5096_v40, %v5093_v25  ;;  %v14427_v46 = vpop.f32.mrb[119].mxu0  ;;  %v15279_v25 = vld [vmem:[%s19230_s3] ss:$8 sps:$4 sm:$0xff]   ;;  %v15285_v40 = vld [vmem:[%s19230_s3 + $0x14] ss:$8 sps:$4 sm:$0xff]  }
 0xbd9   :  { %v15283_v46 = vld [vmem:[%s19230_s3 + $0x10] ss:$8 sps:$4 sm:$0xff]  }
 0xbda   :  { %5153 = vrot.lane.b32.xlu0 %v5143_v41, %s15820_s18 }
 0xbdd   :  { %v17406_v51 = vpop.f32.mrb[120].mxu0 }
 0xbde   :  { %v14430_v15 = vpop.f32.mrb[121].mxu0 }
 0xbdf   :  { %v17408_v48 = vpop.f32.mrb[122].mxu0  ;;  %v15288_v15 = vld [vmem:[%s19230_s3 + $0x24] ss:$8 sps:$4 sm:$0xff]  }
 0xbe0   :  { %v5144_v52 = vpack.c.bf16 %v17408_v48, %v17406_v51  ;;  %v14431_v53 = vpop.f32.mrb[123].mxu0  ;;  %v15286_v51 = vld [vmem:[%s19230_s3 + $0x20] ss:$8 sps:$4 sm:$0xff]   ;;  %v15291_v48 = vld [vmem:[%s19230_s3 + $0x34] ss:$8 sps:$4 sm:$0xff]  }
 0xbe5   :  { %v5109_v1 = vpop.f32.mrb[124].mxu0 }
 0xbe6   :  { %v14434_v27 = vpop.f32.mrb[125].mxu0 }
 0xbe7   :  { %v5112_v37 = vpop.f32.mrb[126].mxu0 }
 0xbe8   :  { %v5145_v61 = vpack.c.bf16 %v5112_v37, %v5109_v1  ;;  %v14435_v63 = vpop.f32.mrb[127].mxu0 }
 0xbea   :  { %5156 = vrot.lane.b32.xlu1 %v5145_v61, %s15820_s18 }
 0xbed   :  { %v17418_v7 = vpop.f32.mrb[128].mxu0 }
 0xbee   :  { %5258 = vperm.xlu1 %14709, %v5250_v39   ;;  %v14438_v49 = vpop.f32.mrb[129].mxu0 }
 0xbef   :  { %v17420_v9 = vpop.f32.mrb[130].mxu0 }
 0xbf0   :  { %v5146_v14 = vpack.c.bf16 %v17420_v9, %v17418_v7  ;;  %v14439_v18 = vpop.f32.mrb[131].mxu0 }
 0xbf5   :  { %v5125_v56 = vpop.f32.mrb[132].mxu0 }
 0xbf6   :  { %v14442_v11 = vpop.f32.mrb[133].mxu0 }
 0xbf7   :  { %v5128_v45 = vpop.f32.mrb[134].mxu0 }
 0xbf8   :  { %v5147_v58 = vpack.c.bf16 %v5128_v45, %v5125_v56  ;;  %v14443_v19 = vpop.f32.mrb[135].mxu0 }
 0xbfa   :  { %5159 = vrot.lane.b32.xlu0 %v5147_v58, %s15820_s18 }
 0xbfd   :  { %v5133_v22 = vpop.f32.mrb[136].mxu0 }
 0xbfe   :  { %5253 = vperm.xlu0 %14708, %v5249_v20   ;;  %v14446_v24 = vpop.f32.mrb[137].mxu0 }
 0xbff   :  { %v5136_v59 = vpop.f32.mrb[138].mxu0 }
 0xc00   :  { %v5148_v42 = vpack.c.bf16 %v5136_v59, %v5133_v22  ;;  %v14447_v26 = vpop.f32.mrb[139].mxu0 }
 0xc02   :  { %14457 = vmatmul.mubr.msk.bf16.vlgmr.msra.gmra.mrb[140].mxu0 %vm2131_vm7, %v5148_v42 }
 0xc03   :  { %14464 = vmatprep.mubr.msk.bf16.mxu0 %vm15826_vm3, %v15825_v12 }
 0xc3c   :  { %v5151_v10 = vpop.permute.xlu1 %5150 }
 0xc3d   :  { %v5163_v5 = vsel %vm2131_vm7, %v5140_v54, %v5151_v10  ;;  %v15273_v54 = vld [vmem:[#allocation2 + $0xf0] sm:$0xff]  }
 0xc4c   :  { %v5154_v36 = vpop.permute.xlu0 %5153 }
 0xc4d   :  { %v5167_v57 = vsel %vm2131_vm7, %v5142_v62, %v5154_v36 }
 0xc4e   :  { %5512 = vmatprep.mubr.bf16.mxu1 %v5167_v57 }
 0xc4f   :  { %5513 = vmatmul.mubr.bf16.vlgmr.msra.gmra.mrb[140].mxu1 %v5163_v5 }
 0xc50   :  { %13731 = vmatpush3.bf16.msra.mxu1 %v15261_v50 }
 0xc51   :  { %13732 = vmatprep.subr.bf16.mxu1 %v15262_v2 }
 0xc54   :  { %13733 = vmatpush3.bf16.msra.mxu1 %v15263_v32 }
 0xc55   :  { %13734 = vmatprep.subr.bf16.mxu1 %v15264_v28 }
 0xc58   :  { %13735 = vmatpush3.bf16.msra.mxu1 %v15265_v29 }
 0xc59   :  { %13736 = vmatprep.subr.bf16.mxu1 %v15266_v30 }
 0xc5c   :  { %13737 = vmatpush3.bf16.msra.mxu1 %v15267_v33  ;;  %v5157_v62 = vpop.permute.xlu1 %5156 }
 0xc5d   :  { %13738 = vmatprep.subr.bf16.mxu1 %v15268_v34  ;;  %v5171_v41 = vsel %vm2131_vm7, %v5144_v52, %v5157_v62  ;;  %v15289_v52 = vld [vmem:[%s19230_s3 + $0x30] ss:$8 sps:$4 sm:$0xff]  }
 0xc60   :  { %13739 = vmatpush3.bf16.msra.mxu1 %v15269_v8 }
 0xc61   :  { %13740 = vmatprep.subr.bf16.mxu1 %v15270_v43 }
 0xc64   :  { %13741 = vmatpush3.bf16.msra.mxu1 %v15271_v23 }
 0xc65   :  { %13742 = vmatprep.subr.bf16.mxu1 %v15273_v54 }
 0xc68   :  { %13743 = vmatpush3.bf16.msra.mxu1 %v15274_v13 }
 0xc69   :  { %13744 = vmatprep.subr.bf16.mxu1 %v15276_v35 }
 0xc6c   :  { %13745 = vmatpush3.bf16.msra.mxu1 %v15277_v44  ;;  %v5160_v21 = vpop.permute.xlu0 %5159 }
 0xc6d   :  { %v5175_v31 = vsel %vm2131_vm7, %v5146_v14, %v5160_v21  ;;  %5656 = vmatprep.subr.bf16.mxu1 %v15281_v47  ;;  %v5259_v56 = vpop.permute.xlu1 %5258 }
 0xc6e   :  { %5553 = vmatprep.mubr.bf16.mxu1 %v5175_v31 }
 0xc6f   :  { %5554 = vmatmul.mubr.bf16.vlgmr.msra.gmra.mrb[144].mxu1 %v5171_v41 }
 0xc70   :  { %5657 = vmatpush1.bf16.msra.mxu1 %v15279_v25  ;;  %5688 = vmatprep.mubr.bf16.mxu1 %v15823_v0 }
 0xc71   :  { %5658 = vmatprep.subr.bf16.mxu1 %v15285_v40 }
 0xc74   :  { %5659 = vmatpush1.bf16.msra.mxu1 %v15283_v46 }
 0xc75   :  { %5660 = vmatprep.subr.bf16.mxu1 %v15288_v15 }
 0xc78   :  { %5661 = vmatpush1.bf16.msra.mxu1 %v15286_v51 }
 0xc79   :  { %5662 = vmatprep.subr.bf16.mxu1 %v15291_v48 }
 0xc7c   :  { %5663 = vmatpush1.bf16.msra.mxu1 %v15289_v52 }
 0xc7d   :  { %6089 = vmatprep.subr.bf16.mxu1 %v15823_v0  ;;  %v5254_v49 = vpop.permute.xlu0 %5253 }
 0xc7f   :  { %12677 = vmatmul.mubr.msk.bf16.vlgmr.msra.gmra.mrb[148].mxu1 %vm2131_vm7, %v17335_v17 }
 0xcd5   :  { %v5596_v53 = vpop.f32.mrb[140].mxu0 }
 0xcd6   :  { %v14458_v55 = vpop.f32.mrb[141].mxu0 }
 0xcd7   :  { %v5599_v1 = vpop.f32.mrb[142].mxu0 }
 0xcd8   :  { %v14459_v27 = vpop.f32.mrb[143].mxu0 }
 0xd22   :  { %v13724_v37 = vpop.f32.mrb[140].mxu1 }
 0xd23   :  { %v13725_v61 = vpop.f32.mrb[141].mxu1 }
 0xd24   :  { %v13726_v63 = vadd.f32 %v13725_v61, %v13724_v37  ;;  %v13727_v4 = vpop.f32.mrb[142].mxu1 }
 0xd25   :  { %v13728_v39 = vpop.f32.mrb[143].mxu1 }
 0xd26   :  { %v13729_v6 = vadd.f32 %v13728_v39, %v13727_v4  ;;  %v5515_v14 = vadd.f32 %v13726_v63, %v5254_v49  ;;  %v15292_v49 = vld [vmem:[%s19238_s11] sm:$0xff]  }
 0xd28   :  { %v5518_v45 = vadd.f32 %v13729_v6, %v5259_v56  ;;  %v15297_v56 = vld [vmem:[%s19238_s11 + $0x28] sm:$0xff]  }
 0xd42   :  { %v13746_v7 = vpop.f32.mrb[144].mxu1 }
 0xd43   :  { %v13747_v9 = vpop.f32.mrb[145].mxu1 }
 0xd44   :  { %v13748_v18 = vadd.f32 %v13747_v9, %v13746_v7  ;;  %v13749_v60 = vpop.f32.mrb[146].mxu1  ;;  %v15293_v9 = vld [vmem:[%s19238_s11 + $0x8] sm:$0xff]  }
 0xd45   :  { %v13750_v11 = vpop.f32.mrb[147].mxu1 }
 0xd46   :  { %v13751_v17 = vadd.f32 %v13750_v11, %v13749_v60  ;;  %v5556_v58 = vadd.f32 %v13748_v18, %v5515_v14  ;;  %v15294_v14 = vld [vmem:[%s19238_s11 + $0x10] sm:$0xff]   ;;  %v15295_v18 = vld [vmem:[%s19238_s11 + $0x18] sm:$0xff]   ;;  %v15296_v60 = vld [vmem:[%s19238_s11 + $0x20] sm:$0xff]  }
 0xd47   :  { %v15298_v11 = vld [vmem:[%s19238_s11 + $0x30] sm:$0xff]  }
 0xd48   :  { %v5597_v19 = vadd.f32 %v5596_v53, %v5556_v58  ;;  %v5559_v20 = vadd.f32 %v13751_v17, %v5518_v45  ;;  %v15299_v45 = vld [vmem:[%s19238_s11 + $0x38] sm:$0xff]   ;;  %v15300_v17 = vld [vmem:[%s19238_s11 + $0x40] sm:$0xff]  }
 0xd4a   :  { %v5600_v22 = vadd.f32 %v5599_v1, %v5559_v20  ;;  %v5603_v24 = vmax.f32 %v5597_v19, 0.0 }
 0xd4c   :  { %v5604_v59 = vmax.f32 %v5600_v22, 0.0 }
 0xd4e   :  { %v5777_v42 = vpack.c.bf16 %v5604_v59, %v5603_v24 }
 0xd50   :  { %14461 = vmatpush3.bf16.msra.mxu0 %v5777_v42  ;;  %v15301_v42 = vld [vmem:[#allocation4] sm:$0xff]  }
 0xd51   :  { %14462 = vmatprep.subr.bf16.mxu0 %v15825_v12  ;;  %6090 = vmatpush1.bf16.msra.mxu1 %v15301_v42  ;;  %v15323_v42 = vld [vmem:[%s19228_s1 + $0x48] sm:$0xff]  }
 0xd52   :  { %v5690_v26 = vpop.f32.mrb[148].mxu1  ;;  %6091 = vmatprep.subr.bf16.mxu1 %v15823_v0 }
 0xd53   :  { %v5692_v10 = vpop.f32.mrb[149].mxu1 }
 0xd54   :  { %v5694_v36 = vpop.f32.mrb[150].mxu1 }
 0xd55   :  { %v5696_v50 = vpop.f32.mrb[151].mxu1  ;;  %v14750_v57 = vpack.i.bf16 %v5694_v36, %v5690_v26 }
 0xd57   :  { %14751 = vrot.lane.b32.xlu1 %v14750_v57, %s15827_s29  ;;  %14746 = vrot.lane.b32.xlu0 %v14750_v57, %s15828_s30 }
 0xd5b   :  { %14761 = vrot.lane.b32.xlu1 %v14750_v57, %s15820_s18  ;;  %14756 = vrot.lane.b32.xlu0 %v14750_v57, %s15829_s14 }
 0xd5f   :  { %14771 = vrot.lane.b32.xlu1 %v14750_v57, %s15830_s15  ;;  %14766 = vrot.lane.b32.xlu0 %v14750_v57, %s15831_s2 }
 0xd63   :  { %14776 = vrot.lane.b32.xlu0 %v14750_v57, %s15832_s26 }
 0xdc9   :  { %v14752_v2 = vpop.permute.xlu1 %14751  ;;  %v14747_v5 = vpop.permute.xlu0 %14746 }
 0xdca   :  { %v14749_v32 = vunpack.i.h.bf16 %v14747_v5  ;;  %v14748_v28 = vunpack.i.l.bf16 %v14747_v5  ;;  %v14754_v33 = vunpack.i.h.bf16 %v14752_v2  ;;  %v14753_v34 = vunpack.i.l.bf16 %v14752_v2  ;;  %v15302_v2 = vld [vmem:[#allocation4 + $0x8] sm:$0xff]  }
 0xdcb   :  { %6092 = vmatpush1.bf16.msra.mxu1 %v15302_v2  ;;  %v15331_v2 = vld [vmem:[%s19228_s1 + $0x60] sm:$0xff]  }
 0xdcc   :  { %v5708_v29 = vmax.f32 %v5694_v36, %v14749_v32  ;;  %v5707_v30 = vmax.f32 %v5690_v26, %v14748_v28  ;;  %v15303_v28 = vld [vmem:[#allocation4 + $0x10] sm:$0xff]   ;;  %6093 = vmatprep.subr.bf16.mxu1 %v15823_v0 }
 0xdcd   :  { %v14762_v8 = vpop.permute.xlu1 %14761  ;;  %v14757_v43 = vpop.permute.xlu0 %14756 }
 0xdce   :  { %v14759_v23 = vunpack.i.h.bf16 %v14757_v43  ;;  %v14758_v54 = vunpack.i.l.bf16 %v14757_v43  ;;  %v5715_v13 = vmax.f32 %v5707_v30, %v14753_v34  ;;  %v5716_v35 = vmax.f32 %v5708_v29, %v14754_v33  ;;  %v15304_v34 = vld [vmem:[#allocation4 + $0x18] sm:$0xff]  }
 0xdcf   :  { %v14764_v44 = vunpack.i.h.bf16 %v14762_v8  ;;  %v14763_v47 = vunpack.i.l.bf16 %v14762_v8  ;;  %6094 = vmatpush1.bf16.msra.mxu1 %v15303_v28  ;;  %v15336_v28 = vld [vmem:[%s19228_s1 + $0x28] sm:$0xff]  }
 0xdd0   :  { %v5723_v62 = vmax.f32 %v5715_v13, %v14758_v54  ;;  %v5724_v21 = vmax.f32 %v5716_v35, %v14759_v23  ;;  %6095 = vmatprep.subr.bf16.mxu1 %v15823_v0  ;;  %v15305_v23 = vld [vmem:[#allocation4 + $0x20] sm:$0xff]  }
 0xdd1   :  { %v14767_v25 = vpop.permute.xlu0 %14766  ;;  %v14772_v31 = vpop.permute.xlu1 %14771 }
 0xdd2   :  { %v14769_v40 = vunpack.i.h.bf16 %v14767_v25  ;;  %v14768_v41 = vunpack.i.l.bf16 %v14767_v25  ;;  %v5731_v46 = vmax.f32 %v5723_v62, %v14763_v47  ;;  %v5732_v15 = vmax.f32 %v5724_v21, %v14764_v44  ;;  %v15306_v44 = vld [vmem:[#allocation4 + $0x28] sm:$0xff]   ;;  %v15307_v21 = vld [vmem:[#allocation4 + $0x30] sm:$0xff]  }
 0xdd3   :  { %v14774_v51 = vunpack.i.h.bf16 %v14772_v31  ;;  %v14773_v48 = vunpack.i.l.bf16 %v14772_v31  ;;  %6096 = vmatpush1.bf16.msra.mxu1 %v15304_v34 }
 0xdd4   :  { %v5739_v52 = vmax.f32 %v5731_v46, %v14768_v41  ;;  %v5740_v53 = vmax.f32 %v5732_v15, %v14769_v40  ;;  %6097 = vmatprep.subr.bf16.mxu1 %v15823_v0  ;;  %v15308_v41 = vld [vmem:[#allocation4 + $0x38] sm:$0xff]  }
 0xdd5   :  { %v14777_v55 = vpop.permute.xlu0 %14776 }
 0xdd6   :  { %v14779_v1 = vunpack.i.h.bf16 %v14777_v55  ;;  %v14778_v27 = vunpack.i.l.bf16 %v14777_v55  ;;  %v5747_v37 = vmax.f32 %v5739_v52, %v14773_v48  ;;  %v5748_v61 = vmax.f32 %v5740_v53, %v14774_v51  ;;  %v15309_v51 = vld [vmem:[#allocation4 + $0x40] sm:$0xff]   ;;  %v17553_v55 = vld [vmem:[%s19227_s0 + $0x10] sm:$0x77] }
 0xdd7   :  { %6098 = vmatpush1.bf16.msra.mxu1 %v15305_v23 }
 0xdd8   :  { %v5755_v63 = vmax.f32 %v5747_v37, %v14778_v27  ;;  %v5756_v4 = vmax.f32 %v5748_v61, %v14779_v1  ;;  %6099 = vmatprep.subr.bf16.mxu1 %v15823_v0  ;;  %v12719_v27 = vcombine.high %v17553_v55, %v17553_v55 }
 0xdda   :  { %v5757_v39 = vmax.f32 %v5755_v63, %v5692_v10  ;;  %v5758_v6 = vmax.f32 %v5756_v4, %v5696_v50  ;;  %v6236_v4 = vand.u32 %v12719_v27, %v15935_v3  ;;  %v15320_v27 = vld [vmem:[%s19232_s5 + $0x40] sm:$0xff]  }
 0xddb   :  { %6100 = vmatpush1.bf16.msra.mxu1 %v15306_v44 }
 0xddc   :  { %v5778_v7 = vpack.c.bf16 %v5758_v6, %v5757_v39  ;;  %6101 = vmatprep.subr.bf16.mxu1 %v15823_v0  ;;  %v6667_v39 = vld [vmem:[%s19233_s6] sm:$0xff] }
 0xdde   :  { %14463 = vmatpush3.bf16.msra.mxu0 %v5778_v7 }
 0xddf   :  { %6102 = vmatpush1.bf16.msra.mxu1 %v15307_v21 }
 0xde0   :  { %6103 = vmatprep.subr.bf16.mxu1 %v15823_v0 }
 0xde1   :  { %14465 = vmatmul.mubr.msk.bf16.vlgmr.msra.gmra.mrb[144].mxu0 %vm2795_vm8, %v15292_v49 }
 0xde2   :  { %14468 = vmatprep.mubr.msk.bf16.mxu0 %vm15826_vm3, %v15825_v12 }
 0xde3   :  { %6104 = vmatpush1.bf16.msra.mxu1 %v15308_v41  ;;  %v15334_v41 = vld [vmem:[%s19228_s1 + $0x108] sm:$0xff]  }
 0xde4   :  { %6105 = vmatprep.subr.bf16.mxu1 %v15823_v0 }
 0xde7   :  { %6106 = vmatpush1.bf16.msra.mxu1 %v15309_v51  ;;  %v15314_v51 = vld [vmem:[%s19232_s5 + $0x10] sm:$0xff]  }
 0xde8   :  { %6238 = vmatprep.subr.bf16.mxu1 %v6236_v4  ;;  %v15341_v4 = vld [vmem:[%s19228_s1 + $0x158] sm:$0xff]  }
 0xde9   :  { %14469 = vmatmul.mubr.msk.bf16.gmra.mrb[148].mxu0 %vm2795_vm8, %v15293_v9  ;;  %v7916_v9 = vld [vmem:[%s19235_s8] sm:$0xff] }
 0xdea   :  { %14472 = vmatprep.mubr.msk.bf16.mxu0 %vm15826_vm3, %v15825_v12 }
 0xdf1   :  { %14473 = vmatmul.mubr.msk.bf16.gmra.mrb[152].mxu0 %vm2795_vm8, %v15294_v14 }
 0xdf2   :  { %14476 = vmatprep.mubr.msk.bf16.mxu0 %vm15826_vm3, %v15825_v12 }
 0xdf9   :  { %14477 = vmatmul.mubr.msk.bf16.gmra.mrb[156].mxu0 %vm2795_vm8, %v15295_v18 }
 0xdfa   :  { %14480 = vmatprep.mubr.msk.bf16.mxu0 %vm15826_vm3, %v15825_v12 }
 0xe01   :  { %14481 = vmatmul.mubr.msk.bf16.gmra.mrb[160].mxu0 %vm2795_vm8, %v15296_v60  ;;  %v6668_v60 = vld [vmem:[%s19233_s6 + $0x8] sm:$0xff] }
 0xe02   :  { %14484 = vmatprep.mubr.msk.bf16.mxu0 %vm15826_vm3, %v15825_v12 }
 0xe09   :  { %14485 = vmatmul.mubr.msk.bf16.gmra.mrb[164].mxu0 %vm2795_vm8, %v15297_v56 }
 0xe0a   :  { %14488 = vmatprep.mubr.msk.bf16.mxu0 %vm15826_vm3, %v15825_v12 }
 0xe11   :  { %14489 = vmatmul.mubr.msk.bf16.gmra.mrb[168].mxu0 %vm2795_vm8, %v15298_v11 }
 0xe12   :  { %14492 = vmatprep.mubr.msk.bf16.mxu0 %vm15826_vm3, %v15825_v12 }
 0xe19   :  { %14493 = vmatmul.mubr.msk.bf16.gmra.mrb[172].mxu0 %vm2795_vm8, %v15299_v45 }
 0xe1a   :  { %14496 = vmatprep.mubr.msk.bf16.mxu0 %vm15826_vm3, %v15825_v12 }
 0xe21   :  { %14497 = vmatmul.mubr.msk.bf16.gmra.mrb[176].mxu0 %vm2795_vm8, %v15300_v17 }
 0xeb4   :  { %v17531_v58 = vpop.f32.mrb[144].mxu0 }
 0xeb5   :  { %v14466_v19 = vpop.f32.mrb[145].mxu0 }
 0xeb6   :  { %v17533_v20 = vpop.f32.mrb[146].mxu0 }
 0xeb7   :  { %v5956_v22 = vpack.c.bf16 %v17533_v20, %v17531_v58  ;;  %v14467_v24 = vpop.f32.mrb[147].mxu0  ;;  %v15329_v20 = vld [vmem:[%s19228_s1 + $0x140] sm:$0xff]  }
 0xeb8   :  { %v15321_v24 = vld [vmem:[%s19228_s1 + $0x40] sm:$0xff]  }
 0xeb9   :  { %13768 = vmatprep.subr.bf16.mxu0 %v15321_v24 }
 0xebc   :  { %v5893_v59 = vpop.f32.mrb[148].mxu0 }
 0xebd   :  { %v14470_v26 = vpop.f32.mrb[149].mxu0 }
 0xebe   :  { %v5896_v10 = vpop.f32.mrb[150].mxu0  ;;  %v15324_v26 = vld [vmem:[%s19228_s1 + $0x8] sm:$0xff]  }
 0xebf   :  { %v5957_v36 = vpack.c.bf16 %v5896_v10, %v5893_v59  ;;  %v14471_v50 = vpop.f32.mrb[151].mxu0  ;;  %v15322_v59 = vld [vmem:[%s19228_s1] sm:$0xff]   ;;  %v15325_v10 = vld [vmem:[%s19228_s1 + $0x50] sm:$0xff]  }
 0xec0   :  { %13769 = vmatpush3.bf16.msra.mxu0 %v15322_v59  ;;  %v15327_v50 = vld [vmem:[%s19228_s1 + $0x58] sm:$0xff]  }
 0xec1   :  { %5966 = vrot.lane.b32.xlu1 %v5957_v36, %s15832_s26  ;;  %13770 = vmatprep.subr.bf16.mxu0 %v15323_v42  ;;  %v15326_v36 = vld [vmem:[%s19228_s1 + $0x10] sm:$0xff]  }
 0xec4   :  { %v5901_v57 = vpop.f32.mrb[152].mxu0  ;;  %13771 = vmatpush3.bf16.msra.mxu0 %v15324_v26 }
 0xec5   :  { %v14474_v5 = vpop.f32.mrb[153].mxu0  ;;  %13772 = vmatprep.subr.bf16.mxu0 %v15325_v10 }
 0xec6   :  { %v5904_v32 = vpop.f32.mrb[154].mxu0  ;;  %v15332_v5 = vld [vmem:[%s19228_s1 + $0x20] sm:$0xff]  }
 0xec7   :  { %v5958_v29 = vpack.c.bf16 %v5904_v32, %v5901_v57  ;;  %v14475_v30 = vpop.f32.mrb[155].mxu0  ;;  %v15328_v57 = vld [vmem:[%s19228_s1 + $0x18] sm:$0xff]   ;;  %v15335_v32 = vld [vmem:[%s19228_s1 + $0x68] sm:$0xff]  }
 0xec8   :  { %13773 = vmatpush3.bf16.msra.mxu0 %v15326_v36 }
 0xec9   :  { %5969 = vrot.lane.b32.xlu0 %v5958_v29, %s15830_s15  ;;  %13774 = vmatprep.subr.bf16.mxu0 %v15327_v50 }
 0xecc   :  { %v5909_v33 = vpop.f32.mrb[156].mxu0  ;;  %13775 = vmatpush3.bf16.msra.mxu0 %v15328_v57 }
 0xecd   :  { %v14478_v8 = vpop.f32.mrb[157].mxu0  ;;  %13776 = vmatprep.subr.bf16.mxu0 %v15331_v2 }
 0xece   :  { %v5912_v43 = vpop.f32.mrb[158].mxu0 }
 0xecf   :  { %v5959_v54 = vpack.c.bf16 %v5912_v43, %v5909_v33  ;;  %v14479_v13 = vpop.f32.mrb[159].mxu0  ;;  %v12718_v43 = vcombine.low %v17553_v55, %v17553_v55  ;;  %v15318_v55 = vld [vmem:[%s19232_s5 + $0x30] sm:$0xff]  }
 0xed0   :  { %13777 = vmatpush3.bf16.msra.mxu0 %v15332_v5 }
 0xed1   :  { %5972 = vrot.lane.b32.xlu1 %v5959_v54, %s15831_s2  ;;  %13778 = vmatprep.subr.bf16.mxu0 %v15335_v32  ;;  %v15346_v32 = vld [vmem:[%s19228_s1 + $0x80] sm:$0xff]  }
 0xed4   :  { %v5917_v35 = vpop.f32.mrb[160].mxu0  ;;  %13779 = vmatpush3.bf16.msra.mxu0 %v15336_v28  ;;  %v15348_v28 = vld [vmem:[%s19228_s1 + $0xc8] sm:$0xff]  }
 0xed5   :  { %v14482_v47 = vpop.f32.mrb[161].mxu0 }
 0xed6   :  { %v5920_v62 = vpop.f32.mrb[162].mxu0 }
 0xed7   :  { %v5960_v25 = vpack.c.bf16 %v5920_v62, %v5917_v35  ;;  %v14483_v31 = vpop.f32.mrb[163].mxu0  ;;  %v6233_v62 = vand.u32 %v12718_v43, %v15935_v3 }
 0xed8   :  { %v15330_v31 = vld [vmem:[%s19228_s1 + $0x100] sm:$0xff]  }
 0xed9   :  { %5975 = vrot.lane.b32.xlu0 %v5960_v25, %s15820_s18  ;;  %v15312_v25 = vld [vmem:[%s19232_s5] sm:$0xff]  }
 0xedc   :  { %v5925_v40 = vpop.f32.mrb[164].mxu0 }
 0xedd   :  { %v14486_v46 = vpop.f32.mrb[165].mxu0 }
 0xede   :  { %v5928_v15 = vpop.f32.mrb[166].mxu0  ;;  %v15337_v46 = vld [vmem:[%s19228_s1 + $0x150] sm:$0xff]  }
 0xedf   :  { %v5961_v48 = vpack.c.bf16 %v5928_v15, %v5925_v40  ;;  %v14487_v52 = vpop.f32.mrb[167].mxu0  ;;  %v15333_v40 = vld [vmem:[%s19228_s1 + $0x148] sm:$0xff]  }
 0xee0   :  { %v15313_v15 = vld [vmem:[%s19232_s5 + $0x8] sm:$0xff]   ;;  %v15316_v52 = vld [vmem:[%s19232_s5 + $0x20] sm:$0xff]  }
 0xee1   :  { %5978 = vrot.lane.b32.xlu1 %v5961_v48, %s15829_s14  ;;  %v15315_v48 = vld [vmem:[%s19232_s5 + $0x18] sm:$0xff]  }
 0xee4   :  { %v5933_v53 = vpop.f32.mrb[168].mxu0 }
 0xee5   :  { %v14490_v1 = vpop.f32.mrb[169].mxu0 }
 0xee6   :  { %v5936_v37 = vpop.f32.mrb[170].mxu0  ;;  %v15319_v1 = vld [vmem:[%s19232_s5 + $0x38] sm:$0xff]  }
 0xee7   :  { %v5962_v61 = vpack.c.bf16 %v5936_v37, %v5933_v53  ;;  %v14491_v63 = vpop.f32.mrb[171].mxu0  ;;  %v15317_v53 = vld [vmem:[%s19232_s5 + $0x28] sm:$0xff]   ;;  %v15338_v37 = vld [vmem:[%s19228_s1 + $0x110] sm:$0xff]  }
 0xee8   :  { %v15340_v63 = vld [vmem:[%s19228_s1 + $0x30] sm:$0xff]  }
 0xee9   :  { %5981 = vrot.lane.b32.xlu0 %v5962_v61, %s15827_s29  ;;  %v15339_v61 = vld [vmem:[%s19228_s1 + $0x70] sm:$0xff]  }
 0xeea   :  { %13780 = vmatprep.subr.bf16.mxu0 %v15339_v61  ;;  %v15366_v61 = vld [vmem:[%s19228_s1 + $0xb0] sm:$0xff]  }
 0xeeb   :  { %13781 = vmatpush3.bf16.msra.mxu0 %v15340_v63  ;;  %v15377_v63 = vld [vmem:[%s19228_s1 + $0x210] sm:$0xff]  }
 0xeec   :  { %v5941_v6 = vpop.f32.mrb[172].mxu0 }
 0xeed   :  { %6671 = vperm.xlu0 %14708, %v6667_v39   ;;  %v14494_v7 = vpop.f32.mrb[173].mxu0  ;;  %v15343_v39 = vld [vmem:[%s19228_s1 + $0x78] sm:$0xff]  }
 0xeee   :  { %v5944_v49 = vpop.f32.mrb[174].mxu0  ;;  %v15344_v7 = vld [vmem:[%s19228_s1 + $0x38] sm:$0xff]   ;;  %13782 = vmatprep.subr.bf16.mxu0 %v15343_v39 }
 0xeef   :  { %v5963_v14 = vpack.c.bf16 %v5944_v49, %v5941_v6  ;;  %v14495_v18 = vpop.f32.mrb[175].mxu0  ;;  %v15342_v6 = vld [vmem:[%s19228_s1 + $0x118] sm:$0xff]   ;;  %13783 = vmatpush3.bf16.msra.mxu0 %v15344_v7  ;;  %v15345_v49 = vld [vmem:[%s19228_s1 + $0xc0] sm:$0xff]  }
 0xef0   :  { %13790 = vmatprep.subr.bf16.mxu0 %v15345_v49  ;;  %v15354_v18 = vld [vmem:[%s19228_s1 + $0x168] sm:$0xff]   ;;  %v15368_v39 = vld [vmem:[%s19228_s1 + $0xf8] sm:$0xff]  }
 0xef1   :  { %7919 = vperm.xlu0 %14708, %v7916_v9   ;;  %5984 = vrot.lane.b32.xlu1 %v5963_v14, %s15828_s30  ;;  %v15347_v9 = vld [vmem:[%s19228_s1 + $0x160] sm:$0xff]   ;;  %v15370_v7 = vld [vmem:[%s19228_s1 + $0xb8] sm:$0xff]  }
 0xef2   :  { %v15349_v14 = vld [vmem:[%s19228_s1 + $0x120] sm:$0xff]   ;;  %v15381_v49 = vld [vmem:[%s19228_s1 + $0x218] sm:$0xff]  }
 0xef4   :  { %v5949_v56 = vpop.f32.mrb[176].mxu0 }
 0xef5   :  { %6676 = vperm.xlu1 %14709, %v6668_v60   ;;  %v14498_v11 = vpop.f32.mrb[177].mxu0  ;;  %v15356_v60 = vld [vmem:[%s19228_s1 + $0x128] sm:$0xff]  }
 0xef6   :  { %v5952_v45 = vpop.f32.mrb[178].mxu0  ;;  %v15361_v11 = vld [vmem:[%s19228_s1 + $0x130] sm:$0xff]  }
 0xef7   :  { %v5964_v17 = vpack.c.bf16 %v5952_v45, %v5949_v56  ;;  %v14499_v19 = vpop.f32.mrb[179].mxu0  ;;  %v15359_v56 = vld [vmem:[%s19228_s1 + $0x170] sm:$0xff]   ;;  %v15363_v45 = vld [vmem:[%s19228_s1 + $0x178] sm:$0xff]  }
 0xef8   :  { %v15367_v19 = vld [vmem:[%s19228_s1 + $0x240] sm:$0xff]  }
 0xef9   :  { %12705 = vmatprep.mubr.msk.bf16.mxu1 %vm1864_vm4, %v5964_v17  ;;  %v15365_v17 = vld [vmem:[%s19228_s1 + $0x138] sm:$0xff]  }
 0xf33   :  { %v5967_v29 = vpop.permute.xlu1 %5966 }
 0xf34   :  { %v5988_v8 = vsel %vm1864_vm4, %v5956_v22, %v5967_v29  ;;  %v15350_v29 = vld [vmem:[%s19228_s1 + $0x88] sm:$0xff]  }
 0xf3b   :  { %v5970_v30 = vpop.permute.xlu0 %5969 }
 0xf3c   :  { %v5990_v23 = vsel %vm2795_vm8, %v5988_v8, %v5970_v30 }
 0xf43   :  { %v5973_v33 = vpop.permute.xlu1 %5972 }
 0xf44   :  { %v5992_v13 = vsel %vm2963_vm9, %v5990_v23, %v5973_v33  ;;  %v15351_v33 = vld [vmem:[%s19228_s1 + $0xd0] sm:$0xff]  }
 0xf4b   :  { %v5976_v34 = vpop.permute.xlu0 %5975 }
 0xf4c   :  { %v5994_v44 = vsel %vm2131_vm7, %v5992_v13, %v5976_v34 }
 0xf53   :  { %v5979_v54 = vpop.permute.xlu1 %5978 }
 0xf54   :  { %v5996_v47 = vsel %vm2968_vm10, %v5994_v44, %v5979_v54  ;;  %v15352_v54 = vld [vmem:[%s19228_s1 + $0x90] sm:$0xff]   ;;  %v15355_v44 = vld [vmem:[%s19228_s1 + $0x98] sm:$0xff]  }
 0xf5b   :  { %v5982_v35 = vpop.permute.xlu0 %5981 }
 0xf5c   :  { %v5998_v21 = vsel %vm2971_vm11, %v5996_v47, %v5982_v35  ;;  %v15353_v35 = vld [vmem:[%s19228_s1 + $0xd8] sm:$0xff]  }
 0xf63   :  { %v5985_v58 = vpop.permute.xlu1 %5984 }
 0xf64   :  { %v6000_v22 = vsel %vm2974_vm12, %v5998_v21, %v5985_v58 }
 0xf65   :  { %6122 = vmatmul.mubr.bf16.vlgmr.msra.gmra.mrb[152].mxu1 %v6000_v22 }
 0xf66   :  { %6239 = vmatpush1.bf16.msra.mxu1 %v6233_v62  ;;  %6270 = vmatprep.mubr.bf16.mxu1 %v15823_v0  ;;  %v15357_v62 = vld [vmem:[%s19228_s1 + $0xe0] sm:$0xff]  }
 0xf67   :  { %13812 = vmatprep.subr.bf16.mxu1 %v15329_v20 }
 0xf6d   :  { %12720 = vmatmul.mubr.msk.bf16.vlgmr.msra.gmra.mrb[156].mxu1 %vm142_vm2, %v15312_v25  ;;  %v15358_v25 = vld [vmem:[%s19228_s1 + $0xa0] sm:$0xff]  }
 0xf6e   :  { %6280 = vmatprep.mubr.bf16.mxu1 %v15823_v0  ;;  %13813 = vmatpush3.bf16.msra.mxu1 %v15330_v31 }
 0xf6f   :  { %13814 = vmatprep.subr.bf16.mxu1 %v15333_v40  ;;  %v15369_v40 = vld [vmem:[%s19228_s1 + $0x200] sm:$0xff]  }
 0xf72   :  { %13815 = vmatpush3.bf16.msra.mxu1 %v15334_v41  ;;  %v15360_v41 = vld [vmem:[%s19228_s1 + $0xe8] sm:$0xff]  }
 0xf73   :  { %13816 = vmatprep.subr.bf16.mxu1 %v15337_v46  ;;  %v15371_v46 = vld [vmem:[%s19228_s1 + $0x248] sm:$0xff]  }
 0xf75   :  { %12721 = vmatmul.mubr.msk.bf16.gmra.mrb[160].mxu1 %vm142_vm2, %v15313_v15  ;;  %v15362_v15 = vld [vmem:[%s19228_s1 + $0xa8] sm:$0xff]  }
 0xf76   :  { %6290 = vmatprep.mubr.bf16.mxu1 %v15823_v0  ;;  %13817 = vmatpush3.bf16.msra.mxu1 %v15338_v37 }
 0xf77   :  { %13818 = vmatprep.subr.bf16.mxu1 %v15341_v4 }
 0xf7a   :  { %13819 = vmatpush3.bf16.msra.mxu1 %v15342_v6  ;;  %v15379_v6 = vld [vmem:[%s19228_s1 + $0x258] sm:$0xff]  }
 0xf7b   :  { %13820 = vmatprep.subr.bf16.mxu1 %v15347_v9 }
 0xf7d   :  { %12722 = vmatmul.mubr.msk.bf16.gmra.mrb[164].mxu1 %vm142_vm2, %v15314_v51  ;;  %v15373_v51 = vld [vmem:[%s19228_s1 + $0x208] sm:$0xff]  }
 0xf7e   :  { %6300 = vmatprep.mubr.bf16.mxu1 %v15823_v0  ;;  %13821 = vmatpush3.bf16.msra.mxu1 %v15349_v14  ;;  %v15372_v14 = vld [vmem:[%s19228_s1 + $0x1c0] sm:$0xff]  }
 0xf7f   :  { %13822 = vmatprep.subr.bf16.mxu1 %v15354_v18  ;;  %v15383_v18 = vld [vmem:[%s19228_s1 + $0x260] sm:$0xff]  }
 0xf82   :  { %13823 = vmatpush3.bf16.msra.mxu1 %v15356_v60 }
 0xf83   :  { %13824 = vmatprep.subr.bf16.mxu1 %v15359_v56 }
 0xf85   :  { %12723 = vmatmul.mubr.msk.bf16.gmra.mrb[168].mxu1 %vm142_vm2, %v15315_v48 }
 0xf86   :  { %6310 = vmatprep.mubr.bf16.mxu1 %v15823_v0  ;;  %13825 = vmatpush3.bf16.msra.mxu1 %v15361_v11 }
 0xf87   :  { %13826 = vmatprep.subr.bf16.mxu1 %v15363_v45 }
 0xf8a   :  { %13827 = vmatpush3.bf16.msra.mxu1 %v15365_v17  ;;  %v15374_v17 = vld [vmem:[%s19228_s1 + $0x180] sm:$0xff]  }
 0xf8b   :  { %13856 = vmatprep.subr.bf16.mxu1 %v15367_v19  ;;  %v15385_v19 = vld [vmem:[%s19228_s1 + $0x220] sm:$0xff]  }
 0xf8d   :  { %12724 = vmatmul.mubr.msk.bf16.gmra.mrb[172].mxu1 %vm142_vm2, %v15316_v52  ;;  %v15364_v52 = vld [vmem:[%s19228_s1 + $0xf0] sm:$0xff]  }
 0xf8e   :  { %6320 = vmatprep.mubr.bf16.mxu1 %v15823_v0 }
 0xf95   :  { %12725 = vmatmul.mubr.msk.bf16.gmra.mrb[176].mxu1 %vm142_vm2, %v15317_v53  ;;  %v15375_v53 = vld [vmem:[%s19228_s1 + $0x250] sm:$0xff]  }
 0xf96   :  { %6330 = vmatprep.mubr.bf16.mxu1 %v15823_v0 }
 0xf9d   :  { %12726 = vmatmul.mubr.msk.bf16.gmra.mrb[180].mxu1 %vm142_vm2, %v15318_v55 }
 0xf9e   :  { %6340 = vmatprep.mubr.bf16.mxu1 %v15823_v0 }
 0xfa5   :  { %12727 = vmatmul.mubr.msk.bf16.gmra.mrb[184].mxu1 %vm142_vm2, %v15319_v1 }
 0xfa6   :  { %6350 = vmatprep.mubr.bf16.mxu1 %v15823_v0 }
 0xfad   :  { %12728 = vmatmul.mubr.msk.bf16.gmra.mrb[188].mxu1 %vm142_vm2, %v15320_v27 }
0x1038   :  { %v17730_v24 = vpop.f32.mrb[152].mxu1 }
0x1039   :  { %v6125_v59 = vpop.f32.mrb[153].mxu1 }
0x103a   :  { %v17732_v42 = vpop.f32.mrb[154].mxu1 }
0x103b   :  { %v6128_v26 = vpop.f32.mrb[155].mxu1 }
0x103c   :  { %v15376_v26 = vld [vmem:[%s19228_s1 + $0x1c8] sm:$0xff]  }
0x1040   :  { %v6272_v10 = vpop.f32.mrb[156].mxu1 }
0x1041   :  { %v6274_v36 = vpop.f32.mrb[157].mxu1 }
0x1042   :  { %v6276_v50 = vpop.f32.mrb[158].mxu1 }
0x1043   :  { %v6361_v57 = vpack.c.bf16 %v6276_v50, %v6272_v10  ;;  %v6278_v2 = vpop.f32.mrb[159].mxu1  ;;  %v15387_v10 = vld [vmem:[%s19228_s1 + $0x268] sm:$0xff]  }
0x1044   :  { %v6362_v5 = vpack.c.bf16 %v6278_v2, %v6274_v36  ;;  %v15378_v36 = vld [vmem:[%s19228_s1 + $0x188] sm:$0xff]   ;;  %v15380_v2 = vld [vmem:[%s19228_s1 + $0x1d0] sm:$0xff]  }
0x1045   :  { %v15389_v50 = vld [vmem:[%s19228_s1 + $0x228] sm:$0xff]  }
0x1046   :  { %7575 = vmatprep.mubr.bf16.mxu0 %v6362_v5  ;;  %v15391_v5 = vld [vmem:[%s19228_s1 + $0x270] sm:$0xff]  }
0x1047   :  { %7576 = vmatmul.mubr.bf16.vlgmr.msra.gmra.mrb[180].mxu0 %v6361_v57 }
0x1048   :  { %13791 = vmatpush3.bf16.msra.mxu0 %v15346_v32  ;;  %v17743_v30 = vpop.f32.mrb[160].mxu1 }
0x1049   :  { %13792 = vmatprep.subr.bf16.mxu0 %v15348_v28  ;;  %v6284_v34 = vpop.f32.mrb[161].mxu1 }
0x104a   :  { %v17748_v8 = vpop.f32.mrb[162].mxu1 }
0x104b   :  { %v6363_v43 = vpack.c.bf16 %v17748_v8, %v17743_v30  ;;  %v6288_v23 = vpop.f32.mrb[163].mxu1 }
0x104c   :  { %13793 = vmatpush3.bf16.msra.mxu0 %v15350_v29  ;;  %v6364_v13 = vpack.c.bf16 %v6288_v23, %v6284_v34  ;;  %v15393_v34 = vld [vmem:[%s19228_s1 + $0x230] sm:$0xff]   ;;  %v15395_v23 = vld [vmem:[%s19228_s1 + $0x278] sm:$0xff]  }
0x104d   :  { %13794 = vmatprep.subr.bf16.mxu0 %v15351_v33  ;;  %v15382_v33 = vld [vmem:[%s19228_s1 + $0x190] sm:$0xff]  }
0x104e   :  { %7616 = vmatprep.mubr.bf16.mxu0 %v6364_v13  ;;  %v15397_v13 = vld [vmem:[%s19228_s1 + $0x238] sm:$0xff]  }
0x1050   :  { %13795 = vmatpush3.bf16.msra.mxu0 %v15352_v54  ;;  %v6292_v47 = vpop.f32.mrb[164].mxu1  ;;  %v15386_v54 = vld [vmem:[%s19228_s1 + $0x198] sm:$0xff]  }
0x1051   :  { %13796 = vmatprep.subr.bf16.mxu0 %v15353_v35  ;;  %v6294_v21 = vpop.f32.mrb[165].mxu1 }
0x1052   :  { %v6296_v58 = vpop.f32.mrb[166].mxu1 }
0x1053   :  { %v6365_v20 = vpack.c.bf16 %v6296_v58, %v6292_v47  ;;  %v6298_v22 = vpop.f32.mrb[167].mxu1  ;;  %v15399_v47 = vld [vmem:[%s19228_s1 + $0x340] sm:$0xff]  }
0x1054   :  { %13797 = vmatpush3.bf16.msra.mxu0 %v15355_v44  ;;  %v6366_v31 = vpack.c.bf16 %v6298_v22, %v6294_v21  ;;  %v15388_v44 = vld [vmem:[%s19228_s1 + $0x1e0] sm:$0xff]  }
0x1055   :  { %13798 = vmatprep.subr.bf16.mxu0 %v15357_v62  ;;  %v15390_v22 = vld [vmem:[%s19228_s1 + $0x1a0] sm:$0xff]  }
0x1056   :  { %7657 = vmatprep.mubr.bf16.mxu1 %v6366_v31 }
0x1057   :  { %7658 = vmatmul.mubr.bf16.vlgmr.msra.gmra.mrb[192].mxu1 %v6365_v20 }
0x1058   :  { %13799 = vmatpush3.bf16.msra.mxu0 %v15358_v25  ;;  %13857 = vmatpush3.bf16.msra.mxu1 %v15369_v40  ;;  %v17782_v48 = vpop.f32.mrb[168].mxu1  ;;  %v15401_v25 = vld [vmem:[%s19228_s1 + $0x300] sm:$0xff]   ;;  %v15392_v40 = vld [vmem:[%s19228_s1 + $0x1e8] sm:$0xff]  }
0x1059   :  { %13800 = vmatprep.subr.bf16.mxu0 %v15360_v41  ;;  %13858 = vmatprep.subr.bf16.mxu1 %v15371_v46  ;;  %v6304_v55 = vpop.f32.mrb[169].mxu1  ;;  %v15403_v41 = vld [vmem:[%s19228_s1 + $0x348] sm:$0xff]  }
0x105a   :  { %v17790_v1 = vpop.f32.mrb[170].mxu1  ;;  %v15394_v46 = vld [vmem:[%s19228_s1 + $0x1a8] sm:$0xff]  }
0x105b   :  { %v6367_v27 = vpack.c.bf16 %v17790_v1, %v17782_v48  ;;  %v6308_v37 = vpop.f32.mrb[171].mxu1  ;;  %v15423_v48 = vld [vmem:[%s19228_s1 + $0x370] sm:$0xff]  }
0x105c   :  { %13801 = vmatpush3.bf16.msra.mxu0 %v15362_v15  ;;  %13859 = vmatpush3.bf16.msra.mxu1 %v15373_v51  ;;  %v6368_v4 = vpack.c.bf16 %v6308_v37, %v6304_v55  ;;  %v15405_v15 = vld [vmem:[%s19228_s1 + $0x308] sm:$0xff]   ;;  %v15414_v1 = vld [vmem:[%s19228_s1 + $0x290] sm:$0xff]  }
0x105d   :  { %13802 = vmatprep.subr.bf16.mxu0 %v15364_v52  ;;  %13860 = vmatprep.subr.bf16.mxu1 %v15375_v53  ;;  %v15396_v52 = vld [vmem:[%s19228_s1 + $0x1f0] sm:$0xff]  }
0x105e   :  { %v15407_v53 = vld [vmem:[%s19228_s1 + $0x350] sm:$0xff]  }
0x1060   :  { %13803 = vmatpush3.bf16.msra.mxu0 %v15366_v61  ;;  %13861 = vmatpush3.bf16.msra.mxu1 %v15377_v63  ;;  %v17812_v9 = vpop.f32.mrb[172].mxu1 }
0x1061   :  { %13804 = vmatprep.subr.bf16.mxu0 %v15368_v39  ;;  %13862 = vmatprep.subr.bf16.mxu1 %v15379_v6  ;;  %v6314_v60 = vpop.f32.mrb[173].mxu1  ;;  %v15409_v39 = vld [vmem:[%s19228_s1 + $0x310] sm:$0xff]  }
0x1062   :  { %v6316_v56 = vpop.f32.mrb[174].mxu1 }
0x1063   :  { %v6369_v11 = vpack.c.bf16 %v6316_v56, %v17812_v9  ;;  %v6318_v45 = vpop.f32.mrb[175].mxu1  ;;  %v15402_v9 = vld [vmem:[%s19228_s1 + $0x1b8] sm:$0xff]   ;;  %v15415_v56 = vld [vmem:[%s19228_s1 + $0x360] sm:$0xff]  }
0x1064   :  { %13805 = vmatpush3.bf16.msra.mxu0 %v15370_v7  ;;  %13863 = vmatpush3.bf16.msra.mxu1 %v15381_v49  ;;  %v6370_v59 = vpack.c.bf16 %v6318_v45, %v6314_v60  ;;  %v15400_v7 = vld [vmem:[%s19228_s1 + $0x1f8] sm:$0xff]   ;;  %v15404_v60 = vld [vmem:[%s19228_s1 + $0x2c0] sm:$0xff]  }
0x1065   :  { %13834 = vmatprep.subr.bf16.mxu0 %v15372_v14  ;;  %13864 = vmatprep.subr.bf16.mxu1 %v15383_v18  ;;  %v15411_v49 = vld [vmem:[%s19228_s1 + $0x358] sm:$0xff]  }
0x1066   :  { %7739 = vmatprep.mubr.bf16.mxu1 %v6370_v59  ;;  %v15413_v14 = vld [vmem:[%s19228_s1 + $0x318] sm:$0xff]   ;;  %v15406_v59 = vld [vmem:[%s19228_s1 + $0x280] sm:$0xff]  }
0x1067   :  { %7617 = vmatmul.mubr.bf16.vlgmr.msra.gmra.mrb[184].mxu0 %v6363_v43  ;;  %v15384_v43 = vld [vmem:[%s19228_s1 + $0x1d8] sm:$0xff]  }
0x1068   :  { %13835 = vmatpush3.bf16.msra.mxu0 %v15374_v17  ;;  %13865 = vmatpush3.bf16.msra.mxu1 %v15385_v19  ;;  %v17842_v57 = vpop.f32.mrb[176].mxu1 }
0x1069   :  { %13836 = vmatprep.subr.bf16.mxu0 %v15376_v26  ;;  %13866 = vmatprep.subr.bf16.mxu1 %v15387_v10  ;;  %v17850_v32 = vpop.f32.mrb[177].mxu1  ;;  %v15417_v26 = vld [vmem:[%s19228_s1 + $0x320] sm:$0xff]  }
0x106a   :  { %7698 = vmatprep.mubr.bf16.mxu0 %v6368_v4  ;;  %v17852_v28 = vpop.f32.mrb[178].mxu1  ;;  %v15398_v4 = vld [vmem:[%s19228_s1 + $0x1b0] sm:$0xff]  }
0x106b   :  { %v6371_v29 = vpack.c.bf16 %v17852_v28, %v17842_v57  ;;  %v17856_v30 = vpop.f32.mrb[179].mxu1  ;;  %v15455_v57 = vld [vmem:[%s19228_s1 + $0x470] sm:$0xff]  }
0x106c   :  { %13837 = vmatpush3.bf16.msra.mxu0 %v15378_v36  ;;  %13867 = vmatpush3.bf16.msra.mxu1 %v15389_v50  ;;  %v6372_v8 = vpack.c.bf16 %v17856_v30, %v17850_v32  ;;  %v15408_v36 = vld [vmem:[%s19228_s1 + $0x2c8] sm:$0xff]   ;;  %v15427_v32 = vld [vmem:[%s19228_s1 + $0x378] sm:$0xff]   ;;  %v15446_v28 = vld [vmem:[%s19228_s1 + $0x390] sm:$0xff]  }
0x106d   :  { %13838 = vmatprep.subr.bf16.mxu0 %v15380_v2  ;;  %13868 = vmatprep.subr.bf16.mxu1 %v15391_v5  ;;  %v15419_v50 = vld [vmem:[%s19228_s1 + $0x368] sm:$0xff]   ;;  %v15418_v30 = vld [vmem:[%s19228_s1 + $0x298] sm:$0xff]  }
0x106e   :  { %v15410_v2 = vld [vmem:[%s19228_s1 + $0x288] sm:$0xff]  }
0x106f   :  { %v15421_v5 = vld [vmem:[%s19228_s1 + $0x328] sm:$0xff]  }
0x1070   :  { %13839 = vmatpush3.bf16.msra.mxu0 %v15382_v33  ;;  %13869 = vmatpush3.bf16.msra.mxu1 %v15393_v34  ;;  %v17878_v35 = vpop.f32.mrb[180].mxu1  ;;  %v15412_v33 = vld [vmem:[%s19228_s1 + $0x2d0] sm:$0xff]   ;;  %v15416_v34 = vld [vmem:[%s19228_s1 + $0x2d8] sm:$0xff]  }
0x1071   :  { %13840 = vmatprep.subr.bf16.mxu0 %v15384_v43  ;;  %13870 = vmatprep.subr.bf16.mxu1 %v15395_v23  ;;  %v6334_v62 = vpop.f32.mrb[181].mxu1  ;;  %v15420_v43 = vld [vmem:[%s19228_s1 + $0x2e0] sm:$0xff]  }
0x1072   :  { %v17886_v21 = vpop.f32.mrb[182].mxu1  ;;  %v15431_v23 = vld [vmem:[%s19228_s1 + $0x440] sm:$0xff]  }
0x1073   :  { %v6373_v58 = vpack.c.bf16 %v17886_v21, %v17878_v35  ;;  %v6338_v20 = vpop.f32.mrb[183].mxu1  ;;  %v15439_v35 = vld [vmem:[%s19228_s1 + $0x450] sm:$0xff]  }
0x1074   :  { %13841 = vmatpush3.bf16.msra.mxu0 %v15386_v54  ;;  %13871 = vmatpush3.bf16.msra.mxu1 %v15397_v13  ;;  %v6374_v31 = vpack.c.bf16 %v6338_v20, %v6334_v62  ;;  %v15422_v54 = vld [vmem:[%s19228_s1 + $0x2a0] sm:$0xff]   ;;  %v15426_v62 = vld [vmem:[%s19228_s1 + $0x2a8] sm:$0xff]   ;;  %v15430_v21 = vld [vmem:[%s19228_s1 + $0x2b0] sm:$0xff]  }
0x1075   :  { %13842 = vmatprep.subr.bf16.mxu0 %v15388_v44  ;;  %13900 = vmatprep.subr.bf16.mxu1 %v15399_v47  ;;  %v15433_v13 = vld [vmem:[%s19228_s1 + $0x400] sm:$0xff]   ;;  %v15424_v44 = vld [vmem:[%s19228_s1 + $0x2e8] sm:$0xff]  }
0x1076   :  { %v15435_v47 = vld [vmem:[%s19228_s1 + $0x448] sm:$0xff]  }
0x1077   :  { %7740 = vmatmul.mubr.bf16.vlgmr.msra.gmra.mrb[196].mxu1 %v6369_v11  ;;  %v15437_v20 = vld [vmem:[%s19228_s1 + $0x408] sm:$0xff]  }
0x1078   :  { %13843 = vmatpush3.bf16.msra.mxu0 %v15390_v22  ;;  %13901 = vmatpush3.bf16.msra.mxu1 %v15401_v25  ;;  %v17908_v51 = vpop.f32.mrb[184].mxu1  ;;  %v15428_v22 = vld [vmem:[%s19228_s1 + $0x2f0] sm:$0xff]   ;;  %v15432_v25 = vld [vmem:[%s19228_s1 + $0x2f8] sm:$0xff]  }
0x1079   :  { %13844 = vmatprep.subr.bf16.mxu0 %v15392_v40  ;;  %13902 = vmatprep.subr.bf16.mxu1 %v15403_v41  ;;  %v17916_v55 = vpop.f32.mrb[185].mxu1  ;;  %v15434_v40 = vld [vmem:[%s19228_s1 + $0x2b8] sm:$0xff]  }
0x107a   :  { %7821 = vmatprep.mubr.bf16.mxu1 %v6374_v31  ;;  %v17918_v37 = vpop.f32.mrb[186].mxu1  ;;  %v15443_v31 = vld [vmem:[%s19228_s1 + $0x458] sm:$0xff]  }
0x107b   :  { %v6375_v61 = vpack.c.bf16 %v17918_v37, %v17908_v51  ;;  %v17922_v63 = vpop.f32.mrb[187].mxu1  ;;  %v15445_v41 = vld [vmem:[%s19228_s1 + $0x418] sm:$0xff]  }
0x107c   :  { %13845 = vmatpush3.bf16.msra.mxu0 %v15394_v46  ;;  %13903 = vmatpush3.bf16.msra.mxu1 %v15405_v15  ;;  %v6376_v6 = vpack.c.bf16 %v17922_v63, %v17916_v55  ;;  %v15436_v46 = vld [vmem:[%s19228_s1 + $0x3c0] sm:$0xff]   ;;  %v15459_v55 = vld [vmem:[%s19228_s1 + $0x478] sm:$0xff]  }
0x107d   :  { %13846 = vmatprep.subr.bf16.mxu0 %v15396_v52  ;;  %13904 = vmatprep.subr.bf16.mxu1 %v15407_v53  ;;  %v15447_v15 = vld [vmem:[%s19228_s1 + $0x460] sm:$0xff]   ;;  %v15450_v63 = vld [vmem:[%s19228_s1 + $0x398] sm:$0xff]  }
0x107e   :  { %v15438_v52 = vld [vmem:[%s19228_s1 + $0x380] sm:$0xff]  }
0x107f   :  { %v15449_v53 = vld [vmem:[%s19228_s1 + $0x420] sm:$0xff]  }
0x1080   :  { %13847 = vmatpush3.bf16.msra.mxu0 %v15398_v4  ;;  %13905 = vmatpush3.bf16.msra.mxu1 %v15409_v39  ;;  %v17944_v18 = vpop.f32.mrb[188].mxu1  ;;  %v15440_v4 = vld [vmem:[%s19228_s1 + $0x3c8] sm:$0xff]  }
0x1081   :  { %13848 = vmatprep.subr.bf16.mxu0 %v15400_v7  ;;  %13906 = vmatprep.subr.bf16.mxu1 %v15411_v49  ;;  %v6354_v11 = vpop.f32.mrb[189].mxu1  ;;  %v15451_v39 = vld [vmem:[%s19228_s1 + $0x468] sm:$0xff]  }
0x1082   :  { %v17952_v45 = vpop.f32.mrb[190].mxu1  ;;  %v15442_v7 = vld [vmem:[%s19228_s1 + $0x388] sm:$0xff]  }
0x1083   :  { %v6377_v17 = vpack.c.bf16 %v17952_v45, %v17944_v18  ;;  %v6358_v19 = vpop.f32.mrb[191].mxu1  ;;  %v15453_v49 = vld [vmem:[%s19228_s1 + $0x428] sm:$0xff]   ;;  %v15463_v18 = vld [vmem:[%s19228_s1 + $0x3f8] sm:$0xff]  }
0x1084   :  { %13849 = vmatpush3.bf16.msra.mxu0 %v15402_v9  ;;  %13907 = vmatpush3.bf16.msra.mxu1 %v15413_v14  ;;  %v6378_v10 = vpack.c.bf16 %v6358_v19, %v6354_v11  ;;  %v15444_v9 = vld [vmem:[%s19228_s1 + $0x3d0] sm:$0xff]   ;;  %v15448_v14 = vld [vmem:[%s19228_s1 + $0x3d8] sm:$0xff]   ;;  %v15456_v11 = vld [vmem:[%s19228_s1 + $0x3e8] sm:$0xff]  }
0x1085   :  { %13878 = vmatprep.subr.bf16.mxu0 %v15404_v60  ;;  %13908 = vmatprep.subr.bf16.mxu1 %v15415_v56  ;;  %v15452_v60 = vld [vmem:[%s19228_s1 + $0x3e0] sm:$0xff]   ;;  %v15458_v19 = vld [vmem:[%s19228_s1 + $0x3a8] sm:$0xff]   ;;  %v15464_v45 = vld [vmem:[%s19228_s1 + $0x3b8] sm:$0xff]  }
0x1086   :  { %v15454_v56 = vld [vmem:[%s19228_s1 + $0x3a0] sm:$0xff]  }
0x1087   :  { %7699 = vmatmul.mubr.bf16.vlgmr.msra.gmra.mrb[188].mxu0 %v6367_v27  ;;  %v15425_v27 = vld [vmem:[%s19228_s1 + $0x330] sm:$0xff]  }
0x1088   :  { %13879 = vmatpush3.bf16.msra.mxu0 %v15406_v59  ;;  %13909 = vmatpush3.bf16.msra.mxu1 %v15417_v26  ;;  %v15460_v59 = vld [vmem:[%s19228_s1 + $0x3f0] sm:$0xff]  }
0x1089   :  { %13880 = vmatprep.subr.bf16.mxu0 %v15408_v36  ;;  %13910 = vmatprep.subr.bf16.mxu1 %v15419_v50  ;;  %v15462_v26 = vld [vmem:[%s19228_s1 + $0x3b0] sm:$0xff]  }
0x108a   :  { %7780 = vmatprep.mubr.bf16.mxu0 %v6372_v8  ;;  %v15429_v8 = vld [vmem:[%s19228_s1 + $0x338] sm:$0xff]  }
0x108c   :  { %13881 = vmatpush3.bf16.msra.mxu0 %v15410_v2  ;;  %13911 = vmatpush3.bf16.msra.mxu1 %v15421_v5 }
0x108d   :  { %13882 = vmatprep.subr.bf16.mxu0 %v15412_v33  ;;  %13912 = vmatprep.subr.bf16.mxu1 %v15423_v48 }
0x1090   :  { %13883 = vmatpush3.bf16.msra.mxu0 %v15414_v1  ;;  %13913 = vmatpush3.bf16.msra.mxu1 %v15425_v27 }
0x1091   :  { %13884 = vmatprep.subr.bf16.mxu0 %v15416_v34  ;;  %13914 = vmatprep.subr.bf16.mxu1 %v15427_v32 }
0x1094   :  { %13885 = vmatpush3.bf16.msra.mxu0 %v15418_v30  ;;  %13915 = vmatpush3.bf16.msra.mxu1 %v15429_v8  ;;  %v6672_v8 = vpop.permute.xlu0 %6671 }
0x1095   :  { %13886 = vmatprep.subr.bf16.mxu0 %v15420_v43  ;;  %13944 = vmatprep.subr.bf16.mxu1 %v15431_v23  ;;  %v6677_v23 = vpop.permute.xlu1 %6676 }
0x1097   :  { %7822 = vmatmul.mubr.bf16.vlgmr.msra.gmra.mrb[200].mxu1 %v6373_v58  ;;  %v15441_v58 = vld [vmem:[%s19228_s1 + $0x410] sm:$0xff]  }
0x1098   :  { %13887 = vmatpush3.bf16.msra.mxu0 %v15422_v54  ;;  %13945 = vmatpush3.bf16.msra.mxu1 %v15433_v13 }
0x1099   :  { %13888 = vmatprep.subr.bf16.mxu0 %v15424_v44  ;;  %13946 = vmatprep.subr.bf16.mxu1 %v15435_v47 }
0x109a   :  { %7903 = vmatprep.mubr.bf16.mxu1 %v6378_v10 }
0x109c   :  { %13889 = vmatpush3.bf16.msra.mxu0 %v15426_v62  ;;  %13947 = vmatpush3.bf16.msra.mxu1 %v15437_v20 }
0x109d   :  { %13890 = vmatprep.subr.bf16.mxu0 %v15428_v22  ;;  %13948 = vmatprep.subr.bf16.mxu1 %v15439_v35 }
0x10a0   :  { %13891 = vmatpush3.bf16.msra.mxu0 %v15430_v21  ;;  %13949 = vmatpush3.bf16.msra.mxu1 %v15441_v58 }
0x10a1   :  { %13892 = vmatprep.subr.bf16.mxu0 %v15432_v25  ;;  %13950 = vmatprep.subr.bf16.mxu1 %v15443_v31 }
0x10a4   :  { %13893 = vmatpush3.bf16.msra.mxu0 %v15434_v40  ;;  %13951 = vmatpush3.bf16.msra.mxu1 %v15445_v41 }
0x10a5   :  { %13922 = vmatprep.subr.bf16.mxu0 %v15436_v46  ;;  %13952 = vmatprep.subr.bf16.mxu1 %v15447_v15 }
0x10a7   :  { %7781 = vmatmul.mubr.bf16.vlgmr.msra.gmra.mrb[192].mxu0 %v6371_v29  ;;  %v15457_v29 = vld [vmem:[%s19228_s1 + $0x430] sm:$0xff]  }
0x10a8   :  { %13923 = vmatpush3.bf16.msra.mxu0 %v15438_v52  ;;  %13953 = vmatpush3.bf16.msra.mxu1 %v15449_v53 }
0x10a9   :  { %13924 = vmatprep.subr.bf16.mxu0 %v15440_v4  ;;  %13954 = vmatprep.subr.bf16.mxu1 %v15451_v39 }
0x10aa   :  { %7862 = vmatprep.mubr.bf16.mxu0 %v6376_v6  ;;  %v15461_v6 = vld [vmem:[%s19228_s1 + $0x438] sm:$0xff]  }
0x10ac   :  { %13925 = vmatpush3.bf16.msra.mxu0 %v15442_v7  ;;  %13955 = vmatpush3.bf16.msra.mxu1 %v15453_v49 }
0x10ad   :  { %13926 = vmatprep.subr.bf16.mxu0 %v15444_v9  ;;  %13956 = vmatprep.subr.bf16.mxu1 %v15455_v57 }
0x10b0   :  { %13927 = vmatpush3.bf16.msra.mxu0 %v15446_v28  ;;  %13957 = vmatpush3.bf16.msra.mxu1 %v15457_v29 }
0x10b1   :  { %13928 = vmatprep.subr.bf16.mxu0 %v15448_v14  ;;  %13958 = vmatprep.subr.bf16.mxu1 %v15459_v55 }
0x10b4   :  { %13929 = vmatpush3.bf16.msra.mxu0 %v15450_v63  ;;  %13959 = vmatpush3.bf16.msra.mxu1 %v15461_v6 }
0x10b5   :  { %13930 = vmatprep.subr.bf16.mxu0 %v15452_v60  ;;  %14506 = vmatprep.subr.bf16.mxu1 %v15825_v12 }
0x10b7   :  { %7904 = vmatmul.mubr.bf16.vlgmr.msra.gmra.mrb[204].mxu1 %v6377_v17 }
0x10b8   :  { %13931 = vmatpush3.bf16.msra.mxu0 %v15454_v56  ;;  %14508 = vmatprep.mubr.msk.bf16.mxu1 %vm15826_vm3, %v15825_v12 }
0x10b9   :  { %13932 = vmatprep.subr.bf16.mxu0 %v15456_v11 }
0x10bc   :  { %13933 = vmatpush3.bf16.msra.mxu0 %v15458_v19 }
0x10bd   :  { %13934 = vmatprep.subr.bf16.mxu0 %v15460_v59 }
0x10c0   :  { %13935 = vmatpush3.bf16.msra.mxu0 %v15462_v26 }
0x10c1   :  { %13936 = vmatprep.subr.bf16.mxu0 %v15463_v18 }
0x10c4   :  { %13937 = vmatpush3.bf16.msra.mxu0 %v15464_v45 }
0x10c5   :  { %14500 = vmatprep.subr.bf16.mxu0 %v15825_v12 }
0x10c7   :  { %7863 = vmatmul.mubr.bf16.vlgmr.msra.gmra.mrb[196].mxu0 %v6375_v61 }
0x10c8   :  { %14502 = vmatprep.mubr.msk.bf16.mxu0 %vm15826_vm3, %v15825_v12 }
0x111a   :  { %v13784_v17 = vpop.f32.mrb[180].mxu0 }
0x111b   :  { %v13785_v10 = vpop.f32.mrb[181].mxu0 }
0x111c   :  { %v13786_v36 = vadd.f32 %v13785_v10, %v13784_v17  ;;  %v13787_v50 = vpop.f32.mrb[182].mxu0 }
0x111d   :  { %v13788_v2 = vpop.f32.mrb[183].mxu0 }
0x111e   :  { %v13789_v5 = vadd.f32 %v13788_v2, %v13787_v50  ;;  %v7578_v51 = vadd.f32 %v13786_v36, %v6672_v8 }
0x1120   :  { %v7581_v13 = vadd.f32 %v13789_v5, %v6677_v23 }
0x112a   :  { %v13828_v33 = vpop.f32.mrb[192].mxu1 }
0x112b   :  { %v13829_v48 = vpop.f32.mrb[193].mxu1 }
0x112c   :  { %v13830_v1 = vadd.f32 %v13829_v48, %v13828_v33  ;;  %v13831_v27 = vpop.f32.mrb[194].mxu1 }
0x112d   :  { %v13832_v34 = vpop.f32.mrb[195].mxu1 }
0x112e   :  { %v13833_v32 = vadd.f32 %v13832_v34, %v13831_v27 }
0x113a   :  { %v13806_v30 = vpop.f32.mrb[184].mxu0 }
0x113b   :  { %v13807_v43 = vpop.f32.mrb[185].mxu0 }
0x113c   :  { %v13808_v37 = vadd.f32 %v13807_v43, %v13806_v30  ;;  %v13809_v61 = vpop.f32.mrb[186].mxu0 }
0x113d   :  { %v13810_v54 = vpop.f32.mrb[187].mxu0 }
0x113e   :  { %v7619_v44 = vadd.f32 %v13808_v37, %v7578_v51  ;;  %v13811_v47 = vadd.f32 %v13810_v54, %v13809_v61 }
0x1140   :  { %v7622_v62 = vadd.f32 %v13811_v47, %v7581_v13  ;;  %v7660_v20 = vadd.f32 %v13830_v1, %v7619_v44  ;;  %v7915_v13 = vld [vmem:[%s19234_s7] sm:$0xf]  ;;  %v7920_v44 = vpop.permute.xlu0 %7919 }
0x1142   :  { %v7663_v22 = vadd.f32 %v13833_v32, %v7622_v62 }
0x114a   :  { %v13872_v35 = vpop.f32.mrb[196].mxu1 }
0x114b   :  { %v13873_v21 = vpop.f32.mrb[197].mxu1 }
0x114c   :  { %v13874_v58 = vadd.f32 %v13873_v21, %v13872_v35  ;;  %v13875_v25 = vpop.f32.mrb[198].mxu1 }
0x114d   :  { %v13876_v31 = vpop.f32.mrb[199].mxu1 }
0x114e   :  { %v13877_v40 = vadd.f32 %v13876_v31, %v13875_v25  ;;  %v15465_v31 = vld [vmem:[%s19236_s9] sm:$0xff]  }
0x115a   :  { %v13850_v41 = vpop.f32.mrb[188].mxu0 }
0x115b   :  { %v13851_v46 = vpop.f32.mrb[189].mxu0 }
0x115c   :  { %v13852_v15 = vadd.f32 %v13851_v46, %v13850_v41  ;;  %v13853_v52 = vpop.f32.mrb[190].mxu0  ;;  %v15467_v41 = vld [vmem:[%s19236_s9 + $0x10] sm:$0xff]   ;;  %v15468_v46 = vld [vmem:[%s19236_s9 + $0x18] sm:$0xff]  }
0x115d   :  { %v13854_v53 = vpop.f32.mrb[191].mxu0 }
0x115e   :  { %v7701_v4 = vadd.f32 %v13852_v15, %v7660_v20  ;;  %v13855_v39 = vadd.f32 %v13854_v53, %v13853_v52  ;;  %v15469_v15 = vld [vmem:[%s19236_s9 + $0x20] sm:$0xff]   ;;  %v15470_v52 = vld [vmem:[%s19236_s9 + $0x28] sm:$0xff]   ;;  %v15471_v53 = vld [vmem:[%s19236_s9 + $0x30] sm:$0xff]  }
0x1160   :  { %v7704_v7 = vadd.f32 %v13855_v39, %v7663_v22  ;;  %v7742_v49 = vadd.f32 %v13874_v58, %v7701_v4  ;;  %v15472_v4 = vld [vmem:[%s19236_s9 + $0x38] sm:$0xff]   ;;  %v15473_v39 = vld [vmem:[%s19236_s9 + $0x40] sm:$0xff]  }
0x1162   :  { %v7745_v9 = vadd.f32 %v13877_v40, %v7704_v7  ;;  %v15466_v40 = vld [vmem:[%s19236_s9 + $0x8] sm:$0xff]   ;;  %v15474_v7 = vld [vmem:[#allocation2 + $0x40] sm:$0xff]  }
0x116a   :  { %v13916_v57 = vpop.f32.mrb[200].mxu1 }
0x116b   :  { %v13917_v28 = vpop.f32.mrb[201].mxu1 }
0x116c   :  { %v13918_v29 = vadd.f32 %v13917_v28, %v13916_v57  ;;  %v13919_v14 = vpop.f32.mrb[202].mxu1  ;;  %v15477_v57 = vld [vmem:[#allocation2 + $0x8] sm:$0xff]   ;;  %v15478_v28 = vld [vmem:[#allocation2 + $0x50] sm:$0xff]  }
0x116d   :  { %v13920_v55 = vpop.f32.mrb[203].mxu1 }
0x116e   :  { %v13921_v63 = vadd.f32 %v13920_v55, %v13919_v14  ;;  %v15480_v14 = vld [vmem:[#allocation2 + $0x58] sm:$0xff]  }
0x116f   :  { %v15481_v55 = vld [vmem:[#allocation2 + $0x18] sm:$0xff]  }
0x117a   :  { %v13894_v6 = vpop.f32.mrb[192].mxu0 }
0x117b   :  { %v13895_v60 = vpop.f32.mrb[193].mxu0 }
0x117c   :  { %v13896_v56 = vadd.f32 %v13895_v60, %v13894_v6  ;;  %v13897_v11 = vpop.f32.mrb[194].mxu0  ;;  %v15483_v60 = vld [vmem:[#allocation2 + $0x20] sm:$0xff]  }
0x117d   :  { %v13898_v19 = vpop.f32.mrb[195].mxu0 }
0x117e   :  { %v7783_v59 = vadd.f32 %v13896_v56, %v7742_v49  ;;  %v13899_v26 = vadd.f32 %v13898_v19, %v13897_v11  ;;  %v15475_v49 = vld [vmem:[#allocation2] sm:$0xff]   ;;  %v15484_v56 = vld [vmem:[#allocation2 + $0x68] sm:$0xff]  }
0x1180   :  { %v7786_v18 = vadd.f32 %v13899_v26, %v7745_v9  ;;  %v7824_v45 = vadd.f32 %v13918_v29, %v7783_v59  ;;  %v15476_v9 = vld [vmem:[#allocation2 + $0x48] sm:$0xff]   ;;  %v15479_v29 = vld [vmem:[#allocation2 + $0x10] sm:$0xff]  }
0x1181   :  { %v15485_v59 = vld [vmem:[#allocation2 + $0x28] sm:$0xff]  }
0x1182   :  { %v7827_v17 = vadd.f32 %v13921_v63, %v7786_v18  ;;  %v15482_v63 = vld [vmem:[#allocation2 + $0x60] sm:$0xff]  }
0x118a   :  { %v13960_v10 = vpop.f32.mrb[204].mxu1 }
0x118b   :  { %v13961_v36 = vpop.f32.mrb[205].mxu1 }
0x118c   :  { %v13962_v50 = vadd.f32 %v13961_v36, %v13960_v10  ;;  %v13963_v2 = vpop.f32.mrb[206].mxu1  ;;  %v15488_v10 = vld [vmem:[#allocation2 + $0x78] sm:$0xff]  }
0x118d   :  { %v13964_v5 = vpop.f32.mrb[207].mxu1 }
0x118e   :  { %v13965_v33 = vadd.f32 %v13964_v5, %v13963_v2  ;;  %v15489_v5 = vld [vmem:[#allocation2 + $0x38] sm:$0xff]  }
0x119a   :  { %v13938_v48 = vpop.f32.mrb[196].mxu0 }
0x119b   :  { %v13939_v1 = vpop.f32.mrb[197].mxu0 }
0x119c   :  { %v13940_v27 = vadd.f32 %v13939_v1, %v13938_v48  ;;  %v13941_v34 = vpop.f32.mrb[198].mxu0  ;;  %v15490_v1 = vld [vmem:[#allocation2 + $0xc0] sm:$0xff]  }
0x119d   :  { %v13942_v32 = vpop.f32.mrb[199].mxu0 }
0x119e   :  { %v7865_v30 = vadd.f32 %v13940_v27, %v7824_v45  ;;  %v13943_v8 = vadd.f32 %v13942_v32, %v13941_v34  ;;  %v15486_v45 = vld [vmem:[#allocation2 + $0x70] sm:$0xff]  }
0x11a0   :  { %v7906_v43 = vadd.f32 %v13962_v50, %v7865_v30  ;;  %v7868_v51 = vadd.f32 %v13943_v8, %v7827_v17  ;;  %v15487_v17 = vld [vmem:[#allocation2 + $0x30] sm:$0xff]  }
0x11a2   :  { %v7909_v37 = vadd.f32 %v13965_v33, %v7868_v51  ;;  %v7912_v61 = vmax.f32 %v7906_v43, 0.0 }
0x11a4   :  { %v7913_v23 = vmax.f32 %v7909_v37, 0.0 }
0x11a6   :  { %v18145_v54 = vpack.c.bf16 %v7913_v23, %v7912_v61 }
0x11a8   :  { %14501 = vmatpush3.bf16.msra.mxu0 %v18145_v54 }
0x11a9   :  { %13978 = vmatprep.subr.bf16.mxu0 %v15474_v7  ;;  %v15512_v7 = vld [vmem:[#allocation2 + $0x118] sm:$0xff]  }
0x11ab   :  { %14503 = vmatmul.mubr.msk.bf16.vlgmr.msra.gmra.mrb[200].mxu0 %vm1864_vm4, %v7915_v13 }
0x11ac   :  { %13979 = vmatpush3.bf16.msra.mxu0 %v15475_v49 }
0x11ad   :  { %13980 = vmatprep.subr.bf16.mxu0 %v15476_v9 }
0x11b0   :  { %13981 = vmatpush3.bf16.msra.mxu0 %v15477_v57 }
0x11b1   :  { %13982 = vmatprep.subr.bf16.mxu0 %v15478_v28 }
0x11b4   :  { %13983 = vmatpush3.bf16.msra.mxu0 %v15479_v29 }
0x11b5   :  { %13984 = vmatprep.subr.bf16.mxu0 %v15480_v14  ;;  %v8274_v14 = vld [vmem:[%s19237_s10] sm:$0xff] }
0x11b8   :  { %13985 = vmatpush3.bf16.msra.mxu0 %v15481_v55 }
0x11b9   :  { %13986 = vmatprep.subr.bf16.mxu0 %v15482_v63 }
0x11bc   :  { %13987 = vmatpush3.bf16.msra.mxu0 %v15483_v60 }
0x11bd   :  { %13988 = vmatprep.subr.bf16.mxu0 %v15484_v56 }
0x11c0   :  { %13989 = vmatpush3.bf16.msra.mxu0 %v15485_v59 }
0x11c1   :  { %13990 = vmatprep.subr.bf16.mxu0 %v15486_v45  ;;  %v15491_v45 = vld [vmem:[#allocation2 + $0x80] sm:$0xff]  }
0x11c4   :  { %13991 = vmatpush3.bf16.msra.mxu0 %v15487_v17 }
0x11c5   :  { %13992 = vmatprep.subr.bf16.mxu0 %v15488_v10  ;;  %v15492_v10 = vld [vmem:[#allocation2 + $0xc8] sm:$0xff]  }
0x11c8   :  { %13993 = vmatpush3.bf16.msra.mxu0 %v15489_v5  ;;  %v15495_v5 = vld [vmem:[#allocation2 + $0x90] sm:$0xff]  }
0x11c9   :  { %14000 = vmatprep.subr.bf16.mxu0 %v15490_v1  ;;  %v15498_v1 = vld [vmem:[#allocation2 + $0xe0] sm:$0xff]  }
0x127e   :  { %v7959_v47 = vpop.f32.mrb[200].mxu0 }
0x127f   :  { %v7960_v62 = vadd.f32 %v7959_v47, %v7920_v44  ;;  %v14504_v20 = vpop.f32.mrb[201].mxu0 }
0x1280   :  { %v7962_v22 = vpop.f32.mrb[202].mxu0 }
0x1281   :  { %v7965_v35 = vmax.f32 %v7960_v62, 0.0  ;;  %v14505_v21 = vpop.f32.mrb[203].mxu0  ;;  %v15502_v22 = vld [vmem:[#allocation2 + $0x100] sm:$0xff]  }
0x1283   :  { %v7984_v58 = vpack.c.bf16 %v7965_v35, %v7965_v35 }
0x1285   :  { %v8058_v25 = vsel %vm2001_vm5, %v7984_v58, 0 }
0x1286   :  { %14507 = vmatpush3.bf16.msra.mxu1 %v8058_v25 }
0x1287   :  { %14544 = vmatprep.subr.bf16.mxu1 %v15825_v12 }
0x1289   :  { %14509 = vmatmul.mubr.msk.bf16.vlgmr.msra.gmra.mrb[208].mxu1 %vm1973_vm6, %v15465_v31 }
0x128a   :  { %14512 = vmatprep.mubr.msk.bf16.mxu1 %vm15826_vm3, %v15825_v12  ;;  %14545 = vmatpush3.bf16.msra.mxu1 %v15502_v22  ;;  %v15518_v22 = vld [vmem:[%s19230_s3 + $0x24] ss:$8 sps:$4 sm:$0xff]  }
0x128b   :  { %14546 = vmatprep.subr.bf16.mxu1 %v15825_v12 }
0x1291   :  { %14513 = vmatmul.mubr.msk.bf16.gmra.mrb[212].mxu1 %vm1973_vm6, %v15466_v40  ;;  %v15505_v40 = vld [vmem:[#allocation2 + $0x108] sm:$0xff]  }
0x1292   :  { %14516 = vmatprep.mubr.msk.bf16.mxu1 %vm15826_vm3, %v15825_v12  ;;  %14547 = vmatpush3.bf16.msra.mxu1 %v15505_v40 }
0x1293   :  { %14548 = vmatprep.subr.bf16.mxu1 %v15825_v12 }
0x1299   :  { %14517 = vmatmul.mubr.msk.bf16.gmra.mrb[216].mxu1 %vm1973_vm6, %v15467_v41  ;;  %v8275_v41 = vld [vmem:[%s19237_s10 + $0x8] sm:$0xff] }
0x129a   :  { %14520 = vmatprep.mubr.msk.bf16.mxu1 %vm15826_vm3, %v15825_v12 }
0x12a1   :  { %14521 = vmatmul.mubr.msk.bf16.gmra.mrb[220].mxu1 %vm1973_vm6, %v15468_v46  ;;  %v15508_v46 = vld [vmem:[#allocation2 + $0x110] sm:$0xff]  }
0x12a2   :  { %14524 = vmatprep.mubr.msk.bf16.mxu1 %vm15826_vm3, %v15825_v12  ;;  %14549 = vmatpush3.bf16.msra.mxu1 %v15508_v46 }
0x12a3   :  { %14550 = vmatprep.subr.bf16.mxu1 %v15825_v12 }
0x12a6   :  { %14551 = vmatpush3.bf16.msra.mxu1 %v15512_v7 }
0x12a7   :  { %14556 = vmatprep.subr.bf16.mxu1 %v15825_v12 }
0x12a9   :  { %14525 = vmatmul.mubr.msk.bf16.gmra.mrb[224].mxu1 %vm1973_vm6, %v15469_v15 }
0x12aa   :  { %14528 = vmatprep.mubr.msk.bf16.mxu1 %vm15826_vm3, %v15825_v12 }
0x12b1   :  { %14529 = vmatmul.mubr.msk.bf16.gmra.mrb[228].mxu1 %vm1973_vm6, %v15470_v52 }
0x12b2   :  { %14532 = vmatprep.mubr.msk.bf16.mxu1 %vm15826_vm3, %v15825_v12 }
0x12b9   :  { %14533 = vmatmul.mubr.msk.bf16.gmra.mrb[232].mxu1 %vm1973_vm6, %v15471_v53 }
0x12ba   :  { %14536 = vmatprep.mubr.msk.bf16.mxu1 %vm15826_vm3, %v15825_v12 }
0x12c1   :  { %14537 = vmatmul.mubr.msk.bf16.gmra.mrb[236].mxu1 %vm1973_vm6, %v15472_v4 }
0x12c2   :  { %14540 = vmatprep.mubr.msk.bf16.mxu1 %vm15826_vm3, %v15825_v12 }
0x12c9   :  { %14541 = vmatmul.mubr.msk.bf16.gmra.mrb[240].mxu1 %vm1973_vm6, %v15473_v39 }
0x12ca   :  { %14552 = vmatprep.mubr.msk.bf16.mxu1 %vm15826_vm3, %v15825_v12 }
0x135c   :  { %v18208_v6 = vpop.f32.mrb[208].mxu1 }
0x135d   :  { %v14510_v11 = vpop.f32.mrb[209].mxu1 }
0x135e   :  { %v18210_v19 = vpop.f32.mrb[210].mxu1 }
0x135f   :  { %v8165_v26 = vpack.c.bf16 %v18210_v19, %v18208_v6  ;;  %v14511_v18 = vpop.f32.mrb[211].mxu1  ;;  %v15500_v6 = vld [vmem:[#allocation2 + $0xe8] sm:$0xff]  }
0x1360   :  { %v15501_v19 = vld [vmem:[#allocation2 + $0xa8] sm:$0xff]  }
0x1364   :  { %v8102_v36 = vpop.f32.mrb[212].mxu1 }
0x1365   :  { %v14514_v50 = vpop.f32.mrb[213].mxu1 }
0x1366   :  { %v8105_v2 = vpop.f32.mrb[214].mxu1  ;;  %v15493_v50 = vld [vmem:[#allocation2 + $0x88] sm:$0xff]  }
0x1367   :  { %v8166_v33 = vpack.c.bf16 %v8105_v2, %v8102_v36  ;;  %v14515_v48 = vpop.f32.mrb[215].mxu1  ;;  %v15494_v2 = vld [vmem:[#allocation2 + $0xd0] sm:$0xff]  }
0x1368   :  { %v15497_v48 = vld [vmem:[#allocation2 + $0x98] sm:$0xff]  }
0x1369   :  { %8175 = vrot.lane.b32.xlu0 %v8166_v33, %s15820_s18  ;;  %v15496_v33 = vld [vmem:[#allocation2 + $0xd8] sm:$0xff]  }
0x136c   :  { %v8110_v27 = vpop.f32.mrb[216].mxu1 }
0x136d   :  { %v14518_v34 = vpop.f32.mrb[217].mxu1 }
0x136e   :  { %v8113_v32 = vpop.f32.mrb[218].mxu1  ;;  %v15504_v34 = vld [vmem:[#allocation2 + $0xb0] sm:$0xff]  }
0x136f   :  { %v8167_v30 = vpack.c.bf16 %v8113_v32, %v8110_v27  ;;  %v14519_v8 = vpop.f32.mrb[219].mxu1  ;;  %v15499_v27 = vld [vmem:[#allocation2 + $0xa0] sm:$0xff]   ;;  %v15506_v32 = vld [vmem:[#allocation2 + $0xf8] sm:$0xff]  }
0x1370   :  { %v15511_v8 = vld [vmem:[%s19230_s3 + $0x4] ss:$8 sps:$4 sm:$0xff]  }
0x1374   :  { %v8118_v43 = vpop.f32.mrb[220].mxu1 }
0x1375   :  { %v14522_v51 = vpop.f32.mrb[221].mxu1 }
0x1376   :  { %v8121_v37 = vpop.f32.mrb[222].mxu1 }
0x1377   :  { %v8168_v61 = vpack.c.bf16 %v8121_v37, %v8118_v43  ;;  %v14523_v23 = vpop.f32.mrb[223].mxu1  ;;  %v15509_v37 = vld [vmem:[%s19230_s3] ss:$8 sps:$4 sm:$0xff]  }
0x1378   :  { %v15515_v23 = vld [vmem:[%s19230_s3 + $0x14] ss:$8 sps:$4 sm:$0xff]  }
0x1379   :  { %8178 = vrot.lane.b32.xlu1 %v8168_v61, %s15820_s18 }
0x137c   :  { %v18216_v13 = vpop.f32.mrb[224].mxu1 }
0x137d   :  { %v14526_v44 = vpop.f32.mrb[225].mxu1 }
0x137e   :  { %v18218_v47 = vpop.f32.mrb[226].mxu1 }
0x137f   :  { %v8169_v62 = vpack.c.bf16 %v18218_v47, %v18216_v13  ;;  %v14527_v20 = vpop.f32.mrb[227].mxu1  ;;  %v15516_v13 = vld [vmem:[%s19230_s3 + $0x20] ss:$8 sps:$4 sm:$0xff]   ;;  %v15521_v47 = vld [vmem:[%s19230_s3 + $0x34] ss:$8 sps:$4 sm:$0xff]  }
0x1380   :  { %v15513_v20 = vld [vmem:[%s19230_s3 + $0x10] ss:$8 sps:$4 sm:$0xff]  }
0x1384   :  { %v8134_v35 = vpop.f32.mrb[228].mxu1 }
0x1385   :  { %v14530_v21 = vpop.f32.mrb[229].mxu1 }
0x1386   :  { %v8137_v58 = vpop.f32.mrb[230].mxu1 }
0x1387   :  { %v8170_v25 = vpack.c.bf16 %v8137_v58, %v8134_v35  ;;  %v14531_v31 = vpop.f32.mrb[231].mxu1 }
0x1389   :  { %8181 = vrot.lane.b32.xlu0 %v8170_v25, %s15820_s18 }
0x138c   :  { %v18228_v15 = vpop.f32.mrb[232].mxu1 }
0x138d   :  { %8283 = vperm.xlu0 %14708, %v8275_v41   ;;  %v14534_v52 = vpop.f32.mrb[233].mxu1 }
0x138e   :  { %v18230_v53 = vpop.f32.mrb[234].mxu1 }
0x138f   :  { %v8171_v4 = vpack.c.bf16 %v18230_v53, %v18228_v15  ;;  %v14535_v39 = vpop.f32.mrb[235].mxu1 }
0x1394   :  { %v8150_v49 = vpop.f32.mrb[236].mxu1 }
0x1395   :  { %v14538_v9 = vpop.f32.mrb[237].mxu1 }
0x1396   :  { %v8153_v57 = vpop.f32.mrb[238].mxu1 }
0x1397   :  { %v8172_v28 = vpack.c.bf16 %v8153_v57, %v8150_v49  ;;  %v14539_v29 = vpop.f32.mrb[239].mxu1 }
0x1399   :  { %8184 = vrot.lane.b32.xlu1 %v8172_v28, %s15820_s18 }
0x139c   :  { %v8158_v55 = vpop.f32.mrb[240].mxu1 }
0x139d   :  { %8278 = vperm.xlu1 %14709, %v8274_v14   ;;  %v14542_v63 = vpop.f32.mrb[241].mxu1 }
0x139e   :  { %v8161_v60 = vpop.f32.mrb[242].mxu1 }
0x139f   :  { %v8173_v56 = vpack.c.bf16 %v8161_v60, %v8158_v55  ;;  %v14543_v11 = vpop.f32.mrb[243].mxu1 }
0x13a1   :  { %14553 = vmatmul.mubr.msk.bf16.vlgmr.msra.gmra.mrb[244].mxu1 %vm2131_vm7, %v8173_v56 }
0x13a2   :  { %14560 = vmatprep.mubr.msk.bf16.mxu1 %vm15826_vm3, %v15825_v12 }
0x13db   :  { %v8176_v59 = vpop.permute.xlu0 %8175 }
0x13dc   :  { %v8188_v36 = vsel %vm2131_vm7, %v8165_v26, %v8176_v59  ;;  %v15503_v26 = vld [vmem:[#allocation2 + $0xf0] sm:$0xff]  }
0x13eb   :  { %v8179_v18 = vpop.permute.xlu1 %8178 }
0x13ec   :  { %v8192_v17 = vsel %vm2131_vm7, %v8167_v30, %v8179_v18  ;;  %v15507_v30 = vld [vmem:[#allocation2 + $0xb8] sm:$0xff]  }
0x13ed   :  { %8537 = vmatprep.mubr.bf16.mxu0 %v8192_v17 }
0x13ee   :  { %8538 = vmatmul.mubr.bf16.vlgmr.msra.gmra.mrb[204].mxu0 %v8188_v36 }
0x13ef   :  { %14001 = vmatpush3.bf16.msra.mxu0 %v15491_v45 }
0x13f0   :  { %14002 = vmatprep.subr.bf16.mxu0 %v15492_v10 }
0x13f3   :  { %14003 = vmatpush3.bf16.msra.mxu0 %v15493_v50 }
0x13f4   :  { %14004 = vmatprep.subr.bf16.mxu0 %v15494_v2 }
0x13f7   :  { %14005 = vmatpush3.bf16.msra.mxu0 %v15495_v5 }
0x13f8   :  { %14006 = vmatprep.subr.bf16.mxu0 %v15496_v33 }
0x13fb   :  { %14007 = vmatpush3.bf16.msra.mxu0 %v15497_v48  ;;  %v8182_v43 = vpop.permute.xlu0 %8181 }
0x13fc   :  { %14008 = vmatprep.subr.bf16.mxu0 %v15498_v1  ;;  %v8196_v44 = vsel %vm2131_vm7, %v8169_v62, %v8182_v43  ;;  %v15519_v62 = vld [vmem:[%s19230_s3 + $0x30] ss:$8 sps:$4 sm:$0xff]  }
0x13ff   :  { %14009 = vmatpush3.bf16.msra.mxu0 %v15499_v27 }
0x1400   :  { %14010 = vmatprep.subr.bf16.mxu0 %v15500_v6 }
0x1403   :  { %14011 = vmatpush3.bf16.msra.mxu0 %v15501_v19 }
0x1404   :  { %14012 = vmatprep.subr.bf16.mxu0 %v15503_v26 }
0x1407   :  { %14013 = vmatpush3.bf16.msra.mxu0 %v15504_v34 }
0x1408   :  { %14014 = vmatprep.subr.bf16.mxu0 %v15506_v32 }
0x140b   :  { %14015 = vmatpush3.bf16.msra.mxu0 %v15507_v30  ;;  %v8185_v51 = vpop.permute.xlu1 %8184 }
0x140c   :  { %v8200_v61 = vsel %vm2131_vm7, %v8171_v4, %v8185_v51  ;;  %8681 = vmatprep.subr.bf16.mxu0 %v15511_v8  ;;  %v8284_v57 = vpop.permute.xlu0 %8283 }
0x140d   :  { %8578 = vmatprep.mubr.bf16.mxu0 %v8200_v61 }
0x140e   :  { %8579 = vmatmul.mubr.bf16.vlgmr.msra.gmra.mrb[208].mxu0 %v8196_v44 }
0x140f   :  { %8682 = vmatpush1.bf16.msra.mxu0 %v15509_v37  ;;  %8713 = vmatprep.mubr.bf16.mxu0 %v15823_v0 }
0x1410   :  { %8683 = vmatprep.subr.bf16.mxu0 %v15515_v23 }
0x1413   :  { %8684 = vmatpush1.bf16.msra.mxu0 %v15513_v20 }
0x1414   :  { %8685 = vmatprep.subr.bf16.mxu0 %v15518_v22 }
0x1417   :  { %8686 = vmatpush1.bf16.msra.mxu0 %v15516_v13 }
0x1418   :  { %8687 = vmatprep.subr.bf16.mxu0 %v15521_v47 }
0x141b   :  { %8688 = vmatpush1.bf16.msra.mxu0 %v15519_v62 }
0x141c   :  { %9114 = vmatprep.subr.bf16.mxu0 %v15823_v0  ;;  %v8279_v4 = vpop.permute.xlu1 %8278 }
0x141e   :  { %12937 = vmatmul.mubr.msk.bf16.vlgmr.msra.gmra.mrb[212].mxu0 %vm2131_vm7, %v18145_v54 }
0x1474   :  { %v8621_v35 = vpop.f32.mrb[244].mxu1 }
0x1475   :  { %v14554_v21 = vpop.f32.mrb[245].mxu1 }
0x1476   :  { %v8624_v58 = vpop.f32.mrb[246].mxu1 }
0x1477   :  { %v14555_v25 = vpop.f32.mrb[247].mxu1 }
0x14c1   :  { %v13994_v31 = vpop.f32.mrb[204].mxu0 }
0x14c2   :  { %v13995_v40 = vpop.f32.mrb[205].mxu0 }
0x14c3   :  { %v13996_v41 = vadd.f32 %v13995_v40, %v13994_v31  ;;  %v13997_v46 = vpop.f32.mrb[206].mxu0 }
0x14c4   :  { %v13998_v15 = vpop.f32.mrb[207].mxu0 }
0x14c5   :  { %v13999_v52 = vadd.f32 %v13998_v15, %v13997_v46  ;;  %v8540_v7 = vadd.f32 %v13996_v41, %v8279_v4 }
0x14c7   :  { %v8543_v29 = vadd.f32 %v13999_v52, %v8284_v57  ;;  %v15525_v57 = vld [vmem:[%s19238_s11 + $0x18] sm:$0xff]  }
0x14e1   :  { %v14016_v53 = vpop.f32.mrb[208].mxu0 }
0x14e2   :  { %v14017_v39 = vpop.f32.mrb[209].mxu0 }
0x14e3   :  { %v14018_v49 = vadd.f32 %v14017_v39, %v14016_v53  ;;  %v14019_v9 = vpop.f32.mrb[210].mxu0 }
0x14e4   :  { %v14020_v28 = vpop.f32.mrb[211].mxu0 }
0x14e5   :  { %v14021_v54 = vadd.f32 %v14020_v28, %v14019_v9  ;;  %v8581_v14 = vadd.f32 %v14018_v49, %v8540_v7  ;;  %v15522_v7 = vld [vmem:[%s19238_s11] sm:$0xff]   ;;  %v15523_v49 = vld [vmem:[%s19238_s11 + $0x8] sm:$0xff]   ;;  %v15524_v9 = vld [vmem:[%s19238_s11 + $0x10] sm:$0xff]  }
0x14e6   :  { %v15526_v28 = vld [vmem:[%s19238_s11 + $0x20] sm:$0xff]  }
0x14e7   :  { %v8622_v55 = vadd.f32 %v8621_v35, %v8581_v14  ;;  %v8584_v63 = vadd.f32 %v14021_v54, %v8543_v29  ;;  %v15527_v29 = vld [vmem:[%s19238_s11 + $0x28] sm:$0xff]   ;;  %v15528_v54 = vld [vmem:[%s19238_s11 + $0x30] sm:$0xff]   ;;  %v15529_v14 = vld [vmem:[%s19238_s11 + $0x38] sm:$0xff]  }
0x14e9   :  { %v8625_v60 = vadd.f32 %v8624_v58, %v8584_v63  ;;  %v8628_v56 = vmax.f32 %v8622_v55, 0.0  ;;  %v15530_v55 = vld [vmem:[%s19238_s11 + $0x40] sm:$0xff]  }
0x14eb   :  { %v8629_v11 = vmax.f32 %v8625_v60, 0.0 }
0x14ed   :  { %v8802_v59 = vpack.c.bf16 %v8629_v11, %v8628_v56 }
0x14ef   :  { %14557 = vmatpush3.bf16.msra.mxu1 %v8802_v59 }
0x14f0   :  { %14558 = vmatprep.subr.bf16.mxu1 %v15825_v12 }
0x14f1   :  { %v8715_v18 = vpop.f32.mrb[212].mxu0 }
0x14f2   :  { %v8717_v45 = vpop.f32.mrb[213].mxu0 }
0x14f3   :  { %v8719_v17 = vpop.f32.mrb[214].mxu0 }
0x14f4   :  { %v8721_v10 = vpop.f32.mrb[215].mxu0  ;;  %v14785_v36 = vpack.i.bf16 %v8719_v17, %v8715_v18 }
0x14f6   :  { %14786 = vrot.lane.b32.xlu0 %v14785_v36, %s15827_s29  ;;  %14781 = vrot.lane.b32.xlu1 %v14785_v36, %s15828_s30 }
0x14fa   :  { %14796 = vrot.lane.b32.xlu0 %v14785_v36, %s15820_s18  ;;  %14791 = vrot.lane.b32.xlu1 %v14785_v36, %s15829_s14 }
0x14fe   :  { %14806 = vrot.lane.b32.xlu0 %v14785_v36, %s15830_s15  ;;  %14801 = vrot.lane.b32.xlu1 %v14785_v36, %s15831_s2 }
0x1502   :  { %14811 = vrot.lane.b32.xlu1 %v14785_v36, %s15832_s26 }
0x1568   :  { %v14787_v50 = vpop.permute.xlu0 %14786  ;;  %v14782_v2 = vpop.permute.xlu1 %14781 }
0x1569   :  { %v14784_v5 = vunpack.i.h.bf16 %v14782_v2  ;;  %v14783_v33 = vunpack.i.l.bf16 %v14782_v2  ;;  %v14789_v27 = vunpack.i.h.bf16 %v14787_v50  ;;  %v14788_v6 = vunpack.i.l.bf16 %v14787_v50 }
0x156b   :  { %v8733_v48 = vmax.f32 %v8719_v17, %v14784_v5  ;;  %v8732_v1 = vmax.f32 %v8715_v18, %v14783_v33  ;;  %v15532_v5 = vld [vmem:[#allocation4 + $0x8] sm:$0xff]  }
0x156c   :  { %v14797_v19 = vpop.permute.xlu0 %14796  ;;  %v14792_v26 = vpop.permute.xlu1 %14791 }
0x156d   :  { %v14794_v34 = vunpack.i.h.bf16 %v14792_v26  ;;  %v14793_v32 = vunpack.i.l.bf16 %v14792_v26  ;;  %v8740_v30 = vmax.f32 %v8732_v1, %v14788_v6  ;;  %v8741_v8 = vmax.f32 %v8733_v48, %v14789_v27  ;;  %v15533_v1 = vld [vmem:[#allocation4 + $0x10] sm:$0xff]   ;;  %v15534_v26 = vld [vmem:[#allocation4 + $0x18] sm:$0xff]  }
0x156e   :  { %v14799_v43 = vunpack.i.h.bf16 %v14797_v19  ;;  %v14798_v51 = vunpack.i.l.bf16 %v14797_v19 }
0x156f   :  { %v8748_v37 = vmax.f32 %v8740_v30, %v14793_v32  ;;  %v8749_v61 = vmax.f32 %v8741_v8, %v14794_v34  ;;  %v15535_v30 = vld [vmem:[#allocation4 + $0x20] sm:$0xff]  }
0x1570   :  { %v14802_v23 = vpop.permute.xlu1 %14801  ;;  %v14807_v44 = vpop.permute.xlu0 %14806 }
0x1571   :  { %v14804_v20 = vunpack.i.h.bf16 %v14802_v23  ;;  %v14803_v22 = vunpack.i.l.bf16 %v14802_v23  ;;  %v8756_v13 = vmax.f32 %v8748_v37, %v14798_v51  ;;  %v8757_v47 = vmax.f32 %v8749_v61, %v14799_v43  ;;  %v15536_v37 = vld [vmem:[#allocation4 + $0x28] sm:$0xff]  }
0x1572   :  { %v14809_v62 = vunpack.i.h.bf16 %v14807_v44  ;;  %v14808_v35 = vunpack.i.l.bf16 %v14807_v44  ;;  %v15537_v44 = vld [vmem:[#allocation4 + $0x30] sm:$0xff]  }
0x1573   :  { %v8764_v21 = vmax.f32 %v8756_v13, %v14803_v22  ;;  %v8765_v58 = vmax.f32 %v8757_v47, %v14804_v20  ;;  %v15538_v47 = vld [vmem:[#allocation4 + $0x38] sm:$0xff]  }
0x1574   :  { %v14812_v25 = vpop.permute.xlu1 %14811 }
0x1575   :  { %v14814_v31 = vunpack.i.h.bf16 %v14812_v25  ;;  %v14813_v40 = vunpack.i.l.bf16 %v14812_v25  ;;  %v8772_v41 = vmax.f32 %v8764_v21, %v14808_v35  ;;  %v8773_v46 = vmax.f32 %v8765_v58, %v14809_v62  ;;  %v15539_v21 = vld [vmem:[#allocation4 + $0x40] sm:$0xff]  }
0x1577   :  { %v8780_v15 = vmax.f32 %v8772_v41, %v14813_v40  ;;  %v8781_v52 = vmax.f32 %v8773_v46, %v14814_v31  ;;  %v18363_v40 = vld [vmem:[%s19227_s0 + $0x18] sm:$0x77] }
0x1578   :  { %v12979_v46 = vcombine.high %v18363_v40, %v18363_v40 }
0x1579   :  { %v8782_v53 = vmax.f32 %v8780_v15, %v8717_v45  ;;  %v8783_v4 = vmax.f32 %v8781_v52, %v8721_v10  ;;  %v15531_v45 = vld [vmem:[#allocation4] sm:$0xff]  }
0x157a   :  { %9115 = vmatpush1.bf16.msra.mxu0 %v15531_v45  ;;  %v15551_v45 = vld [vmem:[%s19228_s1 + $0x40] sm:$0xff]  }
0x157b   :  { %v8803_v39 = vpack.c.bf16 %v8783_v4, %v8782_v53  ;;  %9116 = vmatprep.subr.bf16.mxu0 %v15823_v0  ;;  %v9261_v4 = vand.u32 %v12979_v46, %v15935_v3  ;;  %v15549_v46 = vld [vmem:[%s19232_s5 + $0x38] sm:$0xff]  }
0x157d   :  { %14559 = vmatpush3.bf16.msra.mxu1 %v8803_v39  ;;  %v9692_v39 = vld [vmem:[%s19233_s6] sm:$0xff] }
0x157e   :  { %9117 = vmatpush1.bf16.msra.mxu0 %v15532_v5  ;;  %14038 = vmatprep.subr.bf16.mxu1 %v15551_v45  ;;  %v15557_v5 = vld [vmem:[%s19228_s1 + $0x58] sm:$0xff]   ;;  %v15597_v45 = vld [vmem:[%s19228_s1 + $0x240] sm:$0xff]  }
0x157f   :  { %9118 = vmatprep.subr.bf16.mxu0 %v15823_v0 }
0x1580   :  { %14561 = vmatmul.mubr.msk.bf16.vlgmr.msra.gmra.mrb[248].mxu1 %vm2795_vm8, %v15522_v7 }
0x1581   :  { %14564 = vmatprep.mubr.msk.bf16.mxu1 %vm15826_vm3, %v15825_v12 }
0x1582   :  { %9119 = vmatpush1.bf16.msra.mxu0 %v15533_v1  ;;  %v15562_v1 = vld [vmem:[%s19228_s1 + $0x20] sm:$0xff]  }
0x1583   :  { %9120 = vmatprep.subr.bf16.mxu0 %v15823_v0 }
0x1586   :  { %9121 = vmatpush1.bf16.msra.mxu0 %v15534_v26 }
0x1587   :  { %9122 = vmatprep.subr.bf16.mxu0 %v15823_v0 }
0x1588   :  { %14565 = vmatmul.mubr.msk.bf16.gmra.mrb[252].mxu1 %vm2795_vm8, %v15523_v49 }
0x1589   :  { %14568 = vmatprep.mubr.msk.bf16.mxu1 %vm15826_vm3, %v15825_v12 }
0x158a   :  { %9123 = vmatpush1.bf16.msra.mxu0 %v15535_v30 }
0x158b   :  { %9124 = vmatprep.subr.bf16.mxu0 %v15823_v0 }
0x158e   :  { %9125 = vmatpush1.bf16.msra.mxu0 %v15536_v37 }
0x158f   :  { %9126 = vmatprep.subr.bf16.mxu0 %v15823_v0 }
0x1590   :  { %14569 = vmatmul.mubr.msk.bf16.gmra.mrb[0].mxu1 %vm2795_vm8, %v15524_v9 }
0x1591   :  { %14572 = vmatprep.mubr.msk.bf16.mxu1 %vm15826_vm3, %v15825_v12 }
0x1592   :  { %9127 = vmatpush1.bf16.msra.mxu0 %v15537_v44 }
0x1593   :  { %9128 = vmatprep.subr.bf16.mxu0 %v15823_v0 }
0x1596   :  { %9129 = vmatpush1.bf16.msra.mxu0 %v15538_v47  ;;  %v15563_v47 = vld [vmem:[%s19228_s1 + $0x148] sm:$0xff]  }
0x1597   :  { %9130 = vmatprep.subr.bf16.mxu0 %v15823_v0 }
0x1598   :  { %14573 = vmatmul.mubr.msk.bf16.gmra.mrb[4].mxu1 %vm2795_vm8, %v15525_v57  ;;  %v10941_v57 = vld [vmem:[%s19235_s8] sm:$0xff] }
0x1599   :  { %14576 = vmatprep.mubr.msk.bf16.mxu1 %vm15826_vm3, %v15825_v12 }
0x159a   :  { %9131 = vmatpush1.bf16.msra.mxu0 %v15539_v21  ;;  %v15543_v21 = vld [vmem:[%s19232_s5 + $0x8] sm:$0xff]  }
0x159b   :  { %9263 = vmatprep.subr.bf16.mxu0 %v9261_v4  ;;  %v15570_v4 = vld [vmem:[%s19228_s1 + $0x30] sm:$0xff]  }
0x15a0   :  { %14577 = vmatmul.mubr.msk.bf16.gmra.mrb[8].mxu1 %vm2795_vm8, %v15526_v28 }
0x15a1   :  { %14580 = vmatprep.mubr.msk.bf16.mxu1 %vm15826_vm3, %v15825_v12 }
0x15a8   :  { %14581 = vmatmul.mubr.msk.bf16.gmra.mrb[12].mxu1 %vm2795_vm8, %v15527_v29 }
0x15a9   :  { %14584 = vmatprep.mubr.msk.bf16.mxu1 %vm15826_vm3, %v15825_v12 }
0x15b0   :  { %14585 = vmatmul.mubr.msk.bf16.gmra.mrb[16].mxu1 %vm2795_vm8, %v15528_v54  ;;  %v9693_v54 = vld [vmem:[%s19233_s6 + $0x8] sm:$0xff] }
0x15b1   :  { %14588 = vmatprep.mubr.msk.bf16.mxu1 %vm15826_vm3, %v15825_v12 }
0x15b8   :  { %14589 = vmatmul.mubr.msk.bf16.gmra.mrb[20].mxu1 %vm2795_vm8, %v15529_v14 }
0x15b9   :  { %14592 = vmatprep.mubr.msk.bf16.mxu1 %vm15826_vm3, %v15825_v12 }
0x15c0   :  { %14593 = vmatmul.mubr.msk.bf16.gmra.mrb[24].mxu1 %vm2795_vm8, %v15530_v55 }
0x1653   :  { %v18341_v63 = vpop.f32.mrb[248].mxu1 }
0x1654   :  { %v14562_v60 = vpop.f32.mrb[249].mxu1 }
0x1655   :  { %v18343_v56 = vpop.f32.mrb[250].mxu1 }
0x1656   :  { %v8981_v11 = vpack.c.bf16 %v18343_v56, %v18341_v63  ;;  %v14563_v59 = vpop.f32.mrb[251].mxu1  ;;  %v15559_v56 = vld [vmem:[%s19228_s1 + $0x140] sm:$0xff]  }
0x165b   :  { %v8918_v18 = vpop.f32.mrb[252].mxu1 }
0x165c   :  { %v14566_v17 = vpop.f32.mrb[253].mxu1 }
0x165d   :  { %v8921_v10 = vpop.f32.mrb[254].mxu1  ;;  %v15552_v17 = vld [vmem:[%s19228_s1] sm:$0xff]  }
0x165e   :  { %v8982_v36 = vpack.c.bf16 %v8921_v10, %v8918_v18  ;;  %v14567_v50 = vpop.f32.mrb[255].mxu1  ;;  %v15553_v10 = vld [vmem:[%s19228_s1 + $0x48] sm:$0xff]   ;;  %14039 = vmatpush3.bf16.msra.mxu1 %v15552_v17 }
0x165f   :  { %14040 = vmatprep.subr.bf16.mxu1 %v15553_v10  ;;  %v15555_v50 = vld [vmem:[%s19228_s1 + $0x50] sm:$0xff]  }
0x1660   :  { %8991 = vrot.lane.b32.xlu0 %v8982_v36, %s15832_s26  ;;  %v15554_v36 = vld [vmem:[%s19228_s1 + $0x8] sm:$0xff]  }
0x1662   :  { %14041 = vmatpush3.bf16.msra.mxu1 %v15554_v36 }
0x1663   :  { %v8926_v2 = vpop.f32.mrb[0].mxu1  ;;  %14042 = vmatprep.subr.bf16.mxu1 %v15555_v50 }
0x1664   :  { %v14570_v33 = vpop.f32.mrb[1].mxu1 }
0x1665   :  { %v8929_v48 = vpop.f32.mrb[2].mxu1  ;;  %v15558_v33 = vld [vmem:[%s19228_s1 + $0x18] sm:$0xff]  }
0x1666   :  { %v8983_v27 = vpack.c.bf16 %v8929_v48, %v8926_v2  ;;  %v14571_v6 = vpop.f32.mrb[3].mxu1  ;;  %v15556_v2 = vld [vmem:[%s19228_s1 + $0x10] sm:$0xff]   ;;  %v15561_v48 = vld [vmem:[%s19228_s1 + $0x60] sm:$0xff]  }
0x1667   :  { %14043 = vmatpush3.bf16.msra.mxu1 %v15556_v2  ;;  %v15566_v6 = vld [vmem:[%s19228_s1 + $0x28] sm:$0xff]  }
0x1668   :  { %8994 = vrot.lane.b32.xlu1 %v8983_v27, %s15830_s15  ;;  %14044 = vmatprep.subr.bf16.mxu1 %v15557_v5  ;;  %v15565_v27 = vld [vmem:[%s19228_s1 + $0x68] sm:$0xff]  }
0x166b   :  { %v8934_v19 = vpop.f32.mrb[4].mxu1  ;;  %14045 = vmatpush3.bf16.msra.mxu1 %v15558_v33 }
0x166c   :  { %v14574_v34 = vpop.f32.mrb[5].mxu1  ;;  %14046 = vmatprep.subr.bf16.mxu1 %v15561_v48 }
0x166d   :  { %v8937_v32 = vpop.f32.mrb[6].mxu1 }
0x166e   :  { %v8984_v8 = vpack.c.bf16 %v8937_v32, %v8934_v19  ;;  %v14575_v43 = vpop.f32.mrb[7].mxu1 }
0x166f   :  { %14047 = vmatpush3.bf16.msra.mxu1 %v15562_v1 }
0x1670   :  { %8997 = vrot.lane.b32.xlu0 %v8984_v8, %s15831_s2  ;;  %14048 = vmatprep.subr.bf16.mxu1 %v15565_v27  ;;  %v12978_v8 = vcombine.low %v18363_v40, %v18363_v40  ;;  %v15547_v40 = vld [vmem:[%s19232_s5 + $0x28] sm:$0xff]  }
0x1673   :  { %v8942_v51 = vpop.f32.mrb[8].mxu1  ;;  %14049 = vmatpush3.bf16.msra.mxu1 %v15566_v6  ;;  %v15576_v6 = vld [vmem:[%s19228_s1 + $0x80] sm:$0xff]  }
0x1674   :  { %v14578_v61 = vpop.f32.mrb[9].mxu1 }
0x1675   :  { %v8945_v23 = vpop.f32.mrb[10].mxu1 }
0x1676   :  { %v8985_v20 = vpack.c.bf16 %v8945_v23, %v8942_v51  ;;  %v14579_v22 = vpop.f32.mrb[11].mxu1 }
0x1678   :  { %9000 = vrot.lane.b32.xlu1 %v8985_v20, %s15820_s18  ;;  %v9258_v20 = vand.u32 %v12978_v8, %v15935_v3  ;;  %v15560_v3 = vld [vmem:[%s19228_s1 + $0x100] sm:$0xff]  }
0x167b   :  { %v8950_v13 = vpop.f32.mrb[12].mxu1 }
0x167c   :  { %v14582_v62 = vpop.f32.mrb[13].mxu1 }
0x167d   :  { %v8953_v35 = vpop.f32.mrb[14].mxu1  ;;  %v15564_v62 = vld [vmem:[%s19228_s1 + $0x108] sm:$0xff]  }
0x167e   :  { %v8986_v58 = vpack.c.bf16 %v8953_v35, %v8950_v13  ;;  %v14583_v25 = vpop.f32.mrb[15].mxu1  ;;  %v15542_v13 = vld [vmem:[%s19232_s5] sm:$0xff]   ;;  %v15567_v35 = vld [vmem:[%s19228_s1 + $0x150] sm:$0xff]  }
0x167f   :  { %v15545_v25 = vld [vmem:[%s19232_s5 + $0x18] sm:$0xff]  }
0x1680   :  { %9003 = vrot.lane.b32.xlu0 %v8986_v58, %s15829_s14  ;;  %v15544_v58 = vld [vmem:[%s19232_s5 + $0x10] sm:$0xff]  }
0x1683   :  { %v8958_v31 = vpop.f32.mrb[16].mxu1 }
0x1684   :  { %v14586_v41 = vpop.f32.mrb[17].mxu1 }
0x1685   :  { %v8961_v15 = vpop.f32.mrb[18].mxu1  ;;  %v15548_v41 = vld [vmem:[%s19232_s5 + $0x30] sm:$0xff]  }
0x1686   :  { %v8987_v52 = vpack.c.bf16 %v8961_v15, %v8958_v31  ;;  %v14587_v53 = vpop.f32.mrb[19].mxu1  ;;  %v15546_v31 = vld [vmem:[%s19232_s5 + $0x20] sm:$0xff]  }
0x1687   :  { %v15550_v15 = vld [vmem:[%s19232_s5 + $0x40] sm:$0xff]   ;;  %v15569_v53 = vld [vmem:[%s19228_s1 + $0x70] sm:$0xff]  }
0x1688   :  { %9006 = vrot.lane.b32.xlu1 %v8987_v52, %s15827_s29  ;;  %v15568_v52 = vld [vmem:[%s19228_s1 + $0x110] sm:$0xff]   ;;  %14050 = vmatprep.subr.bf16.mxu1 %v15569_v53 }
0x1689   :  { %14051 = vmatpush3.bf16.msra.mxu1 %v15570_v4  ;;  %v15596_v4 = vld [vmem:[%s19228_s1 + $0xb0] sm:$0xff]  }
0x168b   :  { %v8966_v7 = vpop.f32.mrb[20].mxu1 }
0x168c   :  { %9696 = vperm.xlu1 %14709, %v9692_v39   ;;  %v14590_v49 = vpop.f32.mrb[21].mxu1  ;;  %v15571_v39 = vld [vmem:[%s19228_s1 + $0x158] sm:$0xff]  }
0x168d   :  { %v8969_v9 = vpop.f32.mrb[22].mxu1  ;;  %v15572_v49 = vld [vmem:[%s19228_s1 + $0x118] sm:$0xff]  }
0x168e   :  { %v8988_v28 = vpack.c.bf16 %v8969_v9, %v8966_v7  ;;  %v14591_v29 = vpop.f32.mrb[23].mxu1  ;;  %v15573_v7 = vld [vmem:[%s19228_s1 + $0x78] sm:$0xff]  }
0x168f   :  { %v15574_v9 = vld [vmem:[%s19228_s1 + $0x38] sm:$0xff]   ;;  %14052 = vmatprep.subr.bf16.mxu1 %v15573_v7  ;;  %v15579_v29 = vld [vmem:[%s19228_s1 + $0x120] sm:$0xff]  }
0x1690   :  { %10944 = vperm.xlu1 %14709, %v10941_v57   ;;  %9009 = vrot.lane.b32.xlu0 %v8988_v28, %s15828_s30  ;;  %v15575_v57 = vld [vmem:[%s19228_s1 + $0xc0] sm:$0xff]  }
0x1691   :  { %14053 = vmatpush3.bf16.msra.mxu1 %v15574_v9  ;;  %v15577_v28 = vld [vmem:[%s19228_s1 + $0x160] sm:$0xff]   ;;  %v15609_v9 = vld [vmem:[%s19228_s1 + $0x258] sm:$0xff]  }
0x1692   :  { %14060 = vmatprep.subr.bf16.mxu1 %v15575_v57  ;;  %v15600_v57 = vld [vmem:[%s19228_s1 + $0xb8] sm:$0xff]  }
0x1693   :  { %v8974_v14 = vpop.f32.mrb[24].mxu1 }
0x1694   :  { %9701 = vperm.xlu0 %14708, %v9693_v54   ;;  %v14594_v55 = vpop.f32.mrb[25].mxu1  ;;  %v15584_v54 = vld [vmem:[%s19228_s1 + $0x168] sm:$0xff]  }
0x1695   :  { %v8977_v60 = vpop.f32.mrb[26].mxu1  ;;  %v15589_v55 = vld [vmem:[%s19228_s1 + $0x170] sm:$0xff]  }
0x1696   :  { %v8989_v59 = vpack.c.bf16 %v8977_v60, %v8974_v14  ;;  %v14595_v18 = vpop.f32.mrb[27].mxu1  ;;  %v15586_v14 = vld [vmem:[%s19228_s1 + $0x128] sm:$0xff]   ;;  %v15591_v60 = vld [vmem:[%s19228_s1 + $0x130] sm:$0xff]  }
0x1697   :  { %v15595_v18 = vld [vmem:[%s19228_s1 + $0x138] sm:$0xff]  }
0x1698   :  { %12965 = vmatprep.mubr.msk.bf16.mxu0 %vm1864_vm4, %v8989_v59  ;;  %v15593_v59 = vld [vmem:[%s19228_s1 + $0x178] sm:$0xff]  }
0x16d2   :  { %v8992_v19 = vpop.permute.xlu0 %8991 }
0x16d3   :  { %v9013_v30 = vsel %vm1864_vm4, %v8981_v11, %v8992_v19  ;;  %v15578_v19 = vld [vmem:[%s19228_s1 + $0xc8] sm:$0xff]  }
0x16da   :  { %v8995_v26 = vpop.permute.xlu1 %8994 }
0x16db   :  { %v9015_v43 = vsel %vm2795_vm8, %v9013_v30, %v8995_v26  ;;  %v15580_v26 = vld [vmem:[%s19228_s1 + $0x88] sm:$0xff]  }
0x16e2   :  { %v8998_v34 = vpop.permute.xlu0 %8997 }
0x16e3   :  { %v9017_v37 = vsel %vm2963_vm9, %v9015_v43, %v8998_v34 }
0x16ea   :  { %v9001_v32 = vpop.permute.xlu1 %9000 }
0x16eb   :  { %v9019_v23 = vsel %vm2131_vm7, %v9017_v37, %v9001_v32  ;;  %v15581_v32 = vld [vmem:[%s19228_s1 + $0xd0] sm:$0xff]  }
0x16ec   :  { %v15582_v37 = vld [vmem:[%s19228_s1 + $0x90] sm:$0xff]  }
0x16f2   :  { %v9004_v51 = vpop.permute.xlu0 %9003 }
0x16f3   :  { %v9021_v44 = vsel %vm2968_vm10, %v9019_v23, %v9004_v51  ;;  %v15583_v23 = vld [vmem:[%s19228_s1 + $0xd8] sm:$0xff]  }
0x16fa   :  { %v9007_v61 = vpop.permute.xlu1 %9006 }
0x16fb   :  { %v9023_v22 = vsel %vm2971_vm11, %v9021_v44, %v9007_v61  ;;  %v15585_v44 = vld [vmem:[%s19228_s1 + $0x98] sm:$0xff]  }
0x1702   :  { %v9010_v63 = vpop.permute.xlu0 %9009 }
0x1703   :  { %v9025_v11 = vsel %vm2974_vm12, %v9023_v22, %v9010_v63  ;;  %v15587_v22 = vld [vmem:[%s19228_s1 + $0xe0] sm:$0xff]  }
0x1704   :  { %9147 = vmatmul.mubr.bf16.vlgmr.msra.gmra.mrb[216].mxu0 %v9025_v11 }
0x1705   :  { %9264 = vmatpush1.bf16.msra.mxu0 %v9258_v20  ;;  %9295 = vmatprep.mubr.bf16.mxu0 %v15823_v0 }
0x1706   :  { %14082 = vmatprep.subr.bf16.mxu0 %v15559_v56 }
0x170c   :  { %12980 = vmatmul.mubr.msk.bf16.vlgmr.msra.gmra.mrb[220].mxu0 %vm142_vm2, %v15542_v13 }
0x170d   :  { %9305 = vmatprep.mubr.bf16.mxu0 %v15823_v0  ;;  %14083 = vmatpush3.bf16.msra.mxu0 %v15560_v3  ;;  %v15588_v3 = vld [vmem:[%s19228_s1 + $0xa0] sm:$0xff]  }
0x170e   :  { %14084 = vmatprep.subr.bf16.mxu0 %v15563_v47 }
0x1711   :  { %14085 = vmatpush3.bf16.msra.mxu0 %v15564_v62  ;;  %v15599_v62 = vld [vmem:[%s19228_s1 + $0x200] sm:$0xff]  }
0x1712   :  { %14086 = vmatprep.subr.bf16.mxu0 %v15567_v35  ;;  %v15590_v35 = vld [vmem:[%s19228_s1 + $0xe8] sm:$0xff]  }
0x1714   :  { %12981 = vmatmul.mubr.msk.bf16.gmra.mrb[224].mxu0 %vm142_vm2, %v15543_v21  ;;  %v15601_v21 = vld [vmem:[%s19228_s1 + $0x248] sm:$0xff]  }
0x1715   :  { %9315 = vmatprep.mubr.bf16.mxu0 %v15823_v0  ;;  %14087 = vmatpush3.bf16.msra.mxu0 %v15568_v52 }
0x1716   :  { %14088 = vmatprep.subr.bf16.mxu0 %v15571_v39  ;;  %v15607_v39 = vld [vmem:[%s19228_s1 + $0x210] sm:$0xff]  }
0x1719   :  { %14089 = vmatpush3.bf16.msra.mxu0 %v15572_v49  ;;  %v15598_v49 = vld [vmem:[%s19228_s1 + $0xf8] sm:$0xff]  }
0x171a   :  { %14090 = vmatprep.subr.bf16.mxu0 %v15577_v28  ;;  %v15611_v28 = vld [vmem:[%s19228_s1 + $0x218] sm:$0xff]  }
0x171c   :  { %12982 = vmatmul.mubr.msk.bf16.gmra.mrb[228].mxu0 %vm142_vm2, %v15544_v58  ;;  %v15592_v58 = vld [vmem:[%s19228_s1 + $0xa8] sm:$0xff]  }
0x171d   :  { %9325 = vmatprep.mubr.bf16.mxu0 %v15823_v0  ;;  %14091 = vmatpush3.bf16.msra.mxu0 %v15579_v29 }
0x171e   :  { %14092 = vmatprep.subr.bf16.mxu0 %v15584_v54  ;;  %v15602_v54 = vld [vmem:[%s19228_s1 + $0x1c0] sm:$0xff]  }
0x1721   :  { %14093 = vmatpush3.bf16.msra.mxu0 %v15586_v14  ;;  %v15613_v14 = vld [vmem:[%s19228_s1 + $0x260] sm:$0xff]  }
0x1722   :  { %14094 = vmatprep.subr.bf16.mxu0 %v15589_v55 }
0x1724   :  { %12983 = vmatmul.mubr.msk.bf16.gmra.mrb[232].mxu0 %vm142_vm2, %v15545_v25  ;;  %v15603_v25 = vld [vmem:[%s19228_s1 + $0x208] sm:$0xff]  }
0x1725   :  { %9335 = vmatprep.mubr.bf16.mxu0 %v15823_v0  ;;  %14095 = vmatpush3.bf16.msra.mxu0 %v15591_v60 }
0x1726   :  { %14096 = vmatprep.subr.bf16.mxu0 %v15593_v59 }
0x1729   :  { %14097 = vmatpush3.bf16.msra.mxu0 %v15595_v18 }
0x172a   :  { %14126 = vmatprep.subr.bf16.mxu0 %v15597_v45  ;;  %v15604_v45 = vld [vmem:[%s19228_s1 + $0x180] sm:$0xff]  }
0x172c   :  { %12984 = vmatmul.mubr.msk.bf16.gmra.mrb[236].mxu0 %vm142_vm2, %v15546_v31 }
0x172d   :  { %9345 = vmatprep.mubr.bf16.mxu0 %v15823_v0 }
0x1734   :  { %12985 = vmatmul.mubr.msk.bf16.gmra.mrb[240].mxu0 %vm142_vm2, %v15547_v40  ;;  %v15594_v40 = vld [vmem:[%s19228_s1 + $0xf0] sm:$0xff]  }
0x1735   :  { %9355 = vmatprep.mubr.bf16.mxu0 %v15823_v0 }
0x173c   :  { %12986 = vmatmul.mubr.msk.bf16.gmra.mrb[244].mxu0 %vm142_vm2, %v15548_v41  ;;  %v15605_v41 = vld [vmem:[%s19228_s1 + $0x250] sm:$0xff]  }
0x173d   :  { %9365 = vmatprep.mubr.bf16.mxu0 %v15823_v0 }
0x1744   :  { %12987 = vmatmul.mubr.msk.bf16.gmra.mrb[248].mxu0 %vm142_vm2, %v15549_v46 }
0x1745   :  { %9375 = vmatprep.mubr.bf16.mxu0 %v15823_v0 }
0x174c   :  { %12988 = vmatmul.mubr.msk.bf16.gmra.mrb[252].mxu0 %vm142_vm2, %v15550_v15 }
0x17d7   :  { %v18540_v17 = vpop.f32.mrb[216].mxu0 }
0x17d8   :  { %v9150_v10 = vpop.f32.mrb[217].mxu0 }
0x17d9   :  { %v18542_v36 = vpop.f32.mrb[218].mxu0  ;;  %v15615_v10 = vld [vmem:[%s19228_s1 + $0x220] sm:$0xff]  }
0x17da   :  { %v9153_v50 = vpop.f32.mrb[219].mxu0 }
0x17df   :  { %v9297_v2 = vpop.f32.mrb[220].mxu0 }
0x17e0   :  { %v9299_v5 = vpop.f32.mrb[221].mxu0 }
0x17e1   :  { %v9301_v33 = vpop.f32.mrb[222].mxu0 }
0x17e2   :  { %v9386_v48 = vpack.c.bf16 %v9301_v33, %v9297_v2  ;;  %v9303_v1 = vpop.f32.mrb[223].mxu0  ;;  %v15606_v2 = vld [vmem:[%s19228_s1 + $0x1c8] sm:$0xff]  }
0x17e3   :  { %v9387_v27 = vpack.c.bf16 %v9303_v1, %v9299_v5  ;;  %v15617_v5 = vld [vmem:[%s19228_s1 + $0x268] sm:$0xff]  }
0x17e4   :  { %v15608_v33 = vld [vmem:[%s19228_s1 + $0x188] sm:$0xff]  }
0x17e5   :  { %10600 = vmatprep.mubr.bf16.mxu1 %v9387_v27  ;;  %v15610_v27 = vld [vmem:[%s19228_s1 + $0x1d0] sm:$0xff]  }
0x17e6   :  { %10601 = vmatmul.mubr.bf16.vlgmr.msra.gmra.mrb[28].mxu1 %v9386_v48  ;;  %v15619_v48 = vld [vmem:[%s19228_s1 + $0x228] sm:$0xff]  }
0x17e7   :  { %14061 = vmatpush3.bf16.msra.mxu1 %v15576_v6  ;;  %v18553_v34 = vpop.f32.mrb[224].mxu0  ;;  %v15621_v6 = vld [vmem:[%s19228_s1 + $0x270] sm:$0xff]  }
0x17e8   :  { %14062 = vmatprep.subr.bf16.mxu1 %v15578_v19  ;;  %v9309_v30 = vpop.f32.mrb[225].mxu0 }
0x17e9   :  { %v18558_v8 = vpop.f32.mrb[226].mxu0 }
0x17ea   :  { %v9388_v43 = vpack.c.bf16 %v18558_v8, %v18553_v34  ;;  %v9313_v51 = vpop.f32.mrb[227].mxu0  ;;  %v15623_v8 = vld [vmem:[%s19228_s1 + $0x230] sm:$0xff]  }
0x17eb   :  { %14063 = vmatpush3.bf16.msra.mxu1 %v15580_v26  ;;  %v9389_v61 = vpack.c.bf16 %v9313_v51, %v9309_v30  ;;  %v15612_v30 = vld [vmem:[%s19228_s1 + $0x190] sm:$0xff]   ;;  %v15614_v51 = vld [vmem:[%s19228_s1 + $0x1d8] sm:$0xff]  }
0x17ec   :  { %14064 = vmatprep.subr.bf16.mxu1 %v15581_v32 }
0x17ed   :  { %10641 = vmatprep.mubr.bf16.mxu1 %v9389_v61  ;;  %v15616_v61 = vld [vmem:[%s19228_s1 + $0x198] sm:$0xff]  }
0x17ef   :  { %14065 = vmatpush3.bf16.msra.mxu1 %v15582_v37  ;;  %v9317_v20 = vpop.f32.mrb[228].mxu0  ;;  %v15625_v37 = vld [vmem:[%s19228_s1 + $0x278] sm:$0xff]  }
0x17f0   :  { %14066 = vmatprep.subr.bf16.mxu1 %v15583_v23  ;;  %v9319_v63 = vpop.f32.mrb[229].mxu0  ;;  %v15627_v23 = vld [vmem:[%s19228_s1 + $0x238] sm:$0xff]  }
0x17f1   :  { %v9321_v56 = vpop.f32.mrb[230].mxu0 }
0x17f2   :  { %v9390_v11 = vpack.c.bf16 %v9321_v56, %v9317_v20  ;;  %v9323_v13 = vpop.f32.mrb[231].mxu0  ;;  %v15618_v20 = vld [vmem:[%s19228_s1 + $0x1e0] sm:$0xff]  }
0x17f3   :  { %14067 = vmatpush3.bf16.msra.mxu1 %v15585_v44  ;;  %v9391_v47 = vpack.c.bf16 %v9323_v13, %v9319_v63 }
0x17f4   :  { %14068 = vmatprep.subr.bf16.mxu1 %v15587_v22  ;;  %v15629_v22 = vld [vmem:[%s19228_s1 + $0x340] sm:$0xff]  }
0x17f5   :  { %10682 = vmatprep.mubr.bf16.mxu0 %v9391_v47  ;;  %v15631_v47 = vld [vmem:[%s19228_s1 + $0x300] sm:$0xff]  }
0x17f6   :  { %10683 = vmatmul.mubr.bf16.vlgmr.msra.gmra.mrb[0].mxu0 %v9390_v11 }
0x17f7   :  { %14069 = vmatpush3.bf16.msra.mxu1 %v15588_v3  ;;  %14127 = vmatpush3.bf16.msra.mxu0 %v15599_v62  ;;  %v18592_v31 = vpop.f32.mrb[232].mxu0  ;;  %v15620_v3 = vld [vmem:[%s19228_s1 + $0x1a0] sm:$0xff]  }
0x17f8   :  { %14070 = vmatprep.subr.bf16.mxu1 %v15590_v35  ;;  %14128 = vmatprep.subr.bf16.mxu0 %v15601_v21  ;;  %v9329_v46 = vpop.f32.mrb[233].mxu0  ;;  %v15622_v35 = vld [vmem:[%s19228_s1 + $0x1e8] sm:$0xff]  }
0x17f9   :  { %v18600_v15 = vpop.f32.mrb[234].mxu0  ;;  %v15633_v21 = vld [vmem:[%s19228_s1 + $0x348] sm:$0xff]  }
0x17fa   :  { %v9392_v52 = vpack.c.bf16 %v18600_v15, %v18592_v31  ;;  %v9333_v53 = vpop.f32.mrb[235].mxu0  ;;  %v15653_v31 = vld [vmem:[%s19228_s1 + $0x370] sm:$0xff]  }
0x17fb   :  { %14071 = vmatpush3.bf16.msra.mxu1 %v15592_v58  ;;  %14129 = vmatpush3.bf16.msra.mxu0 %v15603_v25  ;;  %v9393_v7 = vpack.c.bf16 %v9333_v53, %v9329_v46  ;;  %v15624_v58 = vld [vmem:[%s19228_s1 + $0x1a8] sm:$0xff]   ;;  %v15637_v46 = vld [vmem:[%s19228_s1 + $0x350] sm:$0xff]  }
0x17fc   :  { %14072 = vmatprep.subr.bf16.mxu1 %v15594_v40  ;;  %14130 = vmatprep.subr.bf16.mxu0 %v15605_v41  ;;  %v15635_v25 = vld [vmem:[%s19228_s1 + $0x308] sm:$0xff]   ;;  %v15626_v41 = vld [vmem:[%s19228_s1 + $0x1f0] sm:$0xff]  }
0x17fd   :  { %v15644_v15 = vld [vmem:[%s19228_s1 + $0x290] sm:$0xff]  }
0x17ff   :  { %14073 = vmatpush3.bf16.msra.mxu1 %v15596_v4  ;;  %14131 = vmatpush3.bf16.msra.mxu0 %v15607_v39  ;;  %v18622_v29 = vpop.f32.mrb[236].mxu0 }
0x1800   :  { %14074 = vmatprep.subr.bf16.mxu1 %v15598_v49  ;;  %14132 = vmatprep.subr.bf16.mxu0 %v15609_v9  ;;  %v9339_v55 = vpop.f32.mrb[237].mxu0  ;;  %v15628_v49 = vld [vmem:[%s19228_s1 + $0x1b0] sm:$0xff]  }
0x1801   :  { %v9341_v60 = vpop.f32.mrb[238].mxu0  ;;  %v15639_v9 = vld [vmem:[%s19228_s1 + $0x310] sm:$0xff]  }
0x1802   :  { %v9394_v59 = vpack.c.bf16 %v9341_v60, %v18622_v29  ;;  %v9343_v18 = vpop.f32.mrb[239].mxu0  ;;  %v15641_v29 = vld [vmem:[%s19228_s1 + $0x358] sm:$0xff]   ;;  %v15634_v60 = vld [vmem:[%s19228_s1 + $0x2c0] sm:$0xff]  }
0x1803   :  { %14075 = vmatpush3.bf16.msra.mxu1 %v15600_v57  ;;  %14133 = vmatpush3.bf16.msra.mxu0 %v15611_v28  ;;  %v9395_v50 = vpack.c.bf16 %v9343_v18, %v9339_v55  ;;  %v15630_v28 = vld [vmem:[%s19228_s1 + $0x1f8] sm:$0xff]  }
0x1804   :  { %14104 = vmatprep.subr.bf16.mxu1 %v15602_v54  ;;  %14134 = vmatprep.subr.bf16.mxu0 %v15613_v14  ;;  %v15632_v54 = vld [vmem:[%s19228_s1 + $0x1b8] sm:$0xff]  }
0x1805   :  { %10764 = vmatprep.mubr.bf16.mxu0 %v9395_v50  ;;  %v15643_v14 = vld [vmem:[%s19228_s1 + $0x318] sm:$0xff]  }
0x1806   :  { %10642 = vmatmul.mubr.bf16.vlgmr.msra.gmra.mrb[32].mxu1 %v9388_v43 }
0x1807   :  { %14105 = vmatpush3.bf16.msra.mxu1 %v15604_v45  ;;  %14135 = vmatpush3.bf16.msra.mxu0 %v15615_v10  ;;  %v18652_v1 = vpop.f32.mrb[240].mxu0 }
0x1808   :  { %14106 = vmatprep.subr.bf16.mxu1 %v15606_v2  ;;  %14136 = vmatprep.subr.bf16.mxu0 %v15617_v5  ;;  %v18660_v19 = vpop.f32.mrb[241].mxu0  ;;  %v15636_v2 = vld [vmem:[%s19228_s1 + $0x280] sm:$0xff]  }
0x1809   :  { %10723 = vmatprep.mubr.bf16.mxu1 %v9393_v7  ;;  %v18662_v26 = vpop.f32.mrb[242].mxu0  ;;  %v15647_v5 = vld [vmem:[%s19228_s1 + $0x320] sm:$0xff]  }
0x180a   :  { %v9396_v34 = vpack.c.bf16 %v18662_v26, %v18652_v1  ;;  %v18666_v32 = vpop.f32.mrb[243].mxu0  ;;  %v15685_v1 = vld [vmem:[%s19228_s1 + $0x470] sm:$0xff]  }
0x180b   :  { %14107 = vmatpush3.bf16.msra.mxu1 %v15608_v33  ;;  %14137 = vmatpush3.bf16.msra.mxu0 %v15619_v48  ;;  %v9397_v43 = vpack.c.bf16 %v18666_v32, %v18660_v19  ;;  %v15638_v48 = vld [vmem:[%s19228_s1 + $0x2c8] sm:$0xff]   ;;  %v15657_v19 = vld [vmem:[%s19228_s1 + $0x378] sm:$0xff]   ;;  %v15676_v26 = vld [vmem:[%s19228_s1 + $0x390] sm:$0xff]  }
0x180c   :  { %14108 = vmatprep.subr.bf16.mxu1 %v15610_v27  ;;  %14138 = vmatprep.subr.bf16.mxu0 %v15621_v6  ;;  %v15649_v27 = vld [vmem:[%s19228_s1 + $0x368] sm:$0xff]   ;;  %v15648_v32 = vld [vmem:[%s19228_s1 + $0x298] sm:$0xff]  }
0x180d   :  { %v15640_v6 = vld [vmem:[%s19228_s1 + $0x288] sm:$0xff]  }
0x180f   :  { %14109 = vmatpush3.bf16.msra.mxu1 %v15612_v30  ;;  %14139 = vmatpush3.bf16.msra.mxu0 %v15623_v8  ;;  %v18688_v44 = vpop.f32.mrb[244].mxu0  ;;  %v15651_v30 = vld [vmem:[%s19228_s1 + $0x328] sm:$0xff]   ;;  %v15642_v8 = vld [vmem:[%s19228_s1 + $0x2d0] sm:$0xff]  }
0x1810   :  { %14110 = vmatprep.subr.bf16.mxu1 %v15614_v51  ;;  %14140 = vmatprep.subr.bf16.mxu0 %v15625_v37  ;;  %v9359_v63 = vpop.f32.mrb[245].mxu0  ;;  %v15646_v51 = vld [vmem:[%s19228_s1 + $0x2d8] sm:$0xff]   ;;  %v15650_v37 = vld [vmem:[%s19228_s1 + $0x2e0] sm:$0xff]  }
0x1811   :  { %v18696_v56 = vpop.f32.mrb[246].mxu0 }
0x1812   :  { %v9398_v11 = vpack.c.bf16 %v18696_v56, %v18688_v44  ;;  %v9363_v13 = vpop.f32.mrb[247].mxu0  ;;  %v15669_v44 = vld [vmem:[%s19228_s1 + $0x450] sm:$0xff]  }
0x1813   :  { %14111 = vmatpush3.bf16.msra.mxu1 %v15616_v61  ;;  %14141 = vmatpush3.bf16.msra.mxu0 %v15627_v23  ;;  %v9399_v62 = vpack.c.bf16 %v9363_v13, %v9359_v63  ;;  %v15661_v61 = vld [vmem:[%s19228_s1 + $0x440] sm:$0xff]   ;;  %v15665_v63 = vld [vmem:[%s19228_s1 + $0x448] sm:$0xff]   ;;  %v15660_v56 = vld [vmem:[%s19228_s1 + $0x2b0] sm:$0xff]  }
0x1814   :  { %14112 = vmatprep.subr.bf16.mxu1 %v15618_v20  ;;  %14170 = vmatprep.subr.bf16.mxu0 %v15629_v22  ;;  %v15652_v23 = vld [vmem:[%s19228_s1 + $0x2a0] sm:$0xff]   ;;  %v15654_v22 = vld [vmem:[%s19228_s1 + $0x2e8] sm:$0xff]  }
0x1815   :  { %v15663_v20 = vld [vmem:[%s19228_s1 + $0x400] sm:$0xff]   ;;  %v15656_v13 = vld [vmem:[%s19228_s1 + $0x2a8] sm:$0xff]  }
0x1816   :  { %10765 = vmatmul.mubr.bf16.vlgmr.msra.gmra.mrb[4].mxu0 %v9394_v59  ;;  %v15645_v59 = vld [vmem:[%s19228_s1 + $0x360] sm:$0xff]  }
0x1817   :  { %14113 = vmatpush3.bf16.msra.mxu1 %v15620_v3  ;;  %14171 = vmatpush3.bf16.msra.mxu0 %v15631_v47  ;;  %v18718_v40 = vpop.f32.mrb[248].mxu0  ;;  %v15667_v3 = vld [vmem:[%s19228_s1 + $0x408] sm:$0xff]   ;;  %v15658_v47 = vld [vmem:[%s19228_s1 + $0x2f0] sm:$0xff]  }
0x1818   :  { %14114 = vmatprep.subr.bf16.mxu1 %v15622_v35  ;;  %14172 = vmatprep.subr.bf16.mxu0 %v15633_v21  ;;  %v18726_v53 = vpop.f32.mrb[249].mxu0  ;;  %v15673_v35 = vld [vmem:[%s19228_s1 + $0x458] sm:$0xff]  }
0x1819   :  { %10846 = vmatprep.mubr.bf16.mxu0 %v9399_v62  ;;  %v18728_v4 = vpop.f32.mrb[250].mxu0  ;;  %v15662_v62 = vld [vmem:[%s19228_s1 + $0x2f8] sm:$0xff]  }
0x181a   :  { %v9400_v39 = vpack.c.bf16 %v18728_v4, %v18718_v40  ;;  %v18732_v7 = vpop.f32.mrb[251].mxu0  ;;  %v15664_v21 = vld [vmem:[%s19228_s1 + $0x2b8] sm:$0xff]  }
0x181b   :  { %14115 = vmatpush3.bf16.msra.mxu1 %v15624_v58  ;;  %14173 = vmatpush3.bf16.msra.mxu0 %v15635_v25  ;;  %v9401_v57 = vpack.c.bf16 %v18732_v7, %v18726_v53  ;;  %v15675_v58 = vld [vmem:[%s19228_s1 + $0x418] sm:$0xff]   ;;  %v15666_v25 = vld [vmem:[%s19228_s1 + $0x3c0] sm:$0xff]  }
0x181c   :  { %14116 = vmatprep.subr.bf16.mxu1 %v15626_v41  ;;  %14174 = vmatprep.subr.bf16.mxu0 %v15637_v46  ;;  %v15677_v41 = vld [vmem:[%s19228_s1 + $0x460] sm:$0xff]   ;;  %v15689_v53 = vld [vmem:[%s19228_s1 + $0x478] sm:$0xff]  }
0x181d   :  { %v15668_v46 = vld [vmem:[%s19228_s1 + $0x380] sm:$0xff]   ;;  %v15680_v7 = vld [vmem:[%s19228_s1 + $0x398] sm:$0xff]  }
0x181f   :  { %14117 = vmatpush3.bf16.msra.mxu1 %v15628_v49  ;;  %14175 = vmatpush3.bf16.msra.mxu0 %v15639_v9  ;;  %v18754_v55 = vpop.f32.mrb[252].mxu0  ;;  %v15679_v49 = vld [vmem:[%s19228_s1 + $0x420] sm:$0xff]   ;;  %v15670_v9 = vld [vmem:[%s19228_s1 + $0x3c8] sm:$0xff]  }
0x1820   :  { %14118 = vmatprep.subr.bf16.mxu1 %v15630_v28  ;;  %14176 = vmatprep.subr.bf16.mxu0 %v15641_v29  ;;  %v9379_v18 = vpop.f32.mrb[253].mxu0  ;;  %v15681_v28 = vld [vmem:[%s19228_s1 + $0x468] sm:$0xff]  }
0x1821   :  { %v18762_v45 = vpop.f32.mrb[254].mxu0  ;;  %v15672_v29 = vld [vmem:[%s19228_s1 + $0x388] sm:$0xff]  }
0x1822   :  { %v9402_v10 = vpack.c.bf16 %v18762_v45, %v18754_v55  ;;  %v9383_v50 = vpop.f32.mrb[255].mxu0  ;;  %v15693_v55 = vld [vmem:[%s19228_s1 + $0x3f8] sm:$0xff]  }
0x1823   :  { %14119 = vmatpush3.bf16.msra.mxu1 %v15632_v54  ;;  %14177 = vmatpush3.bf16.msra.mxu0 %v15643_v14  ;;  %v9403_v33 = vpack.c.bf16 %v9383_v50, %v9379_v18  ;;  %v15683_v54 = vld [vmem:[%s19228_s1 + $0x428] sm:$0xff]   ;;  %v15674_v14 = vld [vmem:[%s19228_s1 + $0x3d0] sm:$0xff]   ;;  %v15684_v18 = vld [vmem:[%s19228_s1 + $0x3a0] sm:$0xff]  }
0x1824   :  { %14148 = vmatprep.subr.bf16.mxu1 %v15634_v60  ;;  %14178 = vmatprep.subr.bf16.mxu0 %v15645_v59  ;;  %v15678_v60 = vld [vmem:[%s19228_s1 + $0x3d8] sm:$0xff]   ;;  %v15682_v59 = vld [vmem:[%s19228_s1 + $0x3e0] sm:$0xff]   ;;  %v15686_v50 = vld [vmem:[%s19228_s1 + $0x3e8] sm:$0xff]  }
0x1825   :  { %v15694_v45 = vld [vmem:[%s19228_s1 + $0x3b8] sm:$0xff]  }
0x1826   :  { %10724 = vmatmul.mubr.bf16.vlgmr.msra.gmra.mrb[36].mxu1 %v9392_v52  ;;  %v15655_v52 = vld [vmem:[%s19228_s1 + $0x330] sm:$0xff]  }
0x1827   :  { %14149 = vmatpush3.bf16.msra.mxu1 %v15636_v2  ;;  %14179 = vmatpush3.bf16.msra.mxu0 %v15647_v5  ;;  %v15688_v2 = vld [vmem:[%s19228_s1 + $0x3a8] sm:$0xff]   ;;  %v15690_v5 = vld [vmem:[%s19228_s1 + $0x3f0] sm:$0xff]  }
0x1828   :  { %14150 = vmatprep.subr.bf16.mxu1 %v15638_v48  ;;  %14180 = vmatprep.subr.bf16.mxu0 %v15649_v27 }
0x1829   :  { %10805 = vmatprep.mubr.bf16.mxu1 %v9397_v43  ;;  %v15659_v43 = vld [vmem:[%s19228_s1 + $0x338] sm:$0xff]  }
0x182b   :  { %14151 = vmatpush3.bf16.msra.mxu1 %v15640_v6  ;;  %14181 = vmatpush3.bf16.msra.mxu0 %v15651_v30 }
0x182c   :  { %14152 = vmatprep.subr.bf16.mxu1 %v15642_v8  ;;  %14182 = vmatprep.subr.bf16.mxu0 %v15653_v31 }
0x182f   :  { %14153 = vmatpush3.bf16.msra.mxu1 %v15644_v15  ;;  %14183 = vmatpush3.bf16.msra.mxu0 %v15655_v52 }
0x1830   :  { %14154 = vmatprep.subr.bf16.mxu1 %v15646_v51  ;;  %14184 = vmatprep.subr.bf16.mxu0 %v15657_v19 }
0x1833   :  { %14155 = vmatpush3.bf16.msra.mxu1 %v15648_v32  ;;  %14185 = vmatpush3.bf16.msra.mxu0 %v15659_v43 }
0x1834   :  { %14156 = vmatprep.subr.bf16.mxu1 %v15650_v37  ;;  %14214 = vmatprep.subr.bf16.mxu0 %v15661_v61  ;;  %v9697_v37 = vpop.permute.xlu1 %9696 }
0x1836   :  { %10847 = vmatmul.mubr.bf16.vlgmr.msra.gmra.mrb[8].mxu0 %v9398_v11  ;;  %v15671_v11 = vld [vmem:[%s19228_s1 + $0x410] sm:$0xff]  }
0x1837   :  { %14157 = vmatpush3.bf16.msra.mxu1 %v15652_v23  ;;  %14215 = vmatpush3.bf16.msra.mxu0 %v15663_v20  ;;  %v9702_v23 = vpop.permute.xlu0 %9701 }
0x1838   :  { %14158 = vmatprep.subr.bf16.mxu1 %v15654_v22  ;;  %14216 = vmatprep.subr.bf16.mxu0 %v15665_v63 }
0x1839   :  { %10928 = vmatprep.mubr.bf16.mxu0 %v9403_v33  ;;  %v15692_v33 = vld [vmem:[%s19228_s1 + $0x3b0] sm:$0xff]  }
0x183b   :  { %14159 = vmatpush3.bf16.msra.mxu1 %v15656_v13  ;;  %14217 = vmatpush3.bf16.msra.mxu0 %v15667_v3 }
0x183c   :  { %14160 = vmatprep.subr.bf16.mxu1 %v15658_v47  ;;  %14218 = vmatprep.subr.bf16.mxu0 %v15669_v44 }
0x183f   :  { %14161 = vmatpush3.bf16.msra.mxu1 %v15660_v56  ;;  %14219 = vmatpush3.bf16.msra.mxu0 %v15671_v11 }
0x1840   :  { %14162 = vmatprep.subr.bf16.mxu1 %v15662_v62  ;;  %14220 = vmatprep.subr.bf16.mxu0 %v15673_v35 }
0x1843   :  { %14163 = vmatpush3.bf16.msra.mxu1 %v15664_v21  ;;  %14221 = vmatpush3.bf16.msra.mxu0 %v15675_v58 }
0x1844   :  { %14192 = vmatprep.subr.bf16.mxu1 %v15666_v25  ;;  %14222 = vmatprep.subr.bf16.mxu0 %v15677_v41 }
0x1846   :  { %10806 = vmatmul.mubr.bf16.vlgmr.msra.gmra.mrb[40].mxu1 %v9396_v34  ;;  %v15687_v34 = vld [vmem:[%s19228_s1 + $0x430] sm:$0xff]  }
0x1847   :  { %14193 = vmatpush3.bf16.msra.mxu1 %v15668_v46  ;;  %14223 = vmatpush3.bf16.msra.mxu0 %v15679_v49 }
0x1848   :  { %14194 = vmatprep.subr.bf16.mxu1 %v15670_v9  ;;  %14224 = vmatprep.subr.bf16.mxu0 %v15681_v28 }
0x1849   :  { %10887 = vmatprep.mubr.bf16.mxu1 %v9401_v57  ;;  %v15691_v57 = vld [vmem:[%s19228_s1 + $0x438] sm:$0xff]  }
0x184b   :  { %14195 = vmatpush3.bf16.msra.mxu1 %v15672_v29  ;;  %14225 = vmatpush3.bf16.msra.mxu0 %v15683_v54 }
0x184c   :  { %14196 = vmatprep.subr.bf16.mxu1 %v15674_v14  ;;  %14226 = vmatprep.subr.bf16.mxu0 %v15685_v1 }
0x184f   :  { %14197 = vmatpush3.bf16.msra.mxu1 %v15676_v26  ;;  %14227 = vmatpush3.bf16.msra.mxu0 %v15687_v34 }
0x1850   :  { %14198 = vmatprep.subr.bf16.mxu1 %v15678_v60  ;;  %14228 = vmatprep.subr.bf16.mxu0 %v15689_v53 }
0x1853   :  { %14199 = vmatpush3.bf16.msra.mxu1 %v15680_v7  ;;  %14229 = vmatpush3.bf16.msra.mxu0 %v15691_v57 }
0x1854   :  { %14200 = vmatprep.subr.bf16.mxu1 %v15682_v59  ;;  %14602 = vmatprep.subr.bf16.mxu0 %v15825_v12 }
0x1856   :  { %10929 = vmatmul.mubr.bf16.vlgmr.msra.gmra.mrb[12].mxu0 %v9402_v10 }
0x1857   :  { %14201 = vmatpush3.bf16.msra.mxu1 %v15684_v18  ;;  %14604 = vmatprep.mubr.msk.bf16.mxu0 %vm15826_vm3, %v15825_v12 }
0x1858   :  { %14202 = vmatprep.subr.bf16.mxu1 %v15686_v50 }
0x185b   :  { %14203 = vmatpush3.bf16.msra.mxu1 %v15688_v2 }
0x185c   :  { %14204 = vmatprep.subr.bf16.mxu1 %v15690_v5 }
0x185f   :  { %14205 = vmatpush3.bf16.msra.mxu1 %v15692_v33 }
0x1860   :  { %14206 = vmatprep.subr.bf16.mxu1 %v15693_v55 }
0x1863   :  { %14207 = vmatpush3.bf16.msra.mxu1 %v15694_v45 }
0x1864   :  { %14596 = vmatprep.subr.bf16.mxu1 %v15825_v12 }
0x1866   :  { %10888 = vmatmul.mubr.bf16.vlgmr.msra.gmra.mrb[44].mxu1 %v9400_v39 }
0x1867   :  { %14598 = vmatprep.mubr.msk.bf16.mxu1 %vm15826_vm3, %v15825_v12 }
0x18b9   :  { %v14054_v10 = vpop.f32.mrb[28].mxu1 }
0x18ba   :  { %v14055_v48 = vpop.f32.mrb[29].mxu1 }
0x18bb   :  { %v14056_v27 = vadd.f32 %v14055_v48, %v14054_v10  ;;  %v14057_v6 = vpop.f32.mrb[30].mxu1 }
0x18bc   :  { %v14058_v30 = vpop.f32.mrb[31].mxu1 }
0x18bd   :  { %v14059_v8 = vadd.f32 %v14058_v30, %v14057_v6  ;;  %v10603_v40 = vadd.f32 %v14056_v27, %v9697_v37 }
0x18bf   :  { %v10606_v22 = vadd.f32 %v14059_v8, %v9702_v23 }
0x18c9   :  { %v14098_v31 = vpop.f32.mrb[0].mxu0 }
0x18ca   :  { %v14099_v15 = vpop.f32.mrb[1].mxu0 }
0x18cb   :  { %v14100_v52 = vadd.f32 %v14099_v15, %v14098_v31  ;;  %v14101_v51 = vpop.f32.mrb[2].mxu0 }
0x18cc   :  { %v14102_v19 = vpop.f32.mrb[3].mxu0 }
0x18cd   :  { %v14103_v32 = vadd.f32 %v14102_v19, %v14101_v51 }
0x18d9   :  { %v14076_v43 = vpop.f32.mrb[32].mxu1 }
0x18da   :  { %v14077_v61 = vpop.f32.mrb[33].mxu1 }
0x18db   :  { %v14078_v4 = vadd.f32 %v14077_v61, %v14076_v43  ;;  %v14079_v39 = vpop.f32.mrb[34].mxu1 }
0x18dc   :  { %v14080_v20 = vpop.f32.mrb[35].mxu1 }
0x18dd   :  { %v10644_v63 = vadd.f32 %v14078_v4, %v10603_v40  ;;  %v14081_v13 = vadd.f32 %v14080_v20, %v14079_v39 }
0x18df   :  { %v10647_v3 = vadd.f32 %v14081_v13, %v10606_v22  ;;  %v10685_v47 = vadd.f32 %v14100_v52, %v10644_v63  ;;  %v10940_v63 = vld [vmem:[%s19234_s7] sm:$0xf]  ;;  %v10945_v13 = vpop.permute.xlu1 %10944 }
0x18e1   :  { %v10688_v44 = vadd.f32 %v14103_v32, %v10647_v3 }
0x18e9   :  { %v14142_v56 = vpop.f32.mrb[4].mxu0 }
0x18ea   :  { %v14143_v11 = vpop.f32.mrb[5].mxu0 }
0x18eb   :  { %v14144_v62 = vadd.f32 %v14143_v11, %v14142_v56  ;;  %v14145_v35 = vpop.f32.mrb[6].mxu0 }
0x18ec   :  { %v14146_v21 = vpop.f32.mrb[7].mxu0 }
0x18ed   :  { %v14147_v58 = vadd.f32 %v14146_v21, %v14145_v35 }
0x18f9   :  { %v14120_v25 = vpop.f32.mrb[36].mxu1 }
0x18fa   :  { %v14121_v41 = vpop.f32.mrb[37].mxu1 }
0x18fb   :  { %v14122_v46 = vadd.f32 %v14121_v41, %v14120_v25  ;;  %v14123_v49 = vpop.f32.mrb[38].mxu1  ;;  %v15696_v25 = vld [vmem:[%s19236_s9 + $0x8] sm:$0xff]   ;;  %v15697_v41 = vld [vmem:[%s19236_s9 + $0x10] sm:$0xff]  }
0x18fc   :  { %v14124_v9 = vpop.f32.mrb[39].mxu1 }
0x18fd   :  { %v10726_v28 = vadd.f32 %v14122_v46, %v10685_v47  ;;  %v14125_v29 = vadd.f32 %v14124_v9, %v14123_v49  ;;  %v15698_v46 = vld [vmem:[%s19236_s9 + $0x18] sm:$0xff]   ;;  %v15699_v49 = vld [vmem:[%s19236_s9 + $0x20] sm:$0xff]   ;;  %v15700_v9 = vld [vmem:[%s19236_s9 + $0x28] sm:$0xff]  }
0x18ff   :  { %v10729_v54 = vadd.f32 %v14125_v29, %v10688_v44  ;;  %v10767_v14 = vadd.f32 %v14144_v62, %v10726_v28  ;;  %v15701_v28 = vld [vmem:[%s19236_s9 + $0x30] sm:$0xff]   ;;  %v15702_v29 = vld [vmem:[%s19236_s9 + $0x38] sm:$0xff]  }
0x1901   :  { %v10770_v1 = vadd.f32 %v14147_v58, %v10729_v54  ;;  %v15695_v58 = vld [vmem:[%s19236_s9] sm:$0xff]  }
0x1902   :  { %v15703_v54 = vld [vmem:[%s19236_s9 + $0x40] sm:$0xff]  }
0x1909   :  { %v14186_v26 = vpop.f32.mrb[8].mxu0 }
0x190a   :  { %v14187_v34 = vpop.f32.mrb[9].mxu0 }
0x190b   :  { %v14188_v60 = vadd.f32 %v14187_v34, %v14186_v26  ;;  %v14189_v53 = vpop.f32.mrb[10].mxu0  ;;  %v15706_v26 = vld [vmem:[#allocation2 + $0x48] sm:$0xff]  }
0x190c   :  { %v14190_v7 = vpop.f32.mrb[11].mxu0  ;;  %v15707_v34 = vld [vmem:[#allocation2 + $0x8] sm:$0xff]  }
0x190d   :  { %v14191_v57 = vadd.f32 %v14190_v7, %v14189_v53  ;;  %v15709_v53 = vld [vmem:[#allocation2 + $0x10] sm:$0xff]   ;;  %v15710_v7 = vld [vmem:[#allocation2 + $0x58] sm:$0xff]  }
0x1919   :  { %v14164_v59 = vpop.f32.mrb[40].mxu1 }
0x191a   :  { %v14165_v18 = vpop.f32.mrb[41].mxu1 }
0x191b   :  { %v14166_v50 = vadd.f32 %v14165_v18, %v14164_v59  ;;  %v14167_v2 = vpop.f32.mrb[42].mxu1  ;;  %v15712_v59 = vld [vmem:[#allocation2 + $0x60] sm:$0xff]  }
0x191c   :  { %v14168_v5 = vpop.f32.mrb[43].mxu1 }
0x191d   :  { %v10808_v33 = vadd.f32 %v14166_v50, %v10767_v14  ;;  %v14169_v55 = vadd.f32 %v14168_v5, %v14167_v2  ;;  %v15704_v14 = vld [vmem:[#allocation2 + $0x40] sm:$0xff]   ;;  %v15714_v2 = vld [vmem:[#allocation2 + $0x68] sm:$0xff]  }
0x191e   :  { %v15713_v50 = vld [vmem:[#allocation2 + $0x20] sm:$0xff]  }
0x191f   :  { %v10811_v45 = vadd.f32 %v14169_v55, %v10770_v1  ;;  %v10849_v10 = vadd.f32 %v14188_v60, %v10808_v33  ;;  %v15705_v1 = vld [vmem:[#allocation2] sm:$0xff]   ;;  %v15708_v60 = vld [vmem:[#allocation2 + $0x50] sm:$0xff]   ;;  %v15715_v55 = vld [vmem:[#allocation2 + $0x28] sm:$0xff]  }
0x1921   :  { %v10852_v48 = vadd.f32 %v14191_v57, %v10811_v45  ;;  %v15711_v57 = vld [vmem:[#allocation2 + $0x18] sm:$0xff]  }
0x1929   :  { %v14230_v27 = vpop.f32.mrb[12].mxu0 }
0x192a   :  { %v14231_v6 = vpop.f32.mrb[13].mxu0 }
0x192b   :  { %v14232_v30 = vadd.f32 %v14231_v6, %v14230_v27  ;;  %v14233_v8 = vpop.f32.mrb[14].mxu0  ;;  %v15717_v27 = vld [vmem:[#allocation2 + $0x30] sm:$0xff]   ;;  %v15718_v6 = vld [vmem:[#allocation2 + $0x78] sm:$0xff]  }
0x192c   :  { %v14234_v31 = vpop.f32.mrb[15].mxu0 }
0x192d   :  { %v14235_v15 = vadd.f32 %v14234_v31, %v14233_v8 }
0x1939   :  { %v14208_v52 = vpop.f32.mrb[44].mxu1 }
0x193a   :  { %v14209_v51 = vpop.f32.mrb[45].mxu1 }
0x193b   :  { %v14210_v19 = vadd.f32 %v14209_v51, %v14208_v52  ;;  %v14211_v32 = vpop.f32.mrb[46].mxu1 }
0x193c   :  { %v14212_v43 = vpop.f32.mrb[47].mxu1 }
0x193d   :  { %v10890_v37 = vadd.f32 %v14210_v19, %v10849_v10  ;;  %v14213_v61 = vadd.f32 %v14212_v43, %v14211_v32  ;;  %v15720_v19 = vld [vmem:[#allocation2 + $0xc0] sm:$0xff]  }
0x193f   :  { %v10931_v40 = vadd.f32 %v14232_v30, %v10890_v37  ;;  %v10893_v4 = vadd.f32 %v14213_v61, %v10852_v48  ;;  %v15716_v48 = vld [vmem:[#allocation2 + $0x70] sm:$0xff]  }
0x1941   :  { %v10934_v39 = vadd.f32 %v14235_v15, %v10893_v4  ;;  %v10937_v23 = vmax.f32 %v10931_v40, 0.0  ;;  %v15719_v15 = vld [vmem:[#allocation2 + $0x38] sm:$0xff]  }
0x1943   :  { %v10938_v20 = vmax.f32 %v10934_v39, 0.0 }
0x1945   :  { %v18955_v22 = vpack.c.bf16 %v10938_v20, %v10937_v23 }
0x1947   :  { %14597 = vmatpush3.bf16.msra.mxu1 %v18955_v22 }
0x1948   :  { %14248 = vmatprep.subr.bf16.mxu1 %v15704_v14 }
0x194a   :  { %14599 = vmatmul.mubr.msk.bf16.vlgmr.msra.gmra.mrb[48].mxu1 %vm1864_vm4, %v10940_v63 }
0x194b   :  { %14249 = vmatpush3.bf16.msra.mxu1 %v15705_v1  ;;  %v15742_v1 = vld [vmem:[#allocation2 + $0x118] sm:$0xff]  }
0x194c   :  { %14250 = vmatprep.subr.bf16.mxu1 %v15706_v26 }
0x194f   :  { %14251 = vmatpush3.bf16.msra.mxu1 %v15707_v34 }
0x1950   :  { %14252 = vmatprep.subr.bf16.mxu1 %v15708_v60 }
0x1953   :  { %14253 = vmatpush3.bf16.msra.mxu1 %v15709_v53 }
0x1954   :  { %14254 = vmatprep.subr.bf16.mxu1 %v15710_v7 }
0x1957   :  { %14255 = vmatpush3.bf16.msra.mxu1 %v15711_v57  ;;  %v11299_v57 = vld [vmem:[%s19237_s10] sm:$0xff] }
0x1958   :  { %14256 = vmatprep.subr.bf16.mxu1 %v15712_v59 }
0x195b   :  { %14257 = vmatpush3.bf16.msra.mxu1 %v15713_v50 }
0x195c   :  { %14258 = vmatprep.subr.bf16.mxu1 %v15714_v2 }
0x195f   :  { %14259 = vmatpush3.bf16.msra.mxu1 %v15715_v55 }
0x1960   :  { %14260 = vmatprep.subr.bf16.mxu1 %v15716_v48 }
0x1963   :  { %14261 = vmatpush3.bf16.msra.mxu1 %v15717_v27  ;;  %v15721_v27 = vld [vmem:[#allocation2 + $0x80] sm:$0xff]  }
0x1964   :  { %14262 = vmatprep.subr.bf16.mxu1 %v15718_v6 }
0x1967   :  { %14263 = vmatpush3.bf16.msra.mxu1 %v15719_v15  ;;  %v15724_v15 = vld [vmem:[#allocation2 + $0xd0] sm:$0xff]  }
0x1968   :  { %14270 = vmatprep.subr.bf16.mxu1 %v15720_v19  ;;  %v15727_v19 = vld [vmem:[#allocation2 + $0x98] sm:$0xff]  }
0x1a1d   :  { %v10984_v3 = vpop.f32.mrb[48].mxu1 }
0x1a1e   :  { %v10985_v47 = vadd.f32 %v10984_v3, %v10945_v13  ;;  %v14600_v44 = vpop.f32.mrb[49].mxu1 }
0x1a1f   :  { %v10987_v56 = vpop.f32.mrb[50].mxu1 }
0x1a20   :  { %v10990_v11 = vmax.f32 %v10985_v47, 0.0  ;;  %v14601_v62 = vpop.f32.mrb[51].mxu1 }
0x1a22   :  { %v11009_v35 = vpack.c.bf16 %v10990_v11, %v10990_v11  ;;  %v15732_v11 = vld [vmem:[#allocation2 + $0x100] sm:$0xff]  }
0x1a24   :  { %v11083_v21 = vsel %vm2001_vm5, %v11009_v35, 0 }
0x1a25   :  { %14603 = vmatpush3.bf16.msra.mxu0 %v11083_v21 }
0x1a26   :  { %14640 = vmatprep.subr.bf16.mxu0 %v15825_v12 }
0x1a28   :  { %14605 = vmatmul.mubr.msk.bf16.vlgmr.msra.gmra.mrb[16].mxu0 %vm1973_vm6, %v15695_v58 }
0x1a29   :  { %14608 = vmatprep.mubr.msk.bf16.mxu0 %vm15826_vm3, %v15825_v12  ;;  %14641 = vmatpush3.bf16.msra.mxu0 %v15732_v11  ;;  %v15743_v11 = vld [vmem:[%s19230_s3 + $0x10] ss:$8 sps:$4 sm:$0xff]  }
0x1a2a   :  { %14642 = vmatprep.subr.bf16.mxu0 %v15825_v12 }
0x1a30   :  { %14609 = vmatmul.mubr.msk.bf16.gmra.mrb[20].mxu0 %vm1973_vm6, %v15696_v25 }
0x1a31   :  { %14612 = vmatprep.mubr.msk.bf16.mxu0 %vm15826_vm3, %v15825_v12 }
0x1a38   :  { %14613 = vmatmul.mubr.msk.bf16.gmra.mrb[24].mxu0 %vm1973_vm6, %v15697_v41  ;;  %v15735_v41 = vld [vmem:[#allocation2 + $0x108] sm:$0xff]  }
0x1a39   :  { %14616 = vmatprep.mubr.msk.bf16.mxu0 %vm15826_vm3, %v15825_v12  ;;  %14643 = vmatpush3.bf16.msra.mxu0 %v15735_v41 }
0x1a3a   :  { %14644 = vmatprep.subr.bf16.mxu0 %v15825_v12 }
0x1a40   :  { %14617 = vmatmul.mubr.msk.bf16.gmra.mrb[28].mxu0 %vm1973_vm6, %v15698_v46  ;;  %v11300_v46 = vld [vmem:[%s19237_s10 + $0x8] sm:$0xff] }
0x1a41   :  { %14620 = vmatprep.mubr.msk.bf16.mxu0 %vm15826_vm3, %v15825_v12 }
0x1a48   :  { %14621 = vmatmul.mubr.msk.bf16.gmra.mrb[32].mxu0 %vm1973_vm6, %v15699_v49  ;;  %v15738_v49 = vld [vmem:[#allocation2 + $0x110] sm:$0xff]  }
0x1a49   :  { %14624 = vmatprep.mubr.msk.bf16.mxu0 %vm15826_vm3, %v15825_v12  ;;  %14645 = vmatpush3.bf16.msra.mxu0 %v15738_v49 }
0x1a4a   :  { %14646 = vmatprep.subr.bf16.mxu0 %v15825_v12 }
0x1a4d   :  { %14647 = vmatpush3.bf16.msra.mxu0 %v15742_v1 }
0x1a4e   :  { %14652 = vmatprep.subr.bf16.mxu0 %v15825_v12 }
0x1a50   :  { %14625 = vmatmul.mubr.msk.bf16.gmra.mrb[36].mxu0 %vm1973_vm6, %v15700_v9 }
0x1a51   :  { %14628 = vmatprep.mubr.msk.bf16.mxu0 %vm15826_vm3, %v15825_v12 }
0x1a58   :  { %14629 = vmatmul.mubr.msk.bf16.gmra.mrb[40].mxu0 %vm1973_vm6, %v15701_v28 }
0x1a59   :  { %14632 = vmatprep.mubr.msk.bf16.mxu0 %vm15826_vm3, %v15825_v12 }
0x1a60   :  { %14633 = vmatmul.mubr.msk.bf16.gmra.mrb[44].mxu0 %vm1973_vm6, %v15702_v29 }
0x1a61   :  { %14636 = vmatprep.mubr.msk.bf16.mxu0 %vm15826_vm3, %v15825_v12 }
0x1a68   :  { %14637 = vmatmul.mubr.msk.bf16.gmra.mrb[48].mxu0 %vm1973_vm6, %v15703_v54 }
0x1a69   :  { %14648 = vmatprep.mubr.msk.bf16.mxu0 %vm15826_vm3, %v15825_v12 }
0x1afb   :  { %v19018_v18 = vpop.f32.mrb[16].mxu0 }
0x1afc   :  { %v14606_v5 = vpop.f32.mrb[17].mxu0 }
0x1afd   :  { %v19020_v33 = vpop.f32.mrb[18].mxu0 }
0x1afe   :  { %v11190_v45 = vpack.c.bf16 %v19020_v33, %v19018_v18  ;;  %v14607_v10 = vpop.f32.mrb[19].mxu0  ;;  %v15730_v18 = vld [vmem:[#allocation2 + $0xe8] sm:$0xff]  }
0x1aff   :  { %v15731_v33 = vld [vmem:[#allocation2 + $0xa8] sm:$0xff]  }
0x1b03   :  { %v11127_v30 = vpop.f32.mrb[20].mxu0 }
0x1b04   :  { %v14610_v8 = vpop.f32.mrb[21].mxu0 }
0x1b05   :  { %v11130_v31 = vpop.f32.mrb[22].mxu0 }
0x1b06   :  { %v11191_v52 = vpack.c.bf16 %v11130_v31, %v11127_v30  ;;  %v14611_v51 = vpop.f32.mrb[23].mxu0  ;;  %v15722_v30 = vld [vmem:[#allocation2 + $0xc8] sm:$0xff]  }
0x1b07   :  { %v15723_v31 = vld [vmem:[#allocation2 + $0x88] sm:$0xff]   ;;  %v15726_v51 = vld [vmem:[#allocation2 + $0xd8] sm:$0xff]  }
0x1b08   :  { %11200 = vrot.lane.b32.xlu1 %v11191_v52, %s15820_s18  ;;  %v15725_v52 = vld [vmem:[#allocation2 + $0x90] sm:$0xff]  }
0x1b0b   :  { %v11135_v32 = vpop.f32.mrb[24].mxu0 }
0x1b0c   :  { %v14614_v43 = vpop.f32.mrb[25].mxu0 }
0x1b0d   :  { %v11138_v37 = vpop.f32.mrb[26].mxu0  ;;  %v15729_v43 = vld [vmem:[#allocation2 + $0xa0] sm:$0xff]  }
0x1b0e   :  { %v11192_v61 = vpack.c.bf16 %v11138_v37, %v11135_v32  ;;  %v14615_v40 = vpop.f32.mrb[27].mxu0  ;;  %v15728_v32 = vld [vmem:[#allocation2 + $0xe0] sm:$0xff]   ;;  %v15734_v37 = vld [vmem:[#allocation2 + $0xb0] sm:$0xff]  }
0x1b0f   :  { %v15737_v40 = vld [vmem:[#allocation2 + $0xb8] sm:$0xff]  }
0x1b13   :  { %v11143_v4 = vpop.f32.mrb[28].mxu0 }
0x1b14   :  { %v14618_v39 = vpop.f32.mrb[29].mxu0 }
0x1b15   :  { %v11146_v23 = vpop.f32.mrb[30].mxu0 }
0x1b16   :  { %v11193_v20 = vpack.c.bf16 %v11146_v23, %v11143_v4  ;;  %v14619_v63 = vpop.f32.mrb[31].mxu0  ;;  %v15741_v4 = vld [vmem:[%s19230_s3 + $0x4] ss:$8 sps:$4 sm:$0xff]  }
0x1b18   :  { %11203 = vrot.lane.b32.xlu0 %v11193_v20, %s15820_s18  ;;  %v15739_v20 = vld [vmem:[%s19230_s3] ss:$8 sps:$4 sm:$0xff]  }
0x1b1b   :  { %v19026_v13 = vpop.f32.mrb[32].mxu0 }
0x1b1c   :  { %v14622_v3 = vpop.f32.mrb[33].mxu0 }
0x1b1d   :  { %v19028_v47 = vpop.f32.mrb[34].mxu0  ;;  %v15745_v3 = vld [vmem:[%s19230_s3 + $0x14] ss:$8 sps:$4 sm:$0xff]  }
0x1b1e   :  { %v11194_v44 = vpack.c.bf16 %v19028_v47, %v19026_v13  ;;  %v14623_v56 = vpop.f32.mrb[35].mxu0  ;;  %v15746_v13 = vld [vmem:[%s19230_s3 + $0x20] ss:$8 sps:$4 sm:$0xff]   ;;  %v15751_v47 = vld [vmem:[%s19230_s3 + $0x34] ss:$8 sps:$4 sm:$0xff]  }
0x1b23   :  { %v11159_v62 = vpop.f32.mrb[36].mxu0 }
0x1b24   :  { %v14626_v35 = vpop.f32.mrb[37].mxu0 }
0x1b25   :  { %v11162_v21 = vpop.f32.mrb[38].mxu0 }
0x1b26   :  { %v11195_v58 = vpack.c.bf16 %v11162_v21, %v11159_v62  ;;  %v14627_v25 = vpop.f32.mrb[39].mxu0  ;;  %v15748_v62 = vld [vmem:[%s19230_s3 + $0x24] ss:$8 sps:$4 sm:$0xff]  }
0x1b28   :  { %11206 = vrot.lane.b32.xlu1 %v11195_v58, %s15820_s18 }
0x1b2b   :  { %v19038_v9 = vpop.f32.mrb[40].mxu0 }
0x1b2c   :  { %11308 = vperm.xlu1 %14709, %v11300_v46   ;;  %v14630_v28 = vpop.f32.mrb[41].mxu0 }
0x1b2d   :  { %v19040_v29 = vpop.f32.mrb[42].mxu0 }
0x1b2e   :  { %v11196_v54 = vpack.c.bf16 %v19040_v29, %v19038_v9  ;;  %v14631_v14 = vpop.f32.mrb[43].mxu0 }
0x1b33   :  { %v11175_v26 = vpop.f32.mrb[44].mxu0 }
0x1b34   :  { %v14634_v34 = vpop.f32.mrb[45].mxu0 }
0x1b35   :  { %v11178_v60 = vpop.f32.mrb[46].mxu0 }
0x1b36   :  { %v11197_v53 = vpack.c.bf16 %v11178_v60, %v11175_v26  ;;  %v14635_v7 = vpop.f32.mrb[47].mxu0 }
0x1b38   :  { %11209 = vrot.lane.b32.xlu0 %v11197_v53, %s15820_s18 }
0x1b3b   :  { %v11183_v59 = vpop.f32.mrb[48].mxu0 }
0x1b3c   :  { %11303 = vperm.xlu0 %14708, %v11299_v57   ;;  %v14638_v50 = vpop.f32.mrb[49].mxu0 }
0x1b3d   :  { %v11186_v2 = vpop.f32.mrb[50].mxu0 }
0x1b3e   :  { %v11198_v5 = vpack.c.bf16 %v11186_v2, %v11183_v59  ;;  %v14639_v55 = vpop.f32.mrb[51].mxu0 }
0x1b40   :  { %14649 = vmatmul.mubr.msk.bf16.vlgmr.msra.gmra.mrb[52].mxu0 %vm2131_vm7, %v11198_v5 }
0x1b41   :  { %14656 = vmatprep.mubr.msk.bf16.mxu0 %vm15826_vm3, %v15825_v12 }
0x1b7a   :  { %v11201_v10 = vpop.permute.xlu1 %11200 }
0x1b7b   :  { %v11213_v8 = vsel %vm2131_vm7, %v11190_v45, %v11201_v10  ;;  %v15733_v45 = vld [vmem:[#allocation2 + $0xf0] sm:$0xff]  }
0x1b8a   :  { %v11204_v48 = vpop.permute.xlu0 %11203 }
0x1b8b   :  { %v11217_v6 = vsel %vm2131_vm7, %v11192_v61, %v11204_v48  ;;  %v15736_v61 = vld [vmem:[#allocation2 + $0xf8] sm:$0xff]  }
0x1b8c   :  { %11562 = vmatprep.mubr.bf16.mxu1 %v11217_v6 }
0x1b8d   :  { %11563 = vmatmul.mubr.bf16.vlgmr.msra.gmra.mrb[52].mxu1 %v11213_v8 }
0x1b8e   :  { %14271 = vmatpush3.bf16.msra.mxu1 %v15721_v27 }
0x1b8f   :  { %14272 = vmatprep.subr.bf16.mxu1 %v15722_v30 }
0x1b92   :  { %14273 = vmatpush3.bf16.msra.mxu1 %v15723_v31 }
0x1b93   :  { %14274 = vmatprep.subr.bf16.mxu1 %v15724_v15 }
0x1b96   :  { %14275 = vmatpush3.bf16.msra.mxu1 %v15725_v52 }
0x1b97   :  { %14276 = vmatprep.subr.bf16.mxu1 %v15726_v51 }
0x1b9a   :  { %14277 = vmatpush3.bf16.msra.mxu1 %v15727_v19  ;;  %v11207_v39 = vpop.permute.xlu1 %11206 }
0x1b9b   :  { %14278 = vmatprep.subr.bf16.mxu1 %v15728_v32  ;;  %v11221_v56 = vsel %vm2131_vm7, %v11194_v44, %v11207_v39  ;;  %v15749_v44 = vld [vmem:[%s19230_s3 + $0x30] ss:$8 sps:$4 sm:$0xff]  }
0x1b9e   :  { %14279 = vmatpush3.bf16.msra.mxu1 %v15729_v43 }
0x1b9f   :  { %14280 = vmatprep.subr.bf16.mxu1 %v15730_v18 }
0x1ba2   :  { %14281 = vmatpush3.bf16.msra.mxu1 %v15731_v33 }
0x1ba3   :  { %14282 = vmatprep.subr.bf16.mxu1 %v15733_v45 }
0x1ba6   :  { %14283 = vmatpush3.bf16.msra.mxu1 %v15734_v37 }
0x1ba7   :  { %14284 = vmatprep.subr.bf16.mxu1 %v15736_v61 }
0x1baa   :  { %14285 = vmatpush3.bf16.msra.mxu1 %v15737_v40  ;;  %v11210_v23 = vpop.permute.xlu0 %11209 }
0x1bab   :  { %v11225_v63 = vsel %vm2131_vm7, %v11196_v54, %v11210_v23  ;;  %11706 = vmatprep.subr.bf16.mxu1 %v15741_v4  ;;  %v11309_v53 = vpop.permute.xlu1 %11308 }
0x1bac   :  { %11603 = vmatprep.mubr.bf16.mxu1 %v11225_v63 }
0x1bad   :  { %11604 = vmatmul.mubr.bf16.vlgmr.msra.gmra.mrb[56].mxu1 %v11221_v56 }
0x1bae   :  { %11707 = vmatpush1.bf16.msra.mxu1 %v15739_v20  ;;  %11738 = vmatprep.mubr.bf16.mxu1 %v15823_v0 }
0x1baf   :  { %11708 = vmatprep.subr.bf16.mxu1 %v15745_v3 }
0x1bb2   :  { %11709 = vmatpush1.bf16.msra.mxu1 %v15743_v11 }
0x1bb3   :  { %11710 = vmatprep.subr.bf16.mxu1 %v15748_v62 }
0x1bb6   :  { %11711 = vmatpush1.bf16.msra.mxu1 %v15746_v13 }
0x1bb7   :  { %11712 = vmatprep.subr.bf16.mxu1 %v15751_v47 }
0x1bba   :  { %11713 = vmatpush1.bf16.msra.mxu1 %v15749_v44 }
0x1bbb   :  { %12139 = vmatprep.subr.bf16.mxu1 %v15823_v0  ;;  %v11304_v14 = vpop.permute.xlu0 %11303 }
0x1bbd   :  { %13197 = vmatmul.mubr.msk.bf16.vlgmr.msra.gmra.mrb[60].mxu1 %vm2131_vm7, %v18955_v22 }
0x1c13   :  { %v11646_v35 = vpop.f32.mrb[52].mxu0 }
0x1c14   :  { %v14650_v21 = vpop.f32.mrb[53].mxu0 }
0x1c15   :  { %v11649_v58 = vpop.f32.mrb[54].mxu0 }
0x1c16   :  { %v14651_v25 = vpop.f32.mrb[55].mxu0 }
0x1c60   :  { %v14264_v41 = vpop.f32.mrb[52].mxu1 }
0x1c61   :  { %v14265_v46 = vpop.f32.mrb[53].mxu1 }
0x1c62   :  { %v14266_v49 = vadd.f32 %v14265_v46, %v14264_v41  ;;  %v14267_v9 = vpop.f32.mrb[54].mxu1 }
0x1c63   :  { %v14268_v28 = vpop.f32.mrb[55].mxu1 }
0x1c64   :  { %v14269_v29 = vadd.f32 %v14268_v28, %v14267_v9  ;;  %v11565_v26 = vadd.f32 %v14266_v49, %v11304_v14 }
0x1c66   :  { %v11568_v57 = vadd.f32 %v14269_v29, %v11309_v53  ;;  %v15754_v53 = vld [vmem:[%s19238_s11 + $0x10] sm:$0xff]  }
0x1c80   :  { %v14286_v54 = vpop.f32.mrb[56].mxu1 }
0x1c81   :  { %v14287_v1 = vpop.f32.mrb[57].mxu1 }
0x1c82   :  { %v14288_v34 = vadd.f32 %v14287_v1, %v14286_v54  ;;  %v14289_v60 = vpop.f32.mrb[58].mxu1 }
0x1c83   :  { %v14290_v7 = vpop.f32.mrb[59].mxu1 }
0x1c84   :  { %v14291_v22 = vadd.f32 %v14290_v7, %v14289_v60  ;;  %v11606_v59 = vadd.f32 %v14288_v34, %v11565_v26  ;;  %v15752_v34 = vld [vmem:[%s19238_s11] sm:$0xff]   ;;  %v15753_v60 = vld [vmem:[%s19238_s11 + $0x8] sm:$0xff]   ;;  %v15755_v7 = vld [vmem:[%s19238_s11 + $0x18] sm:$0xff]  }
0x1c86   :  { %v11647_v50 = vadd.f32 %v11646_v35, %v11606_v59  ;;  %v11609_v2 = vadd.f32 %v14291_v22, %v11568_v57  ;;  %v15756_v57 = vld [vmem:[%s19238_s11 + $0x20] sm:$0xff]   ;;  %v15757_v22 = vld [vmem:[%s19238_s11 + $0x28] sm:$0xff]   ;;  %v15758_v59 = vld [vmem:[%s19238_s11 + $0x30] sm:$0xff]  }
0x1c88   :  { %v11650_v5 = vadd.f32 %v11649_v58, %v11609_v2  ;;  %v11653_v55 = vmax.f32 %v11647_v50, 0.0  ;;  %v15759_v50 = vld [vmem:[%s19238_s11 + $0x38] sm:$0xff]   ;;  %v15760_v2 = vld [vmem:[%s19238_s11 + $0x40] sm:$0xff]  }
0x1c8a   :  { %v11654_v10 = vmax.f32 %v11650_v5, 0.0 }
0x1c8c   :  { %v11827_v48 = vpack.c.bf16 %v11654_v10, %v11653_v55 }
0x1c8e   :  { %14653 = vmatpush3.bf16.msra.mxu0 %v11827_v48 }
0x1c8f   :  { %14654 = vmatprep.subr.bf16.mxu0 %v15825_v12 }
0x1c90   :  { %v11740_v27 = vpop.f32.mrb[60].mxu1 }
0x1c91   :  { %v11742_v6 = vpop.f32.mrb[61].mxu1 }
0x1c92   :  { %v11744_v30 = vpop.f32.mrb[62].mxu1 }
0x1c93   :  { %v11746_v8 = vpop.f32.mrb[63].mxu1  ;;  %v14820_v31 = vpack.i.bf16 %v11744_v30, %v11740_v27 }
0x1c95   :  { %14821 = vrot.lane.b32.xlu1 %v14820_v31, %s15827_s29  ;;  %14816 = vrot.lane.b32.xlu0 %v14820_v31, %s15828_s30 }
0x1c99   :  { %14831 = vrot.lane.b32.xlu1 %v14820_v31, %s15820_s18  ;;  %14826 = vrot.lane.b32.xlu0 %v14820_v31, %s15829_s14 }
0x1c9d   :  { %14841 = vrot.lane.b32.xlu1 %v14820_v31, %s15830_s15  ;;  %14836 = vrot.lane.b32.xlu0 %v14820_v31, %s15831_s2 }
0x1ca1   :  { %14846 = vrot.lane.b32.xlu0 %v14820_v31, %s15832_s26 }
0x1d07   :  { %v14822_v15 = vpop.permute.xlu1 %14821  ;;  %v14817_v52 = vpop.permute.xlu0 %14816 }
0x1d08   :  { %v14819_v51 = vunpack.i.h.bf16 %v14817_v52  ;;  %v14818_v19 = vunpack.i.l.bf16 %v14817_v52  ;;  %v14824_v18 = vunpack.i.h.bf16 %v14822_v15  ;;  %v14823_v33 = vunpack.i.l.bf16 %v14822_v15 }
0x1d0a   :  { %v11758_v32 = vmax.f32 %v11744_v30, %v14819_v51  ;;  %v11757_v43 = vmax.f32 %v11740_v27, %v14818_v19  ;;  %v15761_v30 = vld [vmem:[#allocation4] sm:$0xff]   ;;  %v15762_v51 = vld [vmem:[#allocation4 + $0x8] sm:$0xff]  }
0x1d0b   :  { %v14832_v45 = vpop.permute.xlu1 %14831  ;;  %v14827_v37 = vpop.permute.xlu0 %14826  ;;  %12140 = vmatpush1.bf16.msra.mxu1 %v15761_v30 }
0x1d0c   :  { %v14829_v61 = vunpack.i.h.bf16 %v14827_v37  ;;  %v14828_v40 = vunpack.i.l.bf16 %v14827_v37  ;;  %v11765_v4 = vmax.f32 %v11757_v43, %v14823_v33  ;;  %v11766_v39 = vmax.f32 %v11758_v32, %v14824_v18  ;;  %12141 = vmatprep.subr.bf16.mxu1 %v15823_v0  ;;  %v15763_v43 = vld [vmem:[#allocation4 + $0x10] sm:$0xff]   ;;  %v15764_v37 = vld [vmem:[#allocation4 + $0x18] sm:$0xff]  }
0x1d0d   :  { %v14834_v23 = vunpack.i.h.bf16 %v14832_v45  ;;  %v14833_v20 = vunpack.i.l.bf16 %v14832_v45 }
0x1d0e   :  { %v11773_v63 = vmax.f32 %v11765_v4, %v14828_v40  ;;  %v11774_v3 = vmax.f32 %v11766_v39, %v14829_v61  ;;  %v15765_v4 = vld [vmem:[#allocation4 + $0x20] sm:$0xff]  }
0x1d0f   :  { %v14837_v56 = vpop.permute.xlu0 %14836  ;;  %v14842_v11 = vpop.permute.xlu1 %14841  ;;  %12142 = vmatpush1.bf16.msra.mxu1 %v15762_v51 }
0x1d10   :  { %v14839_v62 = vunpack.i.h.bf16 %v14837_v56  ;;  %v14838_v13 = vunpack.i.l.bf16 %v14837_v56  ;;  %v11781_v47 = vmax.f32 %v11773_v63, %v14833_v20  ;;  %v11782_v44 = vmax.f32 %v11774_v3, %v14834_v23  ;;  %12143 = vmatprep.subr.bf16.mxu1 %v15823_v0  ;;  %v15766_v63 = vld [vmem:[#allocation4 + $0x28] sm:$0xff]  }
0x1d11   :  { %v14844_v35 = vunpack.i.h.bf16 %v14842_v11  ;;  %v14843_v21 = vunpack.i.l.bf16 %v14842_v11  ;;  %v15767_v11 = vld [vmem:[#allocation4 + $0x30] sm:$0xff]  }
0x1d12   :  { %v11789_v58 = vmax.f32 %v11781_v47, %v14838_v13  ;;  %v11790_v25 = vmax.f32 %v11782_v44, %v14839_v62  ;;  %v15768_v44 = vld [vmem:[#allocation4 + $0x38] sm:$0xff]  }
0x1d13   :  { %v14847_v41 = vpop.permute.xlu0 %14846  ;;  %12144 = vmatpush1.bf16.msra.mxu1 %v15763_v43 }
0x1d14   :  { %v14849_v46 = vunpack.i.h.bf16 %v14847_v41  ;;  %v14848_v49 = vunpack.i.l.bf16 %v14847_v41  ;;  %v11797_v9 = vmax.f32 %v11789_v58, %v14843_v21  ;;  %v11798_v28 = vmax.f32 %v11790_v25, %v14844_v35  ;;  %12145 = vmatprep.subr.bf16.mxu1 %v15823_v0  ;;  %v15769_v58 = vld [vmem:[#allocation4 + $0x40] sm:$0xff]  }
0x1d16   :  { %v11805_v29 = vmax.f32 %v11797_v9, %v14848_v49  ;;  %v11806_v54 = vmax.f32 %v11798_v28, %v14849_v46 }
0x1d17   :  { %12146 = vmatpush1.bf16.msra.mxu1 %v15764_v37 }
0x1d18   :  { %v11807_v14 = vmax.f32 %v11805_v29, %v11742_v6  ;;  %v11808_v1 = vmax.f32 %v11806_v54, %v11746_v8  ;;  %12147 = vmatprep.subr.bf16.mxu1 %v15823_v0  ;;  %v2996_v54 = vld [vmem:[%s19239_s12] sm:$0xff] }
0x1d1a   :  { %v11828_v26 = vpack.c.bf16 %v11808_v1, %v11807_v14 }
0x1d1b   :  { %12148 = vmatpush1.bf16.msra.mxu1 %v15765_v4 }
0x1d1c   :  { %14655 = vmatpush3.bf16.msra.mxu0 %v11828_v26  ;;  %12149 = vmatprep.subr.bf16.mxu1 %v15823_v0 }
0x1d1f   :  { %14657 = vmatmul.mubr.msk.bf16.vlgmr.msra.gmra.mrb[56].mxu0 %vm2795_vm8, %v15752_v34  ;;  %12150 = vmatpush1.bf16.msra.mxu1 %v15766_v63 }
0x1d20   :  { %14660 = vmatprep.mubr.msk.bf16.mxu0 %vm15826_vm3, %v15825_v12  ;;  %12151 = vmatprep.subr.bf16.mxu1 %v15823_v0 }
0x1d23   :  { %12152 = vmatpush1.bf16.msra.mxu1 %v15767_v11 }
0x1d24   :  { %12153 = vmatprep.subr.bf16.mxu1 %v15823_v0 }
0x1d27   :  { %14661 = vmatmul.mubr.msk.bf16.gmra.mrb[60].mxu0 %vm2795_vm8, %v15753_v60  ;;  %12154 = vmatpush1.bf16.msra.mxu1 %v15768_v44  ;;  %v2997_v60 = vld [vmem:[%s19239_s12 + $0x8] sm:$0xff] }
0x1d28   :  { %14664 = vmatprep.mubr.msk.bf16.mxu0 %vm15826_vm3, %v15825_v12  ;;  %12155 = vmatprep.subr.bf16.mxu1 %v15823_v0 }
0x1d2b   :  { %12156 = vmatpush1.bf16.msra.mxu1 %v15769_v58 }
0x1d2f   :  { %14665 = vmatmul.mubr.msk.bf16.gmra.mrb[64].mxu0 %vm2795_vm8, %v15754_v53 }
0x1d30   :  { %14668 = vmatprep.mubr.msk.bf16.mxu0 %vm15826_vm3, %v15825_v12 }
0x1d37   :  { %14669 = vmatmul.mubr.msk.bf16.gmra.mrb[68].mxu0 %vm2795_vm8, %v15755_v7 }
0x1d38   :  { %14672 = vmatprep.mubr.msk.bf16.mxu0 %vm15826_vm3, %v15825_v12 }
0x1d3f   :  { %14673 = vmatmul.mubr.msk.bf16.gmra.mrb[72].mxu0 %vm2795_vm8, %v15756_v57 }
0x1d40   :  { %14676 = vmatprep.mubr.msk.bf16.mxu0 %vm15826_vm3, %v15825_v12 }
0x1d47   :  { %14677 = vmatmul.mubr.msk.bf16.gmra.mrb[76].mxu0 %vm2795_vm8, %v15757_v22 }
0x1d48   :  { %14680 = vmatprep.mubr.msk.bf16.mxu0 %vm15826_vm3, %v15825_v12 }
0x1d4f   :  { %14681 = vmatmul.mubr.msk.bf16.gmra.mrb[80].mxu0 %vm2795_vm8, %v15758_v59 }
0x1d50   :  { %14684 = vmatprep.mubr.msk.bf16.mxu0 %vm15826_vm3, %v15825_v12 }
0x1d57   :  { %14685 = vmatmul.mubr.msk.bf16.gmra.mrb[84].mxu0 %vm2795_vm8, %v15759_v50 }
0x1d58   :  { %14688 = vmatprep.mubr.msk.bf16.mxu0 %vm15826_vm3, %v15825_v12 }
0x1d5f   :  { %14689 = vmatmul.mubr.msk.bf16.gmra.mrb[88].mxu0 %vm2795_vm8, %v15760_v2 }
0x1df2   :  { %v19151_v5 = vpop.f32.mrb[56].mxu0 }
0x1df3   :  { %v14658_v55 = vpop.f32.mrb[57].mxu0 }
0x1df4   :  { %v19153_v10 = vpop.f32.mrb[58].mxu0 }
0x1df5   :  { %v12006_v48 = vpack.c.bf16 %v19153_v10, %v19151_v5  ;;  %v14659_v27 = vpop.f32.mrb[59].mxu0 }
0x1dfa   :  { %v11943_v6 = vpop.f32.mrb[60].mxu0 }
0x1dfb   :  { %v14662_v8 = vpop.f32.mrb[61].mxu0 }
0x1dfc   :  { %v11946_v31 = vpop.f32.mrb[62].mxu0 }
0x1dfd   :  { %v12007_v12 = vpack.c.bf16 %v11946_v31, %v11943_v6  ;;  %v14663_v15 = vpop.f32.mrb[63].mxu0 }
0x1dff   :  { %12016 = vrot.lane.b32.xlu1 %v12007_v12, %s15832_s26 }
0x1e02   :  { %v11951_v52 = vpop.f32.mrb[64].mxu0 }
0x1e03   :  { %v14666_v19 = vpop.f32.mrb[65].mxu0 }
0x1e04   :  { %v11954_v32 = vpop.f32.mrb[66].mxu0 }
0x1e05   :  { %v12008_v18 = vpack.c.bf16 %v11954_v32, %v11951_v52  ;;  %v14667_v33 = vpop.f32.mrb[67].mxu0 }
0x1e07   :  { %12019 = vrot.lane.b32.xlu0 %v12008_v18, %s15830_s15 }
0x1e0a   :  { %v11959_v45 = vpop.f32.mrb[68].mxu0 }
0x1e0b   :  { %v14670_v61 = vpop.f32.mrb[69].mxu0 }
0x1e0c   :  { %v11962_v40 = vpop.f32.mrb[70].mxu0 }
0x1e0d   :  { %v12009_v39 = vpack.c.bf16 %v11962_v40, %v11959_v45  ;;  %v14671_v23 = vpop.f32.mrb[71].mxu0 }
0x1e0f   :  { %12022 = vrot.lane.b32.xlu1 %v12009_v39, %s15831_s2 }
0x1e12   :  { %v11967_v20 = vpop.f32.mrb[72].mxu0 }
0x1e13   :  { %v14674_v3 = vpop.f32.mrb[73].mxu0 }
0x1e14   :  { %v11970_v56 = vpop.f32.mrb[74].mxu0 }
0x1e15   :  { %v12010_v62 = vpack.c.bf16 %v11970_v56, %v11967_v20  ;;  %v14675_v13 = vpop.f32.mrb[75].mxu0 }
0x1e17   :  { %12025 = vrot.lane.b32.xlu0 %v12010_v62, %s15820_s18 }
0x1e1a   :  { %v11975_v47 = vpop.f32.mrb[76].mxu0 }
0x1e1b   :  { %v14678_v35 = vpop.f32.mrb[77].mxu0 }
0x1e1c   :  { %v11978_v21 = vpop.f32.mrb[78].mxu0 }
0x1e1d   :  { %v12011_v25 = vpack.c.bf16 %v11978_v21, %v11975_v47  ;;  %v14679_v41 = vpop.f32.mrb[79].mxu0 }
0x1e1f   :  { %12028 = vrot.lane.b32.xlu1 %v12011_v25, %s15829_s14 }
0x1e22   :  { %v11983_v46 = vpop.f32.mrb[80].mxu0 }
0x1e23   :  { %v14682_v49 = vpop.f32.mrb[81].mxu0 }
0x1e24   :  { %v11986_v9 = vpop.f32.mrb[82].mxu0 }
0x1e25   :  { %v12012_v28 = vpack.c.bf16 %v11986_v9, %v11983_v46  ;;  %v14683_v29 = vpop.f32.mrb[83].mxu0 }
0x1e27   :  { %12031 = vrot.lane.b32.xlu0 %v12012_v28, %s15827_s29 }
0x1e2a   :  { %v11991_v14 = vpop.f32.mrb[84].mxu0 }
0x1e2b   :  { %3000 = vperm.xlu0 %14708, %v2996_v54   ;;  %v14686_v1 = vpop.f32.mrb[85].mxu0 }
0x1e2c   :  { %v11994_v26 = vpop.f32.mrb[86].mxu0 }
0x1e2d   :  { %v12013_v34 = vpack.c.bf16 %v11994_v26, %v11991_v14  ;;  %v14687_v0 = vpop.f32.mrb[87].mxu0 }
0x1e2f   :  { %6024 = vperm.xlu0 %14708, %v2996_v54   ;;  %12034 = vrot.lane.b32.xlu1 %v12013_v34, %s15828_s30 }
0x1e32   :  { %v11999_v53 = vpop.f32.mrb[88].mxu0 }
0x1e33   :  { %9049 = vperm.xlu0 %14708, %v2996_v54   ;;  %3005 = vperm.xlu1 %14709, %v2997_v60   ;;  %v14690_v7 = vpop.f32.mrb[89].mxu0 }
0x1e34   :  { %v12002_v57 = vpop.f32.mrb[90].mxu0 }
0x1e35   :  { %v12014_v22 = vpack.c.bf16 %v12002_v57, %v11999_v53  ;;  %v14691_v59 = vpop.f32.mrb[91].mxu0 }
0x1e37   :  { %12074 = vperm.xlu0 %14708, %v2996_v54   ;;  %6029 = vperm.xlu1 %14709, %v2997_v60  }
0x1e38   :  { %13225 = vmatprep.mubr.msk.bf16.mxu1 %vm1864_vm4, %v12014_v22 }
0x1e3b   :  { %9054 = vperm.xlu1 %14709, %v2997_v60  }
0x1e3f   :  { %12079 = vperm.xlu1 %14709, %v2997_v60  }
0x1e71   :  { %v12017_v50 = vpop.permute.xlu1 %12016 }
0x1e72   :  { %v12038_v6 = vsel %vm1864_vm4, %v12006_v48, %v12017_v50 }
0x1e79   :  { %v12020_v2 = vpop.permute.xlu0 %12019 }
0x1e7a   :  { %v12040_v30 = vsel %vm2795_vm8, %v12038_v6, %v12020_v2 }
0x1e81   :  { %v12023_v55 = vpop.permute.xlu1 %12022 }
0x1e82   :  { %v12042_v31 = vsel %vm2963_vm9, %v12040_v30, %v12023_v55 }
0x1e89   :  { %v12026_v27 = vpop.permute.xlu0 %12025 }
0x1e8a   :  { %v12044_v15 = vsel %vm2131_vm7, %v12042_v31, %v12026_v27 }
0x1e91   :  { %v12029_v8 = vpop.permute.xlu1 %12028 }
0x1e92   :  { %v12046_v52 = vsel %vm2968_vm10, %v12044_v15, %v12029_v8 }
0x1e99   :  { %v12032_v12 = vpop.permute.xlu0 %12031 }
0x1e9a   :  { %v12048_v51 = vsel %vm2971_vm11, %v12046_v52, %v12032_v12 }
0x1ea1   :  { %v12035_v19 = vpop.permute.xlu1 %12034 }
0x1ea2   :  { %v12050_v32 = vsel %vm2974_vm12, %v12048_v51, %v12035_v19 }
0x1ea3   :  { %12172 = vmatmul.mubr.bf16.vlgmr.msra.gmra.mrb[64].mxu1 %v12050_v32 }
0x1eaa   :  { %v3001_v43 = vpop.permute.xlu0 %3000 }
0x1eab   :  { %v3100_v5 = vadd.f32 %v16920_v16, %v3001_v43 }
0x1ead   :  { %v3106_v10 = vmax.f32 %v3100_v5, 0.0 }
0x1eae   :  { %v6025_v48 = vpop.permute.xlu0 %6024 }
0x1eaf   :  { %3108 = vst.msk [vmem:[%s19240_s13] sm:$0xff] %vm1864_vm4, %v3106_v10  ;;  %v6124_v18 = vadd.f32 %v17730_v24, %v6025_v48 }
0x1eb1   :  { %v6130_v33 = vmax.f32 %v6124_v18, 0.0 }
0x1eb2   :  { %v9050_v45 = vpop.permute.xlu0 %9049  ;;  %v3006_v37 = vpop.permute.xlu1 %3005 }
0x1eb3   :  { %12706 = vst.msk [vmem:[%s19240_s13 + $0x10] sm:$0xff] %vm1864_vm4, %v6130_v33  ;;  %v9149_v61 = vadd.f32 %v18540_v17, %v9050_v45  ;;  %v3103_v16 = vadd.f32 %v16922_v38, %v3006_v37 }
0x1eb5   :  { %v9155_v40 = vmax.f32 %v9149_v61, 0.0  ;;  %v3107_v4 = vmax.f32 %v3103_v16, 0.0 }
0x1eb6   :  { %v6030_v39 = vpop.permute.xlu1 %6029  ;;  %v12075_v63 = vpop.permute.xlu0 %12074 }
0x1eb7   :  { %12966 = vst.msk [vmem:[%s19240_s13 + $0x20] sm:$0xff] %vm1864_vm4, %v9155_v40  ;;  %3109 = vst.msk [vmem:[%s19240_s13 + $0x8] sm:$0xff] %vm1864_vm4, %v3107_v4  ;;  %v6127_v24 = vadd.f32 %v17732_v42, %v6030_v39 }
0x1eb9   :  { %v6131_v23 = vmax.f32 %v6127_v24, 0.0 }
0x1eba   :  { %v9055_v20 = vpop.permute.xlu1 %9054 }
0x1ebb   :  { %12707 = vst.msk [vmem:[%s19240_s13 + $0x18] sm:$0xff] %vm1864_vm4, %v6131_v23  ;;  %v9152_v38 = vadd.f32 %v18542_v36, %v9055_v20 }
0x1ebd   :  { %v9156_v17 = vmax.f32 %v9152_v38, 0.0 }
0x1ebe   :  { %v12080_v42 = vpop.permute.xlu1 %12079 }
0x1ebf   :  { %12967 = vst.msk [vmem:[%s19240_s13 + $0x28] sm:$0xff] %vm1864_vm4, %v9156_v17 }
0x1f76   :  { %v12173_v3 = vpop.f32.mrb[64].mxu1 }
0x1f77   :  { %v12174_v56 = vadd.f32 %v12173_v3, %v12075_v63  ;;  %v12175_v11 = vpop.f32.mrb[65].mxu1 }
0x1f78   :  { %v12176_v62 = vpop.f32.mrb[66].mxu1 }
0x1f79   :  { %v12180_v13 = vmax.f32 %v12174_v56, 0.0  ;;  %v12177_v47 = vadd.f32 %v12176_v62, %v12080_v42  ;;  %v12178_v44 = vpop.f32.mrb[67].mxu1 }
0x1f7b   :  { %13226 = vst.msk [vmem:[%s19240_s13 + $0x30] sm:$0xff] %vm1864_vm4, %v12180_v13  ;;  %v12181_v36 = vmax.f32 %v12177_v47, 0.0 }
0x1f7d   :  { %13227 = vst.msk [vmem:[%s19240_s13 + $0x38] sm:$0xff] %vm1864_vm4, %v12181_v36 }
0x1f7e   :  { %12189 = vsyncpa [#allocation3], 1 }
0x1f7f   :  { %12190 = vsyncpa [#allocation5], 1 }

</bundles_post_ra>
